<compile_context>
chip_gen: v6e
topology: v6e:2x2x1
jax: 0.10.0
libtpu: 0.0.40
codegen_flags: <defaults>
</compile_context>

<pallas_src>
import jax
import jax.numpy as jnp
import numpy as np
from jax.experimental import pallas as pl
from jax.experimental.pallas import tpu as pltpu

GATE_TILE = 128          # per-gate channel tile -> weight slab width 4*128 = 512


# ---------------------------------------------------------------------------
# im2col glue (data rearrangement only; the matmul hot path lives in Pallas)
# ---------------------------------------------------------------------------
def _im2col(x_nhwc, ksize, stride, pad):
    B, H, W, C = x_nhwc.shape
    xp = jnp.pad(x_nhwc, ((0, 0), (pad, pad), (pad, pad), (0, 0)))
    Ho = (H + 2 * pad - ksize) // stride + 1
    Wo = (W + 2 * pad - ksize) // stride + 1
    cols = []
    for dy in range(ksize):
        for dx in range(ksize):
            cols.append(
                xp[:, dy:dy + stride * (Ho - 1) + 1:stride,
                      dx:dx + stride * (Wo - 1) + 1:stride, :])
    col = jnp.stack(cols, axis=3)                       # (B, Ho, Wo, k*k, C)
    return col.reshape(B * Ho * Wo, ksize * ksize * C), Ho, Wo


# ---------------------------------------------------------------------------
# Weight packing + int8 quantization (done once, outside the jitted forward)
# ---------------------------------------------------------------------------
def _quant_cols(w, n_levels=127):
    """Symmetric per-output-column int8 quantization of a (K, 4C) f32 matrix."""
    s = jnp.maximum(jnp.max(jnp.abs(w), axis=0, keepdims=True) / n_levels, 1e-12)
    q = jnp.clip(jnp.round(w / s), -n_levels, n_levels).astype(jnp.int8)
    return q, s.astype(jnp.float32)


def _permute_gate_cols(w2d, C, tc):
    """(K, 4C) gate-major [i|f|g|o] -> per channel tile j: [i_j|f_j|g_j|o_j]."""
    K = w2d.shape[0]
    return w2d.reshape(K, 4, C // tc, tc).transpose(0, 2, 1, 3).reshape(K, 4 * C)


def _unpermute_gate_cols(w2d, C, tc):
    K = w2d.shape[0]
    return w2d.reshape(K, C // tc, 4, tc).transpose(0, 2, 1, 3).reshape(K, 4 * C)


def _pack_convlstm_weights(w_ih_hwio, w_hh_hwio, tc=GATE_TILE):
    """Stack [W_ih ; W_hh] along K, reorder gate columns per channel tile, and
    quantize to int8 with separate per-column scales for the ih and hh rows.
    Returns (int8 (Kx+C, 4C), f32 scale (2, 4C))."""
    kh, kw, ci, four_c = w_ih_hwio.shape
    C = four_c // 4
    assert C % tc == 0, f"hidden channels {C} must be a multiple of tc={tc}"
    wih = _permute_gate_cols(
        w_ih_hwio.reshape(kh * kw * ci, 4 * C).astype(jnp.float32), C, tc)
    whh = _permute_gate_cols(
        w_hh_hwio.reshape(w_hh_hwio.shape[2], 4 * C).astype(jnp.float32), C, tc)
    q_ih, s_ih = _quant_cols(wih)
    q_hh, s_hh = _quant_cols(whh)
    w_q = jnp.concatenate([q_ih, q_hh], axis=0)          # (Kx + C, 4C) int8
    scale = jnp.concatenate([s_ih, s_hh], axis=0)        # (2, 4C) f32
    return w_q, scale


def prepare_params(params, tc=GATE_TILE):
    """Pre-pack all weights for the Pallas forward (call once, reuse per step)."""
    packed = {"w_conv": params["w_conv"]}                # tiny front conv stays f32
    for i in (1, 2, 3):
        w_q, scale = _pack_convlstm_weights(params[f"w_ih{i}"],
                                            params[f"w_hh{i}"], tc)
        packed[f"w{i}"] = w_q
        packed[f"s{i}"] = scale
    return packed


def _dequant_to_hwio(w_q, scale, kh, kw, ci, C, tc=GATE_TILE):
    """Inverse of _pack_convlstm_weights (for the validation reference)."""
    Kx = kh * kw * ci
    wq = w_q.astype(jnp.float32)
    wih = _unpermute_gate_cols(wq[:Kx] * scale[0:1], C, tc).reshape(kh, kw, ci, 4 * C)
    whh = _unpermute_gate_cols(wq[Kx:] * scale[1:2], C, tc).reshape(1, 1, C, 4 * C)
    return wih, whh


# ---------------------------------------------------------------------------
# Pallas kernel: one grid step = one channel tile (tc) of one ConvLSTM layer
# ---------------------------------------------------------------------------
def _convlstm_kernel(col_ref, h_ref, w_ref, scale_ref, c_ref, hy_ref, cy_ref):
    Kx = col_ref.shape[1]
    # Weight-only int8: dequantize each row group of the slab to f32 (overlaps
    # the next slab's DMA) and fold the per-column scales into the f32 gates.
    w_x = w_ref[:Kx, :].astype(jnp.float32)
    gates = jnp.dot(col_ref[...], w_x,
                    preferred_element_type=jnp.float32) * scale_ref[0:1, :]
    w_h = w_ref[Kx:, :].astype(jnp.float32)
    gates = gates + jnp.dot(h_ref[...], w_h,
                            preferred_element_type=jnp.float32) * scale_ref[1:2, :]
    # Slab columns are [i|f|g|o] for this channel tile -> the whole LSTM state
    # update is local to this grid step.  Everything stays f32 on the VPU.
    tc = cy_ref.shape[-1]
    i_g = jax.nn.sigmoid(gates[:, 0:tc])
    f_g = jax.nn.sigmoid(gates[:, tc:2 * tc])
    g_g = jnp.tanh(gates[:, 2 * tc:3 * tc])
    o_g = jax.nn.sigmoid(gates[:, 3 * tc:4 * tc])
    cy = f_g * c_ref[...] + i_g * g_g
    hy_ref[...] = o_g * jnp.tanh(cy)
    cy_ref[...] = cy


# ---------------------------------------------------------------------------
# Wrapper
# ---------------------------------------------------------------------------
def convlstm_pallas(x_nhwc, hidden, w_q, w_scale, tc=GATE_TILE):
    h, c = hidden                                        # NHWC f32, output res
    B = x_nhwc.shape[0]
    C = h.shape[-1]
    assert C % tc == 0, f"hidden channels {C} must be a multiple of tc={tc}"
    col, Ho, Wo = _im2col(x_nhwc, 3, 2, 1)
    M = B * Ho * Wo
    Kx = col.shape[1]
    Ktot = w_q.shape[0]
    assert Ktot == Kx + C
    num_tiles = C // tc                                  # >= 2 for every layer here

    hy, cy = pl.pallas_call(
        _convlstm_kernel,
        out_shape=(jax.ShapeDtypeStruct((M, C), jnp.float32),
                   jax.ShapeDtypeStruct((M, C), jnp.float32)),
        grid=(num_tiles,),
        in_specs=[
            pl.BlockSpec((M, Kx), lambda j: (0, 0)),        # resident im2col(x), f32
            pl.BlockSpec((M, C), lambda j: (0, 0)),         # resident hidden state, f32
            pl.BlockSpec((Ktot, 4 * tc), lambda j: (0, j)), # streamed int8 weight slab
            pl.BlockSpec((2, 4 * tc), lambda j: (0, j)),    # per-column dequant scales
            pl.BlockSpec((M, tc), lambda j: (0, j)),        # cell-state tile, f32
        ],
        out_specs=(pl.BlockSpec((M, tc), lambda j: (0, j)),
                   pl.BlockSpec((M, tc), lambda j: (0, j))),
        compiler_params=pltpu.CompilerParams(
            dimension_semantics=("parallel",),
            # f32 dequant temporaries (~10.5 MiB on layer 3) + double-buffered
            # int8 slabs exceed v5e's 16 MiB scoped default; 40 MiB is well
            # inside v7x's 64 MiB physical VMEM.
            vmem_limit_bytes=40 * 1024 * 1024),
    )(col, h.reshape(M, C), w_q, w_scale, c.reshape(M, C))
    return hy.reshape(B, Ho, Wo, C), cy.reshape(B, Ho, Wo, C)


def encoder_forward(packed, x, h_1, h_2, h_3):
    # Front conv (3->64, k3 s2 p1, no bias): ~0.4 MFLOP on ~7 KB -- left to XLA
    # per perf review (a dedicated pallas_call launch costs more than the work).
    e = jax.lax.conv_general_dilated(
        x, packed["w_conv"], (2, 2), [(1, 1), (1, 1)],
        dimension_numbers=("NHWC", "HWIO", "NHWC"))
    h_1 = convlstm_pallas(e,      h_1, packed["w1"], packed["s1"])
    h_2 = convlstm_pallas(h_1[0], h_2, packed["w2"], packed["s2"])
    h_3 = convlstm_pallas(h_2[0], h_3, packed["w3"], packed["s3"])
    return (h_3[0], h_1, h_2, h_3)


# ---------------------------------------------------------------------------
# Pure-JAX (XLA conv, f32) reference for validation
# ---------------------------------------------------------------------------
def _conv_ref(x, w, stride, pad):
    return jax.lax.conv_general_dilated(
        x, w, (stride, stride), [(pad, pad), (pad, pad)],
        dimension_numbers=("NHWC", "HWIO", "NHWC"))


def _convlstm_ref(x, hidden, w_ih, w_hh):
    h, c = hidden
    gates = _conv_ref(x, w_ih, 2, 1) + _conv_ref(h, w_hh, 1, 0)
    C = h.shape[-1]
    i_g = jax.nn.sigmoid(gates[..., 0:C])
    f_g = jax.nn.sigmoid(gates[..., C:2 * C])
    g_g = jnp.tanh(gates[..., 2 * C:3 * C])
    o_g = jax.nn.sigmoid(gates[..., 3 * C:4 * C])
    cy = f_g * c + i_g * g_g
    hy = o_g * jnp.tanh(cy)
    return hy, cy


def encoder_ref(params, x, h_1, h_2, h_3):
    e = _conv_ref(x, params["w_conv"], 2, 1)
    h_1 = _convlstm_ref(e,      h_1, params["w_ih1"], params["w_hh1"])
    h_2 = _convlstm_ref(h_1[0], h_2, params["w_ih2"], params["w_hh2"])
    h_3 = _convlstm_ref(h_2[0], h_3, params["w_ih3"], params["w_hh3"])
    return (h_3[0], h_1, h_2, h_3)


# ---------------------------------------------------------------------------
# Deterministic synthetic parameters (shapes from Encoder.__init__)
# ---------------------------------------------------------------------------
def init_params(key):
    ks = jax.random.split(key, 7)

    def w(k, shape):  # HWIO, fan-in scaled
        fan_in = shape[0] * shape[1] * shape[2]
        return jax.random.normal(k, shape, jnp.float32) / np.sqrt(fan_in)

    return dict(
        w_conv=w(ks[0], (3, 3, 3, 64)),
        w_ih1=w(ks[1], (3, 3, 64, 4 * 256)),  w_hh1=w(ks[2], (1, 1, 256, 4 * 256)),
        w_ih2=w(ks[3], (3, 3, 256, 4 * 512)), w_hh2=w(ks[4], (1, 1, 512, 4 * 512)),
        w_ih3=w(ks[5], (3, 3, 512, 4 * 512)), w_hh3=w(ks[6], (1, 1, 512, 4 * 512)),
    )


if __name__ == "__main__":
    key = jax.random.PRNGKey(0)
    kp, kx, kh = jax.random.split(key, 3)
    params = init_params(kp)
    packed = prepare_params(params)          # int8 gate weights + f32 scales

    B, H, W = 2, 16, 16                      # NHWC input (PyTorch NCHW: (2, 3, 16, 16))
    x = jax.random.normal(kx, (B, H, W, 3), jnp.float32)

    hk = jax.random.split(kh, 6)
    h_1 = (0.1 * jax.random.normal(hk[0], (B, 4, 4, 256), jnp.float32),
           0.1 * jax.random.normal(hk[1], (B, 4, 4, 256), jnp.float32))
    h_2 = (0.1 * jax.random.normal(hk[2], (B, 2, 2, 512), jnp.float32),
           0.1 * jax.random.normal(hk[3], (B, 2, 2, 512), jnp.float32))
    h_3 = (0.1 * jax.random.normal(hk[4], (B, 1, 1, 512), jnp.float32),
           0.1 * jax.random.normal(hk[5], (B, 1, 1, 512), jnp.float32))

    out = jax.jit(encoder_forward)(packed, x, h_1, h_2, h_3)
    out = jax.block_until_ready(out)

    # Check 1 (kernel correctness): compare against a pure-XLA f32 reference
    # that uses the SAME int8-dequantized weights -> tight tolerance.
    deq = dict(params)
    dims = {1: (3, 3, 64, 256), 2: (3, 3, 256, 512), 3: (3, 3, 512, 512)}
    for i, (kh_, kw_, ci_, C_) in dims.items():
        wih_d, whh_d = _dequant_to_hwio(packed[f"w{i}"], packed[f"s{i}"],
                                        kh_, kw_, ci_, C_)
        deq[f"w_ih{i}"], deq[f"w_hh{i}"] = wih_d, whh_d
    ref_q = encoder_ref(deq, x, h_1, h_2, h_3)
    for a, b in zip(jax.tree_util.tree_leaves(out), jax.tree_util.tree_leaves(ref_q)):
        np.testing.assert_allclose(np.asarray(a), np.asarray(b), atol=2e-2, rtol=2e-2)

    # Check 2 (end-to-end incl. weight-only int8 quantization error): compare
    # against the original f32-weight reference with a looser tolerance.
    ref = encoder_ref(params, x, h_1, h_2, h_3)
    for a, b in zip(jax.tree_util.tree_leaves(out), jax.tree_util.tree_leaves(ref)):
        np.testing.assert_allclose(np.asarray(a), np.asarray(b), atol=6e-2, rtol=6e-2)

    print("KERNEL_OK")
</pallas_src>

<mosaic_0001>
module attributes {stable_mosaic.version = 11 : i64} {
  func.func @_convlstm_kernel(%arg0: i32, %arg1: memref<32x576xf32, #tpu.memory_space<vmem>>, %arg2: memref<32x256xf32, #tpu.memory_space<vmem>>, %arg3: memref<832x512xi8, #tpu.memory_space<vmem>>, %arg4: memref<2x512xf32, #tpu.memory_space<vmem>>, %arg5: memref<32x128xf32, #tpu.memory_space<vmem>>, %arg6: memref<32x128xf32, #tpu.memory_space<vmem>>, %arg7: memref<32x128xf32, #tpu.memory_space<vmem>>) attributes {dimension_semantics = [#tpu.dimension_semantics<parallel>], iteration_bounds = array<i64: 2>, scalar_prefetch = 0 : i64, scratch_operands = 0 : i64, tpu.core_type = #tpu.core_type<tc>, window_params = [{pipeline_mode = #tpu.pipeline_mode<synchronous>, transform_indices = @transform_0, window_bounds = array<i64: 32, 576>}, {pipeline_mode = #tpu.pipeline_mode<synchronous>, transform_indices = @transform_1, window_bounds = array<i64: 32, 256>}, {transform_indices = @transform_2, window_bounds = array<i64: 832, 512>}, {transform_indices = @transform_3, window_bounds = array<i64: 2, 512>}, {transform_indices = @transform_4, window_bounds = array<i64: 32, 128>}, {transform_indices = @transform_5, window_bounds = array<i64: 32, 128>}, {transform_indices = @transform_6, window_bounds = array<i64: 32, 128>}]} {
    %c0 = arith.constant 0 : index
    %c0_0 = arith.constant 0 : index
    %0 = vector.load %arg3[%c0, %c0_0] : memref<832x512xi8, #tpu.memory_space<vmem>>, vector<576x512xi8>
    %1 = arith.sitofp %0 : vector<576x512xi8> to vector<576x512xf32>
    %c0_1 = arith.constant 0 : index
    %c0_2 = arith.constant 0 : index
    %2 = vector.load %arg1[%c0_1, %c0_2] : memref<32x576xf32, #tpu.memory_space<vmem>>, vector<32x576xf32>
    %cst = arith.constant dense<0.000000e+00> : vector<32x512xf32>
    %3 = tpu.matmul %2, %1, %cst {dimension_numbers = #tpu.dot_dimension_numbers<[1], [0], [0], [1], [0, 0, 1, 1], [], []>} : vector<32x576xf32>, vector<576x512xf32>, vector<32x512xf32> -> vector<32x512xf32>
    %c0_3 = arith.constant 0 : index
    %c0_4 = arith.constant 0 : index
    %4 = vector.load %arg4[%c0_3, %c0_4] : memref<2x512xf32, #tpu.memory_space<vmem>>, vector<1x512xf32>
    %5 = vector.broadcast %4 : vector<1x512xf32> to vector<32x512xf32>
    %6 = arith.mulf %3, %5 : vector<32x512xf32>
    %c576 = arith.constant 576 : index
    %c0_5 = arith.constant 0 : index
    %7 = vector.load %arg3[%c576, %c0_5] : memref<832x512xi8, #tpu.memory_space<vmem>>, vector<256x512xi8>
    %8 = arith.sitofp %7 : vector<256x512xi8> to vector<256x512xf32>
    %c0_6 = arith.constant 0 : index
    %c0_7 = arith.constant 0 : index
    %9 = vector.load %arg2[%c0_6, %c0_7] : memref<32x256xf32, #tpu.memory_space<vmem>>, vector<32x256xf32>
    %cst_8 = arith.constant dense<0.000000e+00> : vector<32x512xf32>
    %10 = tpu.matmul %9, %8, %cst_8 {dimension_numbers = #tpu.dot_dimension_numbers<[1], [0], [0], [1], [0, 0, 1, 1], [], []>} : vector<32x256xf32>, vector<256x512xf32>, vector<32x512xf32> -> vector<32x512xf32>
    %c1 = arith.constant 1 : index
    %c0_9 = arith.constant 0 : index
    %11 = vector.load %arg4[%c1, %c0_9] : memref<2x512xf32, #tpu.memory_space<vmem>>, vector<1x512xf32>
    %12 = vector.broadcast %11 : vector<1x512xf32> to vector<32x512xf32>
    %13 = arith.mulf %10, %12 : vector<32x512xf32>
    %14 = arith.addf %6, %13 : vector<32x512xf32>
    %15 = vector.extract_strided_slice %14 {offsets = [0, 0], sizes = [32, 128], strides = [1, 1]} : vector<32x512xf32> to vector<32x128xf32>
    %16 = arith.negf %15 : vector<32x128xf32>
    %17 = math.exp %16 : vector<32x128xf32>
    %cst_10 = arith.constant 1.000000e+00 : f32
    %18 = vector.broadcast %cst_10 : f32 to vector<32x128xf32>
    %19 = arith.addf %18, %17 : vector<32x128xf32>
    %20 = arith.divf %18, %19 : vector<32x128xf32>
    %21 = vector.extract_strided_slice %14 {offsets = [0, 128], sizes = [32, 128], strides = [1, 1]} : vector<32x512xf32> to vector<32x128xf32>
    %22 = arith.negf %21 : vector<32x128xf32>
    %23 = math.exp %22 : vector<32x128xf32>
    %cst_11 = arith.constant 1.000000e+00 : f32
    %24 = vector.broadcast %cst_11 : f32 to vector<32x128xf32>
    %25 = arith.addf %24, %23 : vector<32x128xf32>
    %26 = arith.divf %24, %25 : vector<32x128xf32>
    %27 = vector.extract_strided_slice %14 {offsets = [0, 256], sizes = [32, 128], strides = [1, 1]} : vector<32x512xf32> to vector<32x128xf32>
    %28 = math.tanh %27 : vector<32x128xf32>
    %29 = vector.extract_strided_slice %14 {offsets = [0, 384], sizes = [32, 128], strides = [1, 1]} : vector<32x512xf32> to vector<32x128xf32>
    %30 = arith.negf %29 : vector<32x128xf32>
    %31 = math.exp %30 : vector<32x128xf32>
    %cst_12 = arith.constant 1.000000e+00 : f32
    %32 = vector.broadcast %cst_12 : f32 to vector<32x128xf32>
    %33 = arith.addf %32, %31 : vector<32x128xf32>
    %34 = arith.divf %32, %33 : vector<32x128xf32>
    %c0_13 = arith.constant 0 : index
    %c0_14 = arith.constant 0 : index
    %35 = vector.load %arg5[%c0_13, %c0_14] : memref<32x128xf32, #tpu.memory_space<vmem>>, vector<32x128xf32>
    %36 = arith.mulf %26, %35 : vector<32x128xf32>
    %37 = arith.mulf %20, %28 : vector<32x128xf32>
    %38 = arith.addf %36, %37 : vector<32x128xf32>
    %39 = math.tanh %38 : vector<32x128xf32>
    %40 = arith.mulf %34, %39 : vector<32x128xf32>
    %c0_15 = arith.constant 0 : index
    %c0_16 = arith.constant 0 : index
    %41 = vector.load %arg6[%c0_15, %c0_16] : memref<32x128xf32, #tpu.memory_space<vmem>>, vector<32x128xf32>
    tpu.vector_store %arg6[%c0_15, %c0_16], %40 {strides = array<i32>} : memref<32x128xf32, #tpu.memory_space<vmem>>, vector<32x128xf32>,
    %c0_17 = arith.constant 0 : index
    %c0_18 = arith.constant 0 : index
    %42 = vector.load %arg7[%c0_17, %c0_18] : memref<32x128xf32, #tpu.memory_space<vmem>>, vector<32x128xf32>
    tpu.vector_store %arg7[%c0_17, %c0_18], %38 {strides = array<i32>} : memref<32x128xf32, #tpu.memory_space<vmem>>, vector<32x128xf32>,
    return
  }
  func.func @transform_0(%arg0: i32) -> (i32, i32) {
    %c0_i32 = arith.constant 0 : i32
    %c0_i32_0 = arith.constant 0 : i32
    %c0_i32_1 = arith.constant 0 : i32
    return %c0_i32, %c0_i32_0 : i32, i32
  }
  func.func @transform_1(%arg0: i32) -> (i32, i32) {
    %c0_i32 = arith.constant 0 : i32
    %c0_i32_0 = arith.constant 0 : i32
    %c0_i32_1 = arith.constant 0 : i32
    return %c0_i32, %c0_i32_0 : i32, i32
  }
  func.func @transform_2(%arg0: i32) -> (i32, i32) {
    %c0_i32 = arith.constant 0 : i32
    %c0_i32_0 = arith.constant 0 : i32
    return %c0_i32, %arg0 : i32, i32
  }
  func.func @transform_3(%arg0: i32) -> (i32, i32) {
    %c0_i32 = arith.constant 0 : i32
    %c0_i32_0 = arith.constant 0 : i32
    return %c0_i32, %arg0 : i32, i32
  }
  func.func @transform_4(%arg0: i32) -> (i32, i32) {
    %c0_i32 = arith.constant 0 : i32
    %c0_i32_0 = arith.constant 0 : i32
    return %c0_i32, %arg0 : i32, i32
  }
  func.func @transform_5(%arg0: i32) -> (i32, i32) {
    %c0_i32 = arith.constant 0 : i32
    %c0_i32_0 = arith.constant 0 : i32
    return %c0_i32, %arg0 : i32, i32
  }
  func.func @transform_6(%arg0: i32) -> (i32, i32) {
    %c0_i32 = arith.constant 0 : i32
    %c0_i32_0 = arith.constant 0 : i32
    return %c0_i32, %arg0 : i32, i32
  }
}

module attributes {stable_mosaic.version = 11 : i64} {
  func.func @_convlstm_kernel(%arg0: i32, %arg1: memref<8x2304xf32, #tpu.memory_space<vmem>>, %arg2: memref<8x512xf32, #tpu.memory_space<vmem>>, %arg3: memref<2816x512xi8, #tpu.memory_space<vmem>>, %arg4: memref<2x512xf32, #tpu.memory_space<vmem>>, %arg5: memref<8x128xf32, #tpu.memory_space<vmem>>, %arg6: memref<8x128xf32, #tpu.memory_space<vmem>>, %arg7: memref<8x128xf32, #tpu.memory_space<vmem>>) attributes {dimension_semantics = [#tpu.dimension_semantics<parallel>], iteration_bounds = array<i64: 4>, scalar_prefetch = 0 : i64, scratch_operands = 0 : i64, tpu.core_type = #tpu.core_type<tc>, window_params = [{pipeline_mode = #tpu.pipeline_mode<synchronous>, transform_indices = @transform_0, window_bounds = array<i64: 8, 2304>}, {pipeline_mode = #tpu.pipeline_mode<synchronous>, transform_indices = @transform_1, window_bounds = array<i64: 8, 512>}, {transform_indices = @transform_2, window_bounds = array<i64: 2816, 512>}, {transform_indices = @transform_3, window_bounds = array<i64: 2, 512>}, {transform_indices = @transform_4, window_bounds = array<i64: 8, 128>}, {transform_indices = @transform_5, window_bounds = array<i64: 8, 128>}, {transform_indices = @transform_6, window_bounds = array<i64: 8, 128>}]} {
    %c0 = arith.constant 0 : index
    %c0_0 = arith.constant 0 : index
    %0 = vector.load %arg3[%c0, %c0_0] : memref<2816x512xi8, #tpu.memory_space<vmem>>, vector<2304x512xi8>
    %1 = arith.sitofp %0 : vector<2304x512xi8> to vector<2304x512xf32>
    %c0_1 = arith.constant 0 : index
    %c0_2 = arith.constant 0 : index
    %2 = vector.load %arg1[%c0_1, %c0_2] : memref<8x2304xf32, #tpu.memory_space<vmem>>, vector<8x2304xf32>
    %cst = arith.constant dense<0.000000e+00> : vector<8x512xf32>
    %3 = tpu.matmul %2, %1, %cst {dimension_numbers = #tpu.dot_dimension_numbers<[1], [0], [0], [1], [0, 0, 1, 1], [], []>} : vector<8x2304xf32>, vector<2304x512xf32>, vector<8x512xf32> -> vector<8x512xf32>
    %c0_3 = arith.constant 0 : index
    %c0_4 = arith.constant 0 : index
    %4 = vector.load %arg4[%c0_3, %c0_4] : memref<2x512xf32, #tpu.memory_space<vmem>>, vector<1x512xf32>
    %5 = vector.broadcast %4 : vector<1x512xf32> to vector<8x512xf32>
    %6 = arith.mulf %3, %5 : vector<8x512xf32>
    %c2304 = arith.constant 2304 : index
    %c0_5 = arith.constant 0 : index
    %7 = vector.load %arg3[%c2304, %c0_5] : memref<2816x512xi8, #tpu.memory_space<vmem>>, vector<512x512xi8>
    %8 = arith.sitofp %7 : vector<512x512xi8> to vector<512x512xf32>
    %c0_6 = arith.constant 0 : index
    %c0_7 = arith.constant 0 : index
    %9 = vector.load %arg2[%c0_6, %c0_7] : memref<8x512xf32, #tpu.memory_space<vmem>>, vector<8x512xf32>
    %cst_8 = arith.constant dense<0.000000e+00> : vector<8x512xf32>
    %10 = tpu.matmul %9, %8, %cst_8 {dimension_numbers = #tpu.dot_dimension_numbers<[1], [0], [0], [1], [0, 0, 1, 1], [], []>} : vector<8x512xf32>, vector<512x512xf32>, vector<8x512xf32> -> vector<8x512xf32>
    %c1 = arith.constant 1 : index
    %c0_9 = arith.constant 0 : index
    %11 = vector.load %arg4[%c1, %c0_9] : memref<2x512xf32, #tpu.memory_space<vmem>>, vector<1x512xf32>
    %12 = vector.broadcast %11 : vector<1x512xf32> to vector<8x512xf32>
    %13 = arith.mulf %10, %12 : vector<8x512xf32>
    %14 = arith.addf %6, %13 : vector<8x512xf32>
    %15 = vector.extract_strided_slice %14 {offsets = [0, 0], sizes = [8, 128], strides = [1, 1]} : vector<8x512xf32> to vector<8x128xf32>
    %16 = arith.negf %15 : vector<8x128xf32>
    %17 = math.exp %16 : vector<8x128xf32>
    %cst_10 = arith.constant 1.000000e+00 : f32
    %18 = vector.broadcast %cst_10 : f32 to vector<8x128xf32>
    %19 = arith.addf %18, %17 : vector<8x128xf32>
    %20 = arith.divf %18, %19 : vector<8x128xf32>
    %21 = vector.extract_strided_slice %14 {offsets = [0, 128], sizes = [8, 128], strides = [1, 1]} : vector<8x512xf32> to vector<8x128xf32>
    %22 = arith.negf %21 : vector<8x128xf32>
    %23 = math.exp %22 : vector<8x128xf32>
    %cst_11 = arith.constant 1.000000e+00 : f32
    %24 = vector.broadcast %cst_11 : f32 to vector<8x128xf32>
    %25 = arith.addf %24, %23 : vector<8x128xf32>
    %26 = arith.divf %24, %25 : vector<8x128xf32>
    %27 = vector.extract_strided_slice %14 {offsets = [0, 256], sizes = [8, 128], strides = [1, 1]} : vector<8x512xf32> to vector<8x128xf32>
    %28 = math.tanh %27 : vector<8x128xf32>
    %29 = vector.extract_strided_slice %14 {offsets = [0, 384], sizes = [8, 128], strides = [1, 1]} : vector<8x512xf32> to vector<8x128xf32>
    %30 = arith.negf %29 : vector<8x128xf32>
    %31 = math.exp %30 : vector<8x128xf32>
    %cst_12 = arith.constant 1.000000e+00 : f32
    %32 = vector.broadcast %cst_12 : f32 to vector<8x128xf32>
    %33 = arith.addf %32, %31 : vector<8x128xf32>
    %34 = arith.divf %32, %33 : vector<8x128xf32>
    %c0_13 = arith.constant 0 : index
    %c0_14 = arith.constant 0 : index
    %35 = vector.load %arg5[%c0_13, %c0_14] : memref<8x128xf32, #tpu.memory_space<vmem>>, vector<8x128xf32>
    %36 = arith.mulf %26, %35 : vector<8x128xf32>
    %37 = arith.mulf %20, %28 : vector<8x128xf32>
    %38 = arith.addf %36, %37 : vector<8x128xf32>
    %39 = math.tanh %38 : vector<8x128xf32>
    %40 = arith.mulf %34, %39 : vector<8x128xf32>
    %c0_15 = arith.constant 0 : index
    %c0_16 = arith.constant 0 : index
    %41 = vector.load %arg6[%c0_15, %c0_16] : memref<8x128xf32, #tpu.memory_space<vmem>>, vector<8x128xf32>
    tpu.vector_store %arg6[%c0_15, %c0_16], %40 {strides = array<i32>} : memref<8x128xf32, #tpu.memory_space<vmem>>, vector<8x128xf32>,
    %c0_17 = arith.constant 0 : index
    %c0_18 = arith.constant 0 : index
    %42 = vector.load %arg7[%c0_17, %c0_18] : memref<8x128xf32, #tpu.memory_space<vmem>>, vector<8x128xf32>
    tpu.vector_store %arg7[%c0_17, %c0_18], %38 {strides = array<i32>} : memref<8x128xf32, #tpu.memory_space<vmem>>, vector<8x128xf32>,
    return
  }
  func.func @transform_0(%arg0: i32) -> (i32, i32) {
    %c0_i32 = arith.constant 0 : i32
    %c0_i32_0 = arith.constant 0 : i32
    %c0_i32_1 = arith.constant 0 : i32
    return %c0_i32, %c0_i32_0 : i32, i32
  }
  func.func @transform_1(%arg0: i32) -> (i32, i32) {
    %c0_i32 = arith.constant 0 : i32
    %c0_i32_0 = arith.constant 0 : i32
    %c0_i32_1 = arith.constant 0 : i32
    return %c0_i32, %c0_i32_0 : i32, i32
  }
  func.func @transform_2(%arg0: i32) -> (i32, i32) {
    %c0_i32 = arith.constant 0 : i32
    %c0_i32_0 = arith.constant 0 : i32
    return %c0_i32, %arg0 : i32, i32
  }
  func.func @transform_3(%arg0: i32) -> (i32, i32) {
    %c0_i32 = arith.constant 0 : i32
    %c0_i32_0 = arith.constant 0 : i32
    return %c0_i32, %arg0 : i32, i32
  }
  func.func @transform_4(%arg0: i32) -> (i32, i32) {
    %c0_i32 = arith.constant 0 : i32
    %c0_i32_0 = arith.constant 0 : i32
    return %c0_i32, %arg0 : i32, i32
  }
  func.func @transform_5(%arg0: i32) -> (i32, i32) {
    %c0_i32 = arith.constant 0 : i32
    %c0_i32_0 = arith.constant 0 : i32
    return %c0_i32, %arg0 : i32, i32
  }
  func.func @transform_6(%arg0: i32) -> (i32, i32) {
    %c0_i32 = arith.constant 0 : i32
    %c0_i32_0 = arith.constant 0 : i32
    return %c0_i32, %arg0 : i32, i32
  }
}

module attributes {stable_mosaic.version = 11 : i64} {
  func.func @_convlstm_kernel(%arg0: i32, %arg1: memref<2x4608xf32, #tpu.memory_space<vmem>>, %arg2: memref<2x512xf32, #tpu.memory_space<vmem>>, %arg3: memref<5120x512xi8, #tpu.memory_space<vmem>>, %arg4: memref<2x512xf32, #tpu.memory_space<vmem>>, %arg5: memref<2x128xf32, #tpu.memory_space<vmem>>, %arg6: memref<2x128xf32, #tpu.memory_space<vmem>>, %arg7: memref<2x128xf32, #tpu.memory_space<vmem>>) attributes {dimension_semantics = [#tpu.dimension_semantics<parallel>], iteration_bounds = array<i64: 4>, scalar_prefetch = 0 : i64, scratch_operands = 0 : i64, tpu.core_type = #tpu.core_type<tc>, window_params = [{pipeline_mode = #tpu.pipeline_mode<synchronous>, transform_indices = @transform_0, window_bounds = array<i64: 2, 4608>}, {pipeline_mode = #tpu.pipeline_mode<synchronous>, transform_indices = @transform_1, window_bounds = array<i64: 2, 512>}, {transform_indices = @transform_2, window_bounds = array<i64: 5120, 512>}, {transform_indices = @transform_3, window_bounds = array<i64: 2, 512>}, {transform_indices = @transform_4, window_bounds = array<i64: 2, 128>}, {transform_indices = @transform_5, window_bounds = array<i64: 2, 128>}, {transform_indices = @transform_6, window_bounds = array<i64: 2, 128>}]} {
    %c0 = arith.constant 0 : index
    %c0_0 = arith.constant 0 : index
    %0 = vector.load %arg3[%c0, %c0_0] : memref<5120x512xi8, #tpu.memory_space<vmem>>, vector<4608x512xi8>
    %1 = arith.sitofp %0 : vector<4608x512xi8> to vector<4608x512xf32>
    %c0_1 = arith.constant 0 : index
    %c0_2 = arith.constant 0 : index
    %2 = vector.load %arg1[%c0_1, %c0_2] : memref<2x4608xf32, #tpu.memory_space<vmem>>, vector<2x4608xf32>
    %cst = arith.constant dense<0.000000e+00> : vector<2x512xf32>
    %3 = tpu.matmul %2, %1, %cst {dimension_numbers = #tpu.dot_dimension_numbers<[1], [0], [0], [1], [0, 0, 1, 1], [], []>} : vector<2x4608xf32>, vector<4608x512xf32>, vector<2x512xf32> -> vector<2x512xf32>
    %c0_3 = arith.constant 0 : index
    %c0_4 = arith.constant 0 : index
    %4 = vector.load %arg4[%c0_3, %c0_4] : memref<2x512xf32, #tpu.memory_space<vmem>>, vector<1x512xf32>
    %5 = vector.broadcast %4 : vector<1x512xf32> to vector<2x512xf32>
    %6 = arith.mulf %3, %5 : vector<2x512xf32>
    %c4608 = arith.constant 4608 : index
    %c0_5 = arith.constant 0 : index
    %7 = vector.load %arg3[%c4608, %c0_5] : memref<5120x512xi8, #tpu.memory_space<vmem>>, vector<512x512xi8>
    %8 = arith.sitofp %7 : vector<512x512xi8> to vector<512x512xf32>
    %c0_6 = arith.constant 0 : index
    %c0_7 = arith.constant 0 : index
    %9 = vector.load %arg2[%c0_6, %c0_7] : memref<2x512xf32, #tpu.memory_space<vmem>>, vector<2x512xf32>
    %cst_8 = arith.constant dense<0.000000e+00> : vector<2x512xf32>
    %10 = tpu.matmul %9, %8, %cst_8 {dimension_numbers = #tpu.dot_dimension_numbers<[1], [0], [0], [1], [0, 0, 1, 1], [], []>} : vector<2x512xf32>, vector<512x512xf32>, vector<2x512xf32> -> vector<2x512xf32>
    %c1 = arith.constant 1 : index
    %c0_9 = arith.constant 0 : index
    %11 = vector.load %arg4[%c1, %c0_9] : memref<2x512xf32, #tpu.memory_space<vmem>>, vector<1x512xf32>
    %12 = vector.broadcast %11 : vector<1x512xf32> to vector<2x512xf32>
    %13 = arith.mulf %10, %12 : vector<2x512xf32>
    %14 = arith.addf %6, %13 : vector<2x512xf32>
    %15 = vector.extract_strided_slice %14 {offsets = [0, 0], sizes = [2, 128], strides = [1, 1]} : vector<2x512xf32> to vector<2x128xf32>
    %16 = arith.negf %15 : vector<2x128xf32>
    %17 = math.exp %16 : vector<2x128xf32>
    %cst_10 = arith.constant 1.000000e+00 : f32
    %18 = vector.broadcast %cst_10 : f32 to vector<2x128xf32>
    %19 = arith.addf %18, %17 : vector<2x128xf32>
    %20 = arith.divf %18, %19 : vector<2x128xf32>
    %21 = vector.extract_strided_slice %14 {offsets = [0, 128], sizes = [2, 128], strides = [1, 1]} : vector<2x512xf32> to vector<2x128xf32>
    %22 = arith.negf %21 : vector<2x128xf32>
    %23 = math.exp %22 : vector<2x128xf32>
    %cst_11 = arith.constant 1.000000e+00 : f32
    %24 = vector.broadcast %cst_11 : f32 to vector<2x128xf32>
    %25 = arith.addf %24, %23 : vector<2x128xf32>
    %26 = arith.divf %24, %25 : vector<2x128xf32>
    %27 = vector.extract_strided_slice %14 {offsets = [0, 256], sizes = [2, 128], strides = [1, 1]} : vector<2x512xf32> to vector<2x128xf32>
    %28 = math.tanh %27 : vector<2x128xf32>
    %29 = vector.extract_strided_slice %14 {offsets = [0, 384], sizes = [2, 128], strides = [1, 1]} : vector<2x512xf32> to vector<2x128xf32>
    %30 = arith.negf %29 : vector<2x128xf32>
    %31 = math.exp %30 : vector<2x128xf32>
    %cst_12 = arith.constant 1.000000e+00 : f32
    %32 = vector.broadcast %cst_12 : f32 to vector<2x128xf32>
    %33 = arith.addf %32, %31 : vector<2x128xf32>
    %34 = arith.divf %32, %33 : vector<2x128xf32>
    %c0_13 = arith.constant 0 : index
    %c0_14 = arith.constant 0 : index
    %35 = vector.load %arg5[%c0_13, %c0_14] : memref<2x128xf32, #tpu.memory_space<vmem>>, vector<2x128xf32>
    %36 = arith.mulf %26, %35 : vector<2x128xf32>
    %37 = arith.mulf %20, %28 : vector<2x128xf32>
    %38 = arith.addf %36, %37 : vector<2x128xf32>
    %39 = math.tanh %38 : vector<2x128xf32>
    %40 = arith.mulf %34, %39 : vector<2x128xf32>
    %c0_15 = arith.constant 0 : index
    %c0_16 = arith.constant 0 : index
    %41 = vector.load %arg6[%c0_15, %c0_16] : memref<2x128xf32, #tpu.memory_space<vmem>>, vector<2x128xf32>
    tpu.vector_store %arg6[%c0_15, %c0_16], %40 {strides = array<i32>} : memref<2x128xf32, #tpu.memory_space<vmem>>, vector<2x128xf32>,
    %c0_17 = arith.constant 0 : index
    %c0_18 = arith.constant 0 : index
    %42 = vector.load %arg7[%c0_17, %c0_18] : memref<2x128xf32, #tpu.memory_space<vmem>>, vector<2x128xf32>
    tpu.vector_store %arg7[%c0_17, %c0_18], %38 {strides = array<i32>} : memref<2x128xf32, #tpu.memory_space<vmem>>, vector<2x128xf32>,
    return
  }
  func.func @transform_0(%arg0: i32) -> (i32, i32) {
    %c0_i32 = arith.constant 0 : i32
    %c0_i32_0 = arith.constant 0 : i32
    %c0_i32_1 = arith.constant 0 : i32
    return %c0_i32, %c0_i32_0 : i32, i32
  }
  func.func @transform_1(%arg0: i32) -> (i32, i32) {
    %c0_i32 = arith.constant 0 : i32
    %c0_i32_0 = arith.constant 0 : i32
    %c0_i32_1 = arith.constant 0 : i32
    return %c0_i32, %c0_i32_0 : i32, i32
  }
  func.func @transform_2(%arg0: i32) -> (i32, i32) {
    %c0_i32 = arith.constant 0 : i32
    %c0_i32_0 = arith.constant 0 : i32
    return %c0_i32, %arg0 : i32, i32
  }
  func.func @transform_3(%arg0: i32) -> (i32, i32) {
    %c0_i32 = arith.constant 0 : i32
    %c0_i32_0 = arith.constant 0 : i32
    return %c0_i32, %arg0 : i32, i32
  }
  func.func @transform_4(%arg0: i32) -> (i32, i32) {
    %c0_i32 = arith.constant 0 : i32
    %c0_i32_0 = arith.constant 0 : i32
    return %c0_i32, %arg0 : i32, i32
  }
  func.func @transform_5(%arg0: i32) -> (i32, i32) {
    %c0_i32 = arith.constant 0 : i32
    %c0_i32_0 = arith.constant 0 : i32
    return %c0_i32, %arg0 : i32, i32
  }
  func.func @transform_6(%arg0: i32) -> (i32, i32) {
    %c0_i32 = arith.constant 0 : i32
    %c0_i32_0 = arith.constant 0 : i32
    return %c0_i32, %arg0 : i32, i32
  }
}

</mosaic_0001>

<bundles_post_ra>
// kernel: encoder_forward.3
= control target key start
LH: loop header
LB: loop body
LE: loop exit
PB: predicated region body
PF: predicated region fallthrough
CT: control target
= control target key end

     0   :  { %s3821_s0 = inlined_call_operand.vmem [shape: f32[32,576], index: 0, kind: input, shape index: {}]   ;;  %s3822_s1 = inlined_call_operand.vmem [shape: f32[32,256], index: 1, kind: input, shape index: {}]   ;;  %s3823_s2 = inlined_call_operand.hbm [shape: s8[832,1024], index: 2, kind: input, shape index: {}]   ;;  %s3824_s3 = inlined_call_operand.hbm [shape: f32[2,1024], index: 3, kind: input, shape index: {}]   ;;  %s3825_s4 = inlined_call_operand.vmem [shape: f32[32,256], index: 4, kind: input, shape index: {}]   ;;  %s3826_s5 = inlined_call_operand.vmem [shape: f32[32,256], index: 5, kind: output, shape index: {0}]   ;;  %s3827_s6 = inlined_call_operand.vmem [shape: f32[32,256], index: 6, kind: output, shape index: {1}]  }
   0x1   :  { %3828 = sst [smem:[#allocation13_spill]] %s3823_s2 }
   0x2   :  { %12 = vsyncpa [#allocation3], 0 }
   0x3   :  { %14 = vsyncpa [#allocation3 + $0x1], 0 }
   0x4   :  { %15 = vsyncpa [#allocation5], 0 }
   0x5   :  { %17 = vsyncpa [#allocation5 + $0x1], 0  ;;  %s3208_s21 = smov 0   ;;  %s3210_s22 = smov 0  }
   0x6   :  { %s3212_s23 = smov 0   ;;  %s3214_s24 = smov 0  }
   0x7 LB: > { %s3227_s25 = sadd.s32 4294967295, %s3165_s24   ;;  %s3230_s26 = sadd.s32 1, %s3165_s24   ;;  %s3165_s24 = sphi %s3214_s24, %s3842_s24   ;;  %s3161_s23 = sphi %s3212_s23, %s3841_s23   ;;  %s3157_s22 = sphi %s3210_s22, %s3840_s22   ;;  %s3153_s21 = sphi %s3208_s21, %s3839_s21  }
   0x8   : > { %s69_s27 = ssub.s32 %s3165_s24, %s3230_s26  ;;  %s72_s28 = sadd.s32 1, %s3161_s23 }
   0x9   : > { %p70_p0 = scmp.eq.s32.totalorder %s69_s27, 0  ;;  %p79_p1 = scmp.ne.s32.totalorder %s3161_s23, %s3157_s22 }
   0xa   : > { %p80_p2 = scmp.eq.s32.totalorder %s3165_s24, 0  ;;  %p85_p3 = scmp.ne.s32.totalorder %s3157_s22, %s3153_s21 }
   0xb   : > { %s3240_s29 = scalar_select %p70_p0, %s3161_s23, %s72_s28  }
   0xc   : > { %p3242_p4 = por %p80_p2, %p79_p1  ;;  %p86_p5 = scmp.eq.s32.totalorder %s3227_s25, 0 }
   0xd   : > { %p161_p6 = scmp.eq.s32.totalorder %s3227_s25, 1  ;;  %p2511_p9 = scmp.ge.s32.totalorder %s3165_s24, 2 }
   0xe   : > { %p3248_p7 = por %p86_p5, %p85_p3  ;;  %s3258_s9 = sand.u32 (!%p2511_p9), 1, %s3161_s23  }
   0xf   : > { %p3252_p8 = por %p161_p6, %p79_p1  ;;  %215 = sbr.rel (%p2511_p9) target bundleno = 77 (0x4d), region = 24 }
  0x10   : > { %s2551_s10 = sshll.u32 (!%p2511_p9), %s3165_s24, 9  ;;  %s2969_s11 = smul.u32 (!%p2511_p9), 832, %s3258_s9 }
  0x11   : > { %s3831_s8 = scalar_select %p3252_p8, 1, 0 }
  0x12   : > { %s3832_s2 = sld [smem:[#allocation13_spill]] (!%p2511_p9)  ;;  %s223_s15 = scalar_lea.vmem (!%p2511_p9), [#allocation2], %s2969_s11 }
  0x13   : > { %s230_s16 = sshll.u32 (!%p2511_p9), %s223_s15, 4  ;;  %s220_s17 = scalar_lea.sflag (!%p2511_p9), [#allocation3], %s3258_s9  ;;  %s3267_s16 = int_to_ptr.vmem [resolvable:$true] %s230_s16 }
  0x18   : > { %s3265_s14 = scalar_lea.hbm %s3832_s2, %s2551_s10  ;;  %s3079_s21 = scalar_lea.hbm %s3832_s2, 26624 }
  0x19   : > { %s3075_s18 = scalar_lea.hbm %s3265_s14, 13312  ;;  %p3080_p13 = scmp.lt.s32.totalorder %s3265_s14, %s3832_s2 }
  0x1a   : > { %p3076_p10 = scmp.ne.s32.totalorder %s3265_s14, %s3075_s18  ;;  %p3081_p0 = scmp.lt.s32.totalorder %s3079_s21, %s3075_s18 }
  0x1c   : > { %p3077_p11 = pnand %p3076_p10, %p3242_p4  ;;  %p3082_p1 = por %p3081_p0, %p3080_p13 }
  0x1e   : > { %p3078_p12 = pneg %p3077_p11 }
  0x20   : > { %p3083_p2 = pnand %p3082_p1, %p3078_p12 }
  0x22   : > { %3086 = shalt.err (!%p3083_p2)
}
  0x23   : > { %s3087_s10 = scalar_lea.vmem %s3267_s16, 13312  ;;  %s3167_s11 = smov [#allocation2]  }
  0x24   : > { %p3088_p3 = scmp.ne.s32.totalorder %s3267_s16, %s3087_s10  ;;  %s3091_s12 = sshll.u32 %s3167_s11, 4  ;;  %s3092_s12 = int_to_ptr.vmem [resolvable:$false] %s3091_s12 }
  0x25   : > { %s3093_s13 = scalar_lea.vmem %s3092_s12, 26624  ;;  %p3094_p9 = scmp.lt.s32.totalorder %s3267_s16, %s3092_s12 }
  0x26   : > { %p3089_p5 = pnand %p3088_p3, %p3242_p4  ;;  %p3095_p10 = scmp.lt.s32.totalorder %s3093_s13, %s3087_s10 }
  0x28   : > { %p3090_p6 = pneg %p3089_p5  ;;  %p3096_p11 = por %p3095_p10, %p3094_p9 }
  0x2a   : > { %p3097_p8 = pnand %p3096_p11, %p3090_p6 }
  0x2c   : > { %3100 = shalt.err (!%p3097_p8)
}
  0x2d   : > { %s3168_s15 = smov 1024   ;;  %s3169_s18 = smov 512  }
  0x2e   : > { %s3170_s19 = smov 32   ;;  %s2514_s20 = sshll.u32 %s3258_s9, 3 }
  0x2f   : > { %2971 = dma.hbm_to_vmem [thread:$0]  (%p3242_p4), %s3265_s14, 13312, %s3267_s16, %s220_s17, %s3168_s15, %s3169_s18, %s3170_s19  }
  0x30   : > { %s2552_s21 = sshll.u32 %s3165_s24, 7  ;;  %s244_s11 = scalar_lea.vmem [#allocation4], %s2514_s20 }
  0x31   : > { %s3297_s10 = scalar_lea.hbm %s3824_s3, %s2552_s21  ;;  %s252_s12 = sshll.u32 %s244_s11, 4  ;;  %s253_s12 = int_to_ptr.vmem [resolvable:$true] %s252_s12 }
  0x32   : > { %s241_s13 = scalar_lea.sflag [#allocation5], %s3258_s9  ;;  %s3101_s2 = scalar_lea.hbm %s3297_s10, 128 }
  0x33   : > { %p3102_p8 = scmp.ne.s32.totalorder %s3297_s10, %s3101_s2  ;;  %s3105_s17 = scalar_lea.hbm %s3824_s3, 256 }
  0x34   : > { %p3106_p0 = scmp.lt.s32.totalorder %s3297_s10, %s3824_s3  ;;  %p3107_p1 = scmp.lt.s32.totalorder %s3105_s17, %s3101_s2 }
  0x35   : > { %p3103_p12 = pnand %p3102_p8, %p3242_p4 }
  0x36   : > { %p3108_p2 = por %p3107_p1, %p3106_p0 }
  0x37   : > { %p3104_p13 = pneg %p3103_p12 }
  0x39   : > { %p3109_p3 = pnand %p3108_p2, %p3104_p13 }
  0x3b   : > { %3112 = shalt.err (!%p3109_p3)
}
  0x3c   : > { %s3113_s19 = scalar_lea.vmem %s253_s12, 128  ;;  %s3171_s20 = smov [#allocation4]  }
  0x3d   : > { %p3114_p5 = scmp.ne.s32.totalorder %s253_s12, %s3113_s19  ;;  %s3117_s21 = sshll.u32 %s3171_s20, 4  ;;  %s3118_s21 = int_to_ptr.vmem [resolvable:$false] %s3117_s21 }
  0x3e   : > { %s3119_s27 = scalar_lea.vmem %s3118_s21, 256  ;;  %p3120_p10 = scmp.lt.s32.totalorder %s253_s12, %s3118_s21 }
  0x3f   : > { %p3115_p6 = pnand %p3114_p5, %p3242_p4  ;;  %p3121_p11 = scmp.lt.s32.totalorder %s3119_s27, %s3113_s19 }
  0x41   : > { %p3116_p9 = pneg %p3115_p6  ;;  %p3122_p8 = por %p3121_p11, %p3120_p10 }
  0x43   : > { %p3123_p12 = pnand %p3122_p8, %p3116_p9 }
  0x45   : > { %3126 = shalt.err (!%p3123_p12)
}
  0x46   : > { %2972 = dma.hbm_to_vmem [thread:$0]  (%p3242_p4), %s3297_s10, 128, %s253_s12, %s241_s13  }
  0x47   : > { %258 = sbr.rel (!%p3242_p4) target bundleno = 77 (0x4d), region = 36  ;;  %s2517_s2 = sshll.u32 (%p3242_p4), %s3258_s9, 5 }
  0x48   : > { %s2518_s28 = sshll.u32 (%p3242_p4), %s3165_s24, 3  ;;  %s262_s17 = scalar_lea.vmem (%p3242_p4), [#allocation6], %s2517_s2 }
  0x49   : > { %s264_s16 = scalar_lea.vmem (%p3242_p4), %s3825_s4, %s2518_s28 }
  0x4a   : > { %v299_v0 = vld [vmem:[%s264_s16] sm:$0xff] (%p3242_p4)  ;;  %v301_v1 = vld [vmem:[%s264_s16 + $0x10] sm:$0xff] (%p3242_p4) }
  0x4b   : > { %v303_v2 = vld [vmem:[%s264_s16 + $0x20] sm:$0xff] (%p3242_p4)  ;;  %300 = vst [vmem:[%s262_s17] sm:$0xff] (%p3242_p4), %v299_v0  ;;  %302 = vst [vmem:[%s262_s17 + $0x8] sm:$0xff] (%p3242_p4), %v301_v1  ;;  %v305_v3 = vld [vmem:[%s264_s16 + $0x30] sm:$0xff] (%p3242_p4) }
  0x4c   : > { %304 = vst [vmem:[%s262_s17 + $0x10] sm:$0xff] %v303_v2  ;;  %306 = vst [vmem:[%s262_s17 + $0x18] sm:$0xff] %v305_v3 }
  0x4d PF: > { %p2519_p4 = scmp.ge.s32.totalorder %s3165_s24, 1  ;;  %p311_p13 = scmp.lt.s32.totalorder %s3165_s24, 3 }
  0x4f   : > { %p312_p0 = pnand %p2519_p4, %p311_p13 }
  0x51   : > { %315 = sbr.rel (%p312_p0) target bundleno = 584 (0x248), region = 74 }
  0x56   : > { %s3326_s30 = sand.u32 1, %s3157_s22  }
  0x57   : > { %s2970_s9 = smul.u32 832, %s3326_s30  ;;  %s318_s10 = scalar_lea.sflag [#allocation3], %s3326_s30 }
  0x59   : > { %s3330_s12 = scalar_lea.vmem [#allocation2], %s2970_s9 }
  0x5a   : > { %3144 = dma.done.wait (%p3248_p7), %s318_s10, 13312  }
  0x5b   : > { %3146 = vsyncadd (%p3248_p7), %s318_s10, 4294953984  ;;  %s2520_s24 = sshll.u32 %s3326_s30, 3  ;;  %s327_s13 = scalar_lea.sflag [#allocation5], %s3326_s30 }
  0x5c   : > { %s3338_s15 = scalar_lea.vmem [#allocation4], %s2520_s24 }
  0x5d   : > { %3148 = dma.done.wait (%p3248_p7), %s327_s13, 128  }
  0x5e   : > { %3150 = vsyncadd (%p3248_p7), %s327_s13, 4294967168  ;;  %v393_v4 = vld [vmem:[%s3330_s12 + $0x68] sm:$0xff]  ;;  %v392_v6 = vld [vmem:[%s3330_s12 + $0x60] sm:$0xff]  ;;  %vm1048_vm0 = vcmask 523264   ;;  %p3837_p7 = scmp.ne.s32.totalorder %s3831_s8, 0 }
  0x5f   : > { %v425_v5 = vld [vmem:[%s3330_s12 + $0x168] sm:$0xff]  ;;  %v2553_v7 = vunpack.c.h.s8.bf16 %v393_v4  ;;  %v2557_v8 = vunpack.c.l.s8.bf16 %v393_v4  ;;  %v424_v11 = vld [vmem:[%s3330_s12 + $0x160] sm:$0xff]  ;;  %v2555_v12 = vunpack.c.h.s8.bf16 %v392_v6  ;;  %v2559_v16 = vunpack.c.l.s8.bf16 %v392_v6  ;;  %v3363_v29 = vld [vmem:[%s3821_s0 + $0x18] sm:$0xff]  ;;  %s2547_s14 = sshll.u32 (%p3837_p7), %s3227_s25, 3 }
  0x60   : > { %v2617_v9 = vunpack.c.h.s8.bf16 %v425_v5  ;;  %v2621_v10 = vunpack.c.l.s8.bf16 %v425_v5  ;;  %v2619_v13 = vunpack.c.h.s8.bf16 %v424_v11  ;;  %v389_v14 = vld [vmem:[%s3330_s12 + $0x48] sm:$0xff]  ;;  %v2623_v17 = vunpack.c.l.s8.bf16 %v424_v11  ;;  %v388_v20 = vld [vmem:[%s3330_s12 + $0x40] sm:$0xff]  ;;  %1214 = vmatprep.mubr.f32.mxu1 %v3363_v29 }
  0x61   : > { %v421_v15 = vld [vmem:[%s3330_s12 + $0x148] sm:$0xff]  ;;  %2554 = vmatprep.subr.bf16.mxu0 %v2553_v7  ;;  %v2561_v18 = vunpack.c.h.s8.bf16 %v389_v14  ;;  %v420_v21 = vld [vmem:[%s3330_s12 + $0x140] sm:$0xff]  ;;  %v2563_v22 = vunpack.c.h.s8.bf16 %v388_v20  ;;  %v2565_v24 = vunpack.c.l.s8.bf16 %v389_v14  ;;  %v2567_v30 = vunpack.c.l.s8.bf16 %v388_v20 }
  0x62   : > { %2618 = vmatprep.subr.bf16.mxu1 %v2617_v9  ;;  %2556 = vmatpush1.bf16.msra.mxu0 %v2555_v12  ;;  %v2625_v19 = vunpack.c.h.s8.bf16 %v421_v15  ;;  %v2627_v23 = vunpack.c.h.s8.bf16 %v420_v21  ;;  %v2629_v25 = vunpack.c.l.s8.bf16 %v421_v15  ;;  %v385_v26 = vld [vmem:[%s3330_s12 + $0x28] sm:$0xff]  ;;  %v2631_v31 = vunpack.c.l.s8.bf16 %v420_v21  ;;  %v384_v34 = vld [vmem:[%s3330_s12 + $0x20] sm:$0xff] }
  0x63   : > { %2620 = vmatpush1.bf16.msra.mxu1 %v2619_v13  ;;  %2558 = vmatprep.subr.bf16.mxu0 %v2557_v8  ;;  %v417_v27 = vld [vmem:[%s3330_s12 + $0x128] sm:$0xff]  ;;  %v2569_v32 = vunpack.c.h.s8.bf16 %v385_v26  ;;  %v416_v35 = vld [vmem:[%s3330_s12 + $0x120] sm:$0xff]  ;;  %v2571_v36 = vunpack.c.h.s8.bf16 %v384_v34  ;;  %v2573_v38 = vunpack.c.l.s8.bf16 %v385_v26  ;;  %v2575_v42 = vunpack.c.l.s8.bf16 %v384_v34 }
  0x64   : > { %2622 = vmatprep.subr.bf16.mxu1 %v2621_v10  ;;  %v3357_v28 = vld [vmem:[%s3821_s0 + $0x8] sm:$0xff]  ;;  %v2633_v33 = vunpack.c.h.s8.bf16 %v417_v27  ;;  %v2635_v37 = vunpack.c.h.s8.bf16 %v416_v35  ;;  %v2637_v39 = vunpack.c.l.s8.bf16 %v417_v27  ;;  %v2639_v43 = vunpack.c.l.s8.bf16 %v416_v35  ;;  %v380_v46 = vld [vmem:[%s3330_s12] sm:$0xff] }
  0x65   : > { %1125 = vmatprep.mubr.f32.mxu0 %v3357_v28  ;;  %v381_v40 = vld [vmem:[%s3330_s12 + $0x8] sm:$0xff]  ;;  %v412_v47 = vld [vmem:[%s3330_s12 + $0x100] sm:$0xff]  ;;  %v2579_v48 = vunpack.c.h.s8.bf16 %v380_v46  ;;  %v2583_v54 = vunpack.c.l.s8.bf16 %v380_v46 }
  0x66   : > { %2560 = vmatpush1.bf16.msra.mxu0 %v2559_v16  ;;  %v413_v41 = vld [vmem:[%s3330_s12 + $0x108] sm:$0xff]  ;;  %v2577_v44 = vunpack.c.h.s8.bf16 %v381_v40  ;;  %v2643_v49 = vunpack.c.h.s8.bf16 %v412_v47  ;;  %v2581_v50 = vunpack.c.l.s8.bf16 %v381_v40  ;;  %v2647_v55 = vunpack.c.l.s8.bf16 %v412_v47  ;;  %v408_v58 = vld [vmem:[%s3330_s12 + $0xe0] sm:$0xff]  ;;  %v3400_v47 = vld [vmem:[%s3821_s0 + $0x10] sm:$0xff] }
  0x67   : > { %2624 = vmatpush1.bf16.msra.mxu1 %v2623_v17  ;;  %2562 = vmatprep.subr.bf16.mxu0 %v2561_v18  ;;  %v2641_v45 = vunpack.c.h.s8.bf16 %v413_v41  ;;  %v2645_v51 = vunpack.c.l.s8.bf16 %v413_v41  ;;  %v409_v52 = vld [vmem:[%s3330_s12 + $0xe8] sm:$0xff]  ;;  %v440_v59 = vld [vmem:[%s3330_s12 + $0x1e0] sm:$0xff]  ;;  %v2587_v60 = vunpack.c.h.s8.bf16 %v408_v58  ;;  %v2591_v2 = vunpack.c.l.s8.bf16 %v408_v58 }
  0x68   : > { %2626 = vmatprep.subr.bf16.mxu1 %v2625_v19  ;;  %v441_v53 = vld [vmem:[%s3330_s12 + $0x1e8] sm:$0xff]  ;;  %v2585_v56 = vunpack.c.h.s8.bf16 %v409_v52  ;;  %v2651_v61 = vunpack.c.h.s8.bf16 %v440_v59  ;;  %v2589_v62 = vunpack.c.l.s8.bf16 %v409_v52  ;;  %v2655_v3 = vunpack.c.l.s8.bf16 %v440_v59  ;;  %v404_v6 = vld [vmem:[%s3330_s12 + $0xc0] sm:$0xff] }
  0x69   : > { %v2649_v57 = vunpack.c.h.s8.bf16 %v441_v53  ;;  %v2653_v63 = vunpack.c.l.s8.bf16 %v441_v53  ;;  %v405_v0 = vld [vmem:[%s3330_s12 + $0xc8] sm:$0xff]  ;;  %v436_v7 = vld [vmem:[%s3330_s12 + $0x1c0] sm:$0xff]  ;;  %v2595_v8 = vunpack.c.h.s8.bf16 %v404_v6  ;;  %v2599_v14 = vunpack.c.l.s8.bf16 %v404_v6 }
  0x6a   : > { %2564 = vmatpush1.bf16.msra.mxu0 %v2563_v22  ;;  %v437_v1 = vld [vmem:[%s3330_s12 + $0x1c8] sm:$0xff]  ;;  %v2593_v4 = vunpack.c.h.s8.bf16 %v405_v0  ;;  %v2659_v9 = vunpack.c.h.s8.bf16 %v436_v7  ;;  %v2597_v10 = vunpack.c.l.s8.bf16 %v405_v0  ;;  %v2663_v15 = vunpack.c.l.s8.bf16 %v436_v7  ;;  %v400_v18 = vld [vmem:[%s3330_s12 + $0xa0] sm:$0xff]  ;;  %v3462_v7 = vld [vmem:[%s3821_s0 + $0x90] sm:$0xff] }
  0x6b   : > { %2628 = vmatpush1.bf16.msra.mxu1 %v2627_v23  ;;  %2566 = vmatprep.subr.bf16.mxu0 %v2565_v24  ;;  %v2657_v5 = vunpack.c.h.s8.bf16 %v437_v1  ;;  %v2661_v11 = vunpack.c.l.s8.bf16 %v437_v1  ;;  %v401_v12 = vld [vmem:[%s3330_s12 + $0xa8] sm:$0xff]  ;;  %v432_v19 = vld [vmem:[%s3330_s12 + $0x1a0] sm:$0xff]  ;;  %v2603_v20 = vunpack.c.h.s8.bf16 %v400_v18  ;;  %v2607_v26 = vunpack.c.l.s8.bf16 %v400_v18  ;;  %v426_v18 = vld [vmem:[%s3330_s12 + $0x170] sm:$0xff] }
  0x6c   : > { %2630 = vmatprep.subr.bf16.mxu1 %v2629_v25  ;;  %v433_v13 = vld [vmem:[%s3330_s12 + $0x1a8] sm:$0xff]  ;;  %v2601_v16 = vunpack.c.h.s8.bf16 %v401_v12  ;;  %v2667_v21 = vunpack.c.h.s8.bf16 %v432_v19  ;;  %v2605_v22 = vunpack.c.l.s8.bf16 %v401_v12  ;;  %v2671_v27 = vunpack.c.l.s8.bf16 %v432_v19  ;;  %v3395_v46 = vld [vmem:[%s3821_s0] sm:$0xff]  ;;  %v3471_v12 = vld [vmem:[%s3821_s0 + $0x78] sm:$0xff] }
  0x6d   : > { %v2665_v17 = vunpack.c.h.s8.bf16 %v433_v13  ;;  %v2669_v23 = vunpack.c.l.s8.bf16 %v433_v13  ;;  %v397_v24 = vld [vmem:[%s3330_s12 + $0x88] sm:$0xff]  ;;  %v3457_v6 = vld [vmem:[%s3821_s0 + $0x80] sm:$0xff] }
  0x6e   : > { %2568 = vmatpush1.bf16.msra.mxu0 %v2567_v30  ;;  %v429_v25 = vld [vmem:[%s3330_s12 + $0x188] sm:$0xff]  ;;  %v2609_v30 = vunpack.c.h.s8.bf16 %v397_v24 }
  0x6f   : > { %2632 = vmatpush1.bf16.msra.mxu1 %v2631_v31  ;;  %2570 = vmatprep.subr.bf16.mxu0 %v2569_v32  ;;  %v2673_v31 = vunpack.c.h.s8.bf16 %v429_v25  ;;  %v396_v32 = vld [vmem:[%s3330_s12 + $0x80] sm:$0xff]  ;;  %v3476_v13 = vld [vmem:[%s3821_s0 + $0x88] sm:$0xff] }
  0x70   : > { %2634 = vmatprep.subr.bf16.mxu1 %v2633_v33  ;;  %v428_v33 = vld [vmem:[%s3330_s12 + $0x180] sm:$0xff]  ;;  %v2611_v34 = vunpack.c.h.s8.bf16 %v396_v32  ;;  %v2615_v40 = vunpack.c.l.s8.bf16 %v396_v32  ;;  %v2767_v32 = vunpack.c.l.s8.bf16 %v426_v18 }
  0x71   : > { %v2675_v35 = vunpack.c.h.s8.bf16 %v428_v33  ;;  %v2679_v41 = vunpack.c.l.s8.bf16 %v428_v33 }
  0x72   : > { %2572 = vmatpush1.bf16.msra.mxu0 %v2571_v36  ;;  %v2613_v36 = vunpack.c.l.s8.bf16 %v397_v24 }
  0x73   : > { %2636 = vmatpush1.bf16.msra.mxu1 %v2635_v37  ;;  %2574 = vmatprep.subr.bf16.mxu0 %v2573_v38  ;;  %v2677_v37 = vunpack.c.l.s8.bf16 %v429_v25  ;;  %v449_v38 = vld [vmem:[%s3330_s12 + $0x228] sm:$0xff] }
  0x74   : > { %2638 = vmatprep.subr.bf16.mxu1 %v2637_v39  ;;  %v395_v39 = vld [vmem:[%s3330_s12 + $0x78] sm:$0xff]  ;;  %v2685_v52 = vunpack.c.l.s8.bf16 %v449_v38 }
  0x75   : > { %v2701_v53 = vunpack.c.l.s8.bf16 %v395_v39 }
  0x76   : > { %2576 = vmatpush1.bf16.msra.mxu0 %v2575_v42  ;;  %v2681_v42 = vunpack.c.h.s8.bf16 %v449_v38 }
  0x77   : > { %2640 = vmatpush1.bf16.msra.mxu1 %v2639_v43  ;;  %2578 = vmatprep.subr.bf16.mxu0 %v2577_v44  ;;  %v2697_v43 = vunpack.c.h.s8.bf16 %v395_v39  ;;  %v448_v44 = vld [vmem:[%s3330_s12 + $0x220] sm:$0xff] }
  0x78   : > { %2642 = vmatprep.subr.bf16.mxu1 %v2641_v45  ;;  %v394_v45 = vld [vmem:[%s3330_s12 + $0x70] sm:$0xff]  ;;  %v2687_v58 = vunpack.c.l.s8.bf16 %v448_v44 }
  0x79   : > { %v2703_v59 = vunpack.c.l.s8.bf16 %v394_v45 }
  0x7a   : > { %2580 = vmatpush1.bf16.msra.mxu0 %v2579_v48  ;;  %v2683_v48 = vunpack.c.h.s8.bf16 %v448_v44 }
  0x7b   : > { %2644 = vmatpush1.bf16.msra.mxu1 %v2643_v49  ;;  %2582 = vmatprep.subr.bf16.mxu0 %v2581_v50  ;;  %v2699_v49 = vunpack.c.h.s8.bf16 %v394_v45  ;;  %v3405_v50 = vld [vmem:[%s3821_s0 + $0x30] sm:$0xff] }
  0x7c   : > { %2646 = vmatprep.subr.bf16.mxu1 %v2645_v51  ;;  %v3410_v51 = vld [vmem:[%s3821_s0 + $0x40] sm:$0xff] }
  0x7e   : > { %2584 = vmatpush1.bf16.msra.mxu0 %v2583_v54  ;;  %v445_v54 = vld [vmem:[%s3330_s12 + $0x208] sm:$0xff] }
  0x7f   : > { %2648 = vmatpush1.bf16.msra.mxu1 %v2647_v55  ;;  %2586 = vmatprep.subr.bf16.mxu0 %v2585_v56  ;;  %v391_v55 = vld [vmem:[%s3330_s12 + $0x58] sm:$0xff]  ;;  %v3419_v56 = vld [vmem:[%s3821_s0 + $0x28] sm:$0xff]  ;;  %v2689_v0 = vunpack.c.h.s8.bf16 %v445_v54 }
  0x80   : > { %2650 = vmatprep.subr.bf16.mxu1 %v2649_v57  ;;  %v3424_v57 = vld [vmem:[%s3821_s0 + $0x38] sm:$0xff]  ;;  %v2705_v1 = vunpack.c.h.s8.bf16 %v391_v55 }
  0x82   : > { %2588 = vmatpush2.bf16.msra.mxu0 %v2587_v60  ;;  %v444_v60 = vld [vmem:[%s3330_s12 + $0x200] sm:$0xff] }
  0x83   : > { %2652 = vmatpush2.bf16.msra.mxu1 %v2651_v61  ;;  %2590 = vmatprep.subr.bf16.mxu0 %v2589_v62  ;;  %v390_v61 = vld [vmem:[%s3330_s12 + $0x50] sm:$0xff]  ;;  %v3433_v62 = vld [vmem:[%s3821_s0 + $0x58] sm:$0xff] }
  0x84   : > { %2654 = vmatprep.subr.bf16.mxu1 %v2653_v63  ;;  %v3438_v63 = vld [vmem:[%s3821_s0 + $0x68] sm:$0xff] }
  0x86   : > { %2592 = vmatpush2.bf16.msra.mxu0 %v2591_v2  ;;  %v3445_v2 = vld [vmem:[%s3821_s0 + $0x50] sm:$0xff] }
  0x87   : > { %2656 = vmatpush2.bf16.msra.mxu1 %v2655_v3  ;;  %2594 = vmatprep.subr.bf16.mxu0 %v2593_v4  ;;  %v3450_v3 = vld [vmem:[%s3821_s0 + $0x60] sm:$0xff]  ;;  %v2691_v4 = vunpack.c.h.s8.bf16 %v444_v60 }
  0x88   : > { %2658 = vmatprep.subr.bf16.mxu1 %v2657_v5  ;;  %v2707_v5 = vunpack.c.h.s8.bf16 %v390_v61 }
  0x8a   : > { %2596 = vmatpush2.bf16.msra.mxu0 %v2595_v8  ;;  %v2693_v8 = vunpack.c.l.s8.bf16 %v445_v54 }
  0x8b   : > { %2660 = vmatpush2.bf16.msra.mxu1 %v2659_v9  ;;  %2598 = vmatprep.subr.bf16.mxu0 %v2597_v10  ;;  %v2709_v9 = vunpack.c.l.s8.bf16 %v391_v55  ;;  %v387_v10 = vld [vmem:[%s3330_s12 + $0x38] sm:$0xff] }
  0x8c   : > { %2662 = vmatprep.subr.bf16.mxu1 %v2661_v11  ;;  %v427_v11 = vld [vmem:[%s3330_s12 + $0x178] sm:$0xff]  ;;  %v2717_v24 = vunpack.c.l.s8.bf16 %v387_v10 }
  0x8d   : > { %v2761_v19 = vunpack.c.h.s8.bf16 %v427_v11  ;;  %v2765_v25 = vunpack.c.l.s8.bf16 %v427_v11 }
  0x8e   : > { %2600 = vmatpush2.bf16.msra.mxu0 %v2599_v14  ;;  %v2695_v14 = vunpack.c.l.s8.bf16 %v444_v60  ;;  %v407_v60 = vld [vmem:[%s3330_s12 + $0xd8] sm:$0xff] }
  0x8f   : > { %2664 = vmatpush2.bf16.msra.mxu1 %v2663_v15  ;;  %2602 = vmatprep.subr.bf16.mxu0 %v2601_v16  ;;  %v2711_v15 = vunpack.c.l.s8.bf16 %v390_v61  ;;  %v2713_v16 = vunpack.c.h.s8.bf16 %v387_v10  ;;  %v415_v61 = vld [vmem:[%s3330_s12 + $0x118] sm:$0xff] }
  0x90   : > { %2666 = vmatprep.subr.bf16.mxu1 %v2665_v17  ;;  %v386_v17 = vld [vmem:[%s3330_s12 + $0x30] sm:$0xff] }
  0x92   : > { %2604 = vmatpush2.bf16.msra.mxu0 %v2603_v20  ;;  %v3487_v20 = vld [vmem:[%s3821_s0 + $0x20] sm:$0xff] }
  0x93   : > { %2668 = vmatpush2.bf16.msra.mxu1 %v2667_v21  ;;  %2606 = vmatprep.subr.bf16.mxu0 %v2605_v22  ;;  %v2715_v21 = vunpack.c.h.s8.bf16 %v386_v17  ;;  %v2763_v22 = vunpack.c.h.s8.bf16 %v426_v18 }
  0x94   : > { %2670 = vmatprep.subr.bf16.mxu1 %v2669_v23  ;;  %v3172_v23 = vmov 0.0  }
  0x96   : > { %2608 = vmatpush2.bf16.msra.mxu0 %v2607_v26  ;;  %v383_v26 = vld [vmem:[%s3330_s12 + $0x18] sm:$0xff] }
  0x97   : > { %2672 = vmatpush2.bf16.msra.mxu1 %v2671_v27  ;;  %2610 = vmatprep.subr.bf16.mxu0 %v2609_v30  ;;  %v423_v27 = vld [vmem:[%s3330_s12 + $0x158] sm:$0xff]  ;;  %v3498_v30 = vld [vmem:[%s3821_s0 + $0x48] sm:$0xff]  ;;  %v2721_v33 = vunpack.c.h.s8.bf16 %v383_v26  ;;  %v2725_v39 = vunpack.c.l.s8.bf16 %v383_v26 }
  0x98   : > { %2674 = vmatprep.subr.bf16.mxu1 %v2673_v31  ;;  %v2719_v31 = vunpack.c.l.s8.bf16 %v386_v17 }
  0x9a   : > { %2612 = vmatpush2.bf16.msra.mxu0 %v2611_v34  ;;  %v382_v34 = vld [vmem:[%s3330_s12 + $0x10] sm:$0xff] }
  0x9b   : > { %2676 = vmatpush2.bf16.msra.mxu1 %v2675_v35  ;;  %2614 = vmatprep.subr.bf16.mxu0 %v2613_v36  ;;  %v2769_v35 = vunpack.c.h.s8.bf16 %v423_v27  ;;  %v3508_v36 = vld [vmem:[%s3821_s0 + $0x70] sm:$0xff]  ;;  %v2727_v44 = vunpack.c.l.s8.bf16 %v382_v34 }
  0x9c   : > { %2678 = vmatprep.subr.bf16.mxu1 %v2677_v37  ;;  %v2723_v37 = vunpack.c.h.s8.bf16 %v382_v34 }
  0x9e   : > { %2616 = vmatpush2.bf16.msra.mxu0 %v2615_v40  ;;  %v2773_v40 = vunpack.c.l.s8.bf16 %v423_v27 }
  0x9f   : > { %2680 = vmatpush2.bf16.msra.mxu1 %v2679_v41  ;;  %2682 = vmatprep.subr.bf16.mxu0 %v2681_v42  ;;  %v411_v41 = vld [vmem:[%s3330_s12 + $0xf8] sm:$0xff] }
  0xa0   : > { %2698 = vmatprep.subr.bf16.mxu1 %v2697_v43  ;;  %v419_v42 = vld [vmem:[%s3330_s12 + $0x138] sm:$0xff] }
  0xa1   : > { %1126 = vmatmul.mubr.f32.vlgmr.msra.gmra.mxu0 %v3395_v46  ;;  %v3518_v43 = vld [vmem:[%s3821_s0 + $0x98] sm:$0xff] }
  0xa2   : > { %1215 = vmatmul.mubr.f32.vlgmr.msra.gmra.mxu1 %v3400_v47  ;;  %2684 = vmatpush1.bf16.msra.mxu0 %v2683_v48  ;;  %v2729_v48 = vunpack.c.h.s8.bf16 %v411_v41 }
  0xa3   : > { %2700 = vmatpush1.bf16.msra.mxu1 %v2699_v49  ;;  %1131 = vmatprep.mubr.f32.mxu0 %v3405_v50  ;;  %v2777_v49 = vunpack.c.h.s8.bf16 %v419_v42 }
  0xa4   : > { %1220 = vmatprep.mubr.f32.mxu1 %v3410_v51  ;;  %2686 = vmatprep.subr.bf16.mxu0 %v2685_v52  ;;  %v410_v52 = vld [vmem:[%s3330_s12 + $0xf0] sm:$0xff] }
  0xa5   : > { %2702 = vmatprep.subr.bf16.mxu1 %v2701_v53  ;;  %1132 = vmatmul.mubr.f32.gmra.mxu0 %v3419_v56  ;;  %v418_v53 = vld [vmem:[%s3330_s12 + $0x130] sm:$0xff]  ;;  %v2731_v54 = vunpack.c.h.s8.bf16 %v410_v52 }
  0xa6   : > { %1221 = vmatmul.mubr.f32.gmra.mxu1 %v3424_v57  ;;  %2688 = vmatpush1.bf16.msra.mxu0 %v2687_v58  ;;  %v2779_v55 = vunpack.c.h.s8.bf16 %v418_v53  ;;  %v2733_v58 = vunpack.c.l.s8.bf16 %v411_v41 }
  0xa7   : > { %2704 = vmatpush1.bf16.msra.mxu1 %v2703_v59  ;;  %1137 = vmatprep.mubr.f32.mxu0 %v3433_v62  ;;  %v2781_v59 = vunpack.c.l.s8.bf16 %v419_v42 }
  0xa8   : > { %1226 = vmatprep.mubr.f32.mxu1 %v3438_v63  ;;  %2690 = vmatprep.subr.bf16.mxu0 %v2689_v0  ;;  %v2735_v0 = vunpack.c.l.s8.bf16 %v410_v52 }
  0xa9   : > { %2706 = vmatprep.subr.bf16.mxu1 %v2705_v1  ;;  %1138 = vmatmul.mubr.f32.gmra.mxu0 %v3445_v2  ;;  %v2783_v1 = vunpack.c.l.s8.bf16 %v418_v53 }
  0xaa   : > { %1227 = vmatmul.mubr.f32.gmra.mxu1 %v3450_v3  ;;  %2692 = vmatpush1.bf16.msra.mxu0 %v2691_v4  ;;  %v2737_v4 = vunpack.c.h.s8.bf16 %v407_v60 }
  0xab   : > { %2708 = vmatpush1.bf16.msra.mxu1 %v2707_v5  ;;  %1143 = vmatprep.mubr.f32.mxu0 %v3457_v6  ;;  %v2785_v5 = vunpack.c.h.s8.bf16 %v415_v61 }
  0xac   : > { %1232 = vmatprep.mubr.f32.mxu1 %v3462_v7  ;;  %2694 = vmatprep.subr.bf16.mxu0 %v2693_v8  ;;  %v406_v8 = vld [vmem:[%s3330_s12 + $0xd0] sm:$0xff] }
  0xad   : > { %2710 = vmatprep.subr.bf16.mxu1 %v2709_v9  ;;  %1144 = vmatmul.mubr.f32.gmra.mxu0 %v3471_v12  ;;  %v414_v9 = vld [vmem:[%s3330_s12 + $0x110] sm:$0xff]  ;;  %v2739_v10 = vunpack.c.h.s8.bf16 %v406_v8  ;;  %v2743_v17 = vunpack.c.l.s8.bf16 %v406_v8 }
  0xae   : > { %1233 = vmatmul.mubr.f32.gmra.mxu1 %v3476_v13  ;;  %2696 = vmatpush1.bf16.msra.mxu0 %v2695_v14  ;;  %v2787_v11 = vunpack.c.h.s8.bf16 %v414_v9  ;;  %v2789_v14 = vunpack.c.l.s8.bf16 %v415_v61  ;;  %v2791_v18 = vunpack.c.l.s8.bf16 %v414_v9 }
  0xaf   : > { %2712 = vmatpush1.bf16.msra.mxu1 %v2711_v15  ;;  %1303 = vmatprep.mubr.f32.mxu0 %v3172_v23  ;;  %v403_v15 = vld [vmem:[%s3330_s12 + $0xb8] sm:$0xff] }
  0xb0   : > { %2714 = vmatprep.subr.bf16.mxu1 %v2713_v16  ;;  %2762 = vmatprep.subr.bf16.mxu0 %v2761_v19  ;;  %v443_v16 = vld [vmem:[%s3330_s12 + $0x1f8] sm:$0xff]  ;;  %v2745_v19 = vunpack.c.h.s8.bf16 %v403_v15  ;;  %v2749_v27 = vunpack.c.l.s8.bf16 %v403_v15 }
  0xb1   : > { %1392 = vmatprep.mubr.f32.mxu1 %v3357_v28  ;;  %2524 = vmatmul.mubr.msk.f32.vlgmr.msra.gmra.mxu0 %vm1048_vm0, %v3487_v20  ;;  %v422_v28 = vld [vmem:[%s3330_s12 + $0x150] sm:$0xff] }
  0xb2   : > { %2764 = vmatpush1.bf16.msra.mxu0 %v2763_v22  ;;  %1309 = vmatprep.mubr.f32.mxu0 %v3172_v23  ;;  %v2771_v38 = vunpack.c.h.s8.bf16 %v422_v28  ;;  %v2775_v45 = vunpack.c.l.s8.bf16 %v422_v28  ;;  %v402_v22 = vld [vmem:[%s3330_s12 + $0xb0] sm:$0xff] }
  0xb3   : > { %2716 = vmatpush1.bf16.msra.mxu1 %v2715_v21  ;;  %2766 = vmatprep.subr.bf16.mxu0 %v2765_v25  ;;  %v2793_v21 = vunpack.c.h.s8.bf16 %v443_v16  ;;  %v2747_v25 = vunpack.c.h.s8.bf16 %v402_v22  ;;  %v2751_v34 = vunpack.c.l.s8.bf16 %v402_v22 }
  0xb4   : > { %2718 = vmatprep.subr.bf16.mxu1 %v2717_v24  ;;  %v442_v24 = vld [vmem:[%s3330_s12 + $0x1f0] sm:$0xff] }
  0xb5   : > { %2525 = vmatmul.mubr.msk.f32.gmra.mxu0 %vm1048_vm0, %v3498_v30  ;;  %v2795_v26 = vunpack.c.h.s8.bf16 %v442_v24  ;;  %v2799_v28 = vunpack.c.l.s8.bf16 %v442_v24 }
  0xb6   : > { %2768 = vmatpush1.bf16.msra.mxu0 %v2767_v32  ;;  %1315 = vmatprep.mubr.f32.mxu0 %v3172_v23  ;;  %v399_v32 = vld [vmem:[%s3330_s12 + $0x98] sm:$0xff] }
  0xb7   : > { %2720 = vmatpush1.bf16.msra.mxu1 %v2719_v31  ;;  %2770 = vmatprep.subr.bf16.mxu0 %v2769_v35  ;;  %v2797_v31 = vunpack.c.l.s8.bf16 %v443_v16  ;;  %v2753_v35 = vunpack.c.h.s8.bf16 %v399_v32  ;;  %v2757_v42 = vunpack.c.l.s8.bf16 %v399_v32  ;;  %v1646_v16 = vld [vmem:[%s3330_s12 + $0x2a8] sm:$0xff] }
  0xb8   : > { %2722 = vmatprep.subr.bf16.mxu1 %v2721_v33  ;;  %v439_v33 = vld [vmem:[%s3330_s12 + $0x1d8] sm:$0xff] }
  0xb9   : > { %2526 = vmatmul.mubr.msk.f32.gmra.mxu0 %vm1048_vm0, %v3508_v36 }
  0xba   : > { %2772 = vmatpush1.bf16.msra.mxu0 %v2771_v38  ;;  %1321 = vmatprep.mubr.f32.mxu0 %v3172_v23  ;;  %v398_v38 = vld [vmem:[%s3330_s12 + $0x90] sm:$0xff] }
  0xbb   : > { %2724 = vmatpush1.bf16.msra.mxu1 %v2723_v37  ;;  %2774 = vmatprep.subr.bf16.mxu0 %v2773_v40  ;;  %v2801_v37 = vunpack.c.h.s8.bf16 %v439_v33  ;;  %v2755_v40 = vunpack.c.h.s8.bf16 %v398_v38 }
  0xbc   : > { %2726 = vmatprep.subr.bf16.mxu1 %v2725_v39  ;;  %v438_v39 = vld [vmem:[%s3330_s12 + $0x1d0] sm:$0xff] }
  0xbd   : > { %2527 = vmatmul.mubr.msk.f32.gmra.mxu0 %vm1048_vm0, %v3518_v43  ;;  %v2803_v41 = vunpack.c.h.s8.bf16 %v438_v39  ;;  %v2807_v52 = vunpack.c.l.s8.bf16 %v438_v39 }
  0xbe   : > { %2776 = vmatpush1.bf16.msra.mxu0 %v2775_v45  ;;  %1481 = vmatprep.mubr.f32.mxu0 %v3363_v29  ;;  %v2741_v29 = vunpack.c.l.s8.bf16 %v407_v60  ;;  %v435_v45 = vld [vmem:[%s3330_s12 + $0x1b8] sm:$0xff] }
  0xbf   : > { %2728 = vmatpush1.bf16.msra.mxu1 %v2727_v44  ;;  %2778 = vmatprep.subr.bf16.mxu0 %v2777_v49  ;;  %v2805_v44 = vunpack.c.l.s8.bf16 %v439_v33  ;;  %v2759_v49 = vunpack.c.l.s8.bf16 %v398_v38  ;;  %v2809_v53 = vunpack.c.h.s8.bf16 %v435_v45  ;;  %v2813_v61 = vunpack.c.l.s8.bf16 %v435_v45  ;;  %v1641_v33 = vld [vmem:[%s3330_s12 + $0x280] sm:$0xff]  ;;  %v1640_v38 = vld [vmem:[%s3330_s12 + $0x278] sm:$0xff] }
  0xc0   : > { %2730 = vmatprep.subr.bf16.mxu1 %v2729_v48  ;;  %v451_v48 = vld [vmem:[%s3330_s12 + $0x238] sm:$0xff]  ;;  %v2921_v39 = vunpack.c.h.s8.bf16 %v1640_v38 }
  0xc1   : > { %v1636_v45 = vld [vmem:[%s3330_s12 + $0x258] sm:$0xff] }
  0xc2   : > { %2780 = vmatpush1.bf16.msra.mxu0 %v2779_v55  ;;  %v434_v55 = vld [vmem:[%s3330_s12 + $0x1b0] sm:$0xff] }
  0xc3   : > { %2732 = vmatpush2.bf16.msra.mxu1 %v2731_v54  ;;  %2782 = vmatprep.subr.bf16.mxu0 %v2781_v59  ;;  %v2825_v54 = vunpack.c.h.s8.bf16 %v451_v48  ;;  %v2811_v59 = vunpack.c.h.s8.bf16 %v434_v55 }
  0xc4   : > { %2734 = vmatprep.subr.bf16.mxu1 %v2733_v58  ;;  %v450_v58 = vld [vmem:[%s3330_s12 + $0x230] sm:$0xff] }
  0xc5   : > { %v2827_v60 = vunpack.c.h.s8.bf16 %v450_v58  ;;  %v2831_v8 = vunpack.c.l.s8.bf16 %v450_v58 }
  0xc6   : > { %2784 = vmatpush1.bf16.msra.mxu0 %v2783_v1  ;;  %v431_v1 = vld [vmem:[%s3330_s12 + $0x198] sm:$0xff] }
  0xc7   : > { %2736 = vmatpush2.bf16.msra.mxu1 %v2735_v0  ;;  %2786 = vmatprep.subr.bf16.mxu0 %v2785_v5  ;;  %v2829_v0 = vunpack.c.l.s8.bf16 %v451_v48  ;;  %v2815_v5 = vunpack.c.l.s8.bf16 %v434_v55  ;;  %v2817_v9 = vunpack.c.h.s8.bf16 %v431_v1 }
  0xc8   : > { %2738 = vmatprep.subr.bf16.mxu1 %v2737_v4  ;;  %v447_v4 = vld [vmem:[%s3330_s12 + $0x218] sm:$0xff] }
  0xc9   : > { %v2837_v15 = vunpack.c.l.s8.bf16 %v447_v4 }
  0xca   : > { %2788 = vmatpush1.bf16.msra.mxu0 %v2787_v11  ;;  %v446_v11 = vld [vmem:[%s3330_s12 + $0x210] sm:$0xff] }
  0xcb   : > { %2740 = vmatpush2.bf16.msra.mxu1 %v2739_v10  ;;  %2790 = vmatprep.subr.bf16.mxu0 %v2789_v14  ;;  %v430_v10 = vld [vmem:[%s3330_s12 + $0x190] sm:$0xff]  ;;  %v2835_v14 = vunpack.c.h.s8.bf16 %v446_v11 }
  0xcc   : > { %2742 = vmatprep.subr.bf16.mxu1 %v2741_v29  ;;  %v2833_v29 = vunpack.c.h.s8.bf16 %v447_v4 }
  0xce   : > { %2792 = vmatpush1.bf16.msra.mxu0 %v2791_v18  ;;  %v2823_v18 = vunpack.c.l.s8.bf16 %v430_v10 }
  0xcf   : > { %2744 = vmatpush2.bf16.msra.mxu1 %v2743_v17  ;;  %2794 = vmatprep.subr.bf16.mxu0 %v2793_v21  ;;  %v1648_v17 = vld [vmem:[%s3330_s12 + $0x2b8] sm:$0xff]  ;;  %v1645_v21 = vld [vmem:[%s3330_s12 + $0x2a0] sm:$0xff] }
  0xd0   : > { %2746 = vmatprep.subr.bf16.mxu1 %v2745_v19  ;;  %v2841_v19 = vunpack.c.h.s8.bf16 %v1646_v16  ;;  %v2905_v22 = vunpack.c.h.s8.bf16 %v1648_v17 }
  0xd2   : > { %2796 = vmatpush2.bf16.msra.mxu0 %v2795_v26  ;;  %v1642_v26 = vld [vmem:[%s3330_s12 + $0x288] sm:$0xff] }
  0xd3   : > { %2748 = vmatpush2.bf16.msra.mxu1 %v2747_v25  ;;  %2798 = vmatprep.subr.bf16.mxu0 %v2797_v31  ;;  %v2909_v25 = vunpack.c.l.s8.bf16 %v1648_v17  ;;  %v2849_v32 = vunpack.c.h.s8.bf16 %v1642_v26 }
  0xd4   : > { %2750 = vmatprep.subr.bf16.mxu1 %v2749_v27  ;;  %v1644_v27 = vld [vmem:[%s3330_s12 + $0x298] sm:$0xff] }
  0xd6   : > { %2800 = vmatpush2.bf16.msra.mxu0 %v2799_v28 }
  0xd7   : > { %2752 = vmatpush2.bf16.msra.mxu1 %v2751_v34  ;;  %2802 = vmatprep.subr.bf16.mxu0 %v2801_v37  ;;  %v1643_v34 = vld [vmem:[%s3330_s12 + $0x290] sm:$0xff]  ;;  %v1638_v37 = vld [vmem:[%s3330_s12 + $0x268] sm:$0xff] }
  0xd8   : > { %2754 = vmatprep.subr.bf16.mxu1 %v2753_v35  ;;  %v2915_v28 = vunpack.c.h.s8.bf16 %v1643_v34  ;;  %v2917_v35 = vunpack.c.l.s8.bf16 %v1644_v27 }
  0xda   : > { %2804 = vmatpush2.bf16.msra.mxu0 %v2803_v41  ;;  %v1639_v41 = vld [vmem:[%s3330_s12 + $0x270] sm:$0xff] }
  0xdb   : > { %2756 = vmatpush2.bf16.msra.mxu1 %v2755_v40  ;;  %2806 = vmatprep.subr.bf16.mxu0 %v2805_v44  ;;  %v1637_v40 = vld [vmem:[%s3330_s12 + $0x260] sm:$0xff]  ;;  %v2925_v44 = vunpack.c.l.s8.bf16 %v1640_v38 }
  0xdc   : > { %2758 = vmatprep.subr.bf16.mxu1 %v2757_v42  ;;  %v2861_v42 = vunpack.c.l.s8.bf16 %v1638_v37 }
  0xde   : > { %2808 = vmatpush2.bf16.msra.mxu0 %v2807_v52  ;;  %v1633_v52 = vld [vmem:[%s3330_s12 + $0x240] sm:$0xff] }
  0xdf   : > { %2760 = vmatpush2.bf16.msra.mxu1 %v2759_v49  ;;  %2810 = vmatprep.subr.bf16.mxu0 %v2809_v53  ;;  %v2929_v49 = vunpack.c.h.s8.bf16 %v1636_v45  ;;  %v1635_v53 = vld [vmem:[%s3330_s12 + $0x250] sm:$0xff] }
  0xe0   : > { %2826 = vmatprep.subr.bf16.mxu1 %v2825_v54  ;;  %v2867_v54 = vunpack.c.h.s8.bf16 %v1633_v52  ;;  %v2931_v55 = vunpack.c.h.s8.bf16 %v1635_v53 }
  0xe2   : > { %1393 = vmatmul.mubr.f32.vlgmr.msra.gmra.mxu1 %v3395_v46  ;;  %2812 = vmatpush2.bf16.msra.mxu0 %v2811_v59  ;;  %v2819_v46 = vunpack.c.h.s8.bf16 %v430_v10  ;;  %v2933_v59 = vunpack.c.l.s8.bf16 %v1636_v45  ;;  %v1926_v45 = vld [vmem:[%s3822_s1 + $0x28] sm:$0xff] }
  0xe3   : > { %2828 = vmatpush1.bf16.msra.mxu1 %v2827_v60  ;;  %1398 = vmatprep.mubr.f32.mxu1 %v3405_v50  ;;  %v2821_v50 = vunpack.c.l.s8.bf16 %v431_v1  ;;  %v1662_v60 = vld [vmem:[%s3330_s12 + $0x328] sm:$0xff]  ;;  %v2935_v1 = vunpack.c.l.s8.bf16 %v1635_v53 }
  0xe4   : > { %2814 = vmatprep.subr.bf16.mxu0 %v2813_v61  ;;  %2830 = vmatprep.subr.bf16.mxu1 %v2829_v0  ;;  %v1664_v61 = vld [vmem:[%s3330_s12 + $0x338] sm:$0xff]  ;;  %v2871_v0 = vunpack.c.l.s8.bf16 %v1633_v52  ;;  %v2873_v4 = vunpack.c.h.s8.bf16 %v1662_v60 }
  0xe6   : > { %1399 = vmatmul.mubr.f32.gmra.mxu1 %v3419_v56  ;;  %2816 = vmatpush2.bf16.msra.mxu0 %v2815_v5  ;;  %v2839_v56 = vunpack.c.l.s8.bf16 %v446_v11  ;;  %v2937_v5 = vunpack.c.h.s8.bf16 %v1664_v61 }
  0xe7   : > { %2832 = vmatpush1.bf16.msra.mxu1 %v2831_v8  ;;  %1404 = vmatprep.mubr.f32.mxu1 %v3433_v62  ;;  %v1647_v62 = vld [vmem:[%s3330_s12 + $0x2b0] sm:$0xff]  ;;  %v1661_v8 = vld [vmem:[%s3330_s12 + $0x320] sm:$0xff] }
  0xe8   : > { %2818 = vmatprep.subr.bf16.mxu0 %v2817_v9  ;;  %2834 = vmatprep.subr.bf16.mxu1 %v2833_v29  ;;  %v2907_v24 = vunpack.c.h.s8.bf16 %v1647_v62  ;;  %v2911_v31 = vunpack.c.l.s8.bf16 %v1647_v62  ;;  %v1663_v9 = vld [vmem:[%s3330_s12 + $0x330] sm:$0xff]  ;;  %v2875_v10 = vunpack.c.h.s8.bf16 %v1661_v8  ;;  %v2877_v29 = vunpack.c.l.s8.bf16 %v1662_v60 }
  0xe9   : > { %v2939_v11 = vunpack.c.h.s8.bf16 %v1663_v9 }
  0xea   : > { %1405 = vmatmul.mubr.f32.gmra.mxu1 %v3445_v2  ;;  %2820 = vmatpush2.bf16.msra.mxu0 %v2819_v46  ;;  %v2843_v2 = vunpack.c.h.s8.bf16 %v1645_v21  ;;  %v2941_v46 = vunpack.c.l.s8.bf16 %v1664_v61 }
  0xeb   : > { %2836 = vmatpush1.bf16.msra.mxu1 %v2835_v14  ;;  %1410 = vmatprep.mubr.f32.mxu1 %v3457_v6  ;;  %v2845_v6 = vunpack.c.l.s8.bf16 %v1646_v16  ;;  %v1658_v14 = vld [vmem:[%s3330_s12 + $0x308] sm:$0xff]  ;;  %v2943_v16 = vunpack.c.l.s8.bf16 %v1663_v9 }
  0xec   : > { %2822 = vmatprep.subr.bf16.mxu0 %v2821_v50  ;;  %2838 = vmatprep.subr.bf16.mxu1 %v2837_v15  ;;  %v1660_v50 = vld [vmem:[%s3330_s12 + $0x318] sm:$0xff]  ;;  %v2879_v15 = vunpack.c.l.s8.bf16 %v1661_v8  ;;  %v2881_v17 = vunpack.c.h.s8.bf16 %v1658_v14 }
  0xee   : > { %1411 = vmatmul.mubr.f32.gmra.mxu1 %v3471_v12  ;;  %2824 = vmatpush2.bf16.msra.mxu0 %v2823_v18  ;;  %v2847_v12 = vunpack.c.l.s8.bf16 %v1645_v21  ;;  %v2945_v18 = vunpack.c.h.s8.bf16 %v1660_v50 }
  0xef   : > { %2840 = vmatpush1.bf16.msra.mxu1 %v2839_v56  ;;  %1570 = vmatprep.mubr.f32.mxu1 %v3172_v23  ;;  %v1657_v56 = vld [vmem:[%s3330_s12 + $0x300] sm:$0xff] }
  0xf0   : > { %2842 = vmatprep.subr.bf16.mxu0 %v2841_v19  ;;  %2906 = vmatprep.subr.bf16.mxu1 %v2905_v22  ;;  %v1659_v19 = vld [vmem:[%s3330_s12 + $0x310] sm:$0xff]  ;;  %v2883_v21 = vunpack.c.h.s8.bf16 %v1657_v56  ;;  %v2885_v22 = vunpack.c.l.s8.bf16 %v1658_v14 }
  0xf1   : > { %1482 = vmatmul.mubr.f32.vlgmr.msra.gmra.mxu0 %v3400_v47  ;;  %v2913_v47 = vunpack.c.h.s8.bf16 %v1644_v27  ;;  %v2947_v62 = vunpack.c.h.s8.bf16 %v1659_v19 }
  0xf2   : > { %2528 = vmatmul.mubr.msk.f32.vlgmr.msra.gmra.mxu1 %vm1048_vm0, %v3487_v20  ;;  %2844 = vmatpush1.bf16.msra.mxu0 %v2843_v2  ;;  %v2851_v20 = vunpack.c.h.s8.bf16 %v1641_v33  ;;  %v2949_v2 = vunpack.c.l.s8.bf16 %v1660_v50 }
  0xf3   : > { %2908 = vmatpush1.bf16.msra.mxu1 %v2907_v24  ;;  %1487 = vmatprep.mubr.f32.mxu0 %v3410_v51  ;;  %v2853_v51 = vunpack.c.l.s8.bf16 %v1642_v26  ;;  %v1654_v24 = vld [vmem:[%s3330_s12 + $0x2e8] sm:$0xff]  ;;  %v2951_v26 = vunpack.c.l.s8.bf16 %v1659_v19 }
  0xf4   : > { %2846 = vmatprep.subr.bf16.mxu0 %v2845_v6  ;;  %2910 = vmatprep.subr.bf16.mxu1 %v2909_v25  ;;  %v1656_v6 = vld [vmem:[%s3330_s12 + $0x2f8] sm:$0xff]  ;;  %v2887_v25 = vunpack.c.l.s8.bf16 %v1657_v56  ;;  %v2889_v27 = vunpack.c.h.s8.bf16 %v1654_v24 }
  0xf5   : > { %1576 = vmatprep.mubr.f32.mxu1 %v3172_v23  ;;  %1488 = vmatmul.mubr.f32.gmra.mxu0 %v3424_v57  ;;  %v2855_v57 = vunpack.c.l.s8.bf16 %v1641_v33 }
  0xf6   : > { %2529 = vmatmul.mubr.msk.f32.gmra.mxu1 %vm1048_vm0, %v3498_v30  ;;  %2848 = vmatpush1.bf16.msra.mxu0 %v2847_v12  ;;  %v2919_v30 = vunpack.c.l.s8.bf16 %v1643_v34  ;;  %v2953_v12 = vunpack.c.h.s8.bf16 %v1656_v6 }
  0xf7   : > { %2912 = vmatpush1.bf16.msra.mxu1 %v2911_v31  ;;  %1493 = vmatprep.mubr.f32.mxu0 %v3438_v63  ;;  %v2857_v63 = vunpack.c.h.s8.bf16 %v1638_v37  ;;  %v1653_v31 = vld [vmem:[%s3330_s12 + $0x2e0] sm:$0xff] }
  0xf8   : > { %2850 = vmatprep.subr.bf16.mxu0 %v2849_v32  ;;  %2914 = vmatprep.subr.bf16.mxu1 %v2913_v47  ;;  %v1655_v32 = vld [vmem:[%s3330_s12 + $0x2f0] sm:$0xff]  ;;  %v2891_v33 = vunpack.c.h.s8.bf16 %v1653_v31  ;;  %v2893_v47 = vunpack.c.l.s8.bf16 %v1654_v24 }
  0xf9   : > { %1582 = vmatprep.mubr.f32.mxu1 %v3172_v23  ;;  %1494 = vmatmul.mubr.f32.gmra.mxu0 %v3450_v3  ;;  %v1922_v3 = vld [vmem:[%s3822_s1 + $0x8] sm:$0xff]  ;;  %v2955_v34 = vunpack.c.h.s8.bf16 %v1655_v32  ;;  %v2959_v37 = vunpack.c.l.s8.bf16 %v1655_v32 }
  0xfa   : > { %2530 = vmatmul.mubr.msk.f32.gmra.mxu1 %vm1048_vm0, %v3508_v36  ;;  %2852 = vmatpush1.bf16.msra.mxu0 %v2851_v20  ;;  %v2923_v36 = vunpack.c.h.s8.bf16 %v1639_v41  ;;  %v2957_v20 = vunpack.c.l.s8.bf16 %v1656_v6 }
  0xfb   : > { %2916 = vmatpush1.bf16.msra.mxu1 %v2915_v28  ;;  %1499 = vmatprep.mubr.f32.mxu0 %v3462_v7  ;;  %v2859_v7 = vunpack.c.h.s8.bf16 %v1637_v40  ;;  %v1650_v28 = vld [vmem:[%s3330_s12 + $0x2c8] sm:$0xff] }
  0xfc   : > { %2854 = vmatprep.subr.bf16.mxu0 %v2853_v51  ;;  %2918 = vmatprep.subr.bf16.mxu1 %v2917_v35  ;;  %v1652_v51 = vld [vmem:[%s3330_s12 + $0x2d8] sm:$0xff]  ;;  %v2895_v35 = vunpack.c.l.s8.bf16 %v1653_v31  ;;  %v2897_v38 = vunpack.c.h.s8.bf16 %v1650_v28 }
  0xfd   : > { %1588 = vmatprep.mubr.f32.mxu1 %v3172_v23  ;;  %1500 = vmatmul.mubr.f32.gmra.mxu0 %v3476_v13  ;;  %v1634_v23 = vld [vmem:[%s3330_s12 + $0x248] sm:$0xff]  ;;  %v2863_v13 = vunpack.c.l.s8.bf16 %v1637_v40 }
  0xfe   : > { %2531 = vmatmul.mubr.msk.f32.gmra.mxu1 %vm1048_vm0, %v3518_v43  ;;  %2856 = vmatpush1.bf16.msra.mxu0 %v2855_v57  ;;  %v2927_v43 = vunpack.c.l.s8.bf16 %v1639_v41  ;;  %v2865_v48 = vunpack.c.h.s8.bf16 %v1634_v23  ;;  %v2869_v58 = vunpack.c.l.s8.bf16 %v1634_v23  ;;  %v2961_v57 = vunpack.c.h.s8.bf16 %v1652_v51  ;;  %v1923_v23 = vld [vmem:[%s3822_s1 + $0x10] sm:$0xff] }
  0xff   : > { %2920 = vmatpush1.bf16.msra.mxu1 %v2919_v30  ;;  %2858 = vmatprep.subr.bf16.mxu0 %v2857_v63  ;;  %v1649_v30 = vld [vmem:[%s3330_s12 + $0x2c0] sm:$0xff]  ;;  %v1651_v63 = vld [vmem:[%s3330_s12 + $0x2d0] sm:$0xff]  ;;  %v2901_v41 = vunpack.c.l.s8.bf16 %v1650_v28  ;;  %s2282_s12 = scalar_lea.vmem (%p3837_p7), %s3826_s5, %s2547_s14 }
 0x100   : > { %2922 = vmatprep.subr.bf16.mxu1 %v2921_v39  ;;  %1993 = vmatprep.mubr.f32.mxu0 %v1922_v3  ;;  %v2899_v39 = vunpack.c.h.s8.bf16 %v1649_v30  ;;  %v2963_v40 = vunpack.c.h.s8.bf16 %v1651_v63 }
 0x101   : > { %2082 = vmatprep.mubr.f32.mxu1 %v1922_v3  ;;  %v2965_v3 = vunpack.c.l.s8.bf16 %v1652_v51 }
 0x102   : > { %2860 = vmatpush1.bf16.msra.mxu0 %v2859_v7  ;;  %v2903_v7 = vunpack.c.l.s8.bf16 %v1649_v30 }
 0x103   : > { %2924 = vmatpush1.bf16.msra.mxu1 %v2923_v36  ;;  %2862 = vmatprep.subr.bf16.mxu0 %v2861_v42  ;;  %v2967_v36 = vunpack.c.l.s8.bf16 %v1651_v63  ;;  %v1921_v42 = vld [vmem:[%s3822_s1] sm:$0xff] }
 0x104   : > { %2926 = vmatprep.subr.bf16.mxu1 %v2925_v44  ;;  %v1924_v44 = vld [vmem:[%s3822_s1 + $0x18] sm:$0xff]  ;;  %v2532_v63 = vld [vmem:[%s3338_s15 + $0x1] ss:$2 sm:$0xf] }
 0x106   : > { %2864 = vmatpush1.bf16.msra.mxu0 %v2863_v13  ;;  %v1925_v13 = vld [vmem:[%s3822_s1 + $0x20] sm:$0xff] }
 0x107   : > { %2928 = vmatpush1.bf16.msra.mxu1 %v2927_v43  ;;  %2866 = vmatprep.subr.bf16.mxu0 %v2865_v48  ;;  %v1928_v43 = vld [vmem:[%s3822_s1 + $0x38] sm:$0xff]  ;;  %v1927_v48 = vld [vmem:[%s3822_s1 + $0x30] sm:$0xff] }
 0x108   : > { %2930 = vmatprep.subr.bf16.mxu1 %v2929_v49 }
 0x10a   : > { %2868 = vmatpush1.bf16.msra.mxu0 %v2867_v54 }
 0x10b   : > { %2932 = vmatpush1.bf16.msra.mxu1 %v2931_v55  ;;  %2870 = vmatprep.subr.bf16.mxu0 %v2869_v58 }
 0x10c   : > { %2934 = vmatprep.subr.bf16.mxu1 %v2933_v59 }
 0x10e   : > { %2872 = vmatpush1.bf16.msra.mxu0 %v2871_v0 }
 0x10f   : > { %2936 = vmatpush1.bf16.msra.mxu1 %v2935_v1  ;;  %2874 = vmatprep.subr.bf16.mxu0 %v2873_v4 }
 0x110   : > { %2938 = vmatprep.subr.bf16.mxu1 %v2937_v5 }
 0x112   : > { %2876 = vmatpush2.bf16.msra.mxu0 %v2875_v10 }
 0x113   : > { %2940 = vmatpush2.bf16.msra.mxu1 %v2939_v11  ;;  %2878 = vmatprep.subr.bf16.mxu0 %v2877_v29 }
 0x114   : > { %2942 = vmatprep.subr.bf16.mxu1 %v2941_v46 }
 0x116   : > { %2880 = vmatpush2.bf16.msra.mxu0 %v2879_v15 }
 0x117   : > { %2944 = vmatpush2.bf16.msra.mxu1 %v2943_v16  ;;  %2882 = vmatprep.subr.bf16.mxu0 %v2881_v17 }
 0x118   : > { %2946 = vmatprep.subr.bf16.mxu1 %v2945_v18 }
 0x11a   : > { %2884 = vmatpush2.bf16.msra.mxu0 %v2883_v21 }
 0x11b   : > { %2948 = vmatpush2.bf16.msra.mxu1 %v2947_v62  ;;  %2886 = vmatprep.subr.bf16.mxu0 %v2885_v22 }
 0x11c   : > { %2950 = vmatprep.subr.bf16.mxu1 %v2949_v2 }
 0x11e   : > { %2888 = vmatpush2.bf16.msra.mxu0 %v2887_v25 }
 0x11f   : > { %2952 = vmatpush2.bf16.msra.mxu1 %v2951_v26  ;;  %2890 = vmatprep.subr.bf16.mxu0 %v2889_v27 }
 0x120   : > { %2954 = vmatprep.subr.bf16.mxu1 %v2953_v12 }
 0x122   : > { %2892 = vmatpush2.bf16.msra.mxu0 %v2891_v33 }
 0x123   : > { %2956 = vmatpush2.bf16.msra.mxu1 %v2955_v34  ;;  %2894 = vmatprep.subr.bf16.mxu0 %v2893_v47  ;;  %v1597_v34 = vlaneseq }
 0x124   : > { %2958 = vmatprep.subr.bf16.mxu1 %v2957_v20 }
 0x125   : > { %v1598_v28 = vshrl.u32 %v1597_v34, 7 }
 0x126   : > { %2896 = vmatpush2.bf16.msra.mxu0 %v2895_v35 }
 0x127   : > { %2960 = vmatpush2.bf16.msra.mxu1 %v2959_v37  ;;  %2898 = vmatprep.subr.bf16.mxu0 %v2897_v38  ;;  %v1599_v37 = vsub.s32 0, %v1598_v28  ;;  %v1595_v38 = vld [vmem:[%s3338_s15] ss:$2 sm:$0xf]  ;;  %s3775_s15 = sshll.u32 %s3326_s30, 5 }
 0x128   : > { %2962 = vmatprep.subr.bf16.mxu1 %v2961_v57  ;;  %s3778_s28 = scalar_lea.vmem [#allocation6], %s3775_s15  ;;  %s3783_s30 = scalar_lea.vmem [#allocation8], %s3775_s15 }
 0x129   : > { %s371_s11 = scalar_lea.vmem [#allocation7], %s3775_s15 }
 0x12a   : > { %2900 = vmatpush2.bf16.msra.mxu0 %v2899_v39 }
 0x12b   : > { %2964 = vmatpush2.bf16.msra.mxu1 %v2963_v40  ;;  %2902 = vmatprep.subr.bf16.mxu0 %v2901_v41  ;;  %v1603_v40 = vsub.s32 1, %v1598_v28  ;;  %v1600_v41 = vrot.slane %v1595_v38, %v1599_v37 }
 0x12c   : > { %2966 = vmatprep.subr.bf16.mxu1 %v2965_v3  ;;  %v1607_v3 = vsub.s32 2, %v1598_v28 }
 0x12d   : > { %v3698_v34 = vrot.slane %v2532_v63, %v1603_v40 }
 0x12e   : > { %2904 = vmatpush2.bf16.msra.mxu0 %v2903_v7 }
 0x12f   : > { %2968 = vmatpush2.bf16.msra.mxu1 %v2967_v36 }
 0x131   : > { %1994 = vmatmul.mubr.f32.vlgmr.msra.gmra.mxu0 %v1921_v42 }
 0x132   : > { %2083 = vmatmul.mubr.f32.vlgmr.msra.gmra.mxu1 %v1921_v42  ;;  %1999 = vmatprep.mubr.f32.mxu0 %v1924_v44  ;;  %v1611_v42 = vsub.s32 3, %v1598_v28 }
 0x133   : > { %2088 = vmatprep.mubr.f32.mxu1 %v1924_v44  ;;  %v3692_v44 = vrot.slane %v2532_v63, %v1599_v37 }
 0x135   : > { %2000 = vmatmul.mubr.f32.gmra.mxu0 %v1923_v23 }
 0x136   : > { %2089 = vmatmul.mubr.f32.gmra.mxu1 %v1923_v23  ;;  %2005 = vmatprep.mubr.f32.mxu0 %v1926_v45 }
 0x137   : > { %2094 = vmatprep.mubr.f32.mxu1 %v1926_v45 }
 0x139   : > { %2006 = vmatmul.mubr.f32.gmra.mxu0 %v1925_v13 }
 0x13a   : > { %2095 = vmatmul.mubr.f32.gmra.mxu1 %v1925_v13  ;;  %2011 = vmatprep.mubr.f32.mxu0 %v1928_v43 }
 0x13b   : > { %2100 = vmatprep.mubr.f32.mxu1 %v1928_v43 }
 0x13d   : > { %2012 = vmatmul.mubr.f32.gmra.mxu0 %v1927_v48 }
 0x13e   : > { %2101 = vmatmul.mubr.f32.gmra.mxu1 %v1927_v48  ;;  %v1604_v48 = vrot.slane %v1595_v38, %v1603_v40 }
 0x161   : > { %v1127_v49 = vpop.f32.mrf.mxu0 }
 0x162   : > { %v1216_v52 = vpop.f32.mrf.mxu1 }
 0x163   : > { %v1129_v53 = vpop.f32.mrf.mxu0  ;;  %v1217_v39 = vadd.f32 %v1216_v52, %v1127_v49 }
 0x164   : > { %v1218_v54 = vpop.f32.mrf.mxu1 }
 0x165   : > { %v1133_v55 = vpop.f32.mrf.mxu0  ;;  %v1219_v7 = vadd.f32 %v1218_v54, %v1129_v53 }
 0x166   : > { %v1222_v58 = vpop.f32.mrf.mxu1 }
 0x167   : > { %v1135_v59 = vpop.f32.mrf.mxu0  ;;  %v1223_v13 = vadd.f32 %v1222_v58, %v1133_v55 }
 0x168   : > { %v1224_v60 = vpop.f32.mrf.mxu1 }
 0x169   : > { %v3628_v61 = vpop.f32.mrf.mxu0 }
 0x16a   : > { %v3630_v0 = vpop.f32.mrf.mxu1 }
 0x16b   : > { %v3632_v1 = vpop.f32.mrf.mxu0  ;;  %v1229_v37 = vadd.f32 %v3630_v0, %v3628_v61  ;;  %v3718_v61 = vrot.slane %v2532_v63, %v1611_v42 }
 0x16c   : > { %v3634_v4 = vpop.f32.mrf.mxu1 }
 0x16d   : > { %v3636_v5 = vpop.f32.mrf.mxu0  ;;  %v1231_v55 = vadd.f32 %v3634_v4, %v3632_v1 }
 0x16e   : > { %v1234_v8 = vpop.f32.mrf.mxu1 }
 0x16f   : > { %v3638_v9 = vpop.f32.mrf.mxu0  ;;  %v1235_v58 = vadd.f32 %v1234_v8, %v3636_v5 }
 0x170   : > { %v3640_v10 = vpop.f32.mrf.mxu1 }
 0x171   : > { %v1305_v29 = vpop.f32.mrf.mxu0 }
 0x172   : > { %v1306_v36 = vadd.f32 %v1305_v29, %v1217_v39  ;;  %v3704_v29 = vrot.slane %v1595_v38, %v1611_v42  ;;  %v1237_v39 = vadd.f32 %v3640_v10, %v3638_v9 }
 0x173   : > { %v1307_v14 = vpop.f32.mrf.mxu0 }
 0x174   : > { %v1308_v43 = vadd.f32 %v1307_v14, %v1219_v7  ;;  %v1617_v53 = vmul.f32 %v1600_v41, %v1306_v36 }
 0x175   : > { %v1311_v15 = vpop.f32.mrf.mxu0 }
 0x176   : > { %v1312_v54 = vadd.f32 %v1311_v15, %v1223_v13  ;;  %v1618_v40 = vmul.f32 %v1604_v48, %v1308_v43  ;;  %v3716_v13 = vrot.slane %v2532_v63, %v1607_v3 }
 0x177   : > { %v1313_v17 = vpop.f32.mrf.mxu0 }
 0x178   : > { %v1621_v4 = vmul.f32 %v1600_v41, %v1312_v54 }
 0x179   : > { %v1317_v56 = vpop.f32.mrf.mxu0 }
 0x17a   : > { %v1318_v7 = vadd.f32 %v1317_v56, %v1229_v37 }
 0x17b   : > { %v3654_v21 = vpop.f32.mrf.mxu0 }
 0x17c   : > { %v1320_v5 = vadd.f32 %v3654_v21, %v1231_v55  ;;  %v1625_v43 = vmul.f32 %v1600_v41, %v1318_v7 }
 0x17d   : > { %v3658_v22 = vpop.f32.mrf.mxu0 }
 0x17e   : > { %v1324_v10 = vadd.f32 %v3658_v22, %v1235_v58  ;;  %v1626_v54 = vmul.f32 %v1604_v48, %v1320_v5 }
 0x17f   : > { %v3662_v24 = vpop.f32.mrf.mxu0 }
 0x1a2   : > { %v3642_v11 = vpop.f32.mrf.mxu1 }
 0x1a4   : > { %v3644_v46 = vpop.f32.mrf.mxu1 }
 0x1a6   : > { %v3646_v50 = vpop.f32.mrf.mxu1 }
 0x1a8   : > { %v3648_v16 = vpop.f32.mrf.mxu1 }
 0x1aa   : > { %v3650_v18 = vpop.f32.mrf.mxu1 }
 0x1ac   : > { %v3652_v19 = vpop.f32.mrf.mxu1 }
 0x1ae   : > { %v3656_v62 = vpop.f32.mrf.mxu1 }
 0x1b0   : > { %v3660_v2 = vpop.f32.mrf.mxu1 }
 0x1b1   : > { %v3664_v6 = vpop.f32.mrf.mxu0 }
 0x1b2   : > { %v3666_v25 = vpop.f32.mrf.mxu1  ;;  %v1484_v63 = vadd.f32 %v3664_v6, %v3642_v11  ;;  %v1629_v11 = vmul.f32 %v1600_v41, %v1324_v10 }
 0x1b3   : > { %v1485_v26 = vpop.f32.mrf.mxu0 }
 0x1b4   : > { %v3668_v27 = vpop.f32.mrf.mxu1  ;;  %v1486_v36 = vadd.f32 %v1485_v26, %v3644_v46 }
 0x1b5   : > { %v3670_v12 = vpop.f32.mrf.mxu0 }
 0x1b6   : > { %v3672_v31 = vpop.f32.mrf.mxu1  ;;  %v1575_v21 = vadd.f32 %v3668_v27, %v1486_v36  ;;  %v1573_v27 = vadd.f32 %v3666_v25, %v1484_v63 }
 0x1b7   : > { %v3674_v32 = vpop.f32.mrf.mxu0 }
 0x1b8   : > { %v3676_v33 = vpop.f32.mrf.mxu1 }
 0x1b9   : > { %v3678_v47 = vpop.f32.mrf.mxu0 }
 0x1ba   : > { %v3680_v20 = vpop.f32.mrf.mxu1 }
 0x1bb   : > { %v3682_v51 = vpop.f32.mrf.mxu0 }
 0x1bc   : > { %v3684_v35 = vpop.f32.mrf.mxu1 }
 0x1bd   : > { %v3687_v57 = vpop.f32.mrf.mxu0 }
 0x1be   : > { %3833 = vst [vmem:[#allocation11_spill] sm:$0xff] %v3687_v57  ;;  %v3689_v30 = vpop.f32.mrf.mxu1  ;;  %v3700_v57 = vrot.slane %v1595_v38, %v1607_v3 }
 0x1bf   : > { %3834 = vst [vmem:[#allocation12_spill] sm:$0xff] %v3689_v30  ;;  %v3694_v23 = vpop.f32.mrf.mxu0  ;;  %v1225_v30 = vadd.f32 %v1224_v60, %v1135_v59 }
 0x1c0   : > { %v3696_v45 = vpop.f32.mrf.mxu1 }
 0x1c1   : > { %v1314_v59 = vadd.f32 %v1313_v17, %v1225_v30  ;;  %v1326_v30 = vadd.f32 %v3662_v24, %v1237_v39 }
 0x1c3   : > { %v1622_v9 = vmul.f32 %v1604_v48, %v1314_v59  ;;  %v1630_v6 = vmul.f32 %v1604_v48, %v1326_v30 }
 0x1f1   : > { %v1995_v49 = vpop.f32.mrf.mxu0 }
 0x1f2   : > { %v3702_v52 = vpop.f32.mrf.mxu1  ;;  %v2130_v28 = vmul.f32 %v3692_v44, %v1995_v49  ;;  %v1492_v49 = vadd.f32 %v3674_v32, %v3648_v16  ;;  %v1490_v16 = vadd.f32 %v3670_v12, %v3646_v50  ;;  %v1504_v50 = vadd.f32 %v3694_v23, %v3660_v2 }
 0x1f3   : > { %v1997_v60 = vpop.f32.mrf.mxu0  ;;  %v2132_v2 = vmul.f32 %v3716_v13, %v3702_v52  ;;  %v1619_v23 = vmul.f32 %v3700_v57, %v1573_v27 }
 0x1f4   : > { %v2086_v14 = vpop.f32.mrf.mxu1  ;;  %v2146_v15 = vadd.f32 %v2130_v28, %v1617_v53  ;;  %v2131_v38 = vmul.f32 %v3698_v34, %v1997_v60 }
 0x1f5   : > { %v2001_v0 = vpop.f32.mrf.mxu0  ;;  %v2133_v55 = vmul.f32 %v3718_v61, %v2086_v14  ;;  %v1498_v14 = vadd.f32 %v3682_v51, %v3652_v19  ;;  %v1496_v19 = vadd.f32 %v3678_v47, %v3650_v18 }
 0x1f6   : > { %v3720_v1 = vpop.f32.mrf.mxu1  ;;  %v2533_v8 = vmul.f32 -1.442695, %v2146_v15  ;;  %v2147_v17 = vadd.f32 %v2131_v38, %v1618_v40  ;;  %v2134_v56 = vmul.f32 %v3692_v44, %v2001_v0  ;;  %v1620_v40 = vmul.f32 %v3704_v29, %v1575_v21 }
 0x1f7   : > { %v2003_v46 = vpop.f32.mrf.mxu0  ;;  %v1581_v15 = vadd.f32 %v3676_v33, %v1492_v49  ;;  %v2136_v47 = vmul.f32 %v3716_v13, %v3720_v1  ;;  %v1585_v63 = vadd.f32 %v3680_v20, %v1496_v19 }
 0x1f8   : > { %v2092_v26 = vpop.f32.mrf.mxu1  ;;  %3011 = vpow2.f32 %v2533_v8  ;;  %v2537_v3 = vmul.f32 -1.442695, %v2147_v17  ;;  %v2135_v42 = vmul.f32 %v3698_v34, %v2003_v46  ;;  %v2150_v22 = vadd.f32 %v2134_v56, %v1621_v4 }
 0x1f9   : > { %v2007_v53 = vpop.f32.mrf.mxu0  ;;  %v2149_v12 = vadd.f32 %v2133_v55, %v1620_v40  ;;  %v2137_v7 = vmul.f32 %v3718_v61, %v2092_v26  ;;  %v1579_v4 = vadd.f32 %v3672_v31, %v1490_v16  ;;  %v1624_v51 = vmul.f32 %v3704_v29, %v1581_v15 }
 0x1fa   : > { %v3732_v24 = vpop.f32.mrf.mxu1  ;;  %3013 = vpow2.f32 %v2537_v3  ;;  %v2151_v28 = vadd.f32 %v2135_v42, %v1622_v9  ;;  %v2138_v37 = vmul.f32 %v3692_v44, %v2007_v53  ;;  %v2534_v58 = vmul.f32 -1.442695, %v2150_v22 }
 0x1fb   : > { %v2009_v59 = vpop.f32.mrf.mxu0  ;;  %v1587_v17 = vadd.f32 %v3684_v35, %v1498_v14  ;;  %v1593_v31 = vadd.f32 %v3696_v45, %v1504_v50  ;;  %v2541_v30 = vmul.f32 -1.442695, %v2149_v12  ;;  %v2153_v56 = vadd.f32 %v2137_v7, %v1624_v51  ;;  %v3835_v35 = vld [vmem:[#allocation11_spill] sm:$0xff] }
 0x1fc   : > { %v2098_v60 = vpop.f32.mrf.mxu1  ;;  %v2538_v32 = vmul.f32 -1.442695, %v2151_v28  ;;  %v2154_v39 = vadd.f32 %v2138_v37, %v1625_v43  ;;  %3015 = vpow2.f32 %v2534_v58  ;;  %v2139_v41 = vmul.f32 %v3698_v34, %v2009_v59  ;;  %v2238_v50 = vld [vmem:[%s3778_s28] sm:$0xff] }
 0x1fd   : > { %v2013_v48 = vpop.f32.mrf.mxu0  ;;  %v1623_v18 = vmul.f32 %v3700_v57, %v1579_v4  ;;  %v2141_v52 = vmul.f32 %v3718_v61, %v2098_v60  ;;  %v1502_v3 = vadd.f32 %v3835_v35, %v3656_v62  ;;  %v2148_v42 = vadd.f32 %v2132_v2, %v1619_v23 }
 0x1fe   : > { %3017 = vpow2.f32 %v2538_v32  ;;  %v2535_v38 = vmul.f32 -1.442695, %v2154_v39  ;;  %v2142_v25 = vmul.f32 %v3692_v44, %v2013_v48  ;;  %v2155_v36 = vadd.f32 %v2139_v41, %v1626_v54  ;;  %v2102_v0 = vpop.f32.mrf.mxu1 }
 0x1ff   : > { %v2015_v33 = vpop.f32.mrf.mxu0  ;;  %v1628_v45 = vmul.f32 %v3704_v29, %v1587_v17  ;;  %v1632_v1 = vmul.f32 %v3704_v29, %v1593_v31  ;;  %v2542_v22 = vmul.f32 -1.442695, %v2153_v56  ;;  %v2140_v53 = vmul.f32 %v3716_v13, %v3732_v24  ;;  %v2240_v56 = vld [vmem:[%s3778_s28 + $0x10] sm:$0xff] }
 0x200   : > { %3019 = vpow2.f32 %v2535_v38  ;;  %v2158_v5 = vadd.f32 %v2142_v25, %v1629_v11  ;;  %v2143_v8 = vmul.f32 %v3698_v34, %v2015_v33  ;;  %v2539_v44 = vmul.f32 -1.442695, %v2155_v36  ;;  %v2104_v34 = vpop.f32.mrf.mxu1  ;;  %v3836_v11 = vld [vmem:[#allocation12_spill] sm:$0xff] }
 0x201   : > { %v2145_v21 = vmul.f32 %v3718_v61, %v2104_v34  ;;  %v2152_v54 = vadd.f32 %v2136_v47, %v1623_v18  ;;  %v2157_v62 = vadd.f32 %v2141_v52, %v1628_v45  ;;  %v1627_v28 = vmul.f32 %v3700_v57, %v1585_v63  ;;  %v2241_v63 = vld [vmem:[%s3778_s28 + $0x18] sm:$0xff] }
 0x202   : > { %v2536_v9 = vmul.f32 -1.442695, %v2158_v5  ;;  %v2159_v10 = vadd.f32 %v2143_v8, %v1630_v6  ;;  %3021 = vpow2.f32 %v2539_v44  ;;  %v1591_v6 = vadd.f32 %v3836_v11, %v1502_v3  ;;  %v2239_v8 = vld [vmem:[%s3778_s28 + $0x8] sm:$0xff] }
 0x203   : > { %v2161_v61 = vadd.f32 %v2145_v21, %v1632_v1  ;;  %v2156_v58 = vadd.f32 %v2140_v53, %v1627_v28  ;;  %v2543_v24 = vmul.f32 -1.442695, %v2157_v62  ;;  %v2144_v60 = vmul.f32 %v3716_v13, %v2102_v0 }
 0x204   : > { %v2540_v46 = vmul.f32 -1.442695, %v2159_v10  ;;  %3023 = vpow2.f32 %v2536_v9  ;;  %v1631_v16 = vmul.f32 %v3700_v57, %v1591_v6 }
 0x205   : > { %v3012_v26 = vpop.eup %3011  ;;  %v2544_v39 = vmul.f32 -1.442695, %v2161_v61 }
 0x206   : > { %v2174_v43 = vadd.f32 1.0, %v3012_v26  ;;  %3025 = vpow2.f32 %v2540_v46  ;;  %v2160_v15 = vadd.f32 %v2144_v60, %v1631_v16 }
 0x207   : > { %v3014_v49 = vpop.eup %3013  ;;  %3027 = vpow2.f32 %v2541_v30 }
 0x208   : > { %3029 = vrcp.f32 %v2174_v43  ;;  %v2198_v20 = vadd.f32 1.0, %v3014_v49 }
 0x209   : > { %3031 = vtanh.f32 %v2148_v42  ;;  %v3016_v37 = vpop.eup %3015 }
 0x20a   : > { %3033 = vrcp.f32 %v2198_v20  ;;  %v2175_v29 = vadd.f32 1.0, %v3016_v37 }
 0x20b   : > { %v3018_v55 = vpop.eup %3017  ;;  %3035 = vpow2.f32 %v2542_v22 }
 0x20c   : > { %3037 = vtanh.f32 %v2152_v54  ;;  %v2199_v59 = vadd.f32 1.0, %v3018_v55 }
 0x20d   : > { %v3020_v27 = vpop.eup %3019  ;;  %3039 = vrcp.f32 %v2175_v29 }
 0x20e   : > { %3041 = vrcp.f32 %v2199_v59  ;;  %v2176_v32 = vadd.f32 1.0, %v3020_v27 }
 0x20f   : > { %3043 = vtanh.f32 %v2156_v58  ;;  %v3022_v40 = vpop.eup %3021 }
 0x210   : > { %3045 = vpow2.f32 %v2543_v24  ;;  %v2200_v41 = vadd.f32 1.0, %v3022_v40 }
 0x211   : > { %3047 = vrcp.f32 %v2176_v32  ;;  %v3024_v48 = vpop.eup %3023 }
 0x212   : > { %3049 = vpow2.f32 %v2544_v39  ;;  %v2177_v13 = vadd.f32 1.0, %v3024_v48 }
 0x213   : > { %v3026_v14 = vpop.eup %3025  ;;  %3051 = vrcp.f32 %v2200_v41 }
 0x214   : > { %v3028_v38 = vpop.eup %3027  ;;  %3053 = vtanh.f32 %v2160_v15  ;;  %v2201_v57 = vadd.f32 1.0, %v3026_v14 }
 0x215   : > { %v3030_v25 = vpop.eup %3029  ;;  %3055 = vrcp.f32 %v2177_v13  ;;  %v2226_v36 = vadd.f32 1.0, %v3028_v38 }
 0x216   : > { %v3032_v12 = vpop.eup %3031  ;;  %3057 = vrcp.f32 %v2201_v57 }
 0x217   : > { %v3034_v7 = vpop.eup %3033  ;;  %v2246_v33 = vmul.f32 %v3032_v12, %v3030_v25  ;;  %3059 = vrcp.f32 %v2226_v36 }
 0x218   : > { %v3036_v0 = vpop.eup %3035  ;;  %v2242_v4 = vmul.f32 %v3034_v7, %v2238_v50 }
 0x219   : > { %v3038_v5 = vpop.eup %3037  ;;  %v2227_v44 = vadd.f32 1.0, %v3036_v0 }
 0x21a   : > { %v3040_v19 = vpop.eup %3039  ;;  %v2250_v51 = vadd.f32 %v2246_v33, %v2242_v4 }
 0x21b   : > { %v3042_v2 = vpop.eup %3041  ;;  %v2247_v17 = vmul.f32 %v3040_v19, %v3038_v5 }
 0x21c   : > { %v3044_v23 = vpop.eup %3043  ;;  %3061 = vtanh.f32 %v2250_v51  ;;  %2266 = vst [vmem:[%s3783_s30] sm:$0xff] %v2250_v51  ;;  %v2243_v9 = vmul.f32 %v3042_v2, %v2239_v8 }
 0x21d   : > { %v3046_v10 = vpop.eup %3045  ;;  %3063 = vrcp.f32 %v2227_v44 }
 0x21e   : > { %v3048_v31 = vpop.eup %3047  ;;  %v2251_v30 = vadd.f32 %v2247_v17, %v2243_v9  ;;  %v2228_v47 = vadd.f32 1.0, %v3046_v10 }
 0x21f   : > { %v3050_v34 = vpop.eup %3049  ;;  %v2248_v46 = vmul.f32 %v3048_v31, %v3044_v23 }
 0x220   : > { %v3052_v18 = vpop.eup %3051  ;;  %3065 = vtanh.f32 %v2251_v30  ;;  %2267 = vst [vmem:[%s3783_s30 + $0x8] sm:$0xff] %v2251_v30  ;;  %v2229_v45 = vadd.f32 1.0, %v3050_v34 }
 0x221   : > { %v3054_v52 = vpop.eup %3053  ;;  %v2244_v26 = vmul.f32 %v3052_v18, %v2240_v56  ;;  %3067 = vrcp.f32 %v2228_v47 }
 0x222   : > { %v3056_v35 = vpop.eup %3055 }
 0x223   : > { %v3058_v3 = vpop.eup %3057  ;;  %v2252_v42 = vadd.f32 %v2248_v46, %v2244_v26  ;;  %v2249_v43 = vmul.f32 %v3056_v35, %v3054_v52 }
 0x224   : > { %v2245_v21 = vmul.f32 %v3058_v3, %v2241_v63  ;;  %v3060_v1 = vpop.eup %3059 }
 0x225   : > { %3069 = vtanh.f32 %v2252_v42  ;;  %2268 = vst [vmem:[%s3783_s30 + $0x10] sm:$0xff] %v2252_v42 }
 0x226   : > { %v2253_v49 = vadd.f32 %v2249_v43, %v2245_v21  ;;  %3071 = vrcp.f32 %v2229_v45 }
 0x228   : > { %3073 = vtanh.f32 %v2253_v49  ;;  %2269 = vst [vmem:[%s3783_s30 + $0x18] sm:$0xff] %v2253_v49 }
 0x229   : > { %v3062_v22 = vpop.eup %3061 }
 0x22a   : > { %v2258_v53 = vmul.f32 %v3062_v22, %v3060_v1  ;;  %v3064_v20 = vpop.eup %3063 }
 0x22c   : > { %2262 = vst [vmem:[%s371_s11] sm:$0xff] %v2258_v53 }
 0x22d   : > { %v3066_v54 = vpop.eup %3065 }
 0x22e   : > { %v2259_v62 = vmul.f32 %v3066_v54, %v3064_v20  ;;  %v3068_v28 = vpop.eup %3067 }
 0x230   : > { %2263 = vst [vmem:[%s371_s11 + $0x8] sm:$0xff] %v2259_v62 }
 0x232   : > { %v3070_v37 = vpop.eup %3069 }
 0x233   : > { %v2260_v11 = vmul.f32 %v3070_v37, %v3068_v28  ;;  %v3072_v6 = vpop.eup %3071  ;;  %v2317_v29 = vld [vmem:[%s371_s11] sm:$0xff] (%p3837_p7) }
 0x234   : > { %2280 = sbr.rel (!%p3837_p7) target bundleno = 577 (0x241), region = 90  ;;  %2318 = vst [vmem:[%s2282_s12] sm:$0xff] (%p3837_p7), %v2317_v29 }
 0x235   : > { %v3074_v61 = vpop.eup %3073  ;;  %2264 = vst [vmem:[%s371_s11 + $0x10] sm:$0xff] %v2260_v11 }
 0x236   : > { %v2261_v55 = vmul.f32 %v3074_v61, %v3072_v6 }
 0x237   : > { %v2319_v58 = vld [vmem:[%s371_s11 + $0x8] sm:$0xff] (%p3837_p7) }
 0x238   : > { %2265 = vst [vmem:[%s371_s11 + $0x18] sm:$0xff] %v2261_v55  ;;  %2320 = vst [vmem:[%s2282_s12 + $0x10] sm:$0xff] (%p3837_p7), %v2319_v58 }
 0x23c   : > { %v2321_v59 = vld [vmem:[%s371_s11 + $0x10] sm:$0xff] }
 0x23d   : > { %2322 = vst [vmem:[%s2282_s12 + $0x20] sm:$0xff] %v2321_v59 }
 0x23f   : > { %v2323_v24 = vld [vmem:[%s371_s11 + $0x18] sm:$0xff] }
 0x240   : > { %2324 = vst [vmem:[%s2282_s12 + $0x30] sm:$0xff] %v2323_v24 }
 0x241 PF: > { %p3838_p1 = scmp.ne.s32.totalorder %s3831_s8, 0 }
 0x242   : > { %s2548_s9 = sshll.u32 (%p3838_p1), %s3227_s25, 3  ;;  %v2367_v60 = vld [vmem:[%s3783_s30] sm:$0xff] (%p3838_p1)  ;;  %v2369_v27 = vld [vmem:[%s3783_s30 + $0x8] sm:$0xff] (%p3838_p1)  ;;  %v2371_v16 = vld [vmem:[%s3783_s30 + $0x10] sm:$0xff] (%p3838_p1) }
 0x243   : > { %2330 = sbr.rel (!%p3838_p1) target bundleno = 584 (0x248), region = 128  ;;  %s2332_s13 = scalar_lea.vmem (%p3838_p1), %s3827_s6, %s2548_s9  ;;  %v2373_v32 = vld [vmem:[%s3783_s30 + $0x18] sm:$0xff] (%p3838_p1) }
 0x244   : > { %2368 = vst [vmem:[%s2332_s13] sm:$0xff] (%p3838_p1), %v2367_v60  ;;  %2370 = vst [vmem:[%s2332_s13 + $0x10] sm:$0xff] (%p3838_p1), %v2369_v27 }
 0x245   : > { %2372 = vst [vmem:[%s2332_s13 + $0x20] sm:$0xff] (%p3838_p1), %v2371_v16  ;;  %2374 = vst [vmem:[%s2332_s13 + $0x30] sm:$0xff] (%p3838_p1), %v2373_v32 }
 0x248 PF: > { %p20_p2 = scmp.ge.s32.totalorder %s3230_s26, 4   ;;  %s3839_s21 = smov %s3157_s22 }
 0x249   : > { %s3840_s22 = smov %s3161_s23  ;;  %s3841_s23 = smov %s3240_s29 }
 0x24a   : > { %s3842_s24 = smov %s3230_s26  ;;  %22 = sbr.rel (!%p20_p2) target bundleno = 7 (0x7), region = 228 }
 0x24f   :  { %2397 = vsyncpa [#allocation3], 1 }
 0x250   :  { %2399 = vsyncpa [#allocation3 + $0x1], 1 }
 0x251   :  { %2400 = vsyncpa [#allocation5], 1 }
 0x252   :  { %2402 = vsyncpa [#allocation5 + $0x1], 1 }

// kernel: encoder_forward.4
= control target key start
LH: loop header
LB: loop body
LE: loop exit
PB: predicated region body
PF: predicated region fallthrough
CT: control target
= control target key end

     0   :  { %s7591_s0 = inlined_call_operand.vmem [shape: f32[8,2304], index: 0, kind: input, shape index: {}]   ;;  %s7592_s1 = inlined_call_operand.vmem [shape: f32[8,512], index: 1, kind: input, shape index: {}]   ;;  %s7593_s2 = inlined_call_operand.hbm [shape: s8[2816,2048], index: 2, kind: input, shape index: {}]   ;;  %s7594_s3 = inlined_call_operand.hbm [shape: f32[2,2048], index: 3, kind: input, shape index: {}]   ;;  %s7595_s4 = inlined_call_operand.vmem [shape: f32[8,512], index: 4, kind: input, shape index: {}]   ;;  %s7596_s5 = inlined_call_operand.vmem [shape: f32[8,512], index: 5, kind: output, shape index: {0}]   ;;  %s7597_s6 = inlined_call_operand.vmem [shape: f32[8,512], index: 6, kind: output, shape index: {1}]  }
   0x1   :  { %7599 = sst [smem:[#allocation8_spill]] %s7593_s2 }
   0x2   :  { %12 = vsyncpa [#allocation3], 0 }
   0x3   :  { %14 = vsyncpa [#allocation3 + $0x1], 0 }
   0x4   :  { %15 = vsyncpa [#allocation5], 0 }
   0x5   :  { %17 = vsyncpa [#allocation5 + $0x1], 0  ;;  %s6953_s21 = smov 0   ;;  %s6955_s22 = smov 0  }
   0x6   :  { %s6957_s23 = smov 0   ;;  %s6959_s24 = smov 0  }
   0x7 LB: > { %s6972_s25 = sadd.s32 4294967295, %s6911_s24   ;;  %s6975_s26 = sadd.s32 1, %s6911_s24   ;;  %s6911_s24 = sphi %s6959_s24, %s7609_s24   ;;  %s6907_s23 = sphi %s6957_s23, %s7608_s23   ;;  %s6903_s22 = sphi %s6955_s22, %s7607_s22   ;;  %s6899_s21 = sphi %s6953_s21, %s7606_s21  }
   0x8   : > { %s69_s27 = ssub.s32 %s6911_s24, %s6975_s26  ;;  %s72_s28 = sadd.s32 1, %s6907_s23 }
   0x9   : > { %p70_p0 = scmp.eq.s32.totalorder %s69_s27, 0  ;;  %p79_p1 = scmp.ne.s32.totalorder %s6907_s23, %s6903_s22 }
   0xa   : > { %p80_p2 = scmp.eq.s32.totalorder %s6911_s24, 0  ;;  %p85_p3 = scmp.ne.s32.totalorder %s6903_s22, %s6899_s21 }
   0xb   : > { %s6985_s29 = scalar_select %p70_p0, %s6907_s23, %s72_s28  }
   0xc   : > { %p81_p4 = por %p80_p2, %p79_p1  ;;  %p86_p5 = scmp.eq.s32.totalorder %s6972_s25, 0 }
   0xd   : > { %p6747_p6 = scmp.lt.s32.totalorder %s6911_s24, 4  ;;  %s6994_s7 = sand.u32 1, %s6907_s23  }
   0xe   : > { %p6989_p7 = por %p86_p5, %p85_p3  ;;  %s6734_s8 = smul.u32 2816, %s6994_s7 }
   0xf   : > { %s5324_s9 = sshll.u32 %s6911_s24, 9  ;;  %p6998_p8 = pnand %p6747_p6, %p81_p4 }
  0x10   : > { %s7600_s30 = scalar_select %p6989_p7, 1, 0 }
  0x11   : > { %s7602_s2 = sld [smem:[#allocation8_spill]]  ;;  %s223_s14 = scalar_lea.vmem [#allocation2], %s6734_s8 }
  0x12   : > { %s230_s15 = sshll.u32 %s223_s14, 4  ;;  %s220_s16 = scalar_lea.sflag [#allocation3], %s6994_s7  ;;  %s7007_s15 = int_to_ptr.vmem [resolvable:$true] %s230_s15 }
  0x13   : > { %p6819_p10 = pneg %p6998_p8 }
  0x17   : > { %s7005_s13 = scalar_lea.hbm %s7602_s2, %s5324_s9  ;;  %s6822_s20 = scalar_lea.hbm %s7602_s2, 180224 }
  0x18   : > { %s6817_s17 = scalar_lea.hbm %s7005_s13, 45056  ;;  %p6823_p13 = scmp.lt.s32.totalorder %s7005_s13, %s7602_s2 }
  0x19   : > { %p6818_p9 = scmp.ne.s32.totalorder %s7005_s13, %s6817_s17  ;;  %p6824_p0 = scmp.lt.s32.totalorder %s6822_s20, %s6817_s17 }
  0x1b   : > { %p6820_p11 = pnand %p6819_p10, %p6818_p9  ;;  %p6825_p1 = por %p6824_p0, %p6823_p13 }
  0x1d   : > { %p6821_p12 = pneg %p6820_p11 }
  0x1f   : > { %p6826_p2 = pnand %p6825_p1, %p6821_p12 }
  0x21   : > { %6829 = shalt.err (!%p6826_p2)
}
  0x22   : > { %s6830_s28 = scalar_lea.vmem %s7007_s15, 45056  ;;  %s6913_s8 = smov [#allocation2]  }
  0x23   : > { %p6831_p3 = scmp.ne.s32.totalorder %s7007_s15, %s6830_s28  ;;  %s6835_s9 = sshll.u32 %s6913_s8, 4  ;;  %s6836_s9 = int_to_ptr.vmem [resolvable:$false] %s6835_s9 }
  0x24   : > { %s6837_s11 = scalar_lea.vmem %s6836_s9, 90112  ;;  %p6838_p6 = scmp.lt.s32.totalorder %s7007_s15, %s6836_s9 }
  0x25   : > { %p6833_p4 = pnand %p6831_p3, %p6819_p10  ;;  %p6839_p9 = scmp.lt.s32.totalorder %s6837_s11, %s6830_s28 }
  0x27   : > { %p6834_p5 = pneg %p6833_p4  ;;  %p6840_p11 = por %p6839_p9, %p6838_p6 }
  0x29   : > { %p6841_p13 = pnand %p6840_p11, %p6834_p5 }
  0x2b   : > { %6844 = shalt.err (!%p6841_p13)
}
  0x2c   : > { %s6914_s12 = smov 2048   ;;  %s6915_s14 = smov 512  }
  0x2d   : > { %s6916_s17 = smov 32   ;;  %p5313_p12 = scmp.ge.s32.totalorder %s6911_s24, 1 }
  0x2e   : > { %6743 = dma.hbm_to_vmem [thread:$0]  (!%p6998_p8), %s7005_s13, 45056, %s7007_s15, %s220_s16, %s6914_s12, %s6915_s14, %s6916_s17  }
  0x2f   : > { %p264_p0 = scmp.lt.s32.totalorder %s6911_s24, 5  ;;  %s5310_s18 = sshll.u32 %s6994_s7, 3 }
  0x30   : > { %s5325_s20 = sshll.u32 %s6911_s24, 7  ;;  %s244_s21 = scalar_lea.vmem [#allocation4], %s5310_s18 }
  0x31   : > { %p7039_p1 = pnand %p5313_p12, %p264_p0  ;;  %s252_s27 = sshll.u32 %s244_s21, 4  ;;  %s253_s27 = int_to_ptr.vmem [resolvable:$true] %s252_s27 }
  0x32   : > { %s250_s9 = scalar_lea.hbm %s7594_s3, %s5325_s20  ;;  %s241_s11 = scalar_lea.sflag [#allocation5], %s6994_s7 }
  0x33   : > { %s7603_s19 = scalar_select %p7039_p1, 1, 0 }
  0x34   : > { %s6845_s2 = scalar_lea.hbm %s250_s9, 128  ;;  %s6850_s16 = scalar_lea.hbm %s7594_s3, 512 }
  0x35   : > { %p6846_p2 = scmp.ne.s32.totalorder %s250_s9, %s6845_s2  ;;  %p6851_p5 = scmp.lt.s32.totalorder %s250_s9, %s7594_s3 }
  0x36   : > { %p6852_p6 = scmp.lt.s32.totalorder %s6850_s16, %s6845_s2 }
  0x37   : > { %p6848_p3 = pnand %p6846_p2, %p6819_p10 }
  0x38   : > { %p6853_p9 = por %p6852_p6, %p6851_p5 }
  0x39   : > { %p6849_p4 = pneg %p6848_p3 }
  0x3b   : > { %p6854_p11 = pnand %p6853_p9, %p6849_p4 }
  0x3d   : > { %6857 = shalt.err (!%p6854_p11)
}
  0x3e   : > { %s6858_s14 = scalar_lea.vmem %s253_s27, 128  ;;  %s6917_s7 = smov [#allocation4]  }
  0x3f   : > { %p6859_p13 = scmp.ne.s32.totalorder %s253_s27, %s6858_s14  ;;  %s6863_s17 = sshll.u32 %s6917_s7, 4  ;;  %s6864_s17 = int_to_ptr.vmem [resolvable:$false] %s6863_s17 }
  0x40   : > { %s6865_s18 = scalar_lea.vmem %s6864_s17, 256  ;;  %p6866_p2 = scmp.lt.s32.totalorder %s253_s27, %s6864_s17 }
  0x41   : > { %p6861_p12 = pnand %p6859_p13, %p6819_p10  ;;  %p6867_p3 = scmp.lt.s32.totalorder %s6865_s18, %s6858_s14 }
  0x43   : > { %p6862_p0 = pneg %p6861_p12  ;;  %p6868_p7 = por %p6867_p3, %p6866_p2 }
  0x45   : > { %p6869_p1 = pnand %p6868_p7, %p6862_p0 }
  0x47   : > { %6872 = shalt.err (!%p6869_p1)
}
  0x48   : > { %6746 = dma.hbm_to_vmem [thread:$0]  (!%p6998_p8), %s250_s9, 128, %s253_s27, %s241_s11  }
  0x49   : > { %p7604_p4 = scmp.ne.s32.totalorder %s7603_s19, 0 }
  0x4a   : > { %s270_s2 = sand.u32 (!%p7604_p4), 1, %s6903_s22   ;;  %p7605_p10 = scmp.ne.s32.totalorder (!%p7604_p4), %s7600_s30, 0 }
  0x4b   : > { %268 = sbr.rel (%p7604_p4) target bundleno = 1028 (0x404), region = 40  ;;  %s271_s21 = scalar_lea.sflag (!%p7604_p4), [#allocation3], %s270_s2 }
  0x4c   : > { %s6735_s20 = smul.u32 (!%p7604_p4), 2816, %s270_s2 }
  0x4e   : > { %s7065_s28 = scalar_lea.vmem (!%p7604_p4), [#allocation2], %s6735_s20 }
  0x50   : > { %6890 = dma.done.wait (%p7605_p10), %s271_s21, 45056  }
  0x51   : > { %6892 = vsyncadd (%p7605_p10), %s271_s21, 4294922240  ;;  %s5314_s8 = sshll.u32 %s270_s2, 3  ;;  %s280_s13 = scalar_lea.sflag [#allocation5], %s270_s2 }
  0x52   : > { %s7071_s10 = scalar_lea.vmem [#allocation4], %s5314_s8 }
  0x53   : > { %6894 = dma.done.wait (%p7605_p10), %s280_s13, 128  }
  0x54   : > { %6896 = vsyncadd (%p7605_p10), %s280_s13, 4294967168  ;;  %v351_v0 = vld [vmem:[%s7065_s28 + $0x68] sm:$0xff]  ;;  %v350_v2 = vld [vmem:[%s7065_s28 + $0x60] sm:$0xff]  ;;  %p326_p7 = scmp.lt.s32.totalorder %s6972_s25, 3 }
  0x55   : > { %v383_v1 = vld [vmem:[%s7065_s28 + $0x168] sm:$0xff]  ;;  %v5326_v3 = vunpack.c.h.s8.bf16 %v351_v0  ;;  %v5330_v4 = vunpack.c.l.s8.bf16 %v351_v0  ;;  %v382_v7 = vld [vmem:[%s7065_s28 + $0x160] sm:$0xff]  ;;  %v5328_v8 = vunpack.c.h.s8.bf16 %v350_v2  ;;  %v5332_v12 = vunpack.c.l.s8.bf16 %v350_v2  ;;  %v2933_v25 = vld [vmem:[%s7591_s0 + $0x18] sm:$0xff] }
  0x56   : > { %v5390_v5 = vunpack.c.h.s8.bf16 %v383_v1  ;;  %v5394_v6 = vunpack.c.l.s8.bf16 %v383_v1  ;;  %v5392_v9 = vunpack.c.h.s8.bf16 %v382_v7  ;;  %v347_v10 = vld [vmem:[%s7065_s28 + $0x48] sm:$0xff]  ;;  %v5396_v13 = vunpack.c.l.s8.bf16 %v382_v7  ;;  %v346_v16 = vld [vmem:[%s7065_s28 + $0x40] sm:$0xff]  ;;  %3083 = vmatprep.mubr.f32.mxu1 %v2933_v25  ;;  %s7611_s25 = smov (!%p326_p7, %s6972_s25), 3 }
  0x57   : > { %v379_v11 = vld [vmem:[%s7065_s28 + $0x148] sm:$0xff]  ;;  %5327 = vmatprep.subr.bf16.mxu0 %v5326_v3  ;;  %v5334_v14 = vunpack.c.h.s8.bf16 %v347_v10  ;;  %v378_v17 = vld [vmem:[%s7065_s28 + $0x140] sm:$0xff]  ;;  %v5336_v18 = vunpack.c.h.s8.bf16 %v346_v16  ;;  %v5338_v20 = vunpack.c.l.s8.bf16 %v347_v10  ;;  %v5340_v26 = vunpack.c.l.s8.bf16 %v346_v16 }
  0x58   : > { %5391 = vmatprep.subr.bf16.mxu1 %v5390_v5  ;;  %5329 = vmatpush1.bf16.msra.mxu0 %v5328_v8  ;;  %v5398_v15 = vunpack.c.h.s8.bf16 %v379_v11  ;;  %v5400_v19 = vunpack.c.h.s8.bf16 %v378_v17  ;;  %v5402_v21 = vunpack.c.l.s8.bf16 %v379_v11  ;;  %v343_v22 = vld [vmem:[%s7065_s28 + $0x28] sm:$0xff]  ;;  %v5404_v27 = vunpack.c.l.s8.bf16 %v378_v17  ;;  %v342_v30 = vld [vmem:[%s7065_s28 + $0x20] sm:$0xff] }
  0x59   : > { %5393 = vmatpush1.bf16.msra.mxu1 %v5392_v9  ;;  %5331 = vmatprep.subr.bf16.mxu0 %v5330_v4  ;;  %v375_v23 = vld [vmem:[%s7065_s28 + $0x128] sm:$0xff]  ;;  %v5342_v28 = vunpack.c.h.s8.bf16 %v343_v22  ;;  %v374_v31 = vld [vmem:[%s7065_s28 + $0x120] sm:$0xff]  ;;  %v5344_v32 = vunpack.c.h.s8.bf16 %v342_v30  ;;  %v5346_v34 = vunpack.c.l.s8.bf16 %v343_v22  ;;  %v5348_v38 = vunpack.c.l.s8.bf16 %v342_v30 }
  0x5a   : > { %5395 = vmatprep.subr.bf16.mxu1 %v5394_v6  ;;  %v2931_v24 = vld [vmem:[%s7591_s0 + $0x8] sm:$0xff]  ;;  %v5406_v29 = vunpack.c.h.s8.bf16 %v375_v23  ;;  %v5408_v33 = vunpack.c.h.s8.bf16 %v374_v31  ;;  %v5410_v35 = vunpack.c.l.s8.bf16 %v375_v23  ;;  %v5412_v39 = vunpack.c.l.s8.bf16 %v374_v31  ;;  %v338_v42 = vld [vmem:[%s7065_s28] sm:$0xff] }
  0x5b   : > { %3012 = vmatprep.mubr.f32.mxu0 %v2931_v24  ;;  %v339_v36 = vld [vmem:[%s7065_s28 + $0x8] sm:$0xff]  ;;  %v370_v43 = vld [vmem:[%s7065_s28 + $0x100] sm:$0xff]  ;;  %v5352_v44 = vunpack.c.h.s8.bf16 %v338_v42  ;;  %v5356_v50 = vunpack.c.l.s8.bf16 %v338_v42 }
  0x5c   : > { %5333 = vmatpush1.bf16.msra.mxu0 %v5332_v12  ;;  %v371_v37 = vld [vmem:[%s7065_s28 + $0x108] sm:$0xff]  ;;  %v5350_v40 = vunpack.c.h.s8.bf16 %v339_v36  ;;  %v5416_v45 = vunpack.c.h.s8.bf16 %v370_v43  ;;  %v5354_v46 = vunpack.c.l.s8.bf16 %v339_v36  ;;  %v5420_v51 = vunpack.c.l.s8.bf16 %v370_v43  ;;  %v366_v54 = vld [vmem:[%s7065_s28 + $0xe0] sm:$0xff] }
  0x5d   : > { %5397 = vmatpush1.bf16.msra.mxu1 %v5396_v13  ;;  %5335 = vmatprep.subr.bf16.mxu0 %v5334_v14  ;;  %v5414_v41 = vunpack.c.h.s8.bf16 %v371_v37  ;;  %v5418_v47 = vunpack.c.l.s8.bf16 %v371_v37  ;;  %v367_v48 = vld [vmem:[%s7065_s28 + $0xe8] sm:$0xff]  ;;  %v398_v55 = vld [vmem:[%s7065_s28 + $0x1e0] sm:$0xff]  ;;  %v5360_v56 = vunpack.c.h.s8.bf16 %v366_v54  ;;  %v5364_v62 = vunpack.c.l.s8.bf16 %v366_v54 }
  0x5e   : > { %5399 = vmatprep.subr.bf16.mxu1 %v5398_v15  ;;  %v399_v49 = vld [vmem:[%s7065_s28 + $0x1e8] sm:$0xff]  ;;  %v5358_v52 = vunpack.c.h.s8.bf16 %v367_v48  ;;  %v5424_v57 = vunpack.c.h.s8.bf16 %v398_v55  ;;  %v5362_v58 = vunpack.c.l.s8.bf16 %v367_v48  ;;  %v5428_v63 = vunpack.c.l.s8.bf16 %v398_v55  ;;  %v362_v2 = vld [vmem:[%s7065_s28 + $0xc0] sm:$0xff] }
  0x5f   : > { %v5422_v53 = vunpack.c.h.s8.bf16 %v399_v49  ;;  %v5426_v59 = vunpack.c.l.s8.bf16 %v399_v49  ;;  %v363_v60 = vld [vmem:[%s7065_s28 + $0xc8] sm:$0xff]  ;;  %v394_v3 = vld [vmem:[%s7065_s28 + $0x1c0] sm:$0xff]  ;;  %v5368_v4 = vunpack.c.h.s8.bf16 %v362_v2  ;;  %v5372_v10 = vunpack.c.l.s8.bf16 %v362_v2  ;;  %v2937_v49 = vld [vmem:[%s7591_s0 + $0x38] sm:$0xff] }
  0x60   : > { %5337 = vmatpush1.bf16.msra.mxu0 %v5336_v18  ;;  %v395_v61 = vld [vmem:[%s7065_s28 + $0x1c8] sm:$0xff]  ;;  %v5366_v0 = vunpack.c.h.s8.bf16 %v363_v60  ;;  %v5432_v5 = vunpack.c.h.s8.bf16 %v394_v3  ;;  %v5370_v6 = vunpack.c.l.s8.bf16 %v363_v60  ;;  %v5436_v11 = vunpack.c.l.s8.bf16 %v394_v3  ;;  %v358_v14 = vld [vmem:[%s7065_s28 + $0xa0] sm:$0xff] }
  0x61   : > { %5401 = vmatpush1.bf16.msra.mxu1 %v5400_v19  ;;  %5339 = vmatprep.subr.bf16.mxu0 %v5338_v20  ;;  %v5430_v1 = vunpack.c.h.s8.bf16 %v395_v61  ;;  %v5434_v7 = vunpack.c.l.s8.bf16 %v395_v61  ;;  %v359_v8 = vld [vmem:[%s7065_s28 + $0xa8] sm:$0xff]  ;;  %v390_v15 = vld [vmem:[%s7065_s28 + $0x1a0] sm:$0xff]  ;;  %v5376_v16 = vunpack.c.h.s8.bf16 %v358_v14  ;;  %v5380_v22 = vunpack.c.l.s8.bf16 %v358_v14 }
  0x62   : > { %5403 = vmatprep.subr.bf16.mxu1 %v5402_v21  ;;  %v391_v9 = vld [vmem:[%s7065_s28 + $0x1a8] sm:$0xff]  ;;  %v5374_v12 = vunpack.c.h.s8.bf16 %v359_v8  ;;  %v5440_v17 = vunpack.c.h.s8.bf16 %v390_v15  ;;  %v5378_v18 = vunpack.c.l.s8.bf16 %v359_v8  ;;  %v5444_v23 = vunpack.c.l.s8.bf16 %v390_v15  ;;  %v410_v54 = vld [vmem:[%s7065_s28 + $0x240] sm:$0xff] }
  0x63   : > { %v5438_v13 = vunpack.c.h.s8.bf16 %v391_v9  ;;  %v5442_v19 = vunpack.c.l.s8.bf16 %v391_v9  ;;  %v355_v20 = vld [vmem:[%s7065_s28 + $0x88] sm:$0xff]  ;;  %v442_v55 = vld [vmem:[%s7065_s28 + $0x340] sm:$0xff] }
  0x64   : > { %5341 = vmatpush1.bf16.msra.mxu0 %v5340_v26  ;;  %v387_v21 = vld [vmem:[%s7065_s28 + $0x188] sm:$0xff]  ;;  %v5382_v24 = vunpack.c.h.s8.bf16 %v355_v20  ;;  %v354_v26 = vld [vmem:[%s7065_s28 + $0x80] sm:$0xff]  ;;  %v5386_v30 = vunpack.c.l.s8.bf16 %v355_v20 }
  0x65   : > { %5405 = vmatpush1.bf16.msra.mxu1 %v5404_v27  ;;  %5343 = vmatprep.subr.bf16.mxu0 %v5342_v28  ;;  %v5446_v25 = vunpack.c.h.s8.bf16 %v387_v21  ;;  %v386_v27 = vld [vmem:[%s7065_s28 + $0x180] sm:$0xff]  ;;  %v5384_v28 = vunpack.c.h.s8.bf16 %v354_v26  ;;  %v5450_v31 = vunpack.c.l.s8.bf16 %v387_v21  ;;  %v2935_v48 = vld [vmem:[%s7591_s0 + $0x28] sm:$0xff] }
  0x66   : > { %5407 = vmatprep.subr.bf16.mxu1 %v5406_v29  ;;  %v5448_v29 = vunpack.c.h.s8.bf16 %v386_v27  ;;  %v407_v60 = vld [vmem:[%s7065_s28 + $0x228] sm:$0xff]  ;;  %v406_v2 = vld [vmem:[%s7065_s28 + $0x220] sm:$0xff] }
  0x67   : > { %v439_v61 = vld [vmem:[%s7065_s28 + $0x328] sm:$0xff]  ;;  %v438_v3 = vld [vmem:[%s7065_s28 + $0x320] sm:$0xff] }
  0x68   : > { %5345 = vmatpush1.bf16.msra.mxu0 %v5344_v32  ;;  %v415_v32 = vld [vmem:[%s7065_s28 + $0x268] sm:$0xff]  ;;  %v402_v14 = vld [vmem:[%s7065_s28 + $0x200] sm:$0xff] }
  0x69   : > { %5409 = vmatpush1.bf16.msra.mxu1 %v5408_v33  ;;  %5347 = vmatprep.subr.bf16.mxu0 %v5346_v34  ;;  %v447_v33 = vld [vmem:[%s7065_s28 + $0x368] sm:$0xff]  ;;  %v5388_v34 = vunpack.c.l.s8.bf16 %v354_v26  ;;  %v5454_v36 = vunpack.c.h.s8.bf16 %v415_v32  ;;  %v434_v15 = vld [vmem:[%s7065_s28 + $0x300] sm:$0xff] }
  0x6a   : > { %5411 = vmatprep.subr.bf16.mxu1 %v5410_v35  ;;  %v5452_v35 = vunpack.c.l.s8.bf16 %v386_v27  ;;  %v5518_v37 = vunpack.c.h.s8.bf16 %v447_v33  ;;  %v403_v8 = vld [vmem:[%s7065_s28 + $0x208] sm:$0xff]  ;;  %v430_v26 = vld [vmem:[%s7065_s28 + $0x2e0] sm:$0xff] }
  0x6b   : > { %v435_v9 = vld [vmem:[%s7065_s28 + $0x308] sm:$0xff]  ;;  %v462_v27 = vld [vmem:[%s7065_s28 + $0x3e0] sm:$0xff] }
  0x6c   : > { %5349 = vmatpush1.bf16.msra.mxu0 %v5348_v38  ;;  %v414_v38 = vld [vmem:[%s7065_s28 + $0x260] sm:$0xff]  ;;  %v431_v20 = vld [vmem:[%s7065_s28 + $0x2e8] sm:$0xff] }
  0x6d   : > { %5413 = vmatpush1.bf16.msra.mxu1 %v5412_v39  ;;  %5351 = vmatprep.subr.bf16.mxu0 %v5350_v40  ;;  %v446_v39 = vld [vmem:[%s7065_s28 + $0x360] sm:$0xff]  ;;  %v5456_v42 = vunpack.c.h.s8.bf16 %v414_v38  ;;  %v463_v21 = vld [vmem:[%s7065_s28 + $0x3e8] sm:$0xff] }
  0x6e   : > { %5415 = vmatprep.subr.bf16.mxu1 %v5414_v41  ;;  %v2930_v40 = vld [vmem:[%s7591_s0] sm:$0xff]  ;;  %v2932_v41 = vld [vmem:[%s7591_s0 + $0x10] sm:$0xff]  ;;  %v5520_v43 = vunpack.c.h.s8.bf16 %v446_v39 }
  0x70   : > { %5353 = vmatpush1.bf16.msra.mxu0 %v5352_v44  ;;  %v5458_v44 = vunpack.c.l.s8.bf16 %v415_v32  ;;  %v427_v32 = vld [vmem:[%s7065_s28 + $0x2c8] sm:$0xff] }
  0x71   : > { %5417 = vmatpush1.bf16.msra.mxu1 %v5416_v45  ;;  %5355 = vmatprep.subr.bf16.mxu0 %v5354_v46  ;;  %v5522_v45 = vunpack.c.l.s8.bf16 %v447_v33  ;;  %v411_v46 = vld [vmem:[%s7065_s28 + $0x248] sm:$0xff] }
  0x72   : > { %5419 = vmatprep.subr.bf16.mxu1 %v5418_v47  ;;  %v443_v47 = vld [vmem:[%s7065_s28 + $0x348] sm:$0xff] }
  0x73   : > { %v459_v33 = vld [vmem:[%s7065_s28 + $0x3c8] sm:$0xff] }
  0x74   : > { %5357 = vmatpush1.bf16.msra.mxu0 %v5356_v50  ;;  %v5460_v50 = vunpack.c.l.s8.bf16 %v414_v38  ;;  %v426_v38 = vld [vmem:[%s7065_s28 + $0x2c0] sm:$0xff] }
  0x75   : > { %5421 = vmatpush1.bf16.msra.mxu1 %v5420_v51  ;;  %5359 = vmatprep.subr.bf16.mxu0 %v5358_v52  ;;  %v5524_v51 = vunpack.c.l.s8.bf16 %v446_v39  ;;  %v5462_v52 = vunpack.c.h.s8.bf16 %v411_v46  ;;  %v458_v39 = vld [vmem:[%s7065_s28 + $0x3c0] sm:$0xff] }
  0x76   : > { %5423 = vmatprep.subr.bf16.mxu1 %v5422_v53  ;;  %v5526_v53 = vunpack.c.h.s8.bf16 %v443_v47 }
  0x78   : > { %5361 = vmatpush2.bf16.msra.mxu0 %v5360_v56  ;;  %v5464_v56 = vunpack.c.h.s8.bf16 %v410_v54 }
  0x79   : > { %5425 = vmatpush2.bf16.msra.mxu1 %v5424_v57  ;;  %5363 = vmatprep.subr.bf16.mxu0 %v5362_v58  ;;  %v5528_v57 = vunpack.c.h.s8.bf16 %v442_v55  ;;  %v5466_v58 = vunpack.c.l.s8.bf16 %v411_v46  ;;  %v5500_v46 = vunpack.c.l.s8.bf16 %v426_v38 }
  0x7a   : > { %5427 = vmatprep.subr.bf16.mxu1 %v5426_v59  ;;  %v5530_v59 = vunpack.c.l.s8.bf16 %v443_v47  ;;  %v5564_v47 = vunpack.c.l.s8.bf16 %v458_v39 }
  0x7c   : > { %5365 = vmatpush2.bf16.msra.mxu0 %v5364_v62  ;;  %v5468_v62 = vunpack.c.l.s8.bf16 %v410_v54 }
  0x7d   : > { %5429 = vmatpush2.bf16.msra.mxu1 %v5428_v63  ;;  %5367 = vmatprep.subr.bf16.mxu0 %v5366_v0  ;;  %v5532_v63 = vunpack.c.l.s8.bf16 %v442_v55  ;;  %v5470_v0 = vunpack.c.h.s8.bf16 %v407_v60 }
  0x7e   : > { %5431 = vmatprep.subr.bf16.mxu1 %v5430_v1  ;;  %v5534_v1 = vunpack.c.h.s8.bf16 %v439_v61 }
  0x80   : > { %5369 = vmatpush2.bf16.msra.mxu0 %v5368_v4  ;;  %v5472_v4 = vunpack.c.h.s8.bf16 %v406_v2 }
  0x81   : > { %5433 = vmatpush2.bf16.msra.mxu1 %v5432_v5  ;;  %5371 = vmatprep.subr.bf16.mxu0 %v5370_v6  ;;  %v5536_v5 = vunpack.c.h.s8.bf16 %v438_v3  ;;  %v5474_v6 = vunpack.c.l.s8.bf16 %v407_v60 }
  0x82   : > { %5435 = vmatprep.subr.bf16.mxu1 %v5434_v7  ;;  %v5538_v7 = vunpack.c.l.s8.bf16 %v439_v61 }
  0x84   : > { %5373 = vmatpush2.bf16.msra.mxu0 %v5372_v10  ;;  %v5476_v10 = vunpack.c.l.s8.bf16 %v406_v2 }
  0x85   : > { %5437 = vmatpush2.bf16.msra.mxu1 %v5436_v11  ;;  %5375 = vmatprep.subr.bf16.mxu0 %v5374_v12  ;;  %v5540_v11 = vunpack.c.l.s8.bf16 %v438_v3  ;;  %v5478_v12 = vunpack.c.h.s8.bf16 %v403_v8 }
  0x86   : > { %5439 = vmatprep.subr.bf16.mxu1 %v5438_v13  ;;  %v5542_v13 = vunpack.c.h.s8.bf16 %v435_v9 }
  0x88   : > { %5377 = vmatpush2.bf16.msra.mxu0 %v5376_v16  ;;  %v5480_v16 = vunpack.c.h.s8.bf16 %v402_v14 }
  0x89   : > { %5441 = vmatpush2.bf16.msra.mxu1 %v5440_v17  ;;  %5379 = vmatprep.subr.bf16.mxu0 %v5378_v18  ;;  %v5544_v17 = vunpack.c.h.s8.bf16 %v434_v15  ;;  %v5482_v18 = vunpack.c.l.s8.bf16 %v403_v8 }
  0x8a   : > { %5443 = vmatprep.subr.bf16.mxu1 %v5442_v19  ;;  %v5546_v19 = vunpack.c.l.s8.bf16 %v435_v9 }
  0x8c   : > { %5381 = vmatpush2.bf16.msra.mxu0 %v5380_v22  ;;  %v5484_v22 = vunpack.c.l.s8.bf16 %v402_v14 }
  0x8d   : > { %5445 = vmatpush2.bf16.msra.mxu1 %v5444_v23  ;;  %5383 = vmatprep.subr.bf16.mxu0 %v5382_v24  ;;  %v5548_v23 = vunpack.c.l.s8.bf16 %v434_v15  ;;  %v5486_v24 = vunpack.c.h.s8.bf16 %v431_v20 }
  0x8e   : > { %5447 = vmatprep.subr.bf16.mxu1 %v5446_v25  ;;  %v5550_v25 = vunpack.c.h.s8.bf16 %v463_v21 }
  0x90   : > { %5385 = vmatpush2.bf16.msra.mxu0 %v5384_v28  ;;  %v5488_v28 = vunpack.c.h.s8.bf16 %v430_v26 }
  0x91   : > { %5449 = vmatpush2.bf16.msra.mxu1 %v5448_v29  ;;  %5387 = vmatprep.subr.bf16.mxu0 %v5386_v30  ;;  %v5552_v29 = vunpack.c.h.s8.bf16 %v462_v27  ;;  %v5490_v30 = vunpack.c.l.s8.bf16 %v431_v20  ;;  %v2939_v20 = vld [vmem:[%s7591_s0 + $0x48] sm:$0xff] }
  0x92   : > { %5451 = vmatprep.subr.bf16.mxu1 %v5450_v31  ;;  %v5554_v31 = vunpack.c.l.s8.bf16 %v463_v21  ;;  %v2941_v21 = vld [vmem:[%s7591_s0 + $0x58] sm:$0xff] }
  0x94   : > { %5389 = vmatpush2.bf16.msra.mxu0 %v5388_v34  ;;  %v5492_v34 = vunpack.c.l.s8.bf16 %v430_v26  ;;  %v474_v26 = vld [vmem:[%s7065_s28 + $0x440] sm:$0xff] }
  0x95   : > { %5453 = vmatpush2.bf16.msra.mxu1 %v5452_v35  ;;  %5455 = vmatprep.subr.bf16.mxu0 %v5454_v36  ;;  %v5556_v35 = vunpack.c.l.s8.bf16 %v462_v27  ;;  %v5494_v36 = vunpack.c.h.s8.bf16 %v427_v32  ;;  %v506_v27 = vld [vmem:[%s7065_s28 + $0x540] sm:$0xff] }
  0x96   : > { %5519 = vmatprep.subr.bf16.mxu1 %v5518_v37  ;;  %v5558_v37 = vunpack.c.h.s8.bf16 %v459_v33 }
  0x97   : > { %3013 = vmatmul.mubr.f32.vlgmr.msra.gmra.mxu0 %v2930_v40  ;;  %v5496_v40 = vunpack.c.h.s8.bf16 %v426_v38  ;;  %v470_v38 = vld [vmem:[%s7065_s28 + $0x420] sm:$0xff] }
  0x98   : > { %3084 = vmatmul.mubr.f32.vlgmr.msra.gmra.mxu1 %v2932_v41  ;;  %5457 = vmatpush1.bf16.msra.mxu0 %v5456_v42  ;;  %v5560_v41 = vunpack.c.h.s8.bf16 %v458_v39  ;;  %v5498_v42 = vunpack.c.l.s8.bf16 %v427_v32  ;;  %v471_v32 = vld [vmem:[%s7065_s28 + $0x428] sm:$0xff]  ;;  %v502_v39 = vld [vmem:[%s7065_s28 + $0x520] sm:$0xff] }
  0x99   : > { %5521 = vmatpush1.bf16.msra.mxu1 %v5520_v43  ;;  %5459 = vmatprep.subr.bf16.mxu0 %v5458_v44  ;;  %v5562_v43 = vunpack.c.l.s8.bf16 %v459_v33  ;;  %v423_v44 = vld [vmem:[%s7065_s28 + $0x2a8] sm:$0xff] }
  0x9a   : > { %5523 = vmatprep.subr.bf16.mxu1 %v5522_v45  ;;  %3154 = vmatprep.mubr.f32.mxu0 %v2935_v48  ;;  %v455_v45 = vld [vmem:[%s7065_s28 + $0x3a8] sm:$0xff]  ;;  %v5502_v48 = vunpack.c.h.s8.bf16 %v423_v44  ;;  %v5506_v54 = vunpack.c.l.s8.bf16 %v423_v44 }
  0x9b   : > { %3225 = vmatprep.mubr.f32.mxu1 %v2937_v49  ;;  %v5566_v49 = vunpack.c.h.s8.bf16 %v455_v45  ;;  %v5570_v55 = vunpack.c.l.s8.bf16 %v455_v45  ;;  %v503_v33 = vld [vmem:[%s7065_s28 + $0x528] sm:$0xff] }
  0x9c   : > { %5461 = vmatpush1.bf16.msra.mxu0 %v5460_v50  ;;  %v422_v50 = vld [vmem:[%s7065_s28 + $0x2a0] sm:$0xff]  ;;  %v467_v44 = vld [vmem:[%s7065_s28 + $0x408] sm:$0xff] }
  0x9d   : > { %5525 = vmatpush1.bf16.msra.mxu1 %v5524_v51  ;;  %5463 = vmatprep.subr.bf16.mxu0 %v5462_v52  ;;  %v454_v51 = vld [vmem:[%s7065_s28 + $0x3a0] sm:$0xff]  ;;  %v5504_v52 = vunpack.c.h.s8.bf16 %v422_v50  ;;  %v499_v45 = vld [vmem:[%s7065_s28 + $0x508] sm:$0xff] }
  0x9e   : > { %5527 = vmatprep.subr.bf16.mxu1 %v5526_v53  ;;  %v5568_v53 = vunpack.c.h.s8.bf16 %v454_v51 }
  0xa0   : > { %5465 = vmatpush1.bf16.msra.mxu0 %v5464_v56  ;;  %v419_v56 = vld [vmem:[%s7065_s28 + $0x288] sm:$0xff] }
  0xa1   : > { %5529 = vmatpush1.bf16.msra.mxu1 %v5528_v57  ;;  %5467 = vmatprep.subr.bf16.mxu0 %v5466_v58  ;;  %v451_v57 = vld [vmem:[%s7065_s28 + $0x388] sm:$0xff]  ;;  %v5508_v58 = vunpack.c.l.s8.bf16 %v422_v50  ;;  %v5510_v60 = vunpack.c.h.s8.bf16 %v419_v56  ;;  %v5514_v2 = vunpack.c.l.s8.bf16 %v419_v56  ;;  %v466_v50 = vld [vmem:[%s7065_s28 + $0x400] sm:$0xff] }
  0xa2   : > { %5531 = vmatprep.subr.bf16.mxu1 %v5530_v59  ;;  %v5572_v59 = vunpack.c.l.s8.bf16 %v454_v51  ;;  %v5574_v61 = vunpack.c.h.s8.bf16 %v451_v57  ;;  %v5578_v3 = vunpack.c.l.s8.bf16 %v451_v57  ;;  %v498_v51 = vld [vmem:[%s7065_s28 + $0x500] sm:$0xff]  ;;  %v495_v56 = vld [vmem:[%s7065_s28 + $0x4e8] sm:$0xff] }
  0xa3   : > { %v527_v57 = vld [vmem:[%s7065_s28 + $0x5e8] sm:$0xff] }
  0xa4   : > { %5469 = vmatpush1.bf16.msra.mxu0 %v5468_v62  ;;  %v418_v62 = vld [vmem:[%s7065_s28 + $0x280] sm:$0xff] }
  0xa5   : > { %5533 = vmatpush1.bf16.msra.mxu1 %v5532_v63  ;;  %5471 = vmatprep.subr.bf16.mxu0 %v5470_v0  ;;  %v450_v63 = vld [vmem:[%s7065_s28 + $0x380] sm:$0xff]  ;;  %v5512_v0 = vunpack.c.h.s8.bf16 %v418_v62 }
  0xa6   : > { %5535 = vmatprep.subr.bf16.mxu1 %v5534_v1  ;;  %v5576_v1 = vunpack.c.h.s8.bf16 %v450_v63 }
  0xa8   : > { %5473 = vmatpush1.bf16.msra.mxu0 %v5472_v4  ;;  %v479_v4 = vld [vmem:[%s7065_s28 + $0x468] sm:$0xff] }
  0xa9   : > { %5537 = vmatpush1.bf16.msra.mxu1 %v5536_v5  ;;  %5475 = vmatprep.subr.bf16.mxu0 %v5474_v6  ;;  %v511_v5 = vld [vmem:[%s7065_s28 + $0x568] sm:$0xff]  ;;  %v5516_v6 = vunpack.c.l.s8.bf16 %v418_v62  ;;  %v5582_v8 = vunpack.c.h.s8.bf16 %v479_v4  ;;  %v494_v62 = vld [vmem:[%s7065_s28 + $0x4e0] sm:$0xff] }
  0xaa   : > { %5539 = vmatprep.subr.bf16.mxu1 %v5538_v7  ;;  %v5580_v7 = vunpack.c.l.s8.bf16 %v450_v63  ;;  %v5646_v9 = vunpack.c.h.s8.bf16 %v511_v5  ;;  %v526_v63 = vld [vmem:[%s7065_s28 + $0x5e0] sm:$0xff] }
  0xac   : > { %5477 = vmatpush1.bf16.msra.mxu0 %v5476_v10  ;;  %v478_v10 = vld [vmem:[%s7065_s28 + $0x460] sm:$0xff] }
  0xad   : > { %5541 = vmatpush1.bf16.msra.mxu1 %v5540_v11  ;;  %5479 = vmatprep.subr.bf16.mxu0 %v5478_v12  ;;  %v510_v11 = vld [vmem:[%s7065_s28 + $0x560] sm:$0xff]  ;;  %v5584_v14 = vunpack.c.h.s8.bf16 %v478_v10 }
  0xae   : > { %5543 = vmatprep.subr.bf16.mxu1 %v5542_v13  ;;  %v2934_v12 = vld [vmem:[%s7591_s0 + $0x20] sm:$0xff]  ;;  %v2936_v13 = vld [vmem:[%s7591_s0 + $0x30] sm:$0xff]  ;;  %v5648_v15 = vunpack.c.h.s8.bf16 %v510_v11 }
  0xb0   : > { %5481 = vmatpush1.bf16.msra.mxu0 %v5480_v16  ;;  %v5586_v16 = vunpack.c.l.s8.bf16 %v479_v4  ;;  %v491_v4 = vld [vmem:[%s7065_s28 + $0x4c8] sm:$0xff] }
  0xb1   : > { %5545 = vmatpush1.bf16.msra.mxu1 %v5544_v17  ;;  %5483 = vmatprep.subr.bf16.mxu0 %v5482_v18  ;;  %v5650_v17 = vunpack.c.l.s8.bf16 %v511_v5  ;;  %v475_v18 = vld [vmem:[%s7065_s28 + $0x448] sm:$0xff] }
  0xb2   : > { %5547 = vmatprep.subr.bf16.mxu1 %v5546_v19  ;;  %v507_v19 = vld [vmem:[%s7065_s28 + $0x548] sm:$0xff] }
  0xb3   : > { %v523_v5 = vld [vmem:[%s7065_s28 + $0x5c8] sm:$0xff] }
  0xb4   : > { %5485 = vmatpush1.bf16.msra.mxu0 %v5484_v22  ;;  %v5588_v22 = vunpack.c.l.s8.bf16 %v478_v10  ;;  %v490_v10 = vld [vmem:[%s7065_s28 + $0x4c0] sm:$0xff] }
  0xb5   : > { %5549 = vmatpush1.bf16.msra.mxu1 %v5548_v23  ;;  %5487 = vmatprep.subr.bf16.mxu0 %v5486_v24  ;;  %v5652_v23 = vunpack.c.l.s8.bf16 %v510_v11  ;;  %v5590_v24 = vunpack.c.h.s8.bf16 %v475_v18  ;;  %v522_v11 = vld [vmem:[%s7065_s28 + $0x5c0] sm:$0xff] }
  0xb6   : > { %5551 = vmatprep.subr.bf16.mxu1 %v5550_v25  ;;  %v5654_v25 = vunpack.c.h.s8.bf16 %v507_v19 }
  0xb8   : > { %5489 = vmatpush2.bf16.msra.mxu0 %v5488_v28  ;;  %v5592_v28 = vunpack.c.h.s8.bf16 %v474_v26 }
  0xb9   : > { %5553 = vmatpush2.bf16.msra.mxu1 %v5552_v29  ;;  %5491 = vmatprep.subr.bf16.mxu0 %v5490_v30  ;;  %v5656_v29 = vunpack.c.h.s8.bf16 %v506_v27  ;;  %v5594_v30 = vunpack.c.l.s8.bf16 %v475_v18  ;;  %v5628_v18 = vunpack.c.l.s8.bf16 %v490_v10 }
  0xba   : > { %5555 = vmatprep.subr.bf16.mxu1 %v5554_v31  ;;  %v5658_v31 = vunpack.c.l.s8.bf16 %v507_v19  ;;  %v5692_v19 = vunpack.c.l.s8.bf16 %v522_v11 }
  0xbc   : > { %5493 = vmatpush2.bf16.msra.mxu0 %v5492_v34  ;;  %v5596_v34 = vunpack.c.l.s8.bf16 %v474_v26 }
  0xbd   : > { %5557 = vmatpush2.bf16.msra.mxu1 %v5556_v35  ;;  %5495 = vmatprep.subr.bf16.mxu0 %v5494_v36  ;;  %v5660_v35 = vunpack.c.l.s8.bf16 %v506_v27  ;;  %v5598_v36 = vunpack.c.h.s8.bf16 %v471_v32 }
  0xbe   : > { %5559 = vmatprep.subr.bf16.mxu1 %v5558_v37  ;;  %v5662_v37 = vunpack.c.h.s8.bf16 %v503_v33 }
  0xc0   : > { %5497 = vmatpush2.bf16.msra.mxu0 %v5496_v40  ;;  %v5600_v40 = vunpack.c.h.s8.bf16 %v470_v38 }
  0xc1   : > { %5561 = vmatpush2.bf16.msra.mxu1 %v5560_v41  ;;  %5499 = vmatprep.subr.bf16.mxu0 %v5498_v42  ;;  %v5664_v41 = vunpack.c.h.s8.bf16 %v502_v39  ;;  %v5602_v42 = vunpack.c.l.s8.bf16 %v471_v32 }
  0xc2   : > { %5563 = vmatprep.subr.bf16.mxu1 %v5562_v43  ;;  %v5666_v43 = vunpack.c.l.s8.bf16 %v503_v33 }
  0xc4   : > { %5501 = vmatpush2.bf16.msra.mxu0 %v5500_v46  ;;  %v5604_v46 = vunpack.c.l.s8.bf16 %v470_v38 }
  0xc5   : > { %5565 = vmatpush2.bf16.msra.mxu1 %v5564_v47  ;;  %5503 = vmatprep.subr.bf16.mxu0 %v5502_v48  ;;  %v5668_v47 = vunpack.c.l.s8.bf16 %v502_v39  ;;  %v5606_v48 = vunpack.c.h.s8.bf16 %v467_v44 }
  0xc6   : > { %5567 = vmatprep.subr.bf16.mxu1 %v5566_v49  ;;  %v5670_v49 = vunpack.c.h.s8.bf16 %v499_v45 }
  0xc8   : > { %5505 = vmatpush2.bf16.msra.mxu0 %v5504_v52  ;;  %v5608_v52 = vunpack.c.h.s8.bf16 %v466_v50 }
  0xc9   : > { %5569 = vmatpush2.bf16.msra.mxu1 %v5568_v53  ;;  %5507 = vmatprep.subr.bf16.mxu0 %v5506_v54  ;;  %v5672_v53 = vunpack.c.h.s8.bf16 %v498_v51  ;;  %v5610_v54 = vunpack.c.l.s8.bf16 %v467_v44 }
  0xca   : > { %5571 = vmatprep.subr.bf16.mxu1 %v5570_v55  ;;  %v5674_v55 = vunpack.c.l.s8.bf16 %v499_v45 }
  0xcc   : > { %5509 = vmatpush2.bf16.msra.mxu0 %v5508_v58  ;;  %v5612_v58 = vunpack.c.l.s8.bf16 %v466_v50 }
  0xcd   : > { %5573 = vmatpush2.bf16.msra.mxu1 %v5572_v59  ;;  %5511 = vmatprep.subr.bf16.mxu0 %v5510_v60  ;;  %v5676_v59 = vunpack.c.l.s8.bf16 %v498_v51  ;;  %v5614_v60 = vunpack.c.h.s8.bf16 %v495_v56 }
  0xce   : > { %5575 = vmatprep.subr.bf16.mxu1 %v5574_v61  ;;  %v5678_v61 = vunpack.c.h.s8.bf16 %v527_v57 }
  0xd0   : > { %5513 = vmatpush2.bf16.msra.mxu0 %v5512_v0  ;;  %v5616_v0 = vunpack.c.h.s8.bf16 %v494_v62 }
  0xd1   : > { %5577 = vmatpush2.bf16.msra.mxu1 %v5576_v1  ;;  %5515 = vmatprep.subr.bf16.mxu0 %v5514_v2  ;;  %v5680_v1 = vunpack.c.h.s8.bf16 %v526_v63  ;;  %v5618_v2 = vunpack.c.l.s8.bf16 %v495_v56  ;;  %v2943_v56 = vld [vmem:[%s7591_s0 + $0x68] sm:$0xff] }
  0xd2   : > { %5579 = vmatprep.subr.bf16.mxu1 %v5578_v3  ;;  %v5682_v3 = vunpack.c.l.s8.bf16 %v527_v57  ;;  %v2945_v57 = vld [vmem:[%s7591_s0 + $0x78] sm:$0xff] }
  0xd4   : > { %5517 = vmatpush2.bf16.msra.mxu0 %v5516_v6  ;;  %v5620_v6 = vunpack.c.l.s8.bf16 %v494_v62  ;;  %v538_v62 = vld [vmem:[%s7065_s28 + $0x640] sm:$0xff] }
  0xd5   : > { %5581 = vmatpush2.bf16.msra.mxu1 %v5580_v7  ;;  %5583 = vmatprep.subr.bf16.mxu0 %v5582_v8  ;;  %v5684_v7 = vunpack.c.l.s8.bf16 %v526_v63  ;;  %v5622_v8 = vunpack.c.h.s8.bf16 %v491_v4  ;;  %v570_v63 = vld [vmem:[%s7065_s28 + $0x740] sm:$0xff] }
  0xd6   : > { %5647 = vmatprep.subr.bf16.mxu1 %v5646_v9  ;;  %v5686_v9 = vunpack.c.h.s8.bf16 %v523_v5 }
  0xd7   : > { %3155 = vmatmul.mubr.f32.vlgmr.msra.gmra.mxu0 %v2934_v12  ;;  %v5624_v12 = vunpack.c.h.s8.bf16 %v490_v10  ;;  %v534_v10 = vld [vmem:[%s7065_s28 + $0x620] sm:$0xff] }
  0xd8   : > { %3226 = vmatmul.mubr.f32.vlgmr.msra.gmra.mxu1 %v2936_v13  ;;  %5585 = vmatpush1.bf16.msra.mxu0 %v5584_v14  ;;  %v5688_v13 = vunpack.c.h.s8.bf16 %v522_v11  ;;  %v5626_v14 = vunpack.c.l.s8.bf16 %v491_v4  ;;  %v535_v4 = vld [vmem:[%s7065_s28 + $0x628] sm:$0xff]  ;;  %v566_v11 = vld [vmem:[%s7065_s28 + $0x720] sm:$0xff] }
  0xd9   : > { %5649 = vmatpush1.bf16.msra.mxu1 %v5648_v15  ;;  %5587 = vmatprep.subr.bf16.mxu0 %v5586_v16  ;;  %v5690_v15 = vunpack.c.l.s8.bf16 %v523_v5  ;;  %v487_v16 = vld [vmem:[%s7065_s28 + $0x4a8] sm:$0xff] }
  0xda   : > { %5651 = vmatprep.subr.bf16.mxu1 %v5650_v17  ;;  %3296 = vmatprep.mubr.f32.mxu0 %v2939_v20  ;;  %v519_v17 = vld [vmem:[%s7065_s28 + $0x5a8] sm:$0xff]  ;;  %v5630_v20 = vunpack.c.h.s8.bf16 %v487_v16  ;;  %v5634_v26 = vunpack.c.l.s8.bf16 %v487_v16 }
  0xdb   : > { %3367 = vmatprep.mubr.f32.mxu1 %v2941_v21  ;;  %v5694_v21 = vunpack.c.h.s8.bf16 %v519_v17  ;;  %v5698_v27 = vunpack.c.l.s8.bf16 %v519_v17  ;;  %v567_v5 = vld [vmem:[%s7065_s28 + $0x728] sm:$0xff] }
  0xdc   : > { %5589 = vmatpush1.bf16.msra.mxu0 %v5588_v22  ;;  %v486_v22 = vld [vmem:[%s7065_s28 + $0x4a0] sm:$0xff]  ;;  %v531_v16 = vld [vmem:[%s7065_s28 + $0x608] sm:$0xff] }
  0xdd   : > { %5653 = vmatpush1.bf16.msra.mxu1 %v5652_v23  ;;  %5591 = vmatprep.subr.bf16.mxu0 %v5590_v24  ;;  %v518_v23 = vld [vmem:[%s7065_s28 + $0x5a0] sm:$0xff]  ;;  %v5632_v24 = vunpack.c.h.s8.bf16 %v486_v22  ;;  %v563_v17 = vld [vmem:[%s7065_s28 + $0x708] sm:$0xff] }
  0xde   : > { %5655 = vmatprep.subr.bf16.mxu1 %v5654_v25  ;;  %v5696_v25 = vunpack.c.h.s8.bf16 %v518_v23 }
  0xe0   : > { %5593 = vmatpush1.bf16.msra.mxu0 %v5592_v28  ;;  %v483_v28 = vld [vmem:[%s7065_s28 + $0x488] sm:$0xff] }
  0xe1   : > { %5657 = vmatpush1.bf16.msra.mxu1 %v5656_v29  ;;  %5595 = vmatprep.subr.bf16.mxu0 %v5594_v30  ;;  %v515_v29 = vld [vmem:[%s7065_s28 + $0x588] sm:$0xff]  ;;  %v5636_v30 = vunpack.c.l.s8.bf16 %v486_v22  ;;  %v5638_v32 = vunpack.c.h.s8.bf16 %v483_v28  ;;  %v5642_v38 = vunpack.c.l.s8.bf16 %v483_v28  ;;  %v530_v22 = vld [vmem:[%s7065_s28 + $0x600] sm:$0xff] }
  0xe2   : > { %5659 = vmatprep.subr.bf16.mxu1 %v5658_v31  ;;  %v5700_v31 = vunpack.c.l.s8.bf16 %v518_v23  ;;  %v5702_v33 = vunpack.c.h.s8.bf16 %v515_v29  ;;  %v5706_v39 = vunpack.c.l.s8.bf16 %v515_v29  ;;  %v562_v23 = vld [vmem:[%s7065_s28 + $0x700] sm:$0xff]  ;;  %v559_v28 = vld [vmem:[%s7065_s28 + $0x6e8] sm:$0xff] }
  0xe3   : > { %v591_v29 = vld [vmem:[%s7065_s28 + $0x7e8] sm:$0xff] }
  0xe4   : > { %5597 = vmatpush1.bf16.msra.mxu0 %v5596_v34  ;;  %v482_v34 = vld [vmem:[%s7065_s28 + $0x480] sm:$0xff] }
  0xe5   : > { %5661 = vmatpush1.bf16.msra.mxu1 %v5660_v35  ;;  %5599 = vmatprep.subr.bf16.mxu0 %v5598_v36  ;;  %v514_v35 = vld [vmem:[%s7065_s28 + $0x580] sm:$0xff]  ;;  %v5640_v36 = vunpack.c.h.s8.bf16 %v482_v34 }
  0xe6   : > { %5663 = vmatprep.subr.bf16.mxu1 %v5662_v37  ;;  %v5704_v37 = vunpack.c.h.s8.bf16 %v514_v35 }
  0xe8   : > { %5601 = vmatpush1.bf16.msra.mxu0 %v5600_v40  ;;  %v543_v40 = vld [vmem:[%s7065_s28 + $0x668] sm:$0xff] }
  0xe9   : > { %5665 = vmatpush1.bf16.msra.mxu1 %v5664_v41  ;;  %5603 = vmatprep.subr.bf16.mxu0 %v5602_v42  ;;  %v575_v41 = vld [vmem:[%s7065_s28 + $0x768] sm:$0xff]  ;;  %v5644_v42 = vunpack.c.l.s8.bf16 %v482_v34  ;;  %v5710_v44 = vunpack.c.h.s8.bf16 %v543_v40  ;;  %v558_v34 = vld [vmem:[%s7065_s28 + $0x6e0] sm:$0xff] }
  0xea   : > { %5667 = vmatprep.subr.bf16.mxu1 %v5666_v43  ;;  %v5708_v43 = vunpack.c.l.s8.bf16 %v514_v35  ;;  %v5774_v45 = vunpack.c.h.s8.bf16 %v575_v41  ;;  %v590_v35 = vld [vmem:[%s7065_s28 + $0x7e0] sm:$0xff] }
  0xec   : > { %5605 = vmatpush1.bf16.msra.mxu0 %v5604_v46  ;;  %v542_v46 = vld [vmem:[%s7065_s28 + $0x660] sm:$0xff] }
  0xed   : > { %5669 = vmatpush1.bf16.msra.mxu1 %v5668_v47  ;;  %5607 = vmatprep.subr.bf16.mxu0 %v5606_v48  ;;  %v574_v47 = vld [vmem:[%s7065_s28 + $0x760] sm:$0xff]  ;;  %v5712_v50 = vunpack.c.h.s8.bf16 %v542_v46 }
  0xee   : > { %5671 = vmatprep.subr.bf16.mxu1 %v5670_v49  ;;  %v2938_v48 = vld [vmem:[%s7591_s0 + $0x40] sm:$0xff]  ;;  %v2940_v49 = vld [vmem:[%s7591_s0 + $0x50] sm:$0xff]  ;;  %v5776_v51 = vunpack.c.h.s8.bf16 %v574_v47 }
  0xf0   : > { %5609 = vmatpush1.bf16.msra.mxu0 %v5608_v52  ;;  %v5714_v52 = vunpack.c.l.s8.bf16 %v543_v40  ;;  %v555_v40 = vld [vmem:[%s7065_s28 + $0x6c8] sm:$0xff] }
  0xf1   : > { %5673 = vmatpush1.bf16.msra.mxu1 %v5672_v53  ;;  %5611 = vmatprep.subr.bf16.mxu0 %v5610_v54  ;;  %v5778_v53 = vunpack.c.l.s8.bf16 %v575_v41  ;;  %v539_v54 = vld [vmem:[%s7065_s28 + $0x648] sm:$0xff] }
  0xf2   : > { %5675 = vmatprep.subr.bf16.mxu1 %v5674_v55  ;;  %v571_v55 = vld [vmem:[%s7065_s28 + $0x748] sm:$0xff] }
  0xf3   : > { %v587_v41 = vld [vmem:[%s7065_s28 + $0x7c8] sm:$0xff] }
  0xf4   : > { %5613 = vmatpush1.bf16.msra.mxu0 %v5612_v58  ;;  %v5716_v58 = vunpack.c.l.s8.bf16 %v542_v46  ;;  %v554_v46 = vld [vmem:[%s7065_s28 + $0x6c0] sm:$0xff] }
  0xf5   : > { %5677 = vmatpush1.bf16.msra.mxu1 %v5676_v59  ;;  %5615 = vmatprep.subr.bf16.mxu0 %v5614_v60  ;;  %v5780_v59 = vunpack.c.l.s8.bf16 %v574_v47  ;;  %v5718_v60 = vunpack.c.h.s8.bf16 %v539_v54  ;;  %v586_v47 = vld [vmem:[%s7065_s28 + $0x7c0] sm:$0xff] }
  0xf6   : > { %5679 = vmatprep.subr.bf16.mxu1 %v5678_v61  ;;  %v5782_v61 = vunpack.c.h.s8.bf16 %v571_v55 }
  0xf8   : > { %5617 = vmatpush2.bf16.msra.mxu0 %v5616_v0  ;;  %v5720_v0 = vunpack.c.h.s8.bf16 %v538_v62 }
  0xf9   : > { %5681 = vmatpush2.bf16.msra.mxu1 %v5680_v1  ;;  %5619 = vmatprep.subr.bf16.mxu0 %v5618_v2  ;;  %v5784_v1 = vunpack.c.h.s8.bf16 %v570_v63  ;;  %v5722_v2 = vunpack.c.l.s8.bf16 %v539_v54  ;;  %v5756_v54 = vunpack.c.l.s8.bf16 %v554_v46 }
  0xfa   : > { %5683 = vmatprep.subr.bf16.mxu1 %v5682_v3  ;;  %v5786_v3 = vunpack.c.l.s8.bf16 %v571_v55  ;;  %v5820_v55 = vunpack.c.l.s8.bf16 %v586_v47 }
  0xfc   : > { %5621 = vmatpush2.bf16.msra.mxu0 %v5620_v6  ;;  %v5724_v6 = vunpack.c.l.s8.bf16 %v538_v62 }
  0xfd   : > { %5685 = vmatpush2.bf16.msra.mxu1 %v5684_v7  ;;  %5623 = vmatprep.subr.bf16.mxu0 %v5622_v8  ;;  %v5788_v7 = vunpack.c.l.s8.bf16 %v570_v63  ;;  %v5726_v8 = vunpack.c.h.s8.bf16 %v535_v4 }
  0xfe   : > { %5687 = vmatprep.subr.bf16.mxu1 %v5686_v9  ;;  %v5790_v9 = vunpack.c.h.s8.bf16 %v567_v5 }
 0x100   : > { %5625 = vmatpush2.bf16.msra.mxu0 %v5624_v12  ;;  %v5728_v12 = vunpack.c.h.s8.bf16 %v534_v10 }
 0x101   : > { %5689 = vmatpush2.bf16.msra.mxu1 %v5688_v13  ;;  %5627 = vmatprep.subr.bf16.mxu0 %v5626_v14  ;;  %v5792_v13 = vunpack.c.h.s8.bf16 %v566_v11  ;;  %v5730_v14 = vunpack.c.l.s8.bf16 %v535_v4 }
 0x102   : > { %5691 = vmatprep.subr.bf16.mxu1 %v5690_v15  ;;  %v5794_v15 = vunpack.c.l.s8.bf16 %v567_v5 }
 0x104   : > { %5629 = vmatpush2.bf16.msra.mxu0 %v5628_v18  ;;  %v5732_v18 = vunpack.c.l.s8.bf16 %v534_v10 }
 0x105   : > { %5693 = vmatpush2.bf16.msra.mxu1 %v5692_v19  ;;  %5631 = vmatprep.subr.bf16.mxu0 %v5630_v20  ;;  %v5796_v19 = vunpack.c.l.s8.bf16 %v566_v11  ;;  %v5734_v20 = vunpack.c.h.s8.bf16 %v531_v16 }
 0x106   : > { %5695 = vmatprep.subr.bf16.mxu1 %v5694_v21  ;;  %v5798_v21 = vunpack.c.h.s8.bf16 %v563_v17 }
 0x108   : > { %5633 = vmatpush2.bf16.msra.mxu0 %v5632_v24  ;;  %v5736_v24 = vunpack.c.h.s8.bf16 %v530_v22 }
 0x109   : > { %5697 = vmatpush2.bf16.msra.mxu1 %v5696_v25  ;;  %5635 = vmatprep.subr.bf16.mxu0 %v5634_v26  ;;  %v5800_v25 = vunpack.c.h.s8.bf16 %v562_v23  ;;  %v5738_v26 = vunpack.c.l.s8.bf16 %v531_v16 }
 0x10a   : > { %5699 = vmatprep.subr.bf16.mxu1 %v5698_v27  ;;  %v5802_v27 = vunpack.c.l.s8.bf16 %v563_v17 }
 0x10c   : > { %5637 = vmatpush2.bf16.msra.mxu0 %v5636_v30  ;;  %v5740_v30 = vunpack.c.l.s8.bf16 %v530_v22 }
 0x10d   : > { %5701 = vmatpush2.bf16.msra.mxu1 %v5700_v31  ;;  %5639 = vmatprep.subr.bf16.mxu0 %v5638_v32  ;;  %v5804_v31 = vunpack.c.l.s8.bf16 %v562_v23  ;;  %v5742_v32 = vunpack.c.h.s8.bf16 %v559_v28 }
 0x10e   : > { %5703 = vmatprep.subr.bf16.mxu1 %v5702_v33  ;;  %v5806_v33 = vunpack.c.h.s8.bf16 %v591_v29 }
 0x110   : > { %5641 = vmatpush2.bf16.msra.mxu0 %v5640_v36  ;;  %v5744_v36 = vunpack.c.h.s8.bf16 %v558_v34 }
 0x111   : > { %5705 = vmatpush2.bf16.msra.mxu1 %v5704_v37  ;;  %5643 = vmatprep.subr.bf16.mxu0 %v5642_v38  ;;  %v5808_v37 = vunpack.c.h.s8.bf16 %v590_v35  ;;  %v5746_v38 = vunpack.c.l.s8.bf16 %v559_v28  ;;  %v2947_v28 = vld [vmem:[%s7591_s0 + $0x88] sm:$0xff] }
 0x112   : > { %5707 = vmatprep.subr.bf16.mxu1 %v5706_v39  ;;  %v5810_v39 = vunpack.c.l.s8.bf16 %v591_v29 }
 0x114   : > { %5645 = vmatpush2.bf16.msra.mxu0 %v5644_v42  ;;  %v5748_v42 = vunpack.c.l.s8.bf16 %v558_v34  ;;  %v348_v34 = vld [vmem:[%s7065_s28 + $0x50] sm:$0xff] }
 0x115   : > { %5709 = vmatpush2.bf16.msra.mxu1 %v5708_v43  ;;  %5711 = vmatprep.subr.bf16.mxu0 %v5710_v44  ;;  %v5812_v43 = vunpack.c.l.s8.bf16 %v590_v35  ;;  %v5750_v44 = vunpack.c.h.s8.bf16 %v555_v40  ;;  %v6799_v35 = vld [vmem:[%s7591_s0 + $0x8] sm:$0xff] }
 0x116   : > { %5775 = vmatprep.subr.bf16.mxu1 %v5774_v45  ;;  %v5814_v45 = vunpack.c.h.s8.bf16 %v587_v41 }
 0x117   : > { %3297 = vmatmul.mubr.f32.vlgmr.msra.gmra.mxu0 %v2938_v48  ;;  %v5752_v48 = vunpack.c.h.s8.bf16 %v554_v46  ;;  %v598_v46 = vld [vmem:[%s7065_s28 + $0x820] sm:$0xff] }
 0x118   : > { %3368 = vmatmul.mubr.f32.vlgmr.msra.gmra.mxu1 %v2940_v49  ;;  %5713 = vmatpush1.bf16.msra.mxu0 %v5712_v50  ;;  %v5816_v49 = vunpack.c.h.s8.bf16 %v586_v47  ;;  %v5754_v50 = vunpack.c.l.s8.bf16 %v555_v40  ;;  %v599_v40 = vld [vmem:[%s7065_s28 + $0x828] sm:$0xff]  ;;  %v344_v47 = vld [vmem:[%s7065_s28 + $0x30] sm:$0xff] }
 0x119   : > { %5777 = vmatpush1.bf16.msra.mxu1 %v5776_v51  ;;  %5715 = vmatprep.subr.bf16.mxu0 %v5714_v52  ;;  %v5818_v51 = vunpack.c.l.s8.bf16 %v587_v41  ;;  %v551_v52 = vld [vmem:[%s7065_s28 + $0x6a8] sm:$0xff]  ;;  %v345_v41 = vld [vmem:[%s7065_s28 + $0x38] sm:$0xff] }
 0x11a   : > { %5779 = vmatprep.subr.bf16.mxu1 %v5778_v53  ;;  %3438 = vmatprep.mubr.f32.mxu0 %v2943_v56  ;;  %v583_v53 = vld [vmem:[%s7065_s28 + $0x7a8] sm:$0xff]  ;;  %v5758_v56 = vunpack.c.h.s8.bf16 %v551_v52  ;;  %v5762_v62 = vunpack.c.l.s8.bf16 %v551_v52 }
 0x11b   : > { %3509 = vmatprep.mubr.f32.mxu1 %v2945_v57  ;;  %v5822_v57 = vunpack.c.h.s8.bf16 %v583_v53  ;;  %v5826_v63 = vunpack.c.l.s8.bf16 %v583_v53  ;;  %v595_v52 = vld [vmem:[%s7065_s28 + $0x808] sm:$0xff]  ;;  %v341_v53 = vld [vmem:[%s7065_s28 + $0x18] sm:$0xff] }
 0x11c   : > { %5717 = vmatpush1.bf16.msra.mxu0 %v5716_v58  ;;  %v550_v58 = vld [vmem:[%s7065_s28 + $0x6a0] sm:$0xff] }
 0x11d   : > { %5781 = vmatpush1.bf16.msra.mxu1 %v5780_v59  ;;  %5719 = vmatprep.subr.bf16.mxu0 %v5718_v60  ;;  %v582_v59 = vld [vmem:[%s7065_s28 + $0x7a0] sm:$0xff]  ;;  %v5760_v60 = vunpack.c.h.s8.bf16 %v550_v58 }
 0x11e   : > { %5783 = vmatprep.subr.bf16.mxu1 %v5782_v61  ;;  %v5824_v61 = vunpack.c.h.s8.bf16 %v582_v59 }
 0x120   : > { %5721 = vmatpush1.bf16.msra.mxu0 %v5720_v0  ;;  %v547_v0 = vld [vmem:[%s7065_s28 + $0x688] sm:$0xff] }
 0x121   : > { %5785 = vmatpush1.bf16.msra.mxu1 %v5784_v1  ;;  %5723 = vmatprep.subr.bf16.mxu0 %v5722_v2  ;;  %v579_v1 = vld [vmem:[%s7065_s28 + $0x788] sm:$0xff]  ;;  %v5764_v2 = vunpack.c.l.s8.bf16 %v550_v58  ;;  %v5766_v4 = vunpack.c.h.s8.bf16 %v547_v0  ;;  %v5770_v10 = vunpack.c.l.s8.bf16 %v547_v0  ;;  %v594_v58 = vld [vmem:[%s7065_s28 + $0x800] sm:$0xff] }
 0x122   : > { %5787 = vmatprep.subr.bf16.mxu1 %v5786_v3  ;;  %v5828_v3 = vunpack.c.l.s8.bf16 %v582_v59  ;;  %v5830_v5 = vunpack.c.h.s8.bf16 %v579_v1  ;;  %v5834_v11 = vunpack.c.l.s8.bf16 %v579_v1  ;;  %v340_v59 = vld [vmem:[%s7065_s28 + $0x10] sm:$0xff]  ;;  %v623_v0 = vld [vmem:[%s7065_s28 + $0x8e8] sm:$0xff]  ;;  %v369_v1 = vld [vmem:[%s7065_s28 + $0xf8] sm:$0xff] }
 0x124   : > { %5725 = vmatpush1.bf16.msra.mxu0 %v5724_v6  ;;  %v546_v6 = vld [vmem:[%s7065_s28 + $0x680] sm:$0xff] }
 0x125   : > { %5789 = vmatpush1.bf16.msra.mxu1 %v5788_v7  ;;  %5727 = vmatprep.subr.bf16.mxu0 %v5726_v8  ;;  %v578_v7 = vld [vmem:[%s7065_s28 + $0x780] sm:$0xff]  ;;  %v5768_v8 = vunpack.c.h.s8.bf16 %v546_v6 }
 0x126   : > { %5791 = vmatprep.subr.bf16.mxu1 %v5790_v9  ;;  %v5832_v9 = vunpack.c.h.s8.bf16 %v578_v7 }
 0x128   : > { %5729 = vmatpush1.bf16.msra.mxu0 %v5728_v12  ;;  %v607_v12 = vld [vmem:[%s7065_s28 + $0x868] sm:$0xff] }
 0x129   : > { %5793 = vmatpush1.bf16.msra.mxu1 %v5792_v13  ;;  %5731 = vmatprep.subr.bf16.mxu0 %v5730_v14  ;;  %v353_v13 = vld [vmem:[%s7065_s28 + $0x78] sm:$0xff]  ;;  %v5772_v14 = vunpack.c.l.s8.bf16 %v546_v6  ;;  %v5838_v16 = vunpack.c.h.s8.bf16 %v607_v12  ;;  %v622_v6 = vld [vmem:[%s7065_s28 + $0x8e0] sm:$0xff] }
 0x12a   : > { %5795 = vmatprep.subr.bf16.mxu1 %v5794_v15  ;;  %v5836_v15 = vunpack.c.l.s8.bf16 %v578_v7  ;;  %v5902_v17 = vunpack.c.h.s8.bf16 %v353_v13  ;;  %v368_v7 = vld [vmem:[%s7065_s28 + $0xf0] sm:$0xff] }
 0x12c   : > { %5733 = vmatpush1.bf16.msra.mxu0 %v5732_v18  ;;  %v606_v18 = vld [vmem:[%s7065_s28 + $0x860] sm:$0xff] }
 0x12d   : > { %5797 = vmatpush1.bf16.msra.mxu1 %v5796_v19  ;;  %5735 = vmatprep.subr.bf16.mxu0 %v5734_v20  ;;  %v352_v19 = vld [vmem:[%s7065_s28 + $0x70] sm:$0xff]  ;;  %v2942_v20 = vld [vmem:[%s7591_s0 + $0x60] sm:$0xff]  ;;  %v5840_v22 = vunpack.c.h.s8.bf16 %v606_v18  ;;  %v5844_v29 = vunpack.c.l.s8.bf16 %v606_v18 }
 0x12e   : > { %5799 = vmatprep.subr.bf16.mxu1 %v5798_v21  ;;  %v2944_v21 = vld [vmem:[%s7591_s0 + $0x70] sm:$0xff]  ;;  %v5904_v23 = vunpack.c.h.s8.bf16 %v352_v19  ;;  %v618_v18 = vld [vmem:[%s7065_s28 + $0x8c0] sm:$0xff] }
 0x130   : > { %5737 = vmatpush1.bf16.msra.mxu0 %v5736_v24  ;;  %v5842_v24 = vunpack.c.l.s8.bf16 %v607_v12  ;;  %v619_v12 = vld [vmem:[%s7065_s28 + $0x8c8] sm:$0xff] }
 0x131   : > { %5801 = vmatpush1.bf16.msra.mxu1 %v5800_v25  ;;  %5739 = vmatprep.subr.bf16.mxu0 %v5738_v26  ;;  %v5906_v25 = vunpack.c.l.s8.bf16 %v353_v13  ;;  %v603_v26 = vld [vmem:[%s7065_s28 + $0x848] sm:$0xff]  ;;  %v365_v13 = vld [vmem:[%s7065_s28 + $0xd8] sm:$0xff] }
 0x132   : > { %5803 = vmatprep.subr.bf16.mxu1 %v5802_v27  ;;  %v349_v27 = vld [vmem:[%s7065_s28 + $0x58] sm:$0xff] }
 0x134   : > { %5741 = vmatpush1.bf16.msra.mxu0 %v5740_v30  ;;  %v5908_v30 = vunpack.c.l.s8.bf16 %v352_v19  ;;  %v364_v19 = vld [vmem:[%s7065_s28 + $0xd0] sm:$0xff] }
 0x135   : > { %5805 = vmatpush1.bf16.msra.mxu1 %v5804_v31  ;;  %5743 = vmatprep.subr.bf16.mxu0 %v5742_v32  ;;  %v5846_v31 = vunpack.c.h.s8.bf16 %v603_v26  ;;  %v5910_v32 = vunpack.c.h.s8.bf16 %v349_v27 }
 0x136   : > { %5807 = vmatprep.subr.bf16.mxu1 %v5806_v33  ;;  %v602_v33 = vld [vmem:[%s7065_s28 + $0x840] sm:$0xff] }
 0x138   : > { %5745 = vmatpush2.bf16.msra.mxu0 %v5744_v36  ;;  %v5848_v36 = vunpack.c.h.s8.bf16 %v602_v33 }
 0x139   : > { %5809 = vmatpush2.bf16.msra.mxu1 %v5808_v37  ;;  %5747 = vmatprep.subr.bf16.mxu0 %v5746_v38  ;;  %v5912_v37 = vunpack.c.h.s8.bf16 %v348_v34  ;;  %v5850_v38 = vunpack.c.l.s8.bf16 %v603_v26  ;;  %v5884_v26 = vunpack.c.l.s8.bf16 %v618_v18 }
 0x13a   : > { %5811 = vmatprep.subr.bf16.mxu1 %v5810_v39  ;;  %v5914_v39 = vunpack.c.l.s8.bf16 %v349_v27  ;;  %v5948_v27 = vunpack.c.l.s8.bf16 %v364_v19 }
 0x13c   : > { %5749 = vmatpush2.bf16.msra.mxu0 %v5748_v42  ;;  %v5852_v42 = vunpack.c.l.s8.bf16 %v602_v33 }
 0x13d   : > { %5813 = vmatpush2.bf16.msra.mxu1 %v5812_v43  ;;  %5751 = vmatprep.subr.bf16.mxu0 %v5750_v44  ;;  %v5916_v43 = vunpack.c.l.s8.bf16 %v348_v34  ;;  %v5854_v44 = vunpack.c.h.s8.bf16 %v599_v40 }
 0x13e   : > { %5815 = vmatprep.subr.bf16.mxu1 %v5814_v45  ;;  %v5918_v45 = vunpack.c.h.s8.bf16 %v345_v41 }
 0x140   : > { %5753 = vmatpush2.bf16.msra.mxu0 %v5752_v48  ;;  %v5856_v48 = vunpack.c.h.s8.bf16 %v598_v46 }
 0x141   : > { %5817 = vmatpush2.bf16.msra.mxu1 %v5816_v49  ;;  %5755 = vmatprep.subr.bf16.mxu0 %v5754_v50  ;;  %v5920_v49 = vunpack.c.h.s8.bf16 %v344_v47  ;;  %v5858_v50 = vunpack.c.l.s8.bf16 %v599_v40 }
 0x142   : > { %5819 = vmatprep.subr.bf16.mxu1 %v5818_v51  ;;  %v5922_v51 = vunpack.c.l.s8.bf16 %v345_v41 }
 0x144   : > { %5757 = vmatpush2.bf16.msra.mxu0 %v5756_v54  ;;  %v5860_v54 = vunpack.c.l.s8.bf16 %v598_v46 }
 0x145   : > { %5821 = vmatpush2.bf16.msra.mxu1 %v5820_v55  ;;  %5759 = vmatprep.subr.bf16.mxu0 %v5758_v56  ;;  %v5924_v55 = vunpack.c.l.s8.bf16 %v344_v47  ;;  %v5862_v56 = vunpack.c.h.s8.bf16 %v595_v52 }
 0x146   : > { %5823 = vmatprep.subr.bf16.mxu1 %v5822_v57  ;;  %v5926_v57 = vunpack.c.h.s8.bf16 %v341_v53 }
 0x148   : > { %5761 = vmatpush2.bf16.msra.mxu0 %v5760_v60  ;;  %v5864_v60 = vunpack.c.h.s8.bf16 %v594_v58 }
 0x149   : > { %5825 = vmatpush2.bf16.msra.mxu1 %v5824_v61  ;;  %5763 = vmatprep.subr.bf16.mxu0 %v5762_v62  ;;  %v5928_v61 = vunpack.c.h.s8.bf16 %v340_v59  ;;  %v5866_v62 = vunpack.c.l.s8.bf16 %v595_v52 }
 0x14a   : > { %5827 = vmatprep.subr.bf16.mxu1 %v5826_v63  ;;  %v5930_v63 = vunpack.c.l.s8.bf16 %v341_v53 }
 0x14c   : > { %5765 = vmatpush2.bf16.msra.mxu0 %v5764_v2  ;;  %v5868_v2 = vunpack.c.l.s8.bf16 %v594_v58 }
 0x14d   : > { %5829 = vmatpush2.bf16.msra.mxu1 %v5828_v3  ;;  %5767 = vmatprep.subr.bf16.mxu0 %v5766_v4  ;;  %v5932_v3 = vunpack.c.l.s8.bf16 %v340_v59  ;;  %v5870_v4 = vunpack.c.h.s8.bf16 %v623_v0 }
 0x14e   : > { %5831 = vmatprep.subr.bf16.mxu1 %v5830_v5  ;;  %v5934_v5 = vunpack.c.h.s8.bf16 %v369_v1 }
 0x150   : > { %5769 = vmatpush2.bf16.msra.mxu0 %v5768_v8  ;;  %v5872_v8 = vunpack.c.h.s8.bf16 %v622_v6 }
 0x151   : > { %5833 = vmatpush2.bf16.msra.mxu1 %v5832_v9  ;;  %5771 = vmatprep.subr.bf16.mxu0 %v5770_v10  ;;  %v5936_v9 = vunpack.c.h.s8.bf16 %v368_v7  ;;  %v5874_v10 = vunpack.c.l.s8.bf16 %v623_v0 }
 0x152   : > { %5835 = vmatprep.subr.bf16.mxu1 %v5834_v11  ;;  %v5938_v11 = vunpack.c.l.s8.bf16 %v369_v1 }
 0x154   : > { %5773 = vmatpush2.bf16.msra.mxu0 %v5772_v14  ;;  %v5876_v14 = vunpack.c.l.s8.bf16 %v622_v6  ;;  %v6801_v6 = vld [vmem:[%s7591_s0 + $0x18] sm:$0xff] }
 0x155   : > { %5837 = vmatpush2.bf16.msra.mxu1 %v5836_v15  ;;  %5839 = vmatprep.subr.bf16.mxu0 %v5838_v16  ;;  %v5940_v15 = vunpack.c.l.s8.bf16 %v368_v7  ;;  %v5878_v16 = vunpack.c.h.s8.bf16 %v619_v12  ;;  %v6802_v7 = vld [vmem:[%s7591_s0 + $0x28] sm:$0xff] }
 0x156   : > { %5903 = vmatprep.subr.bf16.mxu1 %v5902_v17  ;;  %v5942_v17 = vunpack.c.h.s8.bf16 %v365_v13 }
 0x157   : > { %3439 = vmatmul.mubr.f32.vlgmr.msra.gmra.mxu0 %v2942_v20  ;;  %v5880_v20 = vunpack.c.h.s8.bf16 %v618_v18  ;;  %v376_v18 = vld [vmem:[%s7065_s28 + $0x130] sm:$0xff] }
 0x158   : > { %3510 = vmatmul.mubr.f32.vlgmr.msra.gmra.mxu1 %v2944_v21  ;;  %5841 = vmatpush1.bf16.msra.mxu0 %v5840_v22  ;;  %v5944_v21 = vunpack.c.h.s8.bf16 %v364_v19  ;;  %v5882_v22 = vunpack.c.l.s8.bf16 %v619_v12  ;;  %v377_v12 = vld [vmem:[%s7065_s28 + $0x138] sm:$0xff]  ;;  %v408_v19 = vld [vmem:[%s7065_s28 + $0x230] sm:$0xff] }
 0x159   : > { %5905 = vmatpush1.bf16.msra.mxu1 %v5904_v23  ;;  %5843 = vmatprep.subr.bf16.mxu0 %v5842_v24  ;;  %v5946_v23 = vunpack.c.l.s8.bf16 %v365_v13  ;;  %v615_v24 = vld [vmem:[%s7065_s28 + $0x8a8] sm:$0xff]  ;;  %v409_v13 = vld [vmem:[%s7065_s28 + $0x238] sm:$0xff] }
 0x15a   : > { %5907 = vmatprep.subr.bf16.mxu1 %v5906_v25  ;;  %3580 = vmatprep.mubr.f32.mxu0 %v2947_v28  ;;  %v361_v25 = vld [vmem:[%s7065_s28 + $0xb8] sm:$0xff]  ;;  %v5886_v28 = vunpack.c.h.s8.bf16 %v615_v24  ;;  %v5890_v34 = vunpack.c.l.s8.bf16 %v615_v24 }
 0x15b   : > { %3651 = vmatprep.mubr.f32.mxu1 %v6799_v35  ;;  %v5954_v35 = vunpack.c.l.s8.bf16 %v361_v25  ;;  %v373_v24 = vld [vmem:[%s7065_s28 + $0x118] sm:$0xff] }
 0x15c   : > { %5845 = vmatpush1.bf16.msra.mxu0 %v5844_v29  ;;  %v5950_v29 = vunpack.c.h.s8.bf16 %v361_v25  ;;  %v405_v25 = vld [vmem:[%s7065_s28 + $0x218] sm:$0xff] }
 0x15d   : > { %5909 = vmatpush1.bf16.msra.mxu1 %v5908_v30  ;;  %5847 = vmatprep.subr.bf16.mxu0 %v5846_v31  ;;  %v614_v30 = vld [vmem:[%s7065_s28 + $0x8a0] sm:$0xff]  ;;  %v360_v31 = vld [vmem:[%s7065_s28 + $0xb0] sm:$0xff] }
 0x15e   : > { %5911 = vmatprep.subr.bf16.mxu1 %v5910_v32  ;;  %v5888_v32 = vunpack.c.h.s8.bf16 %v614_v30  ;;  %v5952_v33 = vunpack.c.h.s8.bf16 %v360_v31 }
 0x160   : > { %5849 = vmatpush1.bf16.msra.mxu0 %v5848_v36  ;;  %v611_v36 = vld [vmem:[%s7065_s28 + $0x888] sm:$0xff] }
 0x161   : > { %5913 = vmatpush1.bf16.msra.mxu1 %v5912_v37  ;;  %5851 = vmatprep.subr.bf16.mxu0 %v5850_v38  ;;  %v357_v37 = vld [vmem:[%s7065_s28 + $0x98] sm:$0xff]  ;;  %v5892_v38 = vunpack.c.l.s8.bf16 %v614_v30  ;;  %v5894_v40 = vunpack.c.h.s8.bf16 %v611_v36  ;;  %v5898_v46 = vunpack.c.l.s8.bf16 %v611_v36  ;;  %v372_v30 = vld [vmem:[%s7065_s28 + $0x110] sm:$0xff] }
 0x162   : > { %5915 = vmatprep.subr.bf16.mxu1 %v5914_v39  ;;  %v5956_v39 = vunpack.c.l.s8.bf16 %v360_v31  ;;  %v5958_v41 = vunpack.c.h.s8.bf16 %v357_v37  ;;  %v5962_v47 = vunpack.c.l.s8.bf16 %v357_v37  ;;  %v404_v31 = vld [vmem:[%s7065_s28 + $0x210] sm:$0xff]  ;;  %v401_v36 = vld [vmem:[%s7065_s28 + $0x1f8] sm:$0xff] }
 0x163   : > { %v433_v37 = vld [vmem:[%s7065_s28 + $0x2f8] sm:$0xff] }
 0x164   : > { %5853 = vmatpush1.bf16.msra.mxu0 %v5852_v42  ;;  %v610_v42 = vld [vmem:[%s7065_s28 + $0x880] sm:$0xff] }
 0x165   : > { %5917 = vmatpush1.bf16.msra.mxu1 %v5916_v43  ;;  %5855 = vmatprep.subr.bf16.mxu0 %v5854_v44  ;;  %v356_v43 = vld [vmem:[%s7065_s28 + $0x90] sm:$0xff]  ;;  %v5896_v44 = vunpack.c.h.s8.bf16 %v610_v42 }
 0x166   : > { %5919 = vmatprep.subr.bf16.mxu1 %v5918_v45  ;;  %v5960_v45 = vunpack.c.h.s8.bf16 %v356_v43 }
 0x168   : > { %5857 = vmatpush1.bf16.msra.mxu0 %v5856_v48  ;;  %v385_v48 = vld [vmem:[%s7065_s28 + $0x178] sm:$0xff] }
 0x169   : > { %5921 = vmatpush1.bf16.msra.mxu1 %v5920_v49  ;;  %5859 = vmatprep.subr.bf16.mxu0 %v5858_v50  ;;  %v417_v49 = vld [vmem:[%s7065_s28 + $0x278] sm:$0xff]  ;;  %v5900_v50 = vunpack.c.l.s8.bf16 %v610_v42  ;;  %v5966_v52 = vunpack.c.h.s8.bf16 %v385_v48  ;;  %v5970_v59 = vunpack.c.l.s8.bf16 %v385_v48  ;;  %v400_v42 = vld [vmem:[%s7065_s28 + $0x1f0] sm:$0xff] }
 0x16a   : > { %5923 = vmatprep.subr.bf16.mxu1 %v5922_v51  ;;  %v5964_v51 = vunpack.c.l.s8.bf16 %v356_v43  ;;  %v6030_v53 = vunpack.c.h.s8.bf16 %v417_v49  ;;  %v432_v43 = vld [vmem:[%s7065_s28 + $0x2f0] sm:$0xff]  ;;  %v397_v48 = vld [vmem:[%s7065_s28 + $0x1d8] sm:$0xff] }
 0x16c   : > { %5861 = vmatpush1.bf16.msra.mxu0 %v5860_v54  ;;  %v384_v54 = vld [vmem:[%s7065_s28 + $0x170] sm:$0xff] }
 0x16d   : > { %5925 = vmatpush1.bf16.msra.mxu1 %v5924_v55  ;;  %5863 = vmatprep.subr.bf16.mxu0 %v5862_v56  ;;  %v416_v55 = vld [vmem:[%s7065_s28 + $0x270] sm:$0xff]  ;;  %v2946_v56 = vld [vmem:[%s7591_s0 + $0x80] sm:$0xff]  ;;  %v5972_v0 = vunpack.c.l.s8.bf16 %v384_v54 }
 0x16e   : > { %5927 = vmatprep.subr.bf16.mxu1 %v5926_v57  ;;  %v5968_v57 = vunpack.c.h.s8.bf16 %v384_v54  ;;  %v6032_v58 = vunpack.c.h.s8.bf16 %v416_v55  ;;  %v6036_v1 = vunpack.c.l.s8.bf16 %v416_v55  ;;  %v396_v54 = vld [vmem:[%s7065_s28 + $0x1d0] sm:$0xff] }
 0x16f   : > { %v428_v55 = vld [vmem:[%s7065_s28 + $0x2d0] sm:$0xff] }
 0x170   : > { %5865 = vmatpush1.bf16.msra.mxu0 %v5864_v60  ;;  %v6034_v60 = vunpack.c.l.s8.bf16 %v417_v49  ;;  %v429_v49 = vld [vmem:[%s7065_s28 + $0x2d8] sm:$0xff] }
 0x171   : > { %5929 = vmatpush1.bf16.msra.mxu1 %v5928_v61  ;;  %5867 = vmatprep.subr.bf16.mxu0 %v5866_v62  ;;  %v381_v61 = vld [vmem:[%s7065_s28 + $0x158] sm:$0xff] }
 0x172   : > { %5931 = vmatprep.subr.bf16.mxu1 %v5930_v63  ;;  %v413_v62 = vld [vmem:[%s7065_s28 + $0x258] sm:$0xff]  ;;  %v6800_v63 = vld [vmem:[%s7591_s0] sm:$0xff] }
 0x174   : > { %5869 = vmatpush1.bf16.msra.mxu0 %v5868_v2  ;;  %v5974_v2 = vunpack.c.h.s8.bf16 %v381_v61 }
 0x175   : > { %5933 = vmatpush1.bf16.msra.mxu1 %v5932_v3  ;;  %5871 = vmatprep.subr.bf16.mxu0 %v5870_v4  ;;  %v6038_v3 = vunpack.c.h.s8.bf16 %v413_v62  ;;  %v380_v4 = vld [vmem:[%s7065_s28 + $0x150] sm:$0xff] }
 0x176   : > { %5935 = vmatprep.subr.bf16.mxu1 %v5934_v5  ;;  %v412_v5 = vld [vmem:[%s7065_s28 + $0x250] sm:$0xff] }
 0x178   : > { %5873 = vmatpush2.bf16.msra.mxu0 %v5872_v8  ;;  %v5976_v8 = vunpack.c.h.s8.bf16 %v380_v4 }
 0x179   : > { %5937 = vmatpush2.bf16.msra.mxu1 %v5936_v9  ;;  %5875 = vmatprep.subr.bf16.mxu0 %v5874_v10  ;;  %v6040_v9 = vunpack.c.h.s8.bf16 %v412_v5  ;;  %v5978_v10 = vunpack.c.l.s8.bf16 %v381_v61  ;;  %v425_v61 = vld [vmem:[%s7065_s28 + $0x2b8] sm:$0xff] }
 0x17a   : > { %5939 = vmatprep.subr.bf16.mxu1 %v5938_v11  ;;  %v6042_v11 = vunpack.c.l.s8.bf16 %v413_v62  ;;  %v6012_v62 = vunpack.c.l.s8.bf16 %v396_v54 }
 0x17c   : > { %5877 = vmatpush2.bf16.msra.mxu0 %v5876_v14  ;;  %v5980_v14 = vunpack.c.l.s8.bf16 %v380_v4 }
 0x17d   : > { %5941 = vmatpush2.bf16.msra.mxu1 %v5940_v15  ;;  %5879 = vmatprep.subr.bf16.mxu0 %v5878_v16  ;;  %v6044_v15 = vunpack.c.l.s8.bf16 %v412_v5  ;;  %v5982_v16 = vunpack.c.h.s8.bf16 %v377_v12 }
 0x17e   : > { %5943 = vmatprep.subr.bf16.mxu1 %v5942_v17  ;;  %v6046_v17 = vunpack.c.h.s8.bf16 %v409_v13 }
 0x180   : > { %5881 = vmatpush2.bf16.msra.mxu0 %v5880_v20  ;;  %v5984_v20 = vunpack.c.h.s8.bf16 %v376_v18 }
 0x181   : > { %5945 = vmatpush2.bf16.msra.mxu1 %v5944_v21  ;;  %5883 = vmatprep.subr.bf16.mxu0 %v5882_v22  ;;  %v6048_v21 = vunpack.c.h.s8.bf16 %v408_v19  ;;  %v5986_v22 = vunpack.c.l.s8.bf16 %v377_v12 }
 0x182   : > { %5947 = vmatprep.subr.bf16.mxu1 %v5946_v23  ;;  %v6050_v23 = vunpack.c.l.s8.bf16 %v409_v13 }
 0x184   : > { %5885 = vmatpush2.bf16.msra.mxu0 %v5884_v26  ;;  %v5988_v26 = vunpack.c.l.s8.bf16 %v376_v18 }
 0x185   : > { %5949 = vmatpush2.bf16.msra.mxu1 %v5948_v27  ;;  %5887 = vmatprep.subr.bf16.mxu0 %v5886_v28  ;;  %v6052_v27 = vunpack.c.l.s8.bf16 %v408_v19  ;;  %v5990_v28 = vunpack.c.h.s8.bf16 %v373_v24 }
 0x186   : > { %5951 = vmatprep.subr.bf16.mxu1 %v5950_v29  ;;  %v6054_v29 = vunpack.c.h.s8.bf16 %v405_v25 }
 0x188   : > { %5889 = vmatpush2.bf16.msra.mxu0 %v5888_v32  ;;  %v5992_v32 = vunpack.c.h.s8.bf16 %v372_v30 }
 0x189   : > { %5953 = vmatpush2.bf16.msra.mxu1 %v5952_v33  ;;  %5891 = vmatprep.subr.bf16.mxu0 %v5890_v34  ;;  %v6056_v33 = vunpack.c.h.s8.bf16 %v404_v31  ;;  %v5994_v34 = vunpack.c.l.s8.bf16 %v373_v24 }
 0x18a   : > { %5955 = vmatprep.subr.bf16.mxu1 %v5954_v35  ;;  %v6058_v35 = vunpack.c.l.s8.bf16 %v405_v25 }
 0x18c   : > { %5893 = vmatpush2.bf16.msra.mxu0 %v5892_v38  ;;  %v5996_v38 = vunpack.c.l.s8.bf16 %v372_v30 }
 0x18d   : > { %5957 = vmatpush2.bf16.msra.mxu1 %v5956_v39  ;;  %5895 = vmatprep.subr.bf16.mxu0 %v5894_v40  ;;  %v6060_v39 = vunpack.c.l.s8.bf16 %v404_v31  ;;  %v5998_v40 = vunpack.c.h.s8.bf16 %v401_v36 }
 0x18e   : > { %5959 = vmatprep.subr.bf16.mxu1 %v5958_v41  ;;  %v6062_v41 = vunpack.c.h.s8.bf16 %v433_v37 }
 0x190   : > { %5897 = vmatpush2.bf16.msra.mxu0 %v5896_v44  ;;  %v6000_v44 = vunpack.c.h.s8.bf16 %v400_v42 }
 0x191   : > { %5961 = vmatpush2.bf16.msra.mxu1 %v5960_v45  ;;  %5899 = vmatprep.subr.bf16.mxu0 %v5898_v46  ;;  %v6064_v45 = vunpack.c.h.s8.bf16 %v432_v43  ;;  %v6002_v46 = vunpack.c.l.s8.bf16 %v401_v36 }
 0x192   : > { %5963 = vmatprep.subr.bf16.mxu1 %v5962_v47  ;;  %v6066_v47 = vunpack.c.l.s8.bf16 %v433_v37 }
 0x194   : > { %5901 = vmatpush2.bf16.msra.mxu0 %v5900_v50  ;;  %v6004_v50 = vunpack.c.l.s8.bf16 %v400_v42  ;;  %v6805_v42 = vld [vmem:[%s7591_s0 + $0x38] sm:$0xff] }
 0x195   : > { %5965 = vmatpush2.bf16.msra.mxu1 %v5964_v51  ;;  %5967 = vmatprep.subr.bf16.mxu0 %v5966_v52  ;;  %v6068_v51 = vunpack.c.l.s8.bf16 %v432_v43  ;;  %v6006_v52 = vunpack.c.h.s8.bf16 %v397_v48  ;;  %v6806_v43 = vld [vmem:[%s7591_s0 + $0x48] sm:$0xff] }
 0x196   : > { %6031 = vmatprep.subr.bf16.mxu1 %v6030_v53  ;;  %v6070_v53 = vunpack.c.h.s8.bf16 %v429_v49 }
 0x197   : > { %3581 = vmatmul.mubr.f32.vlgmr.msra.gmra.mxu0 %v2946_v56  ;;  %v6008_v56 = vunpack.c.h.s8.bf16 %v396_v54  ;;  %v440_v54 = vld [vmem:[%s7065_s28 + $0x330] sm:$0xff] }
 0x198   : > { %3652 = vmatmul.mubr.f32.vlgmr.msra.gmra.mxu1 %v6800_v63  ;;  %5969 = vmatpush1.bf16.msra.mxu0 %v5968_v57  ;;  %v6072_v57 = vunpack.c.h.s8.bf16 %v428_v55  ;;  %v6076_v63 = vunpack.c.l.s8.bf16 %v428_v55  ;;  %v472_v55 = vld [vmem:[%s7065_s28 + $0x430] sm:$0xff] }
 0x199   : > { %6033 = vmatpush1.bf16.msra.mxu1 %v6032_v58  ;;  %5971 = vmatprep.subr.bf16.mxu0 %v5970_v59  ;;  %v6010_v58 = vunpack.c.l.s8.bf16 %v397_v48  ;;  %v6074_v59 = vunpack.c.l.s8.bf16 %v429_v49  ;;  %v441_v48 = vld [vmem:[%s7065_s28 + $0x338] sm:$0xff] }
 0x19a   : > { %6035 = vmatprep.subr.bf16.mxu1 %v6034_v60  ;;  %3722 = vmatprep.mubr.f32.mxu0 %v6801_v6  ;;  %v393_v60 = vld [vmem:[%s7065_s28 + $0x1b8] sm:$0xff] }
 0x19b   : > { %3793 = vmatprep.mubr.f32.mxu1 %v6802_v7  ;;  %v6018_v6 = vunpack.c.l.s8.bf16 %v393_v60  ;;  %v6082_v7 = vunpack.c.l.s8.bf16 %v425_v61  ;;  %v473_v49 = vld [vmem:[%s7065_s28 + $0x438] sm:$0xff] }
 0x19c   : > { %5973 = vmatpush1.bf16.msra.mxu0 %v5972_v0  ;;  %v6014_v0 = vunpack.c.h.s8.bf16 %v393_v60  ;;  %v437_v60 = vld [vmem:[%s7065_s28 + $0x318] sm:$0xff] }
 0x19d   : > { %6037 = vmatpush1.bf16.msra.mxu1 %v6036_v1  ;;  %5975 = vmatprep.subr.bf16.mxu0 %v5974_v2  ;;  %v6078_v1 = vunpack.c.h.s8.bf16 %v425_v61  ;;  %v392_v2 = vld [vmem:[%s7065_s28 + $0x1b0] sm:$0xff]  ;;  %v469_v61 = vld [vmem:[%s7065_s28 + $0x418] sm:$0xff] }
 0x19e   : > { %6039 = vmatprep.subr.bf16.mxu1 %v6038_v3  ;;  %v424_v3 = vld [vmem:[%s7065_s28 + $0x2b0] sm:$0xff]  ;;  %v6016_v4 = vunpack.c.h.s8.bf16 %v392_v2 }
 0x19f   : > { %v6080_v5 = vunpack.c.h.s8.bf16 %v424_v3 }
 0x1a0   : > { %5977 = vmatpush1.bf16.msra.mxu0 %v5976_v8  ;;  %v389_v8 = vld [vmem:[%s7065_s28 + $0x198] sm:$0xff] }
 0x1a1   : > { %6041 = vmatpush1.bf16.msra.mxu1 %v6040_v9  ;;  %5979 = vmatprep.subr.bf16.mxu0 %v5978_v10  ;;  %v421_v9 = vld [vmem:[%s7065_s28 + $0x298] sm:$0xff]  ;;  %v6020_v10 = vunpack.c.l.s8.bf16 %v392_v2  ;;  %v6022_v12 = vunpack.c.h.s8.bf16 %v389_v8  ;;  %v6026_v18 = vunpack.c.l.s8.bf16 %v389_v8  ;;  %v436_v2 = vld [vmem:[%s7065_s28 + $0x310] sm:$0xff] }
 0x1a2   : > { %6043 = vmatprep.subr.bf16.mxu1 %v6042_v11  ;;  %v6084_v11 = vunpack.c.l.s8.bf16 %v424_v3  ;;  %v6086_v13 = vunpack.c.h.s8.bf16 %v421_v9  ;;  %v6090_v19 = vunpack.c.l.s8.bf16 %v421_v9  ;;  %v468_v3 = vld [vmem:[%s7065_s28 + $0x410] sm:$0xff]  ;;  %v465_v8 = vld [vmem:[%s7065_s28 + $0x3f8] sm:$0xff] }
 0x1a3   : > { %v497_v9 = vld [vmem:[%s7065_s28 + $0x4f8] sm:$0xff] }
 0x1a4   : > { %5981 = vmatpush1.bf16.msra.mxu0 %v5980_v14  ;;  %v388_v14 = vld [vmem:[%s7065_s28 + $0x190] sm:$0xff] }
 0x1a5   : > { %6045 = vmatpush1.bf16.msra.mxu1 %v6044_v15  ;;  %5983 = vmatprep.subr.bf16.mxu0 %v5982_v16  ;;  %v420_v15 = vld [vmem:[%s7065_s28 + $0x290] sm:$0xff]  ;;  %v6024_v16 = vunpack.c.h.s8.bf16 %v388_v14 }
 0x1a6   : > { %6047 = vmatprep.subr.bf16.mxu1 %v6046_v17  ;;  %v6088_v17 = vunpack.c.h.s8.bf16 %v420_v15 }
 0x1a8   : > { %5985 = vmatpush1.bf16.msra.mxu0 %v5984_v20  ;;  %v449_v20 = vld [vmem:[%s7065_s28 + $0x378] sm:$0xff] }
 0x1a9   : > { %6049 = vmatpush1.bf16.msra.mxu1 %v6048_v21  ;;  %5987 = vmatprep.subr.bf16.mxu0 %v5986_v22  ;;  %v481_v21 = vld [vmem:[%s7065_s28 + $0x478] sm:$0xff]  ;;  %v6028_v22 = vunpack.c.l.s8.bf16 %v388_v14  ;;  %v6094_v24 = vunpack.c.h.s8.bf16 %v449_v20  ;;  %v6098_v30 = vunpack.c.l.s8.bf16 %v449_v20  ;;  %v464_v14 = vld [vmem:[%s7065_s28 + $0x3f0] sm:$0xff] }
 0x1aa   : > { %6051 = vmatprep.subr.bf16.mxu1 %v6050_v23  ;;  %v6092_v23 = vunpack.c.l.s8.bf16 %v420_v15  ;;  %v6158_v25 = vunpack.c.h.s8.bf16 %v481_v21  ;;  %v6162_v31 = vunpack.c.l.s8.bf16 %v481_v21  ;;  %v496_v15 = vld [vmem:[%s7065_s28 + $0x4f0] sm:$0xff]  ;;  %v461_v20 = vld [vmem:[%s7065_s28 + $0x3d8] sm:$0xff] }
 0x1ab   : > { %v493_v21 = vld [vmem:[%s7065_s28 + $0x4d8] sm:$0xff] }
 0x1ac   : > { %5989 = vmatpush1.bf16.msra.mxu0 %v5988_v26  ;;  %v448_v26 = vld [vmem:[%s7065_s28 + $0x370] sm:$0xff] }
 0x1ad   : > { %6053 = vmatpush1.bf16.msra.mxu1 %v6052_v27  ;;  %5991 = vmatprep.subr.bf16.mxu0 %v5990_v28  ;;  %v480_v27 = vld [vmem:[%s7065_s28 + $0x470] sm:$0xff]  ;;  %v6096_v28 = vunpack.c.h.s8.bf16 %v448_v26  ;;  %v6100_v36 = vunpack.c.l.s8.bf16 %v448_v26 }
 0x1ae   : > { %6055 = vmatprep.subr.bf16.mxu1 %v6054_v29  ;;  %v6160_v29 = vunpack.c.h.s8.bf16 %v480_v27  ;;  %v6164_v37 = vunpack.c.l.s8.bf16 %v480_v27  ;;  %v460_v26 = vld [vmem:[%s7065_s28 + $0x3d0] sm:$0xff] }
 0x1af   : > { %v492_v27 = vld [vmem:[%s7065_s28 + $0x4d0] sm:$0xff] }
 0x1b0   : > { %5993 = vmatpush1.bf16.msra.mxu0 %v5992_v32  ;;  %v445_v32 = vld [vmem:[%s7065_s28 + $0x358] sm:$0xff] }
 0x1b1   : > { %6057 = vmatpush1.bf16.msra.mxu1 %v6056_v33  ;;  %5995 = vmatprep.subr.bf16.mxu0 %v5994_v34  ;;  %v477_v33 = vld [vmem:[%s7065_s28 + $0x458] sm:$0xff]  ;;  %v6803_v34 = vld [vmem:[%s7591_s0 + $0x10] sm:$0xff] }
 0x1b2   : > { %6059 = vmatprep.subr.bf16.mxu1 %v6058_v35  ;;  %v6804_v35 = vld [vmem:[%s7591_s0 + $0x20] sm:$0xff] }
 0x1b4   : > { %5997 = vmatpush1.bf16.msra.mxu0 %v5996_v38  ;;  %v6102_v38 = vunpack.c.h.s8.bf16 %v445_v32 }
 0x1b5   : > { %6061 = vmatpush1.bf16.msra.mxu1 %v6060_v39  ;;  %5999 = vmatprep.subr.bf16.mxu0 %v5998_v40  ;;  %v6166_v39 = vunpack.c.h.s8.bf16 %v477_v33  ;;  %v444_v40 = vld [vmem:[%s7065_s28 + $0x350] sm:$0xff] }
 0x1b6   : > { %6063 = vmatprep.subr.bf16.mxu1 %v6062_v41  ;;  %v476_v41 = vld [vmem:[%s7065_s28 + $0x450] sm:$0xff] }
 0x1b8   : > { %6001 = vmatpush2.bf16.msra.mxu0 %v6000_v44  ;;  %v6104_v44 = vunpack.c.h.s8.bf16 %v444_v40 }
 0x1b9   : > { %6065 = vmatpush2.bf16.msra.mxu1 %v6064_v45  ;;  %6003 = vmatprep.subr.bf16.mxu0 %v6002_v46  ;;  %v6168_v45 = vunpack.c.h.s8.bf16 %v476_v41  ;;  %v6106_v46 = vunpack.c.l.s8.bf16 %v445_v32  ;;  %v457_v32 = vld [vmem:[%s7065_s28 + $0x3b8] sm:$0xff] }
 0x1ba   : > { %6067 = vmatprep.subr.bf16.mxu1 %v6066_v47  ;;  %v6170_v47 = vunpack.c.l.s8.bf16 %v477_v33  ;;  %v489_v33 = vld [vmem:[%s7065_s28 + $0x4b8] sm:$0xff] }
 0x1bc   : > { %6005 = vmatpush2.bf16.msra.mxu0 %v6004_v50  ;;  %v6108_v50 = vunpack.c.l.s8.bf16 %v444_v40 }
 0x1bd   : > { %6069 = vmatpush2.bf16.msra.mxu1 %v6068_v51  ;;  %6007 = vmatprep.subr.bf16.mxu0 %v6006_v52  ;;  %v6172_v51 = vunpack.c.l.s8.bf16 %v476_v41  ;;  %v6110_v52 = vunpack.c.h.s8.bf16 %v441_v48 }
 0x1be   : > { %6071 = vmatprep.subr.bf16.mxu1 %v6070_v53  ;;  %v6174_v53 = vunpack.c.h.s8.bf16 %v473_v49 }
 0x1c0   : > { %6009 = vmatpush2.bf16.msra.mxu0 %v6008_v56  ;;  %v6112_v56 = vunpack.c.h.s8.bf16 %v440_v54 }
 0x1c1   : > { %6073 = vmatpush2.bf16.msra.mxu1 %v6072_v57  ;;  %6011 = vmatprep.subr.bf16.mxu0 %v6010_v58  ;;  %v6176_v57 = vunpack.c.h.s8.bf16 %v472_v55  ;;  %v6114_v58 = vunpack.c.l.s8.bf16 %v441_v48 }
 0x1c2   : > { %6075 = vmatprep.subr.bf16.mxu1 %v6074_v59  ;;  %v6178_v59 = vunpack.c.l.s8.bf16 %v473_v49 }
 0x1c4   : > { %6013 = vmatpush2.bf16.msra.mxu0 %v6012_v62  ;;  %v6116_v62 = vunpack.c.l.s8.bf16 %v440_v54 }
 0x1c5   : > { %6077 = vmatpush2.bf16.msra.mxu1 %v6076_v63  ;;  %6015 = vmatprep.subr.bf16.mxu0 %v6014_v0  ;;  %v6180_v63 = vunpack.c.l.s8.bf16 %v472_v55  ;;  %v6118_v0 = vunpack.c.h.s8.bf16 %v437_v60 }
 0x1c6   : > { %6079 = vmatprep.subr.bf16.mxu1 %v6078_v1  ;;  %v6182_v1 = vunpack.c.h.s8.bf16 %v469_v61 }
 0x1c8   : > { %6017 = vmatpush2.bf16.msra.mxu0 %v6016_v4  ;;  %v6120_v4 = vunpack.c.h.s8.bf16 %v436_v2 }
 0x1c9   : > { %6081 = vmatpush2.bf16.msra.mxu1 %v6080_v5  ;;  %6019 = vmatprep.subr.bf16.mxu0 %v6018_v6  ;;  %v6184_v5 = vunpack.c.h.s8.bf16 %v468_v3  ;;  %v6122_v6 = vunpack.c.l.s8.bf16 %v437_v60 }
 0x1ca   : > { %6083 = vmatprep.subr.bf16.mxu1 %v6082_v7  ;;  %v6186_v7 = vunpack.c.l.s8.bf16 %v469_v61 }
 0x1cc   : > { %6021 = vmatpush2.bf16.msra.mxu0 %v6020_v10  ;;  %v6124_v10 = vunpack.c.l.s8.bf16 %v436_v2 }
 0x1cd   : > { %6085 = vmatpush2.bf16.msra.mxu1 %v6084_v11  ;;  %6023 = vmatprep.subr.bf16.mxu0 %v6022_v12  ;;  %v6188_v11 = vunpack.c.l.s8.bf16 %v468_v3  ;;  %v6126_v12 = vunpack.c.h.s8.bf16 %v465_v8 }
 0x1ce   : > { %6087 = vmatprep.subr.bf16.mxu1 %v6086_v13  ;;  %v6190_v13 = vunpack.c.h.s8.bf16 %v497_v9 }
 0x1d0   : > { %6025 = vmatpush2.bf16.msra.mxu0 %v6024_v16  ;;  %v6128_v16 = vunpack.c.h.s8.bf16 %v464_v14 }
 0x1d1   : > { %6089 = vmatpush2.bf16.msra.mxu1 %v6088_v17  ;;  %6027 = vmatprep.subr.bf16.mxu0 %v6026_v18  ;;  %v6192_v17 = vunpack.c.h.s8.bf16 %v496_v15  ;;  %v6130_v18 = vunpack.c.l.s8.bf16 %v465_v8 }
 0x1d2   : > { %6091 = vmatprep.subr.bf16.mxu1 %v6090_v19  ;;  %v6194_v19 = vunpack.c.l.s8.bf16 %v497_v9 }
 0x1d4   : > { %6029 = vmatpush2.bf16.msra.mxu0 %v6028_v22  ;;  %v6132_v22 = vunpack.c.l.s8.bf16 %v464_v14  ;;  %v6809_v14 = vld [vmem:[%s7591_s0 + $0x58] sm:$0xff] }
 0x1d5   : > { %6093 = vmatpush2.bf16.msra.mxu1 %v6092_v23  ;;  %6095 = vmatprep.subr.bf16.mxu0 %v6094_v24  ;;  %v6196_v23 = vunpack.c.l.s8.bf16 %v496_v15  ;;  %v6134_v24 = vunpack.c.h.s8.bf16 %v461_v20  ;;  %v6810_v15 = vld [vmem:[%s7591_s0 + $0x68] sm:$0xff] }
 0x1d6   : > { %6159 = vmatprep.subr.bf16.mxu1 %v6158_v25  ;;  %v6198_v25 = vunpack.c.h.s8.bf16 %v493_v21 }
 0x1d7   : > { %3723 = vmatmul.mubr.f32.vlgmr.msra.gmra.mxu0 %v6803_v34  ;;  %v6140_v34 = vunpack.c.l.s8.bf16 %v460_v26 }
 0x1d8   : > { %3794 = vmatmul.mubr.f32.vlgmr.msra.gmra.mxu1 %v6804_v35  ;;  %6097 = vmatpush1.bf16.msra.mxu0 %v6096_v28  ;;  %v6136_v28 = vunpack.c.h.s8.bf16 %v460_v26  ;;  %v6204_v35 = vunpack.c.l.s8.bf16 %v492_v27  ;;  %v504_v26 = vld [vmem:[%s7065_s28 + $0x530] sm:$0xff] }
 0x1d9   : > { %6161 = vmatpush1.bf16.msra.mxu1 %v6160_v29  ;;  %6099 = vmatprep.subr.bf16.mxu0 %v6098_v30  ;;  %v6200_v29 = vunpack.c.h.s8.bf16 %v492_v27  ;;  %v6138_v30 = vunpack.c.l.s8.bf16 %v461_v20  ;;  %v505_v20 = vld [vmem:[%s7065_s28 + $0x538] sm:$0xff]  ;;  %v536_v27 = vld [vmem:[%s7065_s28 + $0x630] sm:$0xff] }
 0x1da   : > { %6163 = vmatprep.subr.bf16.mxu1 %v6162_v31  ;;  %3864 = vmatprep.mubr.f32.mxu0 %v6805_v42  ;;  %v6202_v31 = vunpack.c.l.s8.bf16 %v493_v21  ;;  %v6146_v42 = vunpack.c.l.s8.bf16 %v457_v32  ;;  %v537_v21 = vld [vmem:[%s7065_s28 + $0x638] sm:$0xff] }
 0x1db   : > { %3935 = vmatprep.mubr.f32.mxu1 %v6806_v43  ;;  %v6210_v43 = vunpack.c.l.s8.bf16 %v489_v33 }
 0x1dc   : > { %6101 = vmatpush1.bf16.msra.mxu0 %v6100_v36  ;;  %v6142_v36 = vunpack.c.h.s8.bf16 %v457_v32  ;;  %v501_v32 = vld [vmem:[%s7065_s28 + $0x518] sm:$0xff] }
 0x1dd   : > { %6165 = vmatpush1.bf16.msra.mxu1 %v6164_v37  ;;  %6103 = vmatprep.subr.bf16.mxu0 %v6102_v38  ;;  %v6206_v37 = vunpack.c.h.s8.bf16 %v489_v33  ;;  %v456_v38 = vld [vmem:[%s7065_s28 + $0x3b0] sm:$0xff]  ;;  %v533_v33 = vld [vmem:[%s7065_s28 + $0x618] sm:$0xff] }
 0x1de   : > { %6167 = vmatprep.subr.bf16.mxu1 %v6166_v39  ;;  %v488_v39 = vld [vmem:[%s7065_s28 + $0x4b0] sm:$0xff]  ;;  %v6144_v40 = vunpack.c.h.s8.bf16 %v456_v38 }
 0x1df   : > { %v6208_v41 = vunpack.c.h.s8.bf16 %v488_v39 }
 0x1e0   : > { %6105 = vmatpush1.bf16.msra.mxu0 %v6104_v44  ;;  %v453_v44 = vld [vmem:[%s7065_s28 + $0x398] sm:$0xff] }
 0x1e1   : > { %6169 = vmatpush1.bf16.msra.mxu1 %v6168_v45  ;;  %6107 = vmatprep.subr.bf16.mxu0 %v6106_v46  ;;  %v485_v45 = vld [vmem:[%s7065_s28 + $0x498] sm:$0xff]  ;;  %v6148_v46 = vunpack.c.l.s8.bf16 %v456_v38  ;;  %v6150_v48 = vunpack.c.h.s8.bf16 %v453_v44  ;;  %v6154_v54 = vunpack.c.l.s8.bf16 %v453_v44  ;;  %v500_v38 = vld [vmem:[%s7065_s28 + $0x510] sm:$0xff] }
 0x1e2   : > { %6171 = vmatprep.subr.bf16.mxu1 %v6170_v47  ;;  %v6212_v47 = vunpack.c.l.s8.bf16 %v488_v39  ;;  %v6214_v49 = vunpack.c.h.s8.bf16 %v485_v45  ;;  %v6218_v55 = vunpack.c.l.s8.bf16 %v485_v45  ;;  %v532_v39 = vld [vmem:[%s7065_s28 + $0x610] sm:$0xff]  ;;  %v529_v44 = vld [vmem:[%s7065_s28 + $0x5f8] sm:$0xff] }
 0x1e3   : > { %v561_v45 = vld [vmem:[%s7065_s28 + $0x6f8] sm:$0xff] }
 0x1e4   : > { %6109 = vmatpush1.bf16.msra.mxu0 %v6108_v50  ;;  %v452_v50 = vld [vmem:[%s7065_s28 + $0x390] sm:$0xff] }
 0x1e5   : > { %6173 = vmatpush1.bf16.msra.mxu1 %v6172_v51  ;;  %6111 = vmatprep.subr.bf16.mxu0 %v6110_v52  ;;  %v484_v51 = vld [vmem:[%s7065_s28 + $0x490] sm:$0xff]  ;;  %v6152_v52 = vunpack.c.h.s8.bf16 %v452_v50 }
 0x1e6   : > { %6175 = vmatprep.subr.bf16.mxu1 %v6174_v53  ;;  %v6216_v53 = vunpack.c.h.s8.bf16 %v484_v51 }
 0x1e8   : > { %6113 = vmatpush1.bf16.msra.mxu0 %v6112_v56  ;;  %v513_v56 = vld [vmem:[%s7065_s28 + $0x578] sm:$0xff] }
 0x1e9   : > { %6177 = vmatpush1.bf16.msra.mxu1 %v6176_v57  ;;  %6115 = vmatprep.subr.bf16.mxu0 %v6114_v58  ;;  %v545_v57 = vld [vmem:[%s7065_s28 + $0x678] sm:$0xff]  ;;  %v6156_v58 = vunpack.c.l.s8.bf16 %v452_v50  ;;  %v6222_v60 = vunpack.c.h.s8.bf16 %v513_v56  ;;  %v6226_v2 = vunpack.c.l.s8.bf16 %v513_v56  ;;  %v528_v50 = vld [vmem:[%s7065_s28 + $0x5f0] sm:$0xff] }
 0x1ea   : > { %6179 = vmatprep.subr.bf16.mxu1 %v6178_v59  ;;  %v6220_v59 = vunpack.c.l.s8.bf16 %v484_v51  ;;  %v6286_v61 = vunpack.c.h.s8.bf16 %v545_v57  ;;  %v6290_v3 = vunpack.c.l.s8.bf16 %v545_v57  ;;  %v560_v51 = vld [vmem:[%s7065_s28 + $0x6f0] sm:$0xff]  ;;  %v525_v56 = vld [vmem:[%s7065_s28 + $0x5d8] sm:$0xff] }
 0x1eb   : > { %v557_v57 = vld [vmem:[%s7065_s28 + $0x6d8] sm:$0xff] }
 0x1ec   : > { %6117 = vmatpush1.bf16.msra.mxu0 %v6116_v62  ;;  %v512_v62 = vld [vmem:[%s7065_s28 + $0x570] sm:$0xff] }
 0x1ed   : > { %6181 = vmatpush1.bf16.msra.mxu1 %v6180_v63  ;;  %6119 = vmatprep.subr.bf16.mxu0 %v6118_v0  ;;  %v544_v63 = vld [vmem:[%s7065_s28 + $0x670] sm:$0xff]  ;;  %v6224_v0 = vunpack.c.h.s8.bf16 %v512_v62  ;;  %v6228_v8 = vunpack.c.l.s8.bf16 %v512_v62 }
 0x1ee   : > { %6183 = vmatprep.subr.bf16.mxu1 %v6182_v1  ;;  %v6288_v1 = vunpack.c.h.s8.bf16 %v544_v63  ;;  %v6292_v9 = vunpack.c.l.s8.bf16 %v544_v63  ;;  %v524_v62 = vld [vmem:[%s7065_s28 + $0x5d0] sm:$0xff] }
 0x1ef   : > { %v556_v63 = vld [vmem:[%s7065_s28 + $0x6d0] sm:$0xff] }
 0x1f0   : > { %6121 = vmatpush1.bf16.msra.mxu0 %v6120_v4  ;;  %v509_v4 = vld [vmem:[%s7065_s28 + $0x558] sm:$0xff] }
 0x1f1   : > { %6185 = vmatpush1.bf16.msra.mxu1 %v6184_v5  ;;  %6123 = vmatprep.subr.bf16.mxu0 %v6122_v6  ;;  %v541_v5 = vld [vmem:[%s7065_s28 + $0x658] sm:$0xff]  ;;  %v6807_v6 = vld [vmem:[%s7591_s0 + $0x30] sm:$0xff] }
 0x1f2   : > { %6187 = vmatprep.subr.bf16.mxu1 %v6186_v7  ;;  %v6808_v7 = vld [vmem:[%s7591_s0 + $0x40] sm:$0xff] }
 0x1f4   : > { %6125 = vmatpush1.bf16.msra.mxu0 %v6124_v10  ;;  %v6230_v10 = vunpack.c.h.s8.bf16 %v509_v4 }
 0x1f5   : > { %6189 = vmatpush1.bf16.msra.mxu1 %v6188_v11  ;;  %6127 = vmatprep.subr.bf16.mxu0 %v6126_v12  ;;  %v6294_v11 = vunpack.c.h.s8.bf16 %v541_v5  ;;  %v508_v12 = vld [vmem:[%s7065_s28 + $0x550] sm:$0xff] }
 0x1f6   : > { %6191 = vmatprep.subr.bf16.mxu1 %v6190_v13  ;;  %v540_v13 = vld [vmem:[%s7065_s28 + $0x650] sm:$0xff] }
 0x1f8   : > { %6129 = vmatpush2.bf16.msra.mxu0 %v6128_v16  ;;  %v6232_v16 = vunpack.c.h.s8.bf16 %v508_v12 }
 0x1f9   : > { %6193 = vmatpush2.bf16.msra.mxu1 %v6192_v17  ;;  %6131 = vmatprep.subr.bf16.mxu0 %v6130_v18  ;;  %v6296_v17 = vunpack.c.h.s8.bf16 %v540_v13  ;;  %v6234_v18 = vunpack.c.l.s8.bf16 %v509_v4  ;;  %v521_v4 = vld [vmem:[%s7065_s28 + $0x5b8] sm:$0xff] }
 0x1fa   : > { %6195 = vmatprep.subr.bf16.mxu1 %v6194_v19  ;;  %v6298_v19 = vunpack.c.l.s8.bf16 %v541_v5  ;;  %v553_v5 = vld [vmem:[%s7065_s28 + $0x6b8] sm:$0xff] }
 0x1fc   : > { %6133 = vmatpush2.bf16.msra.mxu0 %v6132_v22  ;;  %v6236_v22 = vunpack.c.l.s8.bf16 %v508_v12 }
 0x1fd   : > { %6197 = vmatpush2.bf16.msra.mxu1 %v6196_v23  ;;  %6135 = vmatprep.subr.bf16.mxu0 %v6134_v24  ;;  %v6300_v23 = vunpack.c.l.s8.bf16 %v540_v13  ;;  %v6238_v24 = vunpack.c.h.s8.bf16 %v505_v20 }
 0x1fe   : > { %6199 = vmatprep.subr.bf16.mxu1 %v6198_v25  ;;  %v6302_v25 = vunpack.c.h.s8.bf16 %v537_v21 }
 0x200   : > { %6137 = vmatpush2.bf16.msra.mxu0 %v6136_v28  ;;  %v6240_v28 = vunpack.c.h.s8.bf16 %v504_v26 }
 0x201   : > { %6201 = vmatpush2.bf16.msra.mxu1 %v6200_v29  ;;  %6139 = vmatprep.subr.bf16.mxu0 %v6138_v30  ;;  %v6304_v29 = vunpack.c.h.s8.bf16 %v536_v27  ;;  %v6242_v30 = vunpack.c.l.s8.bf16 %v505_v20 }
 0x202   : > { %6203 = vmatprep.subr.bf16.mxu1 %v6202_v31  ;;  %v6306_v31 = vunpack.c.l.s8.bf16 %v537_v21 }
 0x204   : > { %6141 = vmatpush2.bf16.msra.mxu0 %v6140_v34  ;;  %v6244_v34 = vunpack.c.l.s8.bf16 %v504_v26 }
 0x205   : > { %6205 = vmatpush2.bf16.msra.mxu1 %v6204_v35  ;;  %6143 = vmatprep.subr.bf16.mxu0 %v6142_v36  ;;  %v6308_v35 = vunpack.c.l.s8.bf16 %v536_v27  ;;  %v6246_v36 = vunpack.c.h.s8.bf16 %v501_v32 }
 0x206   : > { %6207 = vmatprep.subr.bf16.mxu1 %v6206_v37  ;;  %v6310_v37 = vunpack.c.h.s8.bf16 %v533_v33 }
 0x208   : > { %6145 = vmatpush2.bf16.msra.mxu0 %v6144_v40  ;;  %v6248_v40 = vunpack.c.h.s8.bf16 %v500_v38 }
 0x209   : > { %6209 = vmatpush2.bf16.msra.mxu1 %v6208_v41  ;;  %6147 = vmatprep.subr.bf16.mxu0 %v6146_v42  ;;  %v6312_v41 = vunpack.c.h.s8.bf16 %v532_v39  ;;  %v6250_v42 = vunpack.c.l.s8.bf16 %v501_v32 }
 0x20a   : > { %6211 = vmatprep.subr.bf16.mxu1 %v6210_v43  ;;  %v6314_v43 = vunpack.c.l.s8.bf16 %v533_v33 }
 0x20c   : > { %6149 = vmatpush2.bf16.msra.mxu0 %v6148_v46  ;;  %v6252_v46 = vunpack.c.l.s8.bf16 %v500_v38 }
 0x20d   : > { %6213 = vmatpush2.bf16.msra.mxu1 %v6212_v47  ;;  %6151 = vmatprep.subr.bf16.mxu0 %v6150_v48  ;;  %v6316_v47 = vunpack.c.l.s8.bf16 %v532_v39  ;;  %v6254_v48 = vunpack.c.h.s8.bf16 %v529_v44 }
 0x20e   : > { %6215 = vmatprep.subr.bf16.mxu1 %v6214_v49  ;;  %v6318_v49 = vunpack.c.h.s8.bf16 %v561_v45 }
 0x210   : > { %6153 = vmatpush2.bf16.msra.mxu0 %v6152_v52  ;;  %v6256_v52 = vunpack.c.h.s8.bf16 %v528_v50 }
 0x211   : > { %6217 = vmatpush2.bf16.msra.mxu1 %v6216_v53  ;;  %6155 = vmatprep.subr.bf16.mxu0 %v6154_v54  ;;  %v6320_v53 = vunpack.c.h.s8.bf16 %v560_v51  ;;  %v6258_v54 = vunpack.c.l.s8.bf16 %v529_v44 }
 0x212   : > { %6219 = vmatprep.subr.bf16.mxu1 %v6218_v55  ;;  %v6322_v55 = vunpack.c.l.s8.bf16 %v561_v45 }
 0x214   : > { %6157 = vmatpush2.bf16.msra.mxu0 %v6156_v58  ;;  %v6260_v58 = vunpack.c.l.s8.bf16 %v528_v50  ;;  %v6813_v50 = vld [vmem:[%s7591_s0 + $0x78] sm:$0xff] }
 0x215   : > { %6221 = vmatpush2.bf16.msra.mxu1 %v6220_v59  ;;  %6223 = vmatprep.subr.bf16.mxu0 %v6222_v60  ;;  %v6324_v59 = vunpack.c.l.s8.bf16 %v560_v51  ;;  %v6262_v60 = vunpack.c.h.s8.bf16 %v525_v56  ;;  %v6814_v51 = vld [vmem:[%s7591_s0 + $0x88] sm:$0xff] }
 0x216   : > { %6287 = vmatprep.subr.bf16.mxu1 %v6286_v61  ;;  %v6326_v61 = vunpack.c.h.s8.bf16 %v557_v57 }
 0x217   : > { %3865 = vmatmul.mubr.f32.vlgmr.msra.gmra.mxu0 %v6807_v6  ;;  %v6268_v6 = vunpack.c.l.s8.bf16 %v524_v62 }
 0x218   : > { %3936 = vmatmul.mubr.f32.vlgmr.msra.gmra.mxu1 %v6808_v7  ;;  %6225 = vmatpush1.bf16.msra.mxu0 %v6224_v0  ;;  %v6264_v0 = vunpack.c.h.s8.bf16 %v524_v62  ;;  %v6332_v7 = vunpack.c.l.s8.bf16 %v556_v63  ;;  %v568_v62 = vld [vmem:[%s7065_s28 + $0x730] sm:$0xff] }
 0x219   : > { %6289 = vmatpush1.bf16.msra.mxu1 %v6288_v1  ;;  %6227 = vmatprep.subr.bf16.mxu0 %v6226_v2  ;;  %v6328_v1 = vunpack.c.h.s8.bf16 %v556_v63  ;;  %v6266_v2 = vunpack.c.l.s8.bf16 %v525_v56  ;;  %v569_v56 = vld [vmem:[%s7065_s28 + $0x738] sm:$0xff]  ;;  %v600_v63 = vld [vmem:[%s7065_s28 + $0x830] sm:$0xff] }
 0x21a   : > { %6291 = vmatprep.subr.bf16.mxu1 %v6290_v3  ;;  %4006 = vmatprep.mubr.f32.mxu0 %v6809_v14  ;;  %v6330_v3 = vunpack.c.l.s8.bf16 %v557_v57  ;;  %v6274_v14 = vunpack.c.l.s8.bf16 %v521_v4  ;;  %v601_v57 = vld [vmem:[%s7065_s28 + $0x838] sm:$0xff] }
 0x21b   : > { %4077 = vmatprep.mubr.f32.mxu1 %v6810_v15  ;;  %v6338_v15 = vunpack.c.l.s8.bf16 %v553_v5 }
 0x21c   : > { %6229 = vmatpush1.bf16.msra.mxu0 %v6228_v8  ;;  %v6270_v8 = vunpack.c.h.s8.bf16 %v521_v4  ;;  %v565_v4 = vld [vmem:[%s7065_s28 + $0x718] sm:$0xff] }
 0x21d   : > { %6293 = vmatpush1.bf16.msra.mxu1 %v6292_v9  ;;  %6231 = vmatprep.subr.bf16.mxu0 %v6230_v10  ;;  %v6334_v9 = vunpack.c.h.s8.bf16 %v553_v5  ;;  %v520_v10 = vld [vmem:[%s7065_s28 + $0x5b0] sm:$0xff]  ;;  %v597_v5 = vld [vmem:[%s7065_s28 + $0x818] sm:$0xff] }
 0x21e   : > { %6295 = vmatprep.subr.bf16.mxu1 %v6294_v11  ;;  %v552_v11 = vld [vmem:[%s7065_s28 + $0x6b0] sm:$0xff]  ;;  %v6272_v12 = vunpack.c.h.s8.bf16 %v520_v10 }
 0x21f   : > { %v6336_v13 = vunpack.c.h.s8.bf16 %v552_v11 }
 0x220   : > { %6233 = vmatpush1.bf16.msra.mxu0 %v6232_v16  ;;  %v517_v16 = vld [vmem:[%s7065_s28 + $0x598] sm:$0xff] }
 0x221   : > { %6297 = vmatpush1.bf16.msra.mxu1 %v6296_v17  ;;  %6235 = vmatprep.subr.bf16.mxu0 %v6234_v18  ;;  %v549_v17 = vld [vmem:[%s7065_s28 + $0x698] sm:$0xff]  ;;  %v6276_v18 = vunpack.c.l.s8.bf16 %v520_v10  ;;  %v6278_v20 = vunpack.c.h.s8.bf16 %v517_v16  ;;  %v6282_v26 = vunpack.c.l.s8.bf16 %v517_v16  ;;  %v564_v10 = vld [vmem:[%s7065_s28 + $0x710] sm:$0xff] }
 0x222   : > { %6299 = vmatprep.subr.bf16.mxu1 %v6298_v19  ;;  %v6340_v19 = vunpack.c.l.s8.bf16 %v552_v11  ;;  %v6342_v21 = vunpack.c.h.s8.bf16 %v549_v17  ;;  %v6346_v27 = vunpack.c.l.s8.bf16 %v549_v17  ;;  %v596_v11 = vld [vmem:[%s7065_s28 + $0x810] sm:$0xff]  ;;  %v593_v16 = vld [vmem:[%s7065_s28 + $0x7f8] sm:$0xff] }
 0x223   : > { %v625_v17 = vld [vmem:[%s7065_s28 + $0x8f8] sm:$0xff] }
 0x224   : > { %6237 = vmatpush1.bf16.msra.mxu0 %v6236_v22  ;;  %v516_v22 = vld [vmem:[%s7065_s28 + $0x590] sm:$0xff] }
 0x225   : > { %6301 = vmatpush1.bf16.msra.mxu1 %v6300_v23  ;;  %6239 = vmatprep.subr.bf16.mxu0 %v6238_v24  ;;  %v548_v23 = vld [vmem:[%s7065_s28 + $0x690] sm:$0xff]  ;;  %v6280_v24 = vunpack.c.h.s8.bf16 %v516_v22 }
 0x226   : > { %6303 = vmatprep.subr.bf16.mxu1 %v6302_v25  ;;  %v6344_v25 = vunpack.c.h.s8.bf16 %v548_v23 }
 0x228   : > { %6241 = vmatpush1.bf16.msra.mxu0 %v6240_v28  ;;  %v577_v28 = vld [vmem:[%s7065_s28 + $0x778] sm:$0xff] }
 0x229   : > { %6305 = vmatpush1.bf16.msra.mxu1 %v6304_v29  ;;  %6243 = vmatprep.subr.bf16.mxu0 %v6242_v30  ;;  %v609_v29 = vld [vmem:[%s7065_s28 + $0x878] sm:$0xff]  ;;  %v6284_v30 = vunpack.c.l.s8.bf16 %v516_v22  ;;  %v6350_v32 = vunpack.c.h.s8.bf16 %v577_v28  ;;  %v6354_v38 = vunpack.c.l.s8.bf16 %v577_v28  ;;  %v592_v22 = vld [vmem:[%s7065_s28 + $0x7f0] sm:$0xff] }
 0x22a   : > { %6307 = vmatprep.subr.bf16.mxu1 %v6306_v31  ;;  %v6348_v31 = vunpack.c.l.s8.bf16 %v548_v23  ;;  %v6414_v33 = vunpack.c.h.s8.bf16 %v609_v29  ;;  %v6418_v39 = vunpack.c.l.s8.bf16 %v609_v29  ;;  %v624_v23 = vld [vmem:[%s7065_s28 + $0x8f0] sm:$0xff]  ;;  %v589_v28 = vld [vmem:[%s7065_s28 + $0x7d8] sm:$0xff] }
 0x22b   : > { %v621_v29 = vld [vmem:[%s7065_s28 + $0x8d8] sm:$0xff] }
 0x22c   : > { %6245 = vmatpush1.bf16.msra.mxu0 %v6244_v34  ;;  %v576_v34 = vld [vmem:[%s7065_s28 + $0x770] sm:$0xff] }
 0x22d   : > { %6309 = vmatpush1.bf16.msra.mxu1 %v6308_v35  ;;  %6247 = vmatprep.subr.bf16.mxu0 %v6246_v36  ;;  %v608_v35 = vld [vmem:[%s7065_s28 + $0x870] sm:$0xff]  ;;  %v6352_v36 = vunpack.c.h.s8.bf16 %v576_v34  ;;  %v6356_v44 = vunpack.c.l.s8.bf16 %v576_v34 }
 0x22e   : > { %6311 = vmatprep.subr.bf16.mxu1 %v6310_v37  ;;  %v6416_v37 = vunpack.c.h.s8.bf16 %v608_v35  ;;  %v6420_v45 = vunpack.c.l.s8.bf16 %v608_v35  ;;  %v588_v34 = vld [vmem:[%s7065_s28 + $0x7d0] sm:$0xff] }
 0x22f   : > { %v620_v35 = vld [vmem:[%s7065_s28 + $0x8d0] sm:$0xff] }
 0x230   : > { %6249 = vmatpush1.bf16.msra.mxu0 %v6248_v40  ;;  %v573_v40 = vld [vmem:[%s7065_s28 + $0x758] sm:$0xff] }
 0x231   : > { %6313 = vmatpush1.bf16.msra.mxu1 %v6312_v41  ;;  %6251 = vmatprep.subr.bf16.mxu0 %v6250_v42  ;;  %v605_v41 = vld [vmem:[%s7065_s28 + $0x858] sm:$0xff]  ;;  %v6811_v42 = vld [vmem:[%s7591_s0 + $0x50] sm:$0xff] }
 0x232   : > { %6315 = vmatprep.subr.bf16.mxu1 %v6314_v43  ;;  %v6812_v43 = vld [vmem:[%s7591_s0 + $0x60] sm:$0xff] }
 0x234   : > { %6253 = vmatpush1.bf16.msra.mxu0 %v6252_v46  ;;  %v6358_v46 = vunpack.c.h.s8.bf16 %v573_v40 }
 0x235   : > { %6317 = vmatpush1.bf16.msra.mxu1 %v6316_v47  ;;  %6255 = vmatprep.subr.bf16.mxu0 %v6254_v48  ;;  %v6422_v47 = vunpack.c.h.s8.bf16 %v605_v41  ;;  %v572_v48 = vld [vmem:[%s7065_s28 + $0x750] sm:$0xff] }
 0x236   : > { %6319 = vmatprep.subr.bf16.mxu1 %v6318_v49  ;;  %v604_v49 = vld [vmem:[%s7065_s28 + $0x850] sm:$0xff] }
 0x238   : > { %6257 = vmatpush2.bf16.msra.mxu0 %v6256_v52  ;;  %v6360_v52 = vunpack.c.h.s8.bf16 %v572_v48 }
 0x239   : > { %6321 = vmatpush2.bf16.msra.mxu1 %v6320_v53  ;;  %6259 = vmatprep.subr.bf16.mxu0 %v6258_v54  ;;  %v6424_v53 = vunpack.c.h.s8.bf16 %v604_v49  ;;  %v6362_v54 = vunpack.c.l.s8.bf16 %v573_v40  ;;  %v585_v40 = vld [vmem:[%s7065_s28 + $0x7b8] sm:$0xff] }
 0x23a   : > { %6323 = vmatprep.subr.bf16.mxu1 %v6322_v55  ;;  %v6426_v55 = vunpack.c.l.s8.bf16 %v605_v41  ;;  %v617_v41 = vld [vmem:[%s7065_s28 + $0x8b8] sm:$0xff] }
 0x23c   : > { %6261 = vmatpush2.bf16.msra.mxu0 %v6260_v58  ;;  %v6364_v58 = vunpack.c.l.s8.bf16 %v572_v48 }
 0x23d   : > { %6325 = vmatpush2.bf16.msra.mxu1 %v6324_v59  ;;  %6263 = vmatprep.subr.bf16.mxu0 %v6262_v60  ;;  %v6428_v59 = vunpack.c.l.s8.bf16 %v604_v49  ;;  %v6366_v60 = vunpack.c.h.s8.bf16 %v569_v56 }
 0x23e   : > { %6327 = vmatprep.subr.bf16.mxu1 %v6326_v61  ;;  %v6430_v61 = vunpack.c.h.s8.bf16 %v601_v57 }
 0x240   : > { %6265 = vmatpush2.bf16.msra.mxu0 %v6264_v0  ;;  %v6368_v0 = vunpack.c.h.s8.bf16 %v568_v62 }
 0x241   : > { %6329 = vmatpush2.bf16.msra.mxu1 %v6328_v1  ;;  %6267 = vmatprep.subr.bf16.mxu0 %v6266_v2  ;;  %v6432_v1 = vunpack.c.h.s8.bf16 %v600_v63  ;;  %v6370_v2 = vunpack.c.l.s8.bf16 %v569_v56 }
 0x242   : > { %6331 = vmatprep.subr.bf16.mxu1 %v6330_v3  ;;  %v6434_v3 = vunpack.c.l.s8.bf16 %v601_v57 }
 0x244   : > { %6269 = vmatpush2.bf16.msra.mxu0 %v6268_v6  ;;  %v6372_v6 = vunpack.c.l.s8.bf16 %v568_v62 }
 0x245   : > { %6333 = vmatpush2.bf16.msra.mxu1 %v6332_v7  ;;  %6271 = vmatprep.subr.bf16.mxu0 %v6270_v8  ;;  %v6436_v7 = vunpack.c.l.s8.bf16 %v600_v63  ;;  %v6374_v8 = vunpack.c.h.s8.bf16 %v565_v4 }
 0x246   : > { %6335 = vmatprep.subr.bf16.mxu1 %v6334_v9  ;;  %v6438_v9 = vunpack.c.h.s8.bf16 %v597_v5 }
 0x248   : > { %6273 = vmatpush2.bf16.msra.mxu0 %v6272_v12  ;;  %v6376_v12 = vunpack.c.h.s8.bf16 %v564_v10 }
 0x249   : > { %6337 = vmatpush2.bf16.msra.mxu1 %v6336_v13  ;;  %6275 = vmatprep.subr.bf16.mxu0 %v6274_v14  ;;  %v6440_v13 = vunpack.c.h.s8.bf16 %v596_v11  ;;  %v6378_v14 = vunpack.c.l.s8.bf16 %v565_v4 }
 0x24a   : > { %6339 = vmatprep.subr.bf16.mxu1 %v6338_v15  ;;  %v6442_v15 = vunpack.c.l.s8.bf16 %v597_v5 }
 0x24c   : > { %6277 = vmatpush2.bf16.msra.mxu0 %v6276_v18  ;;  %v6380_v18 = vunpack.c.l.s8.bf16 %v564_v10 }
 0x24d   : > { %6341 = vmatpush2.bf16.msra.mxu1 %v6340_v19  ;;  %6279 = vmatprep.subr.bf16.mxu0 %v6278_v20  ;;  %v6444_v19 = vunpack.c.l.s8.bf16 %v596_v11  ;;  %v6382_v20 = vunpack.c.h.s8.bf16 %v593_v16 }
 0x24e   : > { %6343 = vmatprep.subr.bf16.mxu1 %v6342_v21  ;;  %v6446_v21 = vunpack.c.h.s8.bf16 %v625_v17 }
 0x250   : > { %6281 = vmatpush2.bf16.msra.mxu0 %v6280_v24  ;;  %v6384_v24 = vunpack.c.h.s8.bf16 %v592_v22 }
 0x251   : > { %6345 = vmatpush2.bf16.msra.mxu1 %v6344_v25  ;;  %6283 = vmatprep.subr.bf16.mxu0 %v6282_v26  ;;  %v6448_v25 = vunpack.c.h.s8.bf16 %v624_v23  ;;  %v6386_v26 = vunpack.c.l.s8.bf16 %v593_v16  ;;  %v7482_v16 = vld [vmem:[%s7592_s1 + $0x8] sm:$0xff] }
 0x252   : > { %6347 = vmatprep.subr.bf16.mxu1 %v6346_v27  ;;  %v6450_v27 = vunpack.c.l.s8.bf16 %v625_v17  ;;  %v7487_v17 = vld [vmem:[%s7592_s1 + $0x18] sm:$0xff] }
 0x254   : > { %6285 = vmatpush2.bf16.msra.mxu0 %v6284_v30  ;;  %v6388_v30 = vunpack.c.l.s8.bf16 %v592_v22  ;;  %v4260_v22 = vld [vmem:[%s7065_s28 + $0x940] sm:$0xff] }
 0x255   : > { %6349 = vmatpush2.bf16.msra.mxu1 %v6348_v31  ;;  %6351 = vmatprep.subr.bf16.mxu0 %v6350_v32  ;;  %v6452_v31 = vunpack.c.l.s8.bf16 %v624_v23  ;;  %v6390_v32 = vunpack.c.h.s8.bf16 %v589_v28  ;;  %v4292_v23 = vld [vmem:[%s7065_s28 + $0xa40] sm:$0xff] }
 0x256   : > { %6415 = vmatprep.subr.bf16.mxu1 %v6414_v33  ;;  %v6454_v33 = vunpack.c.h.s8.bf16 %v621_v29 }
 0x257   : > { %4007 = vmatmul.mubr.f32.vlgmr.msra.gmra.mxu0 %v6811_v42  ;;  %v6396_v42 = vunpack.c.l.s8.bf16 %v588_v34 }
 0x258   : > { %4078 = vmatmul.mubr.f32.vlgmr.msra.gmra.mxu1 %v6812_v43  ;;  %6353 = vmatpush1.bf16.msra.mxu0 %v6352_v36  ;;  %v6392_v36 = vunpack.c.h.s8.bf16 %v588_v34  ;;  %v6460_v43 = vunpack.c.l.s8.bf16 %v620_v35  ;;  %v4256_v34 = vld [vmem:[%s7065_s28 + $0x920] sm:$0xff] }
 0x259   : > { %6417 = vmatpush1.bf16.msra.mxu1 %v6416_v37  ;;  %6355 = vmatprep.subr.bf16.mxu0 %v6354_v38  ;;  %v6456_v37 = vunpack.c.h.s8.bf16 %v620_v35  ;;  %v6394_v38 = vunpack.c.l.s8.bf16 %v589_v28  ;;  %v4257_v28 = vld [vmem:[%s7065_s28 + $0x928] sm:$0xff]  ;;  %v4288_v35 = vld [vmem:[%s7065_s28 + $0xa20] sm:$0xff] }
 0x25a   : > { %6419 = vmatprep.subr.bf16.mxu1 %v6418_v39  ;;  %4148 = vmatprep.mubr.f32.mxu0 %v6813_v50  ;;  %v6458_v39 = vunpack.c.l.s8.bf16 %v621_v29  ;;  %v6402_v50 = vunpack.c.l.s8.bf16 %v585_v40  ;;  %v4289_v29 = vld [vmem:[%s7065_s28 + $0xa28] sm:$0xff] }
 0x25b   : > { %4219 = vmatprep.mubr.f32.mxu1 %v6814_v51  ;;  %v6466_v51 = vunpack.c.l.s8.bf16 %v617_v41 }
 0x25c   : > { %6357 = vmatpush1.bf16.msra.mxu0 %v6356_v44  ;;  %v6398_v44 = vunpack.c.h.s8.bf16 %v585_v40  ;;  %v4253_v40 = vld [vmem:[%s7065_s28 + $0x908] sm:$0xff] }
 0x25d   : > { %6421 = vmatpush1.bf16.msra.mxu1 %v6420_v45  ;;  %6359 = vmatprep.subr.bf16.mxu0 %v6358_v46  ;;  %v6462_v45 = vunpack.c.h.s8.bf16 %v617_v41  ;;  %v584_v46 = vld [vmem:[%s7065_s28 + $0x7b0] sm:$0xff]  ;;  %v4285_v41 = vld [vmem:[%s7065_s28 + $0xa08] sm:$0xff] }
 0x25e   : > { %6423 = vmatprep.subr.bf16.mxu1 %v6422_v47  ;;  %v616_v47 = vld [vmem:[%s7065_s28 + $0x8b0] sm:$0xff]  ;;  %v6400_v48 = vunpack.c.h.s8.bf16 %v584_v46 }
 0x25f   : > { %v6464_v49 = vunpack.c.h.s8.bf16 %v616_v47 }
 0x260   : > { %6361 = vmatpush1.bf16.msra.mxu0 %v6360_v52  ;;  %v581_v52 = vld [vmem:[%s7065_s28 + $0x798] sm:$0xff] }
 0x261   : > { %6425 = vmatpush1.bf16.msra.mxu1 %v6424_v53  ;;  %6363 = vmatprep.subr.bf16.mxu0 %v6362_v54  ;;  %v613_v53 = vld [vmem:[%s7065_s28 + $0x898] sm:$0xff]  ;;  %v6404_v54 = vunpack.c.l.s8.bf16 %v584_v46  ;;  %v6406_v56 = vunpack.c.h.s8.bf16 %v581_v52  ;;  %v6410_v62 = vunpack.c.l.s8.bf16 %v581_v52  ;;  %v4252_v46 = vld [vmem:[%s7065_s28 + $0x900] sm:$0xff]  ;;  %v4281_v52 = vld [vmem:[%s7065_s28 + $0x9e8] sm:$0xff] }
 0x262   : > { %6427 = vmatprep.subr.bf16.mxu1 %v6426_v55  ;;  %v6468_v55 = vunpack.c.l.s8.bf16 %v616_v47  ;;  %v6470_v57 = vunpack.c.h.s8.bf16 %v613_v53  ;;  %v6474_v63 = vunpack.c.l.s8.bf16 %v613_v53  ;;  %v4284_v47 = vld [vmem:[%s7065_s28 + $0xa00] sm:$0xff]  ;;  %v4313_v53 = vld [vmem:[%s7065_s28 + $0xae8] sm:$0xff] }
 0x264   : > { %6365 = vmatpush1.bf16.msra.mxu0 %v6364_v58  ;;  %v580_v58 = vld [vmem:[%s7065_s28 + $0x790] sm:$0xff] }
 0x265   : > { %6429 = vmatpush1.bf16.msra.mxu1 %v6428_v59  ;;  %6367 = vmatprep.subr.bf16.mxu0 %v6366_v60  ;;  %v612_v59 = vld [vmem:[%s7065_s28 + $0x890] sm:$0xff]  ;;  %v6408_v60 = vunpack.c.h.s8.bf16 %v580_v58 }
 0x266   : > { %6431 = vmatprep.subr.bf16.mxu1 %v6430_v61  ;;  %v6472_v61 = vunpack.c.h.s8.bf16 %v612_v59 }
 0x268   : > { %6369 = vmatpush1.bf16.msra.mxu0 %v6368_v0  ;;  %v4265_v0 = vld [vmem:[%s7065_s28 + $0x968] sm:$0xff] }
 0x269   : > { %6433 = vmatpush1.bf16.msra.mxu1 %v6432_v1  ;;  %6371 = vmatprep.subr.bf16.mxu0 %v6370_v2  ;;  %v4297_v1 = vld [vmem:[%s7065_s28 + $0xa68] sm:$0xff]  ;;  %v6412_v2 = vunpack.c.l.s8.bf16 %v580_v58  ;;  %v6478_v4 = vunpack.c.h.s8.bf16 %v4265_v0  ;;  %v6482_v10 = vunpack.c.l.s8.bf16 %v4265_v0  ;;  %v4280_v58 = vld [vmem:[%s7065_s28 + $0x9e0] sm:$0xff] }
 0x26a   : > { %6435 = vmatprep.subr.bf16.mxu1 %v6434_v3  ;;  %v6476_v3 = vunpack.c.l.s8.bf16 %v612_v59  ;;  %v6542_v5 = vunpack.c.h.s8.bf16 %v4297_v1  ;;  %v6546_v11 = vunpack.c.l.s8.bf16 %v4297_v1  ;;  %v4312_v59 = vld [vmem:[%s7065_s28 + $0xae0] sm:$0xff]  ;;  %v4277_v0 = vld [vmem:[%s7065_s28 + $0x9c8] sm:$0xff] }
 0x26b   : > { %v4309_v1 = vld [vmem:[%s7065_s28 + $0xac8] sm:$0xff] }
 0x26c   : > { %6373 = vmatpush1.bf16.msra.mxu0 %v6372_v6  ;;  %v4264_v6 = vld [vmem:[%s7065_s28 + $0x960] sm:$0xff] }
 0x26d   : > { %6437 = vmatpush1.bf16.msra.mxu1 %v6436_v7  ;;  %6375 = vmatprep.subr.bf16.mxu0 %v6374_v8  ;;  %v4296_v7 = vld [vmem:[%s7065_s28 + $0xa60] sm:$0xff]  ;;  %v6480_v8 = vunpack.c.h.s8.bf16 %v4264_v6 }
 0x26e   : > { %6439 = vmatprep.subr.bf16.mxu1 %v6438_v9  ;;  %v6544_v9 = vunpack.c.h.s8.bf16 %v4296_v7 }
 0x270   : > { %6377 = vmatpush1.bf16.msra.mxu0 %v6376_v12  ;;  %v4261_v12 = vld [vmem:[%s7065_s28 + $0x948] sm:$0xff] }
 0x271   : > { %6441 = vmatpush1.bf16.msra.mxu1 %v6440_v13  ;;  %6379 = vmatprep.subr.bf16.mxu0 %v6378_v14  ;;  %v4293_v13 = vld [vmem:[%s7065_s28 + $0xa48] sm:$0xff]  ;;  %v6815_v14 = vld [vmem:[%s7591_s0 + $0x70] sm:$0xff] }
 0x272   : > { %6443 = vmatprep.subr.bf16.mxu1 %v6442_v15  ;;  %v6816_v15 = vld [vmem:[%s7591_s0 + $0x80] sm:$0xff] }
 0x274   : > { %6381 = vmatpush1.bf16.msra.mxu0 %v6380_v18  ;;  %v6484_v18 = vunpack.c.l.s8.bf16 %v4264_v6  ;;  %v4276_v6 = vld [vmem:[%s7065_s28 + $0x9c0] sm:$0xff] }
 0x275   : > { %6445 = vmatpush1.bf16.msra.mxu1 %v6444_v19  ;;  %6383 = vmatprep.subr.bf16.mxu0 %v6382_v20  ;;  %v6548_v19 = vunpack.c.l.s8.bf16 %v4296_v7  ;;  %v6486_v20 = vunpack.c.h.s8.bf16 %v4261_v12  ;;  %v4308_v7 = vld [vmem:[%s7065_s28 + $0xac0] sm:$0xff] }
 0x276   : > { %6447 = vmatprep.subr.bf16.mxu1 %v6446_v21  ;;  %v6550_v21 = vunpack.c.h.s8.bf16 %v4293_v13 }
 0x278   : > { %6385 = vmatpush2.bf16.msra.mxu0 %v6384_v24  ;;  %v6488_v24 = vunpack.c.h.s8.bf16 %v4260_v22 }
 0x279   : > { %6449 = vmatpush2.bf16.msra.mxu1 %v6448_v25  ;;  %6387 = vmatprep.subr.bf16.mxu0 %v6386_v26  ;;  %v6552_v25 = vunpack.c.h.s8.bf16 %v4292_v23  ;;  %v6490_v26 = vunpack.c.l.s8.bf16 %v4261_v12  ;;  %v4273_v12 = vld [vmem:[%s7065_s28 + $0x9a8] sm:$0xff] }
 0x27a   : > { %6451 = vmatprep.subr.bf16.mxu1 %v6450_v27  ;;  %v6554_v27 = vunpack.c.l.s8.bf16 %v4293_v13  ;;  %v4305_v13 = vld [vmem:[%s7065_s28 + $0xaa8] sm:$0xff] }
 0x27c   : > { %6389 = vmatpush2.bf16.msra.mxu0 %v6388_v30  ;;  %v6492_v30 = vunpack.c.l.s8.bf16 %v4260_v22 }
 0x27d   : > { %6453 = vmatpush2.bf16.msra.mxu1 %v6452_v31  ;;  %6391 = vmatprep.subr.bf16.mxu0 %v6390_v32  ;;  %v6556_v31 = vunpack.c.l.s8.bf16 %v4292_v23  ;;  %v6494_v32 = vunpack.c.h.s8.bf16 %v4257_v28 }
 0x27e   : > { %6455 = vmatprep.subr.bf16.mxu1 %v6454_v33  ;;  %v6558_v33 = vunpack.c.h.s8.bf16 %v4289_v29 }
 0x280   : > { %6393 = vmatpush2.bf16.msra.mxu0 %v6392_v36  ;;  %v6496_v36 = vunpack.c.h.s8.bf16 %v4256_v34 }
 0x281   : > { %6457 = vmatpush2.bf16.msra.mxu1 %v6456_v37  ;;  %6395 = vmatprep.subr.bf16.mxu0 %v6394_v38  ;;  %v6560_v37 = vunpack.c.h.s8.bf16 %v4288_v35  ;;  %v6498_v38 = vunpack.c.l.s8.bf16 %v4257_v28 }
 0x282   : > { %6459 = vmatprep.subr.bf16.mxu1 %v6458_v39  ;;  %v6562_v39 = vunpack.c.l.s8.bf16 %v4289_v29 }
 0x284   : > { %6397 = vmatpush2.bf16.msra.mxu0 %v6396_v42  ;;  %v6500_v42 = vunpack.c.l.s8.bf16 %v4256_v34 }
 0x285   : > { %6461 = vmatpush2.bf16.msra.mxu1 %v6460_v43  ;;  %6399 = vmatprep.subr.bf16.mxu0 %v6398_v44  ;;  %v6564_v43 = vunpack.c.l.s8.bf16 %v4288_v35  ;;  %v6502_v44 = vunpack.c.h.s8.bf16 %v4253_v40 }
 0x286   : > { %6463 = vmatprep.subr.bf16.mxu1 %v6462_v45  ;;  %v6566_v45 = vunpack.c.h.s8.bf16 %v4285_v41 }
 0x288   : > { %6401 = vmatpush2.bf16.msra.mxu0 %v6400_v48  ;;  %v6504_v48 = vunpack.c.h.s8.bf16 %v4252_v46 }
 0x289   : > { %6465 = vmatpush2.bf16.msra.mxu1 %v6464_v49  ;;  %6403 = vmatprep.subr.bf16.mxu0 %v6402_v50  ;;  %v6568_v49 = vunpack.c.h.s8.bf16 %v4284_v47  ;;  %v6506_v50 = vunpack.c.l.s8.bf16 %v4253_v40 }
 0x28a   : > { %6467 = vmatprep.subr.bf16.mxu1 %v6466_v51  ;;  %v6570_v51 = vunpack.c.l.s8.bf16 %v4285_v41 }
 0x28c   : > { %6405 = vmatpush2.bf16.msra.mxu0 %v6404_v54  ;;  %v6508_v54 = vunpack.c.l.s8.bf16 %v4252_v46  ;;  %v7524_v46 = vld [vmem:[%s7592_s1] sm:$0xff] }
 0x28d   : > { %6469 = vmatpush2.bf16.msra.mxu1 %v6468_v55  ;;  %6407 = vmatprep.subr.bf16.mxu0 %v6406_v56  ;;  %v6572_v55 = vunpack.c.l.s8.bf16 %v4284_v47  ;;  %v6510_v56 = vunpack.c.h.s8.bf16 %v4281_v52  ;;  %v7529_v47 = vld [vmem:[%s7592_s1 + $0x10] sm:$0xff] }
 0x28e   : > { %6471 = vmatprep.subr.bf16.mxu1 %v6470_v57  ;;  %v6574_v57 = vunpack.c.h.s8.bf16 %v4313_v53 }
 0x290   : > { %6409 = vmatpush2.bf16.msra.mxu0 %v6408_v60  ;;  %v6512_v60 = vunpack.c.h.s8.bf16 %v4280_v58 }
 0x291   : > { %6473 = vmatpush2.bf16.msra.mxu1 %v6472_v61  ;;  %6411 = vmatprep.subr.bf16.mxu0 %v6410_v62  ;;  %v6576_v61 = vunpack.c.h.s8.bf16 %v4312_v59  ;;  %v6514_v62 = vunpack.c.l.s8.bf16 %v4281_v52  ;;  %v4263_v52 = vld [vmem:[%s7065_s28 + $0x958] sm:$0xff] }
 0x292   : > { %6475 = vmatprep.subr.bf16.mxu1 %v6474_v63  ;;  %v6578_v63 = vunpack.c.l.s8.bf16 %v4313_v53  ;;  %v4295_v53 = vld [vmem:[%s7065_s28 + $0xa58] sm:$0xff] }
 0x294   : > { %6413 = vmatpush2.bf16.msra.mxu0 %v6412_v2  ;;  %v6516_v2 = vunpack.c.l.s8.bf16 %v4280_v58  ;;  %v4262_v58 = vld [vmem:[%s7065_s28 + $0x950] sm:$0xff] }
 0x295   : > { %6477 = vmatpush2.bf16.msra.mxu1 %v6476_v3  ;;  %6479 = vmatprep.subr.bf16.mxu0 %v6478_v4  ;;  %v6580_v3 = vunpack.c.l.s8.bf16 %v4312_v59  ;;  %v6518_v4 = vunpack.c.h.s8.bf16 %v4277_v0  ;;  %v4294_v59 = vld [vmem:[%s7065_s28 + $0xa50] sm:$0xff] }
 0x296   : > { %6543 = vmatprep.subr.bf16.mxu1 %v6542_v5  ;;  %v6582_v5 = vunpack.c.h.s8.bf16 %v4309_v1 }
 0x297   : > { %4149 = vmatmul.mubr.f32.vlgmr.msra.gmra.mxu0 %v6815_v14  ;;  %v6524_v14 = vunpack.c.l.s8.bf16 %v4276_v6 }
 0x298   : > { %4220 = vmatmul.mubr.f32.vlgmr.msra.gmra.mxu1 %v6816_v15  ;;  %6481 = vmatpush1.bf16.msra.mxu0 %v6480_v8  ;;  %v6520_v8 = vunpack.c.h.s8.bf16 %v4276_v6  ;;  %v6588_v15 = vunpack.c.l.s8.bf16 %v4308_v7 }
 0x299   : > { %6545 = vmatpush1.bf16.msra.mxu1 %v6544_v9  ;;  %6483 = vmatprep.subr.bf16.mxu0 %v6482_v10  ;;  %v6584_v9 = vunpack.c.h.s8.bf16 %v4308_v7  ;;  %v6522_v10 = vunpack.c.l.s8.bf16 %v4277_v0  ;;  %v4259_v0 = vld [vmem:[%s7065_s28 + $0x938] sm:$0xff] }
 0x29a   : > { %6547 = vmatprep.subr.bf16.mxu1 %v6546_v11  ;;  %4896 = vmatprep.mubr.f32.mxu0 %v7482_v16  ;;  %v6586_v11 = vunpack.c.l.s8.bf16 %v4309_v1  ;;  %v4291_v1 = vld [vmem:[%s7065_s28 + $0xa38] sm:$0xff] }
 0x29b   : > { %4967 = vmatprep.mubr.f32.mxu1 %v7487_v17 }
 0x29c   : > { %6485 = vmatpush1.bf16.msra.mxu0 %v6484_v18  ;;  %v6526_v18 = vunpack.c.h.s8.bf16 %v4273_v12 }
 0x29d   : > { %6549 = vmatpush1.bf16.msra.mxu1 %v6548_v19  ;;  %6487 = vmatprep.subr.bf16.mxu0 %v6486_v20  ;;  %v6590_v19 = vunpack.c.h.s8.bf16 %v4305_v13  ;;  %v4272_v20 = vld [vmem:[%s7065_s28 + $0x9a0] sm:$0xff] }
 0x29e   : > { %6551 = vmatprep.subr.bf16.mxu1 %v6550_v21  ;;  %v4304_v21 = vld [vmem:[%s7065_s28 + $0xaa0] sm:$0xff]  ;;  %v6528_v22 = vunpack.c.h.s8.bf16 %v4272_v20  ;;  %v6532_v28 = vunpack.c.l.s8.bf16 %v4272_v20 }
 0x29f   : > { %v6592_v23 = vunpack.c.h.s8.bf16 %v4304_v21  ;;  %v6596_v29 = vunpack.c.l.s8.bf16 %v4304_v21 }
 0x2a0   : > { %6489 = vmatpush1.bf16.msra.mxu0 %v6488_v24  ;;  %v6530_v24 = vunpack.c.l.s8.bf16 %v4273_v12 }
 0x2a1   : > { %6553 = vmatpush1.bf16.msra.mxu1 %v6552_v25  ;;  %6491 = vmatprep.subr.bf16.mxu0 %v6490_v26  ;;  %v6594_v25 = vunpack.c.l.s8.bf16 %v4305_v13  ;;  %v4269_v26 = vld [vmem:[%s7065_s28 + $0x988] sm:$0xff] }
 0x2a2   : > { %6555 = vmatprep.subr.bf16.mxu1 %v6554_v27  ;;  %v4301_v27 = vld [vmem:[%s7065_s28 + $0xa88] sm:$0xff] }
 0x2a4   : > { %6493 = vmatpush1.bf16.msra.mxu0 %v6492_v30  ;;  %v6534_v30 = vunpack.c.h.s8.bf16 %v4269_v26 }
 0x2a5   : > { %6557 = vmatpush1.bf16.msra.mxu1 %v6556_v31  ;;  %6495 = vmatprep.subr.bf16.mxu0 %v6494_v32  ;;  %v6598_v31 = vunpack.c.h.s8.bf16 %v4301_v27  ;;  %v4268_v32 = vld [vmem:[%s7065_s28 + $0x980] sm:$0xff] }
 0x2a6   : > { %6559 = vmatprep.subr.bf16.mxu1 %v6558_v33  ;;  %v4300_v33 = vld [vmem:[%s7065_s28 + $0xa80] sm:$0xff]  ;;  %v6536_v34 = vunpack.c.h.s8.bf16 %v4268_v32  ;;  %v6540_v40 = vunpack.c.l.s8.bf16 %v4268_v32 }
 0x2a7   : > { %v6600_v35 = vunpack.c.h.s8.bf16 %v4300_v33  ;;  %v6604_v41 = vunpack.c.l.s8.bf16 %v4300_v33 }
 0x2a8   : > { %6497 = vmatpush1.bf16.msra.mxu0 %v6496_v36  ;;  %v6538_v36 = vunpack.c.l.s8.bf16 %v4269_v26 }
 0x2a9   : > { %6561 = vmatpush1.bf16.msra.mxu1 %v6560_v37  ;;  %6499 = vmatprep.subr.bf16.mxu0 %v6498_v38  ;;  %v6602_v37 = vunpack.c.l.s8.bf16 %v4301_v27  ;;  %v4267_v38 = vld [vmem:[%s7065_s28 + $0x978] sm:$0xff] }
 0x2aa   : > { %6563 = vmatprep.subr.bf16.mxu1 %v6562_v39  ;;  %v4299_v39 = vld [vmem:[%s7065_s28 + $0xa78] sm:$0xff] }
 0x2ac   : > { %6501 = vmatpush1.bf16.msra.mxu0 %v6500_v42  ;;  %v6606_v42 = vunpack.c.h.s8.bf16 %v4267_v38 }
 0x2ad   : > { %6565 = vmatpush1.bf16.msra.mxu1 %v6564_v43  ;;  %6503 = vmatprep.subr.bf16.mxu0 %v6502_v44  ;;  %v6670_v43 = vunpack.c.h.s8.bf16 %v4299_v39  ;;  %v4266_v44 = vld [vmem:[%s7065_s28 + $0x970] sm:$0xff] }
 0x2ae   : > { %6567 = vmatprep.subr.bf16.mxu1 %v6566_v45  ;;  %v4298_v45 = vld [vmem:[%s7065_s28 + $0xa70] sm:$0xff] }
 0x2b0   : > { %6505 = vmatpush1.bf16.msra.mxu0 %v6504_v48  ;;  %v6608_v48 = vunpack.c.h.s8.bf16 %v4266_v44 }
 0x2b1   : > { %6569 = vmatpush1.bf16.msra.mxu1 %v6568_v49  ;;  %6507 = vmatprep.subr.bf16.mxu0 %v6506_v50  ;;  %v6672_v49 = vunpack.c.h.s8.bf16 %v4298_v45  ;;  %v6610_v50 = vunpack.c.l.s8.bf16 %v4267_v38 }
 0x2b2   : > { %6571 = vmatprep.subr.bf16.mxu1 %v6570_v51  ;;  %v6674_v51 = vunpack.c.l.s8.bf16 %v4299_v39 }
 0x2b4   : > { %6509 = vmatpush1.bf16.msra.mxu0 %v6508_v54  ;;  %v6612_v54 = vunpack.c.l.s8.bf16 %v4266_v44 }
 0x2b5   : > { %6573 = vmatpush1.bf16.msra.mxu1 %v6572_v55  ;;  %6511 = vmatprep.subr.bf16.mxu0 %v6510_v56  ;;  %v6676_v55 = vunpack.c.l.s8.bf16 %v4298_v45  ;;  %v6614_v56 = vunpack.c.h.s8.bf16 %v4263_v52 }
 0x2b6   : > { %6575 = vmatprep.subr.bf16.mxu1 %v6574_v57  ;;  %v6678_v57 = vunpack.c.h.s8.bf16 %v4295_v53 }
 0x2b8   : > { %6513 = vmatpush2.bf16.msra.mxu0 %v6512_v60  ;;  %v6616_v60 = vunpack.c.h.s8.bf16 %v4262_v58 }
 0x2b9   : > { %6577 = vmatpush2.bf16.msra.mxu1 %v6576_v61  ;;  %6515 = vmatprep.subr.bf16.mxu0 %v6514_v62  ;;  %v6680_v61 = vunpack.c.h.s8.bf16 %v4294_v59  ;;  %v6618_v62 = vunpack.c.l.s8.bf16 %v4263_v52 }
 0x2ba   : > { %6579 = vmatprep.subr.bf16.mxu1 %v6578_v63  ;;  %v6682_v63 = vunpack.c.l.s8.bf16 %v4295_v53 }
 0x2bc   : > { %6517 = vmatpush2.bf16.msra.mxu0 %v6516_v2  ;;  %v6620_v2 = vunpack.c.l.s8.bf16 %v4262_v58 }
 0x2bd   : > { %6581 = vmatpush2.bf16.msra.mxu1 %v6580_v3  ;;  %6519 = vmatprep.subr.bf16.mxu0 %v6518_v4  ;;  %v6684_v3 = vunpack.c.l.s8.bf16 %v4294_v59  ;;  %v4258_v4 = vld [vmem:[%s7065_s28 + $0x930] sm:$0xff] }
 0x2be   : > { %6583 = vmatprep.subr.bf16.mxu1 %v6582_v5  ;;  %v4290_v5 = vld [vmem:[%s7065_s28 + $0xa30] sm:$0xff]  ;;  %v6624_v6 = vunpack.c.h.s8.bf16 %v4258_v4  ;;  %v6628_v12 = vunpack.c.l.s8.bf16 %v4258_v4 }
 0x2bf   : > { %v6688_v7 = vunpack.c.h.s8.bf16 %v4290_v5  ;;  %v6692_v13 = vunpack.c.l.s8.bf16 %v4290_v5 }
 0x2c0   : > { %6521 = vmatpush2.bf16.msra.mxu0 %v6520_v8  ;;  %v6626_v8 = vunpack.c.l.s8.bf16 %v4259_v0 }
 0x2c1   : > { %6585 = vmatpush2.bf16.msra.mxu1 %v6584_v9  ;;  %6523 = vmatprep.subr.bf16.mxu0 %v6522_v10  ;;  %v6690_v9 = vunpack.c.l.s8.bf16 %v4291_v1  ;;  %v4255_v10 = vld [vmem:[%s7065_s28 + $0x918] sm:$0xff] }
 0x2c2   : > { %6587 = vmatprep.subr.bf16.mxu1 %v6586_v11  ;;  %v4287_v11 = vld [vmem:[%s7065_s28 + $0xa18] sm:$0xff] }
 0x2c4   : > { %6525 = vmatpush2.bf16.msra.mxu0 %v6524_v14  ;;  %v6630_v14 = vunpack.c.h.s8.bf16 %v4255_v10 }
 0x2c5   : > { %6589 = vmatpush2.bf16.msra.mxu1 %v6588_v15  ;;  %6527 = vmatprep.subr.bf16.mxu0 %v6526_v18  ;;  %v6694_v15 = vunpack.c.h.s8.bf16 %v4287_v11  ;;  %v4254_v18 = vld [vmem:[%s7065_s28 + $0x910] sm:$0xff] }
 0x2c6   : > { %6591 = vmatprep.subr.bf16.mxu1 %v6590_v19  ;;  %v4286_v19 = vld [vmem:[%s7065_s28 + $0xa10] sm:$0xff]  ;;  %v6632_v20 = vunpack.c.h.s8.bf16 %v4254_v18  ;;  %v6636_v26 = vunpack.c.l.s8.bf16 %v4254_v18 }
 0x2c7   : > { %v6696_v21 = vunpack.c.h.s8.bf16 %v4286_v19  ;;  %v6700_v27 = vunpack.c.l.s8.bf16 %v4286_v19 }
 0x2c8   : > { %6529 = vmatpush2.bf16.msra.mxu0 %v6528_v22  ;;  %v6634_v22 = vunpack.c.l.s8.bf16 %v4255_v10  ;;  %v3014_v10 = vpop.f32.mrf.mxu0 }
 0x2c9   : > { %6593 = vmatpush2.bf16.msra.mxu1 %v6592_v23  ;;  %6531 = vmatprep.subr.bf16.mxu0 %v6530_v24  ;;  %v6698_v23 = vunpack.c.l.s8.bf16 %v4287_v11  ;;  %v4283_v24 = vld [vmem:[%s7065_s28 + $0x9f8] sm:$0xff]  ;;  %v3085_v11 = vpop.f32.mrf.mxu1 }
 0x2ca   : > { %6595 = vmatprep.subr.bf16.mxu1 %v6594_v25  ;;  %v4315_v25 = vld [vmem:[%s7065_s28 + $0xaf8] sm:$0xff] }
 0x2cc   : > { %6533 = vmatpush2.bf16.msra.mxu0 %v6532_v28  ;;  %v6638_v28 = vunpack.c.h.s8.bf16 %v4283_v24 }
 0x2cd   : > { %6597 = vmatpush2.bf16.msra.mxu1 %v6596_v29  ;;  %6535 = vmatprep.subr.bf16.mxu0 %v6534_v30  ;;  %v6702_v29 = vunpack.c.h.s8.bf16 %v4315_v25  ;;  %v4282_v30 = vld [vmem:[%s7065_s28 + $0x9f0] sm:$0xff] }
 0x2ce   : > { %6599 = vmatprep.subr.bf16.mxu1 %v6598_v31  ;;  %v4314_v31 = vld [vmem:[%s7065_s28 + $0xaf0] sm:$0xff]  ;;  %v6640_v32 = vunpack.c.h.s8.bf16 %v4282_v30  ;;  %v6644_v38 = vunpack.c.l.s8.bf16 %v4282_v30 }
 0x2cf   : > { %v6704_v33 = vunpack.c.h.s8.bf16 %v4314_v31  ;;  %v6708_v39 = vunpack.c.l.s8.bf16 %v4314_v31 }
 0x2d0   : > { %6537 = vmatpush2.bf16.msra.mxu0 %v6536_v34  ;;  %v6642_v34 = vunpack.c.l.s8.bf16 %v4283_v24 }
 0x2d1   : > { %6601 = vmatpush2.bf16.msra.mxu1 %v6600_v35  ;;  %6539 = vmatprep.subr.bf16.mxu0 %v6538_v36  ;;  %v6706_v35 = vunpack.c.l.s8.bf16 %v4315_v25  ;;  %v4279_v36 = vld [vmem:[%s7065_s28 + $0x9d8] sm:$0xff] }
 0x2d2   : > { %6603 = vmatprep.subr.bf16.mxu1 %v6602_v37  ;;  %v4311_v37 = vld [vmem:[%s7065_s28 + $0xad8] sm:$0xff] }
 0x2d4   : > { %6541 = vmatpush2.bf16.msra.mxu0 %v6540_v40  ;;  %v6646_v40 = vunpack.c.h.s8.bf16 %v4279_v36 }
 0x2d5   : > { %6605 = vmatpush2.bf16.msra.mxu1 %v6604_v41  ;;  %6607 = vmatprep.subr.bf16.mxu0 %v6606_v42  ;;  %v6710_v41 = vunpack.c.h.s8.bf16 %v4311_v37  ;;  %v4278_v42 = vld [vmem:[%s7065_s28 + $0x9d0] sm:$0xff] }
 0x2d6   : > { %6671 = vmatprep.subr.bf16.mxu1 %v6670_v43  ;;  %v4310_v43 = vld [vmem:[%s7065_s28 + $0xad0] sm:$0xff]  ;;  %v6648_v44 = vunpack.c.h.s8.bf16 %v4278_v42  ;;  %v6652_v52 = vunpack.c.l.s8.bf16 %v4278_v42 }
 0x2d7   : > { %4897 = vmatmul.mubr.f32.vlgmr.msra.gmra.mxu0 %v7524_v46  ;;  %v6712_v45 = vunpack.c.h.s8.bf16 %v4310_v43  ;;  %v6716_v53 = vunpack.c.l.s8.bf16 %v4310_v43 }
 0x2d8   : > { %4968 = vmatmul.mubr.f32.vlgmr.msra.gmra.mxu1 %v7529_v47  ;;  %6609 = vmatpush1.bf16.msra.mxu0 %v6608_v48  ;;  %v6650_v48 = vunpack.c.l.s8.bf16 %v4279_v36 }
 0x2d9   : > { %6673 = vmatpush1.bf16.msra.mxu1 %v6672_v49  ;;  %6611 = vmatprep.subr.bf16.mxu0 %v6610_v50  ;;  %v6714_v49 = vunpack.c.l.s8.bf16 %v4311_v37  ;;  %v4275_v50 = vld [vmem:[%s7065_s28 + $0x9b8] sm:$0xff] }
 0x2da   : > { %6675 = vmatprep.subr.bf16.mxu1 %v6674_v51  ;;  %5038 = vmatprep.mubr.f32.mxu0 %v7482_v16  ;;  %v6622_v16 = vunpack.c.h.s8.bf16 %v4259_v0  ;;  %v4307_v51 = vld [vmem:[%s7065_s28 + $0xab8] sm:$0xff] }
 0x2db   : > { %5109 = vmatprep.mubr.f32.mxu1 %v7487_v17  ;;  %v6686_v17 = vunpack.c.h.s8.bf16 %v4291_v1 }
 0x2dc   : > { %6613 = vmatpush1.bf16.msra.mxu0 %v6612_v54  ;;  %v6654_v54 = vunpack.c.h.s8.bf16 %v4275_v50 }
 0x2dd   : > { %6677 = vmatpush1.bf16.msra.mxu1 %v6676_v55  ;;  %6615 = vmatprep.subr.bf16.mxu0 %v6614_v56  ;;  %v6718_v55 = vunpack.c.h.s8.bf16 %v4307_v51  ;;  %v4274_v56 = vld [vmem:[%s7065_s28 + $0x9b0] sm:$0xff] }
 0x2de   : > { %6679 = vmatprep.subr.bf16.mxu1 %v6678_v57  ;;  %v4306_v57 = vld [vmem:[%s7065_s28 + $0xab0] sm:$0xff]  ;;  %v6656_v58 = vunpack.c.h.s8.bf16 %v4274_v56  ;;  %v6660_v0 = vunpack.c.l.s8.bf16 %v4274_v56 }
 0x2df   : > { %v6720_v59 = vunpack.c.h.s8.bf16 %v4306_v57  ;;  %v6724_v1 = vunpack.c.l.s8.bf16 %v4306_v57 }
 0x2e0   : > { %6617 = vmatpush1.bf16.msra.mxu0 %v6616_v60  ;;  %v6658_v60 = vunpack.c.l.s8.bf16 %v4275_v50 }
 0x2e1   : > { %6681 = vmatpush1.bf16.msra.mxu1 %v6680_v61  ;;  %6619 = vmatprep.subr.bf16.mxu0 %v6618_v62  ;;  %v6722_v61 = vunpack.c.l.s8.bf16 %v4307_v51  ;;  %v4271_v62 = vld [vmem:[%s7065_s28 + $0x998] sm:$0xff] }
 0x2e2   : > { %6683 = vmatprep.subr.bf16.mxu1 %v6682_v63  ;;  %v4303_v63 = vld [vmem:[%s7065_s28 + $0xa98] sm:$0xff] }
 0x2e4   : > { %6621 = vmatpush1.bf16.msra.mxu0 %v6620_v2  ;;  %v6662_v2 = vunpack.c.h.s8.bf16 %v4271_v62 }
 0x2e5   : > { %6685 = vmatpush1.bf16.msra.mxu1 %v6684_v3  ;;  %6623 = vmatprep.subr.bf16.mxu0 %v6622_v16  ;;  %v6726_v3 = vunpack.c.h.s8.bf16 %v4303_v63  ;;  %v4270_v16 = vld [vmem:[%s7065_s28 + $0x990] sm:$0xff] }
 0x2e6   : > { %6687 = vmatprep.subr.bf16.mxu1 %v6686_v17  ;;  %v4302_v17 = vld [vmem:[%s7065_s28 + $0xa90] sm:$0xff]  ;;  %v6664_v4 = vunpack.c.h.s8.bf16 %v4270_v16  ;;  %s5315_s28 = sshll.u32 %s7611_s25, 3 }
 0x2e7   : > { %v6728_v5 = vunpack.c.h.s8.bf16 %v4302_v17  ;;  %s329_s14 = scalar_lea.vmem %s7595_s4, %s5315_s28  ;;  %s337_s18 = scalar_lea.vmem %s7597_s6, %s5315_s28 }
 0x2e8   : > { %6625 = vmatpush1.bf16.msra.mxu0 %v6624_v6  ;;  %v6666_v6 = vunpack.c.l.s8.bf16 %v4271_v62  ;;  %s333_s20 = scalar_lea.vmem %s7596_s5, %s5315_s28 }
 0x2e9   : > { %6689 = vmatpush1.bf16.msra.mxu1 %v6688_v7  ;;  %6627 = vmatprep.subr.bf16.mxu0 %v6626_v8  ;;  %v6730_v7 = vunpack.c.l.s8.bf16 %v4303_v63  ;;  %v6668_v8 = vunpack.c.l.s8.bf16 %v4270_v16 }
 0x2ea   : > { %6691 = vmatprep.subr.bf16.mxu1 %v6690_v9  ;;  %v6732_v9 = vunpack.c.l.s8.bf16 %v4302_v17 }
 0x2ec   : > { %6629 = vmatpush1.bf16.msra.mxu0 %v6628_v12  ;;  %v3016_v12 = vpop.f32.mrf.mxu0 }
 0x2ed   : > { %6693 = vmatpush1.bf16.msra.mxu1 %v6692_v13  ;;  %6631 = vmatprep.subr.bf16.mxu0 %v6630_v14  ;;  %v3087_v13 = vpop.f32.mrf.mxu1 }
 0x2ee   : > { %6695 = vmatprep.subr.bf16.mxu1 %v6694_v15  ;;  %v3156_v14 = vpop.f32.mrf.mxu0 }
 0x2ef   : > { %v3227_v15 = vpop.f32.mrf.mxu1 }
 0x2f0   : > { %6633 = vmatpush1.bf16.msra.mxu0 %v6632_v20  ;;  %v3158_v18 = vpop.f32.mrf.mxu0 }
 0x2f1   : > { %6697 = vmatpush1.bf16.msra.mxu1 %v6696_v21  ;;  %6635 = vmatprep.subr.bf16.mxu0 %v6634_v22  ;;  %v3229_v19 = vpop.f32.mrf.mxu1 }
 0x2f2   : > { %6699 = vmatprep.subr.bf16.mxu1 %v6698_v23  ;;  %v3298_v20 = vpop.f32.mrf.mxu0 }
 0x2f3   : > { %v3369_v21 = vpop.f32.mrf.mxu1 }
 0x2f4   : > { %6637 = vmatpush1.bf16.msra.mxu0 %v6636_v26  ;;  %v3300_v22 = vpop.f32.mrf.mxu0 }
 0x2f5   : > { %6701 = vmatpush1.bf16.msra.mxu1 %v6700_v27  ;;  %6639 = vmatprep.subr.bf16.mxu0 %v6638_v28  ;;  %v3371_v23 = vpop.f32.mrf.mxu1 }
 0x2f6   : > { %6703 = vmatprep.subr.bf16.mxu1 %v6702_v29  ;;  %v3440_v24 = vpop.f32.mrf.mxu0 }
 0x2f7   : > { %v3511_v25 = vpop.f32.mrf.mxu1 }
 0x2f8   : > { %6641 = vmatpush2.bf16.msra.mxu0 %v6640_v32  ;;  %v3442_v26 = vpop.f32.mrf.mxu0 }
 0x2f9   : > { %6705 = vmatpush2.bf16.msra.mxu1 %v6704_v33  ;;  %6643 = vmatprep.subr.bf16.mxu0 %v6642_v34  ;;  %v3513_v27 = vpop.f32.mrf.mxu1 }
 0x2fa   : > { %6707 = vmatprep.subr.bf16.mxu1 %v6706_v35  ;;  %v3582_v28 = vpop.f32.mrf.mxu0 }
 0x2fc   : > { %6645 = vmatpush2.bf16.msra.mxu0 %v6644_v38  ;;  %v3584_v29 = vpop.f32.mrf.mxu0 }
 0x2fd   : > { %6709 = vmatpush2.bf16.msra.mxu1 %v6708_v39  ;;  %6647 = vmatprep.subr.bf16.mxu0 %v6646_v40  ;;  %v3088_v40 = vadd.f32 %v3087_v13, %v3016_v12 }
 0x2fe   : > { %6711 = vmatprep.subr.bf16.mxu1 %v6710_v41  ;;  %v3724_v30 = vpop.f32.mrf.mxu0  ;;  %v3086_v41 = vadd.f32 %v3085_v11, %v3014_v10 }
 0x2ff   : > { %v3159_v42 = vadd.f32 %v3158_v18, %v3088_v40 }
 0x300   : > { %6649 = vmatpush2.bf16.msra.mxu0 %v6648_v44  ;;  %v3726_v32 = vpop.f32.mrf.mxu0  ;;  %v3157_v43 = vadd.f32 %v3156_v14, %v3086_v41 }
 0x301   : > { %6713 = vmatpush2.bf16.msra.mxu1 %v6712_v45  ;;  %6651 = vmatprep.subr.bf16.mxu0 %v6650_v48  ;;  %v3230_v50 = vadd.f32 %v3229_v19, %v3159_v42 }
 0x302   : > { %6715 = vmatprep.subr.bf16.mxu1 %v6714_v49  ;;  %v3866_v34 = vpop.f32.mrf.mxu0  ;;  %v3228_v51 = vadd.f32 %v3227_v15, %v3157_v43 }
 0x304   : > { %6653 = vmatpush2.bf16.msra.mxu0 %v6652_v52  ;;  %v3868_v36 = vpop.f32.mrf.mxu0  ;;  %v3301_v52 = vadd.f32 %v3300_v22, %v3230_v50 }
 0x305   : > { %6717 = vmatpush2.bf16.msra.mxu1 %v6716_v53  ;;  %6655 = vmatprep.subr.bf16.mxu0 %v6654_v54  ;;  %v3299_v53 = vadd.f32 %v3298_v20, %v3228_v51  ;;  %v4228_v54 = vlaneseq }
 0x306   : > { %6719 = vmatprep.subr.bf16.mxu1 %v6718_v55 }
 0x308   : > { %6657 = vmatpush2.bf16.msra.mxu0 %v6656_v58 }
 0x309   : > { %6721 = vmatpush2.bf16.msra.mxu1 %v6720_v59  ;;  %6659 = vmatprep.subr.bf16.mxu0 %v6658_v60  ;;  %v3372_v59 = vadd.f32 %v3371_v23, %v3301_v52  ;;  %v3370_v60 = vadd.f32 %v3369_v21, %v3299_v53 }
 0x30a   : > { %6723 = vmatprep.subr.bf16.mxu1 %v6722_v61  ;;  %v4229_v61 = vshrl.u32 %v4228_v54, 7 }
 0x30b   : > { %v3443_v62 = vadd.f32 %v3442_v26, %v3372_v59  ;;  %v3441_v63 = vadd.f32 %v3440_v24, %v3370_v60 }
 0x30c   : > { %6661 = vmatpush2.bf16.msra.mxu0 %v6660_v0  ;;  %v4230_v16 = vsub.s32 0, %v4229_v61  ;;  %v4238_v53 = vsub.s32 2, %v4229_v61 }
 0x30d   : > { %6725 = vmatpush2.bf16.msra.mxu1 %v6724_v1  ;;  %6663 = vmatprep.subr.bf16.mxu0 %v6662_v2  ;;  %v4234_v2 = vsub.s32 1, %v4229_v61  ;;  %v3514_v17 = vadd.f32 %v3513_v27, %v3443_v62 }
 0x30e   : > { %6727 = vmatprep.subr.bf16.mxu1 %v6726_v3  ;;  %v5318_v3 = vld [vmem:[%s7071_s10 + $0x1] ss:$2 sm:$0xf] }
 0x30f   : > { %v3585_v10 = vadd.f32 %v3584_v29, %v3514_v17 }
 0x310   : > { %6665 = vmatpush2.bf16.msra.mxu0 %v6664_v4  ;;  %v4226_v4 = vld [vmem:[%s7071_s10] ss:$2 sm:$0xf] }
 0x311   : > { %6729 = vmatpush2.bf16.msra.mxu1 %v6728_v5  ;;  %6667 = vmatprep.subr.bf16.mxu0 %v6666_v6  ;;  %v5126_v6 = vrot.slane %v5318_v3, %v4234_v2  ;;  %v4235_v11 = vrot.slane %v4226_v4, %v4234_v2  ;;  %v4231_v13 = vrot.slane %v4226_v4, %v4230_v16 }
 0x312   : > { %6731 = vmatprep.subr.bf16.mxu1 %v6730_v7  ;;  %v3512_v7 = vadd.f32 %v3511_v25, %v3441_v63 }
 0x313   : > { %v4249_v18 = vmul.f32 %v4235_v11, %v3585_v10 }
 0x314   : > { %6669 = vmatpush2.bf16.msra.mxu0 %v6668_v8  ;;  %v3583_v12 = vadd.f32 %v3582_v28, %v3512_v7 }
 0x315   : > { %6733 = vmatpush2.bf16.msra.mxu1 %v6732_v9  ;;  %v5122_v9 = vrot.slane %v5318_v3, %v4230_v16 }
 0x316   : > { %v4248_v19 = vmul.f32 %v4231_v13, %v3583_v12 }
 0x317   : > { %5039 = vmatmul.mubr.f32.vlgmr.msra.gmra.mxu0 %v7524_v46  ;;  %v3653_v46 = vpop.f32.mrf.mxu1  ;;  %v4008_v38 = vpop.f32.mrf.mxu0 }
 0x318   : > { %5110 = vmatmul.mubr.f32.vlgmr.msra.gmra.mxu1 %v7529_v47  ;;  %v3725_v20 = vadd.f32 %v3724_v30, %v3653_v46  ;;  %v4242_v46 = vsub.s32 3, %v4229_v61 }
 0x319   : > { %v3655_v47 = vpop.f32.mrf.mxu1  ;;  %v4010_v44 = vpop.f32.mrf.mxu0 }
 0x31a   : > { %v3727_v23 = vadd.f32 %v3726_v32, %v3655_v47  ;;  %v4239_v32 = vrot.slane %v4226_v4, %v4238_v53 }
 0x31b   : > { %v3795_v31 = vpop.f32.mrf.mxu1 }
 0x31c   : > { %v3796_v24 = vadd.f32 %v3795_v31, %v3725_v20 }
 0x31d   : > { %v3797_v33 = vpop.f32.mrf.mxu1 }
 0x31e   : > { %v3798_v40 = vadd.f32 %v3797_v33, %v3727_v23  ;;  %v3867_v41 = vadd.f32 %v3866_v34, %v3796_v24  ;;  %v5130_v33 = vrot.slane %v5318_v3, %v4238_v53  ;;  %v4243_v34 = vrot.slane %v4226_v4, %v4242_v46 }
 0x31f   : > { %v3937_v35 = vpop.f32.mrf.mxu1 }
 0x320   : > { %v3869_v25 = vadd.f32 %v3868_v36, %v3798_v40  ;;  %v3938_v29 = vadd.f32 %v3937_v35, %v3867_v41 }
 0x321   : > { %v3939_v37 = vpop.f32.mrf.mxu1 }
 0x322   : > { %v3940_v42 = vadd.f32 %v3939_v37, %v3869_v25  ;;  %v4009_v28 = vadd.f32 %v4008_v38, %v3938_v29  ;;  %v5134_v38 = vrot.slane %v5318_v3, %v4242_v46 }
 0x323   : > { %v4079_v39 = vpop.f32.mrf.mxu1 }
 0x324   : > { %v4011_v43 = vadd.f32 %v4010_v44, %v3940_v42  ;;  %v4080_v50 = vadd.f32 %v4079_v39, %v4009_v28 }
 0x325   : > { %v4081_v45 = vpop.f32.mrf.mxu1 }
 0x326   : > { %v4082_v51 = vadd.f32 %v4081_v45, %v4011_v43 }
 0x357   : > { %v4150_v48 = vpop.f32.mrf.mxu0 }
 0x358   : > { %v4221_v49 = vpop.f32.mrf.mxu1  ;;  %v4151_v52 = vadd.f32 %v4150_v48, %v4080_v50 }
 0x359   : > { %v4152_v55 = vpop.f32.mrf.mxu0 }
 0x35a   : > { %v4223_v56 = vpop.f32.mrf.mxu1  ;;  %v4153_v30 = vadd.f32 %v4152_v55, %v4082_v51  ;;  %v4222_v31 = vadd.f32 %v4221_v49, %v4151_v52 }
 0x35c   : > { %v4250_v48 = vmul.f32 %v4239_v32, %v4222_v31 }
 0x397   : > { %v4898_v57 = vpop.f32.mrf.mxu0 }
 0x398   : > { %v4969_v58 = vpop.f32.mrf.mxu1 }
 0x399   : > { %v4900_v0 = vpop.f32.mrf.mxu0  ;;  %v4970_v8 = vadd.f32 %v4969_v58, %v4898_v57  ;;  %v4224_v58 = vadd.f32 %v4223_v56, %v4153_v30 }
 0x39a   : > { %v4971_v1 = vpop.f32.mrf.mxu1 }
 0x39b   : > { %v4972_v5 = vadd.f32 %v4971_v1, %v4900_v0  ;;  %v5139_v15 = vmul.f32 %v5122_v9, %v4970_v8  ;;  %v4251_v60 = vmul.f32 %v4243_v34, %v4224_v58  ;;  %v5166_v0 = vld [vmem:[%s329_s14] sm:$0xff] }
 0x39d   : > { %v5140_v14 = vmul.f32 %v5126_v6, %v4972_v5  ;;  %v5143_v22 = vadd.f32 %v5139_v15, %v4248_v19 }
 0x39f   : > { %v5144_v21 = vadd.f32 %v5140_v14, %v4249_v18  ;;  %v5319_v27 = vmul.f32 -1.442695, %v5143_v22 }
 0x3a1   : > { %v5320_v26 = vmul.f32 -1.442695, %v5144_v21 }
 0x3a3   : > { %6783 = vpow2.f32 %v5320_v26 }
 0x3a4   : > { %6785 = vpow2.f32 %v5319_v27 }
 0x3b0   : > { %v6784_v54 = vpop.eup %6783 }
 0x3b1   : > { %v6786_v47 = vpop.eup %6785  ;;  %v5156_v35 = vadd.f32 1.0, %v6784_v54 }
 0x3b2   : > { %v5150_v39 = vadd.f32 1.0, %v6786_v47 }
 0x3b3   : > { %6787 = vrcp.f32 %v5156_v35 }
 0x3b4   : > { %6789 = vrcp.f32 %v5150_v39 }
 0x3c0   : > { %v6788_v63 = vpop.eup %6787 }
 0x3c1   : > { %v6790_v1 = vpop.eup %6789  ;;  %v5167_v3 = vmul.f32 %v6788_v63, %v5166_v0 }
 0x3d7   : > { %v5040_v36 = vpop.f32.mrf.mxu0 }
 0x3d8   : > { %v5111_v57 = vpop.f32.mrf.mxu1 }
 0x3d9   : > { %v5112_v37 = vadd.f32 %v5111_v57, %v5040_v36  ;;  %v5042_v44 = vpop.f32.mrf.mxu0 }
 0x3da   : > { %v5113_v45 = vpop.f32.mrf.mxu1 }
 0x3db   : > { %v5141_v59 = vmul.f32 %v5130_v33, %v5112_v37  ;;  %v5114_v55 = vadd.f32 %v5113_v45, %v5042_v44 }
 0x3dd   : > { %v5145_v49 = vadd.f32 %v5141_v59, %v4250_v48  ;;  %v5142_v61 = vmul.f32 %v5134_v38, %v5114_v55 }
 0x3df   : > { %6791 = vtanh.f32 %v5145_v49  ;;  %v5146_v62 = vadd.f32 %v5142_v61, %v4251_v60 }
 0x3e1   : > { %v5321_v56 = vmul.f32 -1.442695, %v5146_v62 }
 0x3e3   : > { %6793 = vpow2.f32 %v5321_v56 }
 0x3ec   : > { %v6792_v2 = vpop.eup %6791 }
 0x3ed   : > { %v5168_v16 = vmul.f32 %v6792_v2, %v6790_v1 }
 0x3ef   : > { %v5169_v17 = vadd.f32 %v5168_v16, %v5167_v3 }
 0x3f0   : > { %v6794_v4 = vpop.eup %6793 }
 0x3f1   : > { %5173 = vst [vmem:[%s337_s18] sm:$0xff] %v5169_v17  ;;  %v5163_v5 = vadd.f32 1.0, %v6794_v4  ;;  %6795 = vtanh.f32 %v5169_v17 }
 0x3f3   : > { %6797 = vrcp.f32 %v5163_v5 }
 0x3fe   : > { %v6796_v6 = vpop.eup %6795 }
 0x400   : > { %v6798_v7 = vpop.eup %6797 }
 0x401   : > { %v5171_v8 = vmul.f32 %v6798_v7, %v6796_v6 }
 0x403   : > { %5172 = vst [vmem:[%s333_s20] sm:$0xff] %v5171_v8 }
 0x404 PF: > { %p20_p8 = scmp.ge.s32.totalorder %s6975_s26, 6   ;;  %s7606_s21 = smov %s6903_s22 }
 0x405   : > { %s7607_s22 = smov %s6907_s23  ;;  %s7608_s23 = smov %s6985_s29 }
 0x406   : > { %s7609_s24 = smov %s6975_s26  ;;  %22 = sbr.rel (!%p20_p8) target bundleno = 7 (0x7), region = 109 }
 0x40b   :  { %5207 = vsyncpa [#allocation3], 1 }
 0x40c   :  { %5209 = vsyncpa [#allocation3 + $0x1], 1 }
 0x40d   :  { %5210 = vsyncpa [#allocation5], 1 }
 0x40e   :  { %5212 = vsyncpa [#allocation5 + $0x1], 1 }

// kernel: encoder_forward.5
= control target key start
LH: loop header
LB: loop body
LE: loop exit
PB: predicated region body
PF: predicated region fallthrough
CT: control target
= control target key end

     0   :  { %s13343_s0 = inlined_call_operand.vmem [shape: f32[2,4608], index: 0, kind: input, shape index: {}]   ;;  %s13344_s1 = inlined_call_operand.vmem [shape: f32[2,512], index: 1, kind: input, shape index: {}]   ;;  %s13345_s2 = inlined_call_operand.hbm [shape: s8[5120,2048], index: 2, kind: input, shape index: {}]   ;;  %s13346_s3 = inlined_call_operand.hbm [shape: f32[2,2048], index: 3, kind: input, shape index: {}]   ;;  %s13347_s4 = inlined_call_operand.vmem [shape: f32[2,512], index: 4, kind: input, shape index: {}]   ;;  %s13348_s5 = inlined_call_operand.vmem [shape: f32[2,512], index: 5, kind: output, shape index: {0}]   ;;  %s13349_s6 = inlined_call_operand.vmem [shape: f32[2,512], index: 6, kind: output, shape index: {1}]  }
   0x1   :  { %13351 = sst [smem:[#allocation8_spill]] %s13345_s2 }
   0x2   :  { %12 = vsyncpa [#allocation3], 0 }
   0x3   :  { %14 = vsyncpa [#allocation3 + $0x1], 0 }
   0x4   :  { %15 = vsyncpa [#allocation5], 0 }
   0x5   :  { %17 = vsyncpa [#allocation5 + $0x1], 0  ;;  %s12177_s21 = smov 0   ;;  %s12179_s22 = smov 0  }
   0x6   :  { %s12181_s23 = smov 0   ;;  %s12183_s24 = smov 0  }
   0x7 LB: > { %s12196_s25 = sadd.s32 4294967295, %s12134_s24   ;;  %s12199_s26 = sadd.s32 1, %s12134_s24   ;;  %s12134_s24 = sphi %s12183_s24, %s13361_s24   ;;  %s12130_s23 = sphi %s12181_s23, %s13360_s23   ;;  %s12126_s22 = sphi %s12179_s22, %s13359_s22   ;;  %s12122_s21 = sphi %s12177_s21, %s13358_s21  }
   0x8   : > { %s69_s27 = ssub.s32 %s12134_s24, %s12199_s26  ;;  %s72_s28 = sadd.s32 1, %s12130_s23 }
   0x9   : > { %p70_p0 = scmp.eq.s32.totalorder %s69_s27, 0  ;;  %p79_p1 = scmp.ne.s32.totalorder %s12130_s23, %s12126_s22 }
   0xa   : > { %p80_p2 = scmp.eq.s32.totalorder %s12134_s24, 0  ;;  %p85_p3 = scmp.ne.s32.totalorder %s12126_s22, %s12122_s21 }
   0xb   : > { %s12209_s29 = scalar_select %p70_p0, %s12130_s23, %s72_s28  }
   0xc   : > { %p81_p4 = por %p80_p2, %p79_p1  ;;  %p86_p5 = scmp.eq.s32.totalorder %s12196_s25, 0 }
   0xd   : > { %p11977_p6 = scmp.lt.s32.totalorder %s12134_s24, 4  ;;  %s12218_s7 = sand.u32 1, %s12130_s23  }
   0xe   : > { %p12213_p7 = por %p86_p5, %p85_p3  ;;  %s11964_s8 = smul.u32 5120, %s12218_s7 }
   0xf   : > { %s9402_s9 = sshll.u32 %s12134_s24, 9  ;;  %p12222_p8 = pnand %p11977_p6, %p81_p4 }
  0x10   : > { %s13352_s30 = scalar_select %p12213_p7, 1, 0 }
  0x11   : > { %s13354_s2 = sld [smem:[#allocation8_spill]]  ;;  %s223_s14 = scalar_lea.vmem [#allocation2], %s11964_s8 }
  0x12   : > { %s230_s15 = sshll.u32 %s223_s14, 4  ;;  %s220_s16 = scalar_lea.sflag [#allocation3], %s12218_s7  ;;  %s12231_s15 = int_to_ptr.vmem [resolvable:$true] %s230_s15 }
  0x13   : > { %p12042_p10 = pneg %p12222_p8 }
  0x17   : > { %s12229_s13 = scalar_lea.hbm %s13354_s2, %s9402_s9  ;;  %s12045_s20 = scalar_lea.hbm %s13354_s2, 327680 }
  0x18   : > { %s12040_s17 = scalar_lea.hbm %s12229_s13, 81920  ;;  %p12046_p13 = scmp.lt.s32.totalorder %s12229_s13, %s13354_s2 }
  0x19   : > { %p12041_p9 = scmp.ne.s32.totalorder %s12229_s13, %s12040_s17  ;;  %p12047_p0 = scmp.lt.s32.totalorder %s12045_s20, %s12040_s17 }
  0x1b   : > { %p12043_p11 = pnand %p12042_p10, %p12041_p9  ;;  %p12048_p1 = por %p12047_p0, %p12046_p13 }
  0x1d   : > { %p12044_p12 = pneg %p12043_p11 }
  0x1f   : > { %p12049_p2 = pnand %p12048_p1, %p12044_p12 }
  0x21   : > { %12052 = shalt.err (!%p12049_p2)
}
  0x22   : > { %s12053_s28 = scalar_lea.vmem %s12231_s15, 81920  ;;  %s12136_s8 = smov [#allocation2]  }
  0x23   : > { %p12054_p3 = scmp.ne.s32.totalorder %s12231_s15, %s12053_s28  ;;  %s12058_s9 = sshll.u32 %s12136_s8, 4  ;;  %s12059_s9 = int_to_ptr.vmem [resolvable:$false] %s12058_s9 }
  0x24   : > { %s12060_s11 = scalar_lea.vmem %s12059_s9, 163840  ;;  %p12061_p6 = scmp.lt.s32.totalorder %s12231_s15, %s12059_s9 }
  0x25   : > { %p12056_p4 = pnand %p12054_p3, %p12042_p10  ;;  %p12062_p9 = scmp.lt.s32.totalorder %s12060_s11, %s12053_s28 }
  0x27   : > { %p12057_p5 = pneg %p12056_p4  ;;  %p12063_p11 = por %p12062_p9, %p12061_p6 }
  0x29   : > { %p12064_p13 = pnand %p12063_p11, %p12057_p5 }
  0x2b   : > { %12067 = shalt.err (!%p12064_p13)
}
  0x2c   : > { %s12137_s12 = smov 2048   ;;  %s12138_s14 = smov 512  }
  0x2d   : > { %s12139_s17 = smov 32   ;;  %p9391_p12 = scmp.ge.s32.totalorder %s12134_s24, 1 }
  0x2e   : > { %11973 = dma.hbm_to_vmem [thread:$0]  (!%p12222_p8), %s12229_s13, 81920, %s12231_s15, %s220_s16, %s12137_s12, %s12138_s14, %s12139_s17  }
  0x2f   : > { %p264_p0 = scmp.lt.s32.totalorder %s12134_s24, 5  ;;  %s9388_s18 = sshll.u32 %s12218_s7, 3 }
  0x30   : > { %s9403_s20 = sshll.u32 %s12134_s24, 7  ;;  %s244_s21 = scalar_lea.vmem [#allocation4], %s9388_s18 }
  0x31   : > { %p12263_p1 = pnand %p9391_p12, %p264_p0  ;;  %s252_s27 = sshll.u32 %s244_s21, 4  ;;  %s253_s27 = int_to_ptr.vmem [resolvable:$true] %s252_s27 }
  0x32   : > { %s250_s9 = scalar_lea.hbm %s13346_s3, %s9403_s20  ;;  %s241_s11 = scalar_lea.sflag [#allocation5], %s12218_s7 }
  0x33   : > { %s13355_s19 = scalar_select %p12263_p1, 1, 0 }
  0x34   : > { %s12068_s2 = scalar_lea.hbm %s250_s9, 128  ;;  %s12073_s16 = scalar_lea.hbm %s13346_s3, 512 }
  0x35   : > { %p12069_p2 = scmp.ne.s32.totalorder %s250_s9, %s12068_s2  ;;  %p12074_p5 = scmp.lt.s32.totalorder %s250_s9, %s13346_s3 }
  0x36   : > { %p12075_p6 = scmp.lt.s32.totalorder %s12073_s16, %s12068_s2 }
  0x37   : > { %p12071_p3 = pnand %p12069_p2, %p12042_p10 }
  0x38   : > { %p12076_p9 = por %p12075_p6, %p12074_p5 }
  0x39   : > { %p12072_p4 = pneg %p12071_p3 }
  0x3b   : > { %p12077_p11 = pnand %p12076_p9, %p12072_p4 }
  0x3d   : > { %12080 = shalt.err (!%p12077_p11)
}
  0x3e   : > { %s12081_s14 = scalar_lea.vmem %s253_s27, 128  ;;  %s12140_s7 = smov [#allocation4]  }
  0x3f   : > { %p12082_p13 = scmp.ne.s32.totalorder %s253_s27, %s12081_s14  ;;  %s12086_s17 = sshll.u32 %s12140_s7, 4  ;;  %s12087_s17 = int_to_ptr.vmem [resolvable:$false] %s12086_s17 }
  0x40   : > { %s12088_s18 = scalar_lea.vmem %s12087_s17, 256  ;;  %p12089_p2 = scmp.lt.s32.totalorder %s253_s27, %s12087_s17 }
  0x41   : > { %p12084_p12 = pnand %p12082_p13, %p12042_p10  ;;  %p12090_p3 = scmp.lt.s32.totalorder %s12088_s18, %s12081_s14 }
  0x43   : > { %p12085_p0 = pneg %p12084_p12  ;;  %p12091_p7 = por %p12090_p3, %p12089_p2 }
  0x45   : > { %p12092_p1 = pnand %p12091_p7, %p12085_p0 }
  0x47   : > { %12095 = shalt.err (!%p12092_p1)
}
  0x48   : > { %11976 = dma.hbm_to_vmem [thread:$0]  (!%p12222_p8), %s250_s9, 128, %s253_s27, %s241_s11  }
  0x49   : > { %p13356_p4 = scmp.ne.s32.totalorder %s13355_s19, 0 }
  0x4a   : > { %s270_s2 = sand.u32 (!%p13356_p4), 1, %s12126_s22   ;;  %p13357_p10 = scmp.ne.s32.totalorder (!%p13356_p4), %s13352_s30, 0 }
  0x4b   : > { %268 = sbr.rel (%p13356_p4) target bundleno = 1604 (0x644), region = 40  ;;  %s271_s21 = scalar_lea.sflag (!%p13356_p4), [#allocation3], %s270_s2 }
  0x4c   : > { %s11965_s20 = smul.u32 (!%p13356_p4), 5120, %s270_s2 }
  0x4e   : > { %s12289_s28 = scalar_lea.vmem (!%p13356_p4), [#allocation2], %s11965_s20 }
  0x50   : > { %12113 = dma.done.wait (%p13357_p10), %s271_s21, 81920  }
  0x51   : > { %12115 = vsyncadd (%p13357_p10), %s271_s21, 4294885376  ;;  %s9392_s8 = sshll.u32 %s270_s2, 3  ;;  %s280_s13 = scalar_lea.sflag [#allocation5], %s270_s2 }
  0x52   : > { %s12295_s10 = scalar_lea.vmem [#allocation4], %s9392_s8 }
  0x53   : > { %12117 = dma.done.wait (%p13357_p10), %s280_s13, 128  }
  0x54   : > { %12119 = vsyncadd (%p13357_p10), %s280_s13, 4294967168  ;;  %v351_v0 = vld [vmem:[%s12289_s28 + $0x68] sm:$0xff]  ;;  %v350_v2 = vld [vmem:[%s12289_s28 + $0x60] sm:$0xff]  ;;  %v12141_v18 = vmov 1983009808   ;;  %v5544_v20 = vlaneseq  ;;  %p326_p7 = scmp.lt.s32.totalorder %s12196_s25, 3 }
  0x55   : > { %v383_v1 = vld [vmem:[%s12289_s28 + $0x168] sm:$0xff]  ;;  %v9404_v3 = vunpack.c.h.s8.bf16 %v351_v0  ;;  %v9408_v4 = vunpack.c.l.s8.bf16 %v351_v0  ;;  %v382_v7 = vld [vmem:[%s12289_s28 + $0x160] sm:$0xff]  ;;  %v9406_v8 = vunpack.c.h.s8.bf16 %v350_v2  ;;  %v9410_v12 = vunpack.c.l.s8.bf16 %v350_v2 }
  0x56   : > { %v9468_v5 = vunpack.c.h.s8.bf16 %v383_v1  ;;  %v9472_v6 = vunpack.c.l.s8.bf16 %v383_v1  ;;  %v9470_v9 = vunpack.c.h.s8.bf16 %v382_v7  ;;  %v347_v10 = vld [vmem:[%s12289_s28 + $0x48] sm:$0xff]  ;;  %v9474_v13 = vunpack.c.l.s8.bf16 %v382_v7  ;;  %v346_v16 = vld [vmem:[%s12289_s28 + $0x40] sm:$0xff]  ;;  %s13363_s25 = smov (!%p326_p7, %s12196_s25), 3 }
  0x57   : > { %v379_v11 = vld [vmem:[%s12289_s28 + $0x148] sm:$0xff]  ;;  %9405 = vmatprep.subr.bf16.mxu0 %v9404_v3  ;;  %v9412_v14 = vunpack.c.h.s8.bf16 %v347_v10  ;;  %v378_v17 = vld [vmem:[%s12289_s28 + $0x140] sm:$0xff]  ;;  %v5542_v19 = vunpack.c.l.s4 %v12141_v18  ;;  %v9414_v21 = vunpack.c.h.s8.bf16 %v346_v16  ;;  %v9416_v23 = vunpack.c.l.s8.bf16 %v347_v10 }
  0x58   : > { %9469 = vmatprep.subr.bf16.mxu1 %v9468_v5  ;;  %9407 = vmatpush1.bf16.msra.mxu0 %v9406_v8  ;;  %v9476_v15 = vunpack.c.h.s8.bf16 %v379_v11  ;;  %v9478_v22 = vunpack.c.h.s8.bf16 %v378_v17  ;;  %v9480_v24 = vunpack.c.l.s8.bf16 %v379_v11  ;;  %v12309_v26 = vshrl.u32 %v5544_v20, 7  ;;  %v343_v27 = vld [vmem:[%s12289_s28 + $0x28] sm:$0xff]  ;;  %v342_v33 = vld [vmem:[%s12289_s28 + $0x20] sm:$0xff] }
  0x59   : > { %9471 = vmatpush1.bf16.msra.mxu1 %v9470_v9  ;;  %9409 = vmatprep.subr.bf16.mxu0 %v9408_v4  ;;  %v5543_v25 = vunpack.c.0.s8 %v5542_v19  ;;  %v375_v28 = vld [vmem:[%s12289_s28 + $0x128] sm:$0xff]  ;;  %v9418_v29 = vunpack.c.l.s8.bf16 %v346_v16  ;;  %v9482_v30 = vunpack.c.l.s8.bf16 %v378_v17  ;;  %v9420_v31 = vunpack.c.h.s8.bf16 %v343_v27  ;;  %v374_v34 = vld [vmem:[%s12289_s28 + $0x120] sm:$0xff] }
  0x5a   : > { %9473 = vmatprep.subr.bf16.mxu1 %v9472_v6  ;;  %v9484_v32 = vunpack.c.h.s8.bf16 %v375_v28  ;;  %v5522_v36 = vld [vmem:[%s13343_s0] sm:$0xff]  ;;  %v9422_v37 = vunpack.c.h.s8.bf16 %v342_v33  ;;  %v9486_v38 = vunpack.c.h.s8.bf16 %v374_v34  ;;  %v9424_v39 = vunpack.c.l.s8.bf16 %v343_v27  ;;  %v339_v43 = vld [vmem:[%s12289_s28 + $0x8] sm:$0xff] }
  0x5b   : > { %v12316_v35 = vsub.s32 %v5543_v25, %v12309_v26  ;;  %v9488_v40 = vunpack.c.l.s8.bf16 %v375_v28  ;;  %v5540_v42 = vcombine.high %v5522_v36, %v5522_v36  ;;  %v371_v44 = vld [vmem:[%s12289_s28 + $0x108] sm:$0xff]  ;;  %v9426_v47 = vunpack.c.l.s8.bf16 %v342_v33  ;;  %v338_v51 = vld [vmem:[%s12289_s28] sm:$0xff] }
  0x5c   : > { %9411 = vmatpush1.bf16.msra.mxu0 %v9410_v12  ;;  %v9490_v48 = vunpack.c.l.s8.bf16 %v374_v34  ;;  %v9428_v49 = vunpack.c.h.s8.bf16 %v339_v43  ;;  %v9492_v50 = vunpack.c.h.s8.bf16 %v371_v44  ;;  %v370_v52 = vld [vmem:[%s12289_s28 + $0x100] sm:$0xff]  ;;  %v9430_v54 = vunpack.c.h.s8.bf16 %v338_v51  ;;  %v367_v58 = vld [vmem:[%s12289_s28 + $0xe8] sm:$0xff] }
  0x5d   : > { %9475 = vmatpush1.bf16.msra.mxu1 %v9474_v13  ;;  %9413 = vmatprep.subr.bf16.mxu0 %v9412_v14  ;;  %v12322_v41 = vrot.slane %v5522_v36, %v12316_v35  ;;  %v12331_v46 = vrot.slane %v5540_v42, %v12316_v35  ;;  %v9494_v55 = vunpack.c.h.s8.bf16 %v370_v52  ;;  %v9432_v56 = vunpack.c.l.s8.bf16 %v339_v43  ;;  %v399_v59 = vld [vmem:[%s12289_s28 + $0x1e8] sm:$0xff]  ;;  %v366_v0 = vld [vmem:[%s12289_s28 + $0xe0] sm:$0xff] }
  0x5e   : > { %9477 = vmatprep.subr.bf16.mxu1 %v9476_v15  ;;  %v9496_v57 = vunpack.c.l.s8.bf16 %v371_v44  ;;  %v9434_v60 = vunpack.c.l.s8.bf16 %v338_v51  ;;  %v9498_v61 = vunpack.c.l.s8.bf16 %v370_v52  ;;  %v9436_v62 = vunpack.c.h.s8.bf16 %v367_v58  ;;  %v398_v1 = vld [vmem:[%s12289_s28 + $0x1e0] sm:$0xff]  ;;  %v363_v6 = vld [vmem:[%s12289_s28 + $0xc8] sm:$0xff] }
  0x5f   : > { %v12328_v45 = vcombine.high %v12322_v41, %v12322_v41  ;;  %v12337_v53 = vcombine.high %v12331_v46, %v12331_v46  ;;  %v9500_v63 = vunpack.c.h.s8.bf16 %v399_v59  ;;  %v9438_v2 = vunpack.c.h.s8.bf16 %v366_v0  ;;  %v395_v7 = vld [vmem:[%s12289_s28 + $0x1c8] sm:$0xff]  ;;  %v362_v12 = vld [vmem:[%s12289_s28 + $0xc0] sm:$0xff] }
  0x60   : > { %9415 = vmatpush1.bf16.msra.mxu0 %v9414_v21  ;;  %v9502_v3 = vunpack.c.h.s8.bf16 %v398_v1  ;;  %v9440_v4 = vunpack.c.l.s8.bf16 %v367_v58  ;;  %v9504_v5 = vunpack.c.l.s8.bf16 %v399_v59  ;;  %v9442_v8 = vunpack.c.l.s8.bf16 %v366_v0  ;;  %v394_v13 = vld [vmem:[%s12289_s28 + $0x1c0] sm:$0xff]  ;;  %v359_v18 = vld [vmem:[%s12289_s28 + $0xa8] sm:$0xff] }
  0x61   : > { %9479 = vmatpush1.bf16.msra.mxu1 %v9478_v22  ;;  %9417 = vmatprep.subr.bf16.mxu0 %v9416_v23  ;;  %v9506_v9 = vunpack.c.l.s8.bf16 %v398_v1  ;;  %v9444_v10 = vunpack.c.h.s8.bf16 %v363_v6  ;;  %v9508_v11 = vunpack.c.h.s8.bf16 %v395_v7  ;;  %v9446_v14 = vunpack.c.h.s8.bf16 %v362_v12  ;;  %v391_v19 = vld [vmem:[%s12289_s28 + $0x1a8] sm:$0xff]  ;;  %v390_v25 = vld [vmem:[%s12289_s28 + $0x1a0] sm:$0xff] }
  0x62   : > { %9481 = vmatprep.subr.bf16.mxu1 %v9480_v24  ;;  %5793 = vmatprep.mubr.f32.mxu0 %v12328_v45  ;;  %v9510_v15 = vunpack.c.h.s8.bf16 %v394_v13  ;;  %v9448_v16 = vunpack.c.l.s8.bf16 %v363_v6  ;;  %v9512_v17 = vunpack.c.l.s8.bf16 %v395_v7  ;;  %v9450_v20 = vunpack.c.l.s8.bf16 %v362_v12  ;;  %v358_v24 = vld [vmem:[%s12289_s28 + $0xa0] sm:$0xff]  ;;  %v411_v0 = vld [vmem:[%s12289_s28 + $0x248] sm:$0xff] }
  0x63   : > { %5864 = vmatprep.mubr.f32.mxu1 %v12337_v53  ;;  %v9514_v21 = vunpack.c.l.s8.bf16 %v394_v13  ;;  %v9452_v22 = vunpack.c.h.s8.bf16 %v359_v18  ;;  %v9516_v23 = vunpack.c.h.s8.bf16 %v391_v19  ;;  %v9454_v27 = vunpack.c.h.s8.bf16 %v358_v24  ;;  %v443_v1 = vld [vmem:[%s12289_s28 + $0x348] sm:$0xff] }
  0x64   : > { %9419 = vmatpush1.bf16.msra.mxu0 %v9418_v29  ;;  %v9518_v28 = vunpack.c.h.s8.bf16 %v390_v25  ;;  %v9456_v29 = vunpack.c.l.s8.bf16 %v359_v18  ;;  %v9458_v33 = vunpack.c.l.s8.bf16 %v358_v24  ;;  %v9522_v34 = vunpack.c.l.s8.bf16 %v390_v25 }
  0x65   : > { %9483 = vmatpush1.bf16.msra.mxu1 %v9482_v30  ;;  %9421 = vmatprep.subr.bf16.mxu0 %v9420_v31  ;;  %v9520_v30 = vunpack.c.l.s8.bf16 %v391_v19  ;;  %v355_v31 = vld [vmem:[%s12289_s28 + $0x88] sm:$0xff]  ;;  %v9540_v6 = vunpack.c.h.s8.bf16 %v411_v0  ;;  %v9604_v7 = vunpack.c.h.s8.bf16 %v443_v1  ;;  %v9544_v12 = vunpack.c.l.s8.bf16 %v411_v0  ;;  %v426_v0 = vld [vmem:[%s12289_s28 + $0x2c0] sm:$0xff] }
  0x66   : > { %9485 = vmatprep.subr.bf16.mxu1 %v9484_v32  ;;  %v387_v32 = vld [vmem:[%s12289_s28 + $0x188] sm:$0xff]  ;;  %v9460_v36 = vunpack.c.h.s8.bf16 %v355_v31  ;;  %v9464_v44 = vunpack.c.l.s8.bf16 %v355_v31  ;;  %v9608_v13 = vunpack.c.l.s8.bf16 %v443_v1  ;;  %v458_v1 = vld [vmem:[%s12289_s28 + $0x3c0] sm:$0xff] }
  0x68   : > { %9423 = vmatpush1.bf16.msra.mxu0 %v9422_v37  ;;  %v9524_v37 = vunpack.c.h.s8.bf16 %v387_v32 }
  0x69   : > { %9487 = vmatpush1.bf16.msra.mxu1 %v9486_v38  ;;  %9425 = vmatprep.subr.bf16.mxu0 %v9424_v39  ;;  %v354_v38 = vld [vmem:[%s12289_s28 + $0x80] sm:$0xff] }
  0x6a   : > { %9489 = vmatprep.subr.bf16.mxu1 %v9488_v40  ;;  %v386_v39 = vld [vmem:[%s12289_s28 + $0x180] sm:$0xff]  ;;  %v5523_v40 = vld [vmem:[%s13343_s0 + $0x8] sm:$0xff]  ;;  %v9462_v42 = vunpack.c.h.s8.bf16 %v354_v38  ;;  %v9466_v51 = vunpack.c.l.s8.bf16 %v354_v38 }
  0x6b   : > { %v9526_v43 = vunpack.c.h.s8.bf16 %v386_v39  ;;  %v9530_v52 = vunpack.c.l.s8.bf16 %v386_v39  ;;  %v12365_v58 = vrot.slane %v5523_v40, %v12316_v35 }
  0x6c   : > { %9427 = vmatpush1.bf16.msra.mxu0 %v9426_v47  ;;  %v9528_v47 = vunpack.c.l.s8.bf16 %v387_v32 }
  0x6d   : > { %9491 = vmatpush1.bf16.msra.mxu1 %v9490_v48  ;;  %9429 = vmatprep.subr.bf16.mxu0 %v9428_v49  ;;  %v415_v48 = vld [vmem:[%s12289_s28 + $0x268] sm:$0xff] }
  0x6e   : > { %9493 = vmatprep.subr.bf16.mxu1 %v9492_v50  ;;  %v447_v49 = vld [vmem:[%s12289_s28 + $0x368] sm:$0xff]  ;;  %v5557_v50 = vcombine.high %v5523_v40, %v5523_v40 }
  0x6f   : > { %v431_v40 = vld [vmem:[%s12289_s28 + $0x2e8] sm:$0xff] }
  0x70   : > { %9431 = vmatpush1.bf16.msra.mxu0 %v9430_v54  ;;  %v9532_v54 = vunpack.c.h.s8.bf16 %v415_v48  ;;  %v12368_v59 = vrot.slane %v5557_v50, %v12316_v35  ;;  %v462_v50 = vld [vmem:[%s12289_s28 + $0x3e0] sm:$0xff] }
  0x71   : > { %9495 = vmatpush1.bf16.msra.mxu1 %v9494_v55  ;;  %9433 = vmatprep.subr.bf16.mxu0 %v9432_v56  ;;  %v9596_v55 = vunpack.c.h.s8.bf16 %v447_v49  ;;  %v414_v56 = vld [vmem:[%s12289_s28 + $0x260] sm:$0xff] }
  0x72   : > { %9497 = vmatprep.subr.bf16.mxu1 %v9496_v57  ;;  %v446_v57 = vld [vmem:[%s12289_s28 + $0x360] sm:$0xff] }
  0x74   : > { %9435 = vmatpush1.bf16.msra.mxu0 %v9434_v60  ;;  %v9534_v60 = vunpack.c.h.s8.bf16 %v414_v56 }
  0x75   : > { %9499 = vmatpush1.bf16.msra.mxu1 %v9498_v61  ;;  %9437 = vmatprep.subr.bf16.mxu0 %v9436_v62  ;;  %v9598_v61 = vunpack.c.h.s8.bf16 %v446_v57  ;;  %v9536_v62 = vunpack.c.l.s8.bf16 %v415_v48 }
  0x76   : > { %9501 = vmatprep.subr.bf16.mxu1 %v9500_v63  ;;  %v9600_v63 = vunpack.c.l.s8.bf16 %v447_v49  ;;  %v430_v49 = vld [vmem:[%s12289_s28 + $0x2e0] sm:$0xff] }
  0x78   : > { %9439 = vmatpush2.bf16.msra.mxu0 %v9438_v2  ;;  %v12374_v2 = vcombine.high %v12365_v58, %v12365_v58 }
  0x79   : > { %9503 = vmatpush2.bf16.msra.mxu1 %v9502_v3  ;;  %9441 = vmatprep.subr.bf16.mxu0 %v9440_v4  ;;  %v12378_v3 = vcombine.high %v12368_v59, %v12368_v59  ;;  %v9538_v4 = vunpack.c.l.s8.bf16 %v414_v56  ;;  %v427_v56 = vld [vmem:[%s12289_s28 + $0x2c8] sm:$0xff] }
  0x7a   : > { %9505 = vmatprep.subr.bf16.mxu1 %v9504_v5  ;;  %v9602_v5 = vunpack.c.l.s8.bf16 %v446_v57  ;;  %v459_v57 = vld [vmem:[%s12289_s28 + $0x3c8] sm:$0xff] }
  0x7c   : > { %9443 = vmatpush2.bf16.msra.mxu0 %v9442_v8  ;;  %v410_v8 = vld [vmem:[%s12289_s28 + $0x240] sm:$0xff] }
  0x7d   : > { %9507 = vmatpush2.bf16.msra.mxu1 %v9506_v9  ;;  %9445 = vmatprep.subr.bf16.mxu0 %v9444_v10  ;;  %v442_v9 = vld [vmem:[%s12289_s28 + $0x340] sm:$0xff]  ;;  %v9542_v10 = vunpack.c.h.s8.bf16 %v410_v8 }
  0x7e   : > { %9509 = vmatprep.subr.bf16.mxu1 %v9508_v11  ;;  %v9606_v11 = vunpack.c.h.s8.bf16 %v442_v9 }
  0x80   : > { %9447 = vmatpush2.bf16.msra.mxu0 %v9446_v14  ;;  %v407_v14 = vld [vmem:[%s12289_s28 + $0x228] sm:$0xff] }
  0x81   : > { %9511 = vmatpush2.bf16.msra.mxu1 %v9510_v15  ;;  %9449 = vmatprep.subr.bf16.mxu0 %v9448_v16  ;;  %v439_v15 = vld [vmem:[%s12289_s28 + $0x328] sm:$0xff]  ;;  %v9546_v16 = vunpack.c.l.s8.bf16 %v410_v8  ;;  %v9548_v18 = vunpack.c.h.s8.bf16 %v407_v14  ;;  %v9552_v24 = vunpack.c.l.s8.bf16 %v407_v14  ;;  %v422_v14 = vld [vmem:[%s12289_s28 + $0x2a0] sm:$0xff] }
  0x82   : > { %9513 = vmatprep.subr.bf16.mxu1 %v9512_v17  ;;  %v9610_v17 = vunpack.c.l.s8.bf16 %v442_v9  ;;  %v9612_v19 = vunpack.c.h.s8.bf16 %v439_v15  ;;  %v9616_v25 = vunpack.c.l.s8.bf16 %v439_v15  ;;  %v423_v8 = vld [vmem:[%s12289_s28 + $0x2a8] sm:$0xff]  ;;  %v454_v15 = vld [vmem:[%s12289_s28 + $0x3a0] sm:$0xff] }
  0x83   : > { %v455_v9 = vld [vmem:[%s12289_s28 + $0x3a8] sm:$0xff] }
  0x84   : > { %9451 = vmatpush2.bf16.msra.mxu0 %v9450_v20  ;;  %v406_v20 = vld [vmem:[%s12289_s28 + $0x220] sm:$0xff] }
  0x85   : > { %9515 = vmatpush2.bf16.msra.mxu1 %v9514_v21  ;;  %9453 = vmatprep.subr.bf16.mxu0 %v9452_v22  ;;  %v438_v21 = vld [vmem:[%s12289_s28 + $0x320] sm:$0xff]  ;;  %v9550_v22 = vunpack.c.h.s8.bf16 %v406_v20 }
  0x86   : > { %9517 = vmatprep.subr.bf16.mxu1 %v9516_v23  ;;  %v9614_v23 = vunpack.c.h.s8.bf16 %v438_v21 }
  0x88   : > { %9455 = vmatpush2.bf16.msra.mxu0 %v9454_v27  ;;  %v403_v27 = vld [vmem:[%s12289_s28 + $0x208] sm:$0xff] }
  0x89   : > { %9519 = vmatpush2.bf16.msra.mxu1 %v9518_v28  ;;  %9457 = vmatprep.subr.bf16.mxu0 %v9456_v29  ;;  %v435_v28 = vld [vmem:[%s12289_s28 + $0x308] sm:$0xff]  ;;  %v9554_v29 = vunpack.c.l.s8.bf16 %v406_v20  ;;  %v9556_v31 = vunpack.c.h.s8.bf16 %v403_v27  ;;  %v9560_v38 = vunpack.c.l.s8.bf16 %v403_v27  ;;  %v418_v27 = vld [vmem:[%s12289_s28 + $0x280] sm:$0xff] }
  0x8a   : > { %9521 = vmatprep.subr.bf16.mxu1 %v9520_v30  ;;  %v9618_v30 = vunpack.c.l.s8.bf16 %v438_v21  ;;  %v9620_v32 = vunpack.c.h.s8.bf16 %v435_v28  ;;  %v9624_v39 = vunpack.c.l.s8.bf16 %v435_v28  ;;  %v419_v20 = vld [vmem:[%s12289_s28 + $0x288] sm:$0xff]  ;;  %v450_v28 = vld [vmem:[%s12289_s28 + $0x380] sm:$0xff] }
  0x8b   : > { %v451_v21 = vld [vmem:[%s12289_s28 + $0x388] sm:$0xff] }
  0x8c   : > { %9459 = vmatpush2.bf16.msra.mxu0 %v9458_v33  ;;  %v402_v33 = vld [vmem:[%s12289_s28 + $0x200] sm:$0xff] }
  0x8d   : > { %9523 = vmatpush2.bf16.msra.mxu1 %v9522_v34  ;;  %9461 = vmatprep.subr.bf16.mxu0 %v9460_v36  ;;  %v434_v34 = vld [vmem:[%s12289_s28 + $0x300] sm:$0xff]  ;;  %v9558_v36 = vunpack.c.h.s8.bf16 %v402_v33 }
  0x8e   : > { %9525 = vmatprep.subr.bf16.mxu1 %v9524_v37  ;;  %v9622_v37 = vunpack.c.h.s8.bf16 %v434_v34 }
  0x90   : > { %9463 = vmatpush2.bf16.msra.mxu0 %v9462_v42  ;;  %v463_v42 = vld [vmem:[%s12289_s28 + $0x3e8] sm:$0xff] }
  0x91   : > { %9527 = vmatpush2.bf16.msra.mxu1 %v9526_v43  ;;  %9465 = vmatprep.subr.bf16.mxu0 %v9464_v44  ;;  %v9562_v43 = vunpack.c.l.s8.bf16 %v402_v33  ;;  %v9626_v44 = vunpack.c.l.s8.bf16 %v434_v34  ;;  %v9628_v48 = vunpack.c.h.s8.bf16 %v463_v42  ;;  %v9656_v33 = vunpack.c.l.s8.bf16 %v451_v21  ;;  %v479_v34 = vld [vmem:[%s12289_s28 + $0x468] sm:$0xff] }
  0x92   : > { %9529 = vmatprep.subr.bf16.mxu1 %v9528_v47  ;;  %v9564_v47 = vunpack.c.h.s8.bf16 %v431_v40 }
  0x94   : > { %9467 = vmatpush2.bf16.msra.mxu0 %v9466_v51  ;;  %v9566_v51 = vunpack.c.h.s8.bf16 %v430_v49 }
  0x95   : > { %9531 = vmatpush2.bf16.msra.mxu1 %v9530_v52  ;;  %9533 = vmatprep.subr.bf16.mxu0 %v9532_v54  ;;  %v9630_v52 = vunpack.c.h.s8.bf16 %v462_v50  ;;  %v9568_v54 = vunpack.c.l.s8.bf16 %v431_v40  ;;  %v9660_v40 = vunpack.c.h.s8.bf16 %v479_v34 }
  0x96   : > { %9597 = vmatprep.subr.bf16.mxu1 %v9596_v55  ;;  %v9632_v55 = vunpack.c.l.s8.bf16 %v463_v42 }
  0x97   : > { %5794 = vmatmul.mubr.f32.vlgmr.msra.gmra.mxu0 %v12322_v41 }
  0x98   : > { %5865 = vmatmul.mubr.f32.vlgmr.msra.gmra.mxu1 %v12331_v46  ;;  %9535 = vmatpush1.bf16.msra.mxu0 %v9534_v60  ;;  %v9570_v60 = vunpack.c.l.s8.bf16 %v430_v49 }
  0x99   : > { %9599 = vmatpush1.bf16.msra.mxu1 %v9598_v61  ;;  %9537 = vmatprep.subr.bf16.mxu0 %v9536_v62  ;;  %v9634_v61 = vunpack.c.l.s8.bf16 %v462_v50  ;;  %v9572_v62 = vunpack.c.h.s8.bf16 %v427_v56 }
  0x9a   : > { %9601 = vmatprep.subr.bf16.mxu1 %v9600_v63  ;;  %5935 = vmatprep.mubr.f32.mxu0 %v12374_v2  ;;  %v9636_v63 = vunpack.c.h.s8.bf16 %v459_v57 }
  0x9b   : > { %6006 = vmatprep.mubr.f32.mxu1 %v12378_v3 }
  0x9c   : > { %9539 = vmatpush1.bf16.msra.mxu0 %v9538_v4  ;;  %v9574_v4 = vunpack.c.h.s8.bf16 %v426_v0 }
  0x9d   : > { %9603 = vmatpush1.bf16.msra.mxu1 %v9602_v5  ;;  %9541 = vmatprep.subr.bf16.mxu0 %v9540_v6  ;;  %v9638_v5 = vunpack.c.h.s8.bf16 %v458_v1  ;;  %v9576_v6 = vunpack.c.l.s8.bf16 %v427_v56 }
  0x9e   : > { %9605 = vmatprep.subr.bf16.mxu1 %v9604_v7  ;;  %v9640_v7 = vunpack.c.l.s8.bf16 %v459_v57 }
  0xa0   : > { %9543 = vmatpush1.bf16.msra.mxu0 %v9542_v10  ;;  %v9578_v10 = vunpack.c.l.s8.bf16 %v426_v0  ;;  %v474_v0 = vld [vmem:[%s12289_s28 + $0x440] sm:$0xff] }
  0xa1   : > { %9607 = vmatpush1.bf16.msra.mxu1 %v9606_v11  ;;  %9545 = vmatprep.subr.bf16.mxu0 %v9544_v12  ;;  %v9642_v11 = vunpack.c.l.s8.bf16 %v458_v1  ;;  %v9580_v12 = vunpack.c.h.s8.bf16 %v423_v8  ;;  %v506_v1 = vld [vmem:[%s12289_s28 + $0x540] sm:$0xff] }
  0xa2   : > { %9609 = vmatprep.subr.bf16.mxu1 %v9608_v13  ;;  %v9644_v13 = vunpack.c.h.s8.bf16 %v455_v9 }
  0xa4   : > { %9547 = vmatpush1.bf16.msra.mxu0 %v9546_v16  ;;  %v9582_v16 = vunpack.c.h.s8.bf16 %v422_v14 }
  0xa5   : > { %9611 = vmatpush1.bf16.msra.mxu1 %v9610_v17  ;;  %9549 = vmatprep.subr.bf16.mxu0 %v9548_v18  ;;  %v9646_v17 = vunpack.c.h.s8.bf16 %v454_v15  ;;  %v9584_v18 = vunpack.c.l.s8.bf16 %v423_v8  ;;  %v471_v8 = vld [vmem:[%s12289_s28 + $0x428] sm:$0xff] }
  0xa6   : > { %9613 = vmatprep.subr.bf16.mxu1 %v9612_v19  ;;  %v9648_v19 = vunpack.c.l.s8.bf16 %v455_v9  ;;  %v503_v9 = vld [vmem:[%s12289_s28 + $0x528] sm:$0xff] }
  0xa8   : > { %9551 = vmatpush1.bf16.msra.mxu0 %v9550_v22  ;;  %v9586_v22 = vunpack.c.l.s8.bf16 %v422_v14  ;;  %v470_v14 = vld [vmem:[%s12289_s28 + $0x420] sm:$0xff] }
  0xa9   : > { %9615 = vmatpush1.bf16.msra.mxu1 %v9614_v23  ;;  %9553 = vmatprep.subr.bf16.mxu0 %v9552_v24  ;;  %v9650_v23 = vunpack.c.l.s8.bf16 %v454_v15  ;;  %v9588_v24 = vunpack.c.h.s8.bf16 %v419_v20  ;;  %v502_v15 = vld [vmem:[%s12289_s28 + $0x520] sm:$0xff] }
  0xaa   : > { %9617 = vmatprep.subr.bf16.mxu1 %v9616_v25  ;;  %v9652_v25 = vunpack.c.h.s8.bf16 %v451_v21  ;;  %v499_v21 = vld [vmem:[%s12289_s28 + $0x508] sm:$0xff] }
  0xac   : > { %9555 = vmatpush1.bf16.msra.mxu0 %v9554_v29  ;;  %v5524_v29 = vld [vmem:[%s13343_s0 + $0x10] sm:$0xff] }
  0xad   : > { %9619 = vmatpush1.bf16.msra.mxu1 %v9618_v30  ;;  %9557 = vmatprep.subr.bf16.mxu0 %v9556_v31  ;;  %v9590_v30 = vunpack.c.h.s8.bf16 %v418_v27  ;;  %v9654_v31 = vunpack.c.h.s8.bf16 %v450_v28 }
  0xae   : > { %9621 = vmatprep.subr.bf16.mxu1 %v9620_v32  ;;  %v9592_v32 = vunpack.c.l.s8.bf16 %v419_v20  ;;  %v467_v20 = vld [vmem:[%s12289_s28 + $0x408] sm:$0xff] }
  0xb0   : > { %9559 = vmatpush1.bf16.msra.mxu0 %v9558_v36  ;;  %v511_v36 = vld [vmem:[%s12289_s28 + $0x568] sm:$0xff] }
  0xb1   : > { %9623 = vmatpush1.bf16.msra.mxu1 %v9622_v37  ;;  %9561 = vmatprep.subr.bf16.mxu0 %v9560_v38  ;;  %v5574_v37 = vcombine.high %v5524_v29, %v5524_v29  ;;  %v9594_v38 = vunpack.c.l.s8.bf16 %v418_v27  ;;  %v9724_v42 = vunpack.c.h.s8.bf16 %v511_v36  ;;  %v466_v27 = vld [vmem:[%s12289_s28 + $0x400] sm:$0xff] }
  0xb2   : > { %9625 = vmatprep.subr.bf16.mxu1 %v9624_v39  ;;  %v9658_v39 = vunpack.c.l.s8.bf16 %v450_v28  ;;  %v498_v28 = vld [vmem:[%s12289_s28 + $0x500] sm:$0xff] }
  0xb4   : > { %9563 = vmatpush1.bf16.msra.mxu0 %v9562_v43  ;;  %v478_v43 = vld [vmem:[%s12289_s28 + $0x460] sm:$0xff] }
  0xb5   : > { %9627 = vmatpush1.bf16.msra.mxu1 %v9626_v44  ;;  %9565 = vmatprep.subr.bf16.mxu0 %v9564_v47  ;;  %v510_v44 = vld [vmem:[%s12289_s28 + $0x560] sm:$0xff]  ;;  %v12418_v47 = vrot.slane %v5524_v29, %v12316_v35  ;;  %v9662_v49 = vunpack.c.h.s8.bf16 %v478_v43  ;;  %v9686_v29 = vunpack.c.h.s8.bf16 %v466_v27 }
  0xb6   : > { %9629 = vmatprep.subr.bf16.mxu1 %v9628_v48  ;;  %v12421_v48 = vrot.slane %v5574_v37, %v12316_v35  ;;  %v9726_v50 = vunpack.c.h.s8.bf16 %v510_v44  ;;  %v9754_v37 = vunpack.c.l.s8.bf16 %v498_v28 }
  0xb7   : > { %v12427_v56 = vcombine.high %v12418_v47, %v12418_v47 }
  0xb8   : > { %9567 = vmatpush2.bf16.msra.mxu0 %v9566_v51  ;;  %v9664_v51 = vunpack.c.l.s8.bf16 %v479_v34  ;;  %v12431_v57 = vcombine.high %v12421_v48, %v12421_v48  ;;  %v527_v34 = vld [vmem:[%s12289_s28 + $0x5e8] sm:$0xff] }
  0xb9   : > { %9631 = vmatpush2.bf16.msra.mxu1 %v9630_v52  ;;  %9569 = vmatprep.subr.bf16.mxu0 %v9568_v54  ;;  %v9728_v52 = vunpack.c.l.s8.bf16 %v511_v36  ;;  %v475_v54 = vld [vmem:[%s12289_s28 + $0x448] sm:$0xff]  ;;  %v9690_v36 = vunpack.c.l.s8.bf16 %v466_v27  ;;  %v5525_v27 = vld [vmem:[%s13343_s0 + $0x18] sm:$0xff] }
  0xba   : > { %9633 = vmatprep.subr.bf16.mxu1 %v9632_v55  ;;  %v507_v55 = vld [vmem:[%s12289_s28 + $0x548] sm:$0xff] }
  0xbc   : > { %9571 = vmatpush2.bf16.msra.mxu0 %v9570_v60  ;;  %v9666_v60 = vunpack.c.l.s8.bf16 %v478_v43 }
  0xbd   : > { %9635 = vmatpush2.bf16.msra.mxu1 %v9634_v61  ;;  %9573 = vmatprep.subr.bf16.mxu0 %v9572_v62  ;;  %v9730_v61 = vunpack.c.l.s8.bf16 %v510_v44  ;;  %v9668_v62 = vunpack.c.h.s8.bf16 %v475_v54 }
  0xbe   : > { %9637 = vmatprep.subr.bf16.mxu1 %v9636_v63  ;;  %v9732_v63 = vunpack.c.h.s8.bf16 %v507_v55 }
  0xc0   : > { %9575 = vmatpush2.bf16.msra.mxu0 %v9574_v4  ;;  %v9670_v4 = vunpack.c.h.s8.bf16 %v474_v0 }
  0xc1   : > { %9639 = vmatpush2.bf16.msra.mxu1 %v9638_v5  ;;  %9577 = vmatprep.subr.bf16.mxu0 %v9576_v6  ;;  %v9734_v5 = vunpack.c.h.s8.bf16 %v506_v1  ;;  %v9672_v6 = vunpack.c.l.s8.bf16 %v475_v54 }
  0xc2   : > { %9641 = vmatprep.subr.bf16.mxu1 %v9640_v7  ;;  %v9736_v7 = vunpack.c.l.s8.bf16 %v507_v55 }
  0xc4   : > { %9579 = vmatpush2.bf16.msra.mxu0 %v9578_v10  ;;  %v9674_v10 = vunpack.c.l.s8.bf16 %v474_v0 }
  0xc5   : > { %9643 = vmatpush2.bf16.msra.mxu1 %v9642_v11  ;;  %9581 = vmatprep.subr.bf16.mxu0 %v9580_v12  ;;  %v9738_v11 = vunpack.c.l.s8.bf16 %v506_v1  ;;  %v9676_v12 = vunpack.c.h.s8.bf16 %v471_v8 }
  0xc6   : > { %9645 = vmatprep.subr.bf16.mxu1 %v9644_v13  ;;  %v9740_v13 = vunpack.c.h.s8.bf16 %v503_v9 }
  0xc8   : > { %9583 = vmatpush2.bf16.msra.mxu0 %v9582_v16  ;;  %v9678_v16 = vunpack.c.h.s8.bf16 %v470_v14 }
  0xc9   : > { %9647 = vmatpush2.bf16.msra.mxu1 %v9646_v17  ;;  %9585 = vmatprep.subr.bf16.mxu0 %v9584_v18  ;;  %v9742_v17 = vunpack.c.h.s8.bf16 %v502_v15  ;;  %v9680_v18 = vunpack.c.l.s8.bf16 %v471_v8 }
  0xca   : > { %9649 = vmatprep.subr.bf16.mxu1 %v9648_v19  ;;  %v9744_v19 = vunpack.c.l.s8.bf16 %v503_v9 }
  0xcc   : > { %9587 = vmatpush2.bf16.msra.mxu0 %v9586_v22  ;;  %v9682_v22 = vunpack.c.l.s8.bf16 %v470_v14 }
  0xcd   : > { %9651 = vmatpush2.bf16.msra.mxu1 %v9650_v23  ;;  %9589 = vmatprep.subr.bf16.mxu0 %v9588_v24  ;;  %v9746_v23 = vunpack.c.l.s8.bf16 %v502_v15  ;;  %v9684_v24 = vunpack.c.h.s8.bf16 %v467_v20 }
  0xce   : > { %9653 = vmatprep.subr.bf16.mxu1 %v9652_v25  ;;  %v9748_v25 = vunpack.c.h.s8.bf16 %v499_v21 }
  0xd0   : > { %9591 = vmatpush2.bf16.msra.mxu0 %v9590_v30  ;;  %v9750_v30 = vunpack.c.h.s8.bf16 %v498_v28 }
  0xd1   : > { %9655 = vmatpush2.bf16.msra.mxu1 %v9654_v31  ;;  %9593 = vmatprep.subr.bf16.mxu0 %v9592_v32  ;;  %v9688_v31 = vunpack.c.l.s8.bf16 %v467_v20  ;;  %v9752_v32 = vunpack.c.l.s8.bf16 %v499_v21 }
  0xd2   : > { %9657 = vmatprep.subr.bf16.mxu1 %v9656_v33  ;;  %v495_v33 = vld [vmem:[%s12289_s28 + $0x4e8] sm:$0xff] }
  0xd4   : > { %9595 = vmatpush2.bf16.msra.mxu0 %v9594_v38  ;;  %v9692_v38 = vunpack.c.h.s8.bf16 %v495_v33 }
  0xd5   : > { %9659 = vmatpush2.bf16.msra.mxu1 %v9658_v39  ;;  %9661 = vmatprep.subr.bf16.mxu0 %v9660_v40  ;;  %v9756_v39 = vunpack.c.h.s8.bf16 %v527_v34  ;;  %v494_v40 = vld [vmem:[%s12289_s28 + $0x4e0] sm:$0xff] }
  0xd6   : > { %9725 = vmatprep.subr.bf16.mxu1 %v9724_v42  ;;  %v526_v42 = vld [vmem:[%s12289_s28 + $0x5e0] sm:$0xff]  ;;  %v9694_v43 = vunpack.c.h.s8.bf16 %v494_v40  ;;  %v9698_v54 = vunpack.c.l.s8.bf16 %v494_v40 }
  0xd7   : > { %5936 = vmatmul.mubr.f32.vlgmr.msra.gmra.mxu0 %v12365_v58  ;;  %v9758_v44 = vunpack.c.h.s8.bf16 %v526_v42  ;;  %v9762_v55 = vunpack.c.l.s8.bf16 %v526_v42  ;;  %v542_v40 = vld [vmem:[%s12289_s28 + $0x660] sm:$0xff] }
  0xd8   : > { %6007 = vmatmul.mubr.f32.vlgmr.msra.gmra.mxu1 %v12368_v59  ;;  %9663 = vmatpush1.bf16.msra.mxu0 %v9662_v49  ;;  %v9696_v49 = vunpack.c.l.s8.bf16 %v495_v33  ;;  %v575_v33 = vld [vmem:[%s12289_s28 + $0x768] sm:$0xff]  ;;  %v574_v42 = vld [vmem:[%s12289_s28 + $0x760] sm:$0xff] }
  0xd9   : > { %9727 = vmatpush1.bf16.msra.mxu1 %v9726_v50  ;;  %9665 = vmatprep.subr.bf16.mxu0 %v9664_v51  ;;  %v9760_v50 = vunpack.c.l.s8.bf16 %v527_v34  ;;  %v491_v51 = vld [vmem:[%s12289_s28 + $0x4c8] sm:$0xff]  ;;  %v5591_v34 = vcombine.high %v5525_v27, %v5525_v27 }
  0xda   : > { %9729 = vmatprep.subr.bf16.mxu1 %v9728_v52  ;;  %6077 = vmatprep.mubr.f32.mxu0 %v12427_v56  ;;  %v523_v52 = vld [vmem:[%s12289_s28 + $0x5c8] sm:$0xff] }
  0xdb   : > { %6148 = vmatprep.mubr.f32.mxu1 %v12431_v57 }
  0xdc   : > { %9667 = vmatpush1.bf16.msra.mxu0 %v9666_v60  ;;  %v9700_v60 = vunpack.c.h.s8.bf16 %v491_v51 }
  0xdd   : > { %9731 = vmatpush1.bf16.msra.mxu1 %v9730_v61  ;;  %9669 = vmatprep.subr.bf16.mxu0 %v9668_v62  ;;  %v9764_v61 = vunpack.c.h.s8.bf16 %v523_v52  ;;  %v490_v62 = vld [vmem:[%s12289_s28 + $0x4c0] sm:$0xff] }
  0xde   : > { %9733 = vmatprep.subr.bf16.mxu1 %v9732_v63  ;;  %v522_v63 = vld [vmem:[%s12289_s28 + $0x5c0] sm:$0xff]  ;;  %v9702_v0 = vunpack.c.h.s8.bf16 %v490_v62  ;;  %v9706_v8 = vunpack.c.l.s8.bf16 %v490_v62  ;;  %v9794_v62 = vunpack.c.l.s8.bf16 %v542_v40 }
  0xdf   : > { %v9766_v1 = vunpack.c.h.s8.bf16 %v522_v63  ;;  %v9770_v9 = vunpack.c.l.s8.bf16 %v522_v63  ;;  %v9858_v63 = vunpack.c.l.s8.bf16 %v574_v42 }
  0xe0   : > { %9671 = vmatpush1.bf16.msra.mxu0 %v9670_v4  ;;  %v9704_v4 = vunpack.c.l.s8.bf16 %v491_v51 }
  0xe1   : > { %9735 = vmatpush1.bf16.msra.mxu1 %v9734_v5  ;;  %9673 = vmatprep.subr.bf16.mxu0 %v9672_v6  ;;  %v9768_v5 = vunpack.c.l.s8.bf16 %v523_v52  ;;  %v487_v6 = vld [vmem:[%s12289_s28 + $0x4a8] sm:$0xff]  ;;  %v9856_v52 = vunpack.c.l.s8.bf16 %v575_v33 }
  0xe2   : > { %9737 = vmatprep.subr.bf16.mxu1 %v9736_v7  ;;  %v519_v7 = vld [vmem:[%s12289_s28 + $0x5a8] sm:$0xff] }
  0xe4   : > { %9675 = vmatpush1.bf16.msra.mxu0 %v9674_v10  ;;  %v9708_v10 = vunpack.c.h.s8.bf16 %v487_v6 }
  0xe5   : > { %9739 = vmatpush1.bf16.msra.mxu1 %v9738_v11  ;;  %9677 = vmatprep.subr.bf16.mxu0 %v9676_v12  ;;  %v9772_v11 = vunpack.c.h.s8.bf16 %v519_v7  ;;  %v486_v12 = vld [vmem:[%s12289_s28 + $0x4a0] sm:$0xff] }
  0xe6   : > { %9741 = vmatprep.subr.bf16.mxu1 %v9740_v13  ;;  %v518_v13 = vld [vmem:[%s12289_s28 + $0x5a0] sm:$0xff]  ;;  %v9710_v14 = vunpack.c.h.s8.bf16 %v486_v12  ;;  %v9714_v20 = vunpack.c.l.s8.bf16 %v486_v12 }
  0xe7   : > { %v9774_v15 = vunpack.c.h.s8.bf16 %v518_v13  ;;  %v9778_v21 = vunpack.c.l.s8.bf16 %v518_v13 }
  0xe8   : > { %9679 = vmatpush1.bf16.msra.mxu0 %v9678_v16  ;;  %v9712_v16 = vunpack.c.l.s8.bf16 %v487_v6 }
  0xe9   : > { %9743 = vmatpush1.bf16.msra.mxu1 %v9742_v17  ;;  %9681 = vmatprep.subr.bf16.mxu0 %v9680_v18  ;;  %v9776_v17 = vunpack.c.l.s8.bf16 %v519_v7  ;;  %v483_v18 = vld [vmem:[%s12289_s28 + $0x488] sm:$0xff] }
  0xea   : > { %9745 = vmatprep.subr.bf16.mxu1 %v9744_v19  ;;  %v515_v19 = vld [vmem:[%s12289_s28 + $0x588] sm:$0xff] }
  0xec   : > { %9683 = vmatpush1.bf16.msra.mxu0 %v9682_v22  ;;  %v9716_v22 = vunpack.c.h.s8.bf16 %v483_v18 }
  0xed   : > { %9747 = vmatpush1.bf16.msra.mxu1 %v9746_v23  ;;  %9685 = vmatprep.subr.bf16.mxu0 %v9684_v24  ;;  %v9780_v23 = vunpack.c.h.s8.bf16 %v515_v19  ;;  %v482_v24 = vld [vmem:[%s12289_s28 + $0x480] sm:$0xff] }
  0xee   : > { %9749 = vmatprep.subr.bf16.mxu1 %v9748_v25  ;;  %v514_v25 = vld [vmem:[%s12289_s28 + $0x580] sm:$0xff]  ;;  %v9718_v28 = vunpack.c.h.s8.bf16 %v482_v24 }
  0xf0   : > { %9687 = vmatpush1.bf16.msra.mxu0 %v9686_v29  ;;  %v9782_v29 = vunpack.c.h.s8.bf16 %v514_v25 }
  0xf1   : > { %9751 = vmatpush1.bf16.msra.mxu1 %v9750_v30  ;;  %9689 = vmatprep.subr.bf16.mxu0 %v9688_v31  ;;  %v9720_v30 = vunpack.c.l.s8.bf16 %v483_v18  ;;  %v9784_v31 = vunpack.c.l.s8.bf16 %v515_v19 }
  0xf2   : > { %9753 = vmatprep.subr.bf16.mxu1 %v9752_v32  ;;  %v543_v32 = vld [vmem:[%s12289_s28 + $0x668] sm:$0xff] }
  0xf3   : > { %v9792_v51 = vunpack.c.l.s8.bf16 %v543_v32 }
  0xf4   : > { %9691 = vmatpush1.bf16.msra.mxu0 %v9690_v36  ;;  %v9722_v36 = vunpack.c.l.s8.bf16 %v482_v24 }
  0xf5   : > { %9755 = vmatpush1.bf16.msra.mxu1 %v9754_v37  ;;  %9693 = vmatprep.subr.bf16.mxu0 %v9692_v38  ;;  %v9786_v37 = vunpack.c.l.s8.bf16 %v514_v25  ;;  %v9788_v38 = vunpack.c.h.s8.bf16 %v543_v32 }
  0xf6   : > { %9757 = vmatprep.subr.bf16.mxu1 %v9756_v39  ;;  %v9852_v39 = vunpack.c.h.s8.bf16 %v575_v33 }
  0xf8   : > { %9695 = vmatpush2.bf16.msra.mxu0 %v9694_v43  ;;  %v12471_v43 = vrot.slane %v5525_v27, %v12316_v35 }
  0xf9   : > { %9759 = vmatpush2.bf16.msra.mxu1 %v9758_v44  ;;  %9697 = vmatprep.subr.bf16.mxu0 %v9696_v49  ;;  %v12474_v44 = vrot.slane %v5591_v34, %v12316_v35  ;;  %v9790_v49 = vunpack.c.h.s8.bf16 %v542_v40 }
  0xfa   : > { %9761 = vmatprep.subr.bf16.mxu1 %v9760_v50  ;;  %v9854_v50 = vunpack.c.h.s8.bf16 %v574_v42 }
  0xfc   : > { %9699 = vmatpush2.bf16.msra.mxu0 %v9698_v54  ;;  %v539_v54 = vld [vmem:[%s12289_s28 + $0x648] sm:$0xff] }
  0xfd   : > { %9763 = vmatpush2.bf16.msra.mxu1 %v9762_v55  ;;  %9701 = vmatprep.subr.bf16.mxu0 %v9700_v60  ;;  %v571_v55 = vld [vmem:[%s12289_s28 + $0x748] sm:$0xff]  ;;  %v12480_v60 = vcombine.high %v12471_v43, %v12471_v43 }
  0xfe   : > { %9765 = vmatprep.subr.bf16.mxu1 %v9764_v61  ;;  %v12484_v61 = vcombine.high %v12474_v44, %v12474_v44 }
 0x100   : > { %9703 = vmatpush2.bf16.msra.mxu0 %v9702_v0  ;;  %v9796_v0 = vunpack.c.h.s8.bf16 %v539_v54 }
 0x101   : > { %9767 = vmatpush2.bf16.msra.mxu1 %v9766_v1  ;;  %9705 = vmatprep.subr.bf16.mxu0 %v9704_v4  ;;  %v9860_v1 = vunpack.c.h.s8.bf16 %v571_v55  ;;  %v538_v4 = vld [vmem:[%s12289_s28 + $0x640] sm:$0xff] }
 0x102   : > { %9769 = vmatprep.subr.bf16.mxu1 %v9768_v5  ;;  %v570_v5 = vld [vmem:[%s12289_s28 + $0x740] sm:$0xff]  ;;  %v9798_v6 = vunpack.c.h.s8.bf16 %v538_v4  ;;  %v9802_v12 = vunpack.c.l.s8.bf16 %v538_v4 }
 0x103   : > { %v9862_v7 = vunpack.c.h.s8.bf16 %v570_v5  ;;  %v9866_v13 = vunpack.c.l.s8.bf16 %v570_v5 }
 0x104   : > { %9707 = vmatpush2.bf16.msra.mxu0 %v9706_v8  ;;  %v9800_v8 = vunpack.c.l.s8.bf16 %v539_v54 }
 0x105   : > { %9771 = vmatpush2.bf16.msra.mxu1 %v9770_v9  ;;  %9709 = vmatprep.subr.bf16.mxu0 %v9708_v10  ;;  %v9864_v9 = vunpack.c.l.s8.bf16 %v571_v55  ;;  %v535_v10 = vld [vmem:[%s12289_s28 + $0x628] sm:$0xff] }
 0x106   : > { %9773 = vmatprep.subr.bf16.mxu1 %v9772_v11  ;;  %v567_v11 = vld [vmem:[%s12289_s28 + $0x728] sm:$0xff] }
 0x108   : > { %9711 = vmatpush2.bf16.msra.mxu0 %v9710_v14  ;;  %v9804_v14 = vunpack.c.h.s8.bf16 %v535_v10 }
 0x109   : > { %9775 = vmatpush2.bf16.msra.mxu1 %v9774_v15  ;;  %9713 = vmatprep.subr.bf16.mxu0 %v9712_v16  ;;  %v9868_v15 = vunpack.c.h.s8.bf16 %v567_v11  ;;  %v534_v16 = vld [vmem:[%s12289_s28 + $0x620] sm:$0xff] }
 0x10a   : > { %9777 = vmatprep.subr.bf16.mxu1 %v9776_v17  ;;  %v566_v17 = vld [vmem:[%s12289_s28 + $0x720] sm:$0xff]  ;;  %v9806_v18 = vunpack.c.h.s8.bf16 %v534_v16  ;;  %v9810_v24 = vunpack.c.l.s8.bf16 %v534_v16 }
 0x10b   : > { %v9870_v19 = vunpack.c.h.s8.bf16 %v566_v17  ;;  %v9874_v25 = vunpack.c.l.s8.bf16 %v566_v17 }
 0x10c   : > { %9715 = vmatpush2.bf16.msra.mxu0 %v9714_v20  ;;  %v9808_v20 = vunpack.c.l.s8.bf16 %v535_v10 }
 0x10d   : > { %9779 = vmatpush2.bf16.msra.mxu1 %v9778_v21  ;;  %9717 = vmatprep.subr.bf16.mxu0 %v9716_v22  ;;  %v9872_v21 = vunpack.c.l.s8.bf16 %v567_v11  ;;  %v531_v22 = vld [vmem:[%s12289_s28 + $0x608] sm:$0xff] }
 0x10e   : > { %9781 = vmatprep.subr.bf16.mxu1 %v9780_v23  ;;  %v563_v23 = vld [vmem:[%s12289_s28 + $0x708] sm:$0xff]  ;;  %v9812_v27 = vunpack.c.h.s8.bf16 %v531_v22  ;;  %v9816_v33 = vunpack.c.l.s8.bf16 %v531_v22 }
 0x10f   : > { %v9880_v34 = vunpack.c.l.s8.bf16 %v563_v23 }
 0x110   : > { %9719 = vmatpush2.bf16.msra.mxu0 %v9718_v28  ;;  %v9876_v28 = vunpack.c.h.s8.bf16 %v563_v23 }
 0x111   : > { %9783 = vmatpush2.bf16.msra.mxu1 %v9782_v29  ;;  %9721 = vmatprep.subr.bf16.mxu0 %v9720_v30  ;;  %v530_v29 = vld [vmem:[%s12289_s28 + $0x600] sm:$0xff] }
 0x112   : > { %9785 = vmatprep.subr.bf16.mxu1 %v9784_v31  ;;  %v562_v30 = vld [vmem:[%s12289_s28 + $0x700] sm:$0xff]  ;;  %v9814_v31 = vunpack.c.h.s8.bf16 %v530_v29 }
 0x113   : > { %v9878_v32 = vunpack.c.h.s8.bf16 %v562_v30 }
 0x114   : > { %9723 = vmatpush2.bf16.msra.mxu0 %v9722_v36  ;;  %v559_v36 = vld [vmem:[%s12289_s28 + $0x6e8] sm:$0xff] }
 0x115   : > { %9787 = vmatpush2.bf16.msra.mxu1 %v9786_v37  ;;  %9789 = vmatprep.subr.bf16.mxu0 %v9788_v38  ;;  %v591_v37 = vld [vmem:[%s12289_s28 + $0x7e8] sm:$0xff]  ;;  %v9818_v38 = vunpack.c.l.s8.bf16 %v530_v29  ;;  %v9820_v40 = vunpack.c.h.s8.bf16 %v559_v36  ;;  %v9824_v54 = vunpack.c.l.s8.bf16 %v559_v36 }
 0x116   : > { %9853 = vmatprep.subr.bf16.mxu1 %v9852_v39  ;;  %v9882_v39 = vunpack.c.l.s8.bf16 %v562_v30  ;;  %v9884_v42 = vunpack.c.h.s8.bf16 %v591_v37  ;;  %v9888_v55 = vunpack.c.l.s8.bf16 %v591_v37 }
 0x117   : > { %6078 = vmatmul.mubr.f32.vlgmr.msra.gmra.mxu0 %v12418_v47 }
 0x118   : > { %6149 = vmatmul.mubr.f32.vlgmr.msra.gmra.mxu1 %v12421_v48  ;;  %9791 = vmatpush1.bf16.msra.mxu0 %v9790_v49  ;;  %v558_v49 = vld [vmem:[%s12289_s28 + $0x6e0] sm:$0xff] }
 0x119   : > { %9855 = vmatpush1.bf16.msra.mxu1 %v9854_v50  ;;  %9793 = vmatprep.subr.bf16.mxu0 %v9792_v51  ;;  %v590_v50 = vld [vmem:[%s12289_s28 + $0x7e0] sm:$0xff]  ;;  %v9822_v51 = vunpack.c.h.s8.bf16 %v558_v49 }
 0x11a   : > { %9857 = vmatprep.subr.bf16.mxu1 %v9856_v52  ;;  %6219 = vmatprep.mubr.f32.mxu0 %v12480_v60  ;;  %v9886_v52 = vunpack.c.h.s8.bf16 %v590_v50 }
 0x11b   : > { %6290 = vmatprep.mubr.f32.mxu1 %v12484_v61 }
 0x11c   : > { %9795 = vmatpush1.bf16.msra.mxu0 %v9794_v62  ;;  %v555_v62 = vld [vmem:[%s12289_s28 + $0x6c8] sm:$0xff] }
 0x11d   : > { %9859 = vmatpush1.bf16.msra.mxu1 %v9858_v63  ;;  %9797 = vmatprep.subr.bf16.mxu0 %v9796_v0  ;;  %v587_v63 = vld [vmem:[%s12289_s28 + $0x7c8] sm:$0xff]  ;;  %v9826_v0 = vunpack.c.l.s8.bf16 %v558_v49  ;;  %v9828_v4 = vunpack.c.h.s8.bf16 %v555_v62  ;;  %v9832_v10 = vunpack.c.l.s8.bf16 %v555_v62 }
 0x11e   : > { %9861 = vmatprep.subr.bf16.mxu1 %v9860_v1  ;;  %v9890_v1 = vunpack.c.l.s8.bf16 %v590_v50  ;;  %v9892_v5 = vunpack.c.h.s8.bf16 %v587_v63  ;;  %v9896_v11 = vunpack.c.l.s8.bf16 %v587_v63 }
 0x120   : > { %9799 = vmatpush1.bf16.msra.mxu0 %v9798_v6  ;;  %v554_v6 = vld [vmem:[%s12289_s28 + $0x6c0] sm:$0xff] }
 0x121   : > { %9863 = vmatpush1.bf16.msra.mxu1 %v9862_v7  ;;  %9801 = vmatprep.subr.bf16.mxu0 %v9800_v8  ;;  %v586_v7 = vld [vmem:[%s12289_s28 + $0x7c0] sm:$0xff]  ;;  %v9830_v8 = vunpack.c.h.s8.bf16 %v554_v6 }
 0x122   : > { %9865 = vmatprep.subr.bf16.mxu1 %v9864_v9  ;;  %v9894_v9 = vunpack.c.h.s8.bf16 %v586_v7 }
 0x124   : > { %9803 = vmatpush1.bf16.msra.mxu0 %v9802_v12  ;;  %v551_v12 = vld [vmem:[%s12289_s28 + $0x6a8] sm:$0xff] }
 0x125   : > { %9867 = vmatpush1.bf16.msra.mxu1 %v9866_v13  ;;  %9805 = vmatprep.subr.bf16.mxu0 %v9804_v14  ;;  %v583_v13 = vld [vmem:[%s12289_s28 + $0x7a8] sm:$0xff]  ;;  %v9834_v14 = vunpack.c.l.s8.bf16 %v554_v6  ;;  %v9836_v16 = vunpack.c.h.s8.bf16 %v551_v12  ;;  %v9840_v22 = vunpack.c.l.s8.bf16 %v551_v12 }
 0x126   : > { %9869 = vmatprep.subr.bf16.mxu1 %v9868_v15  ;;  %v9898_v15 = vunpack.c.l.s8.bf16 %v586_v7  ;;  %v9900_v17 = vunpack.c.h.s8.bf16 %v583_v13  ;;  %v9904_v23 = vunpack.c.l.s8.bf16 %v583_v13  ;;  %v603_v6 = vld [vmem:[%s12289_s28 + $0x848] sm:$0xff] }
 0x127   : > { %v635_v7 = vld [vmem:[%s12289_s28 + $0x948] sm:$0xff]  ;;  %v9924_v12 = vunpack.c.h.s8.bf16 %v603_v6 }
 0x128   : > { %9807 = vmatpush1.bf16.msra.mxu0 %v9806_v18  ;;  %v550_v18 = vld [vmem:[%s12289_s28 + $0x6a0] sm:$0xff]  ;;  %v9988_v13 = vunpack.c.h.s8.bf16 %v635_v7 }
 0x129   : > { %9871 = vmatpush1.bf16.msra.mxu1 %v9870_v19  ;;  %9809 = vmatprep.subr.bf16.mxu0 %v9808_v20  ;;  %v582_v19 = vld [vmem:[%s12289_s28 + $0x7a0] sm:$0xff]  ;;  %v9838_v20 = vunpack.c.h.s8.bf16 %v550_v18 }
 0x12a   : > { %9873 = vmatprep.subr.bf16.mxu1 %v9872_v21  ;;  %v9902_v21 = vunpack.c.h.s8.bf16 %v582_v19 }
 0x12c   : > { %9811 = vmatpush1.bf16.msra.mxu0 %v9810_v24  ;;  %v547_v24 = vld [vmem:[%s12289_s28 + $0x688] sm:$0xff] }
 0x12d   : > { %9875 = vmatpush1.bf16.msra.mxu1 %v9874_v25  ;;  %9813 = vmatprep.subr.bf16.mxu0 %v9812_v27  ;;  %v579_v25 = vld [vmem:[%s12289_s28 + $0x788] sm:$0xff]  ;;  %v9842_v27 = vunpack.c.l.s8.bf16 %v550_v18  ;;  %v9844_v29 = vunpack.c.h.s8.bf16 %v547_v24  ;;  %v9848_v37 = vunpack.c.l.s8.bf16 %v547_v24  ;;  %v9928_v18 = vunpack.c.l.s8.bf16 %v603_v6  ;;  %v622_v6 = vld [vmem:[%s12289_s28 + $0x8e0] sm:$0xff] }
 0x12e   : > { %9877 = vmatprep.subr.bf16.mxu1 %v9876_v28  ;;  %v9906_v28 = vunpack.c.l.s8.bf16 %v582_v19  ;;  %v9908_v30 = vunpack.c.h.s8.bf16 %v579_v25  ;;  %v9992_v19 = vunpack.c.l.s8.bf16 %v635_v7  ;;  %v654_v7 = vld [vmem:[%s12289_s28 + $0x9e0] sm:$0xff] }
 0x130   : > { %9815 = vmatpush1.bf16.msra.mxu0 %v9814_v31  ;;  %v546_v31 = vld [vmem:[%s12289_s28 + $0x680] sm:$0xff] }
 0x131   : > { %9879 = vmatpush1.bf16.msra.mxu1 %v9878_v32  ;;  %9817 = vmatprep.subr.bf16.mxu0 %v9816_v33  ;;  %v578_v32 = vld [vmem:[%s12289_s28 + $0x780] sm:$0xff]  ;;  %v9850_v49 = vunpack.c.l.s8.bf16 %v546_v31 }
 0x132   : > { %9881 = vmatprep.subr.bf16.mxu1 %v9880_v34  ;;  %v5526_v33 = vld [vmem:[%s13343_s0 + $0x20] sm:$0xff]  ;;  %v9846_v34 = vunpack.c.h.s8.bf16 %v546_v31  ;;  %v9910_v36 = vunpack.c.h.s8.bf16 %v578_v32  ;;  %v9914_v50 = vunpack.c.l.s8.bf16 %v578_v32 }
 0x133   : > { %v12524_v62 = vrot.slane %v5526_v33, %v12316_v35 }
 0x134   : > { %9819 = vmatpush1.bf16.msra.mxu0 %v9818_v38  ;;  %v9912_v38 = vunpack.c.l.s8.bf16 %v579_v25 }
 0x135   : > { %9883 = vmatpush1.bf16.msra.mxu1 %v9882_v39  ;;  %9821 = vmatprep.subr.bf16.mxu0 %v9820_v40  ;;  %v607_v39 = vld [vmem:[%s12289_s28 + $0x868] sm:$0xff] }
 0x136   : > { %9885 = vmatprep.subr.bf16.mxu1 %v9884_v42  ;;  %v639_v40 = vld [vmem:[%s12289_s28 + $0x968] sm:$0xff]  ;;  %v5608_v42 = vcombine.high %v5526_v33, %v5526_v33 }
 0x137   : > { %v595_v33 = vld [vmem:[%s12289_s28 + $0x808] sm:$0xff] }
 0x138   : > { %9823 = vmatpush2.bf16.msra.mxu0 %v9822_v51  ;;  %v9916_v51 = vunpack.c.h.s8.bf16 %v607_v39  ;;  %v12527_v63 = vrot.slane %v5608_v42, %v12316_v35  ;;  %v626_v42 = vld [vmem:[%s12289_s28 + $0x900] sm:$0xff] }
 0x139   : > { %9887 = vmatpush2.bf16.msra.mxu1 %v9886_v52  ;;  %9825 = vmatprep.subr.bf16.mxu0 %v9824_v54  ;;  %v9980_v52 = vunpack.c.h.s8.bf16 %v639_v40  ;;  %v606_v54 = vld [vmem:[%s12289_s28 + $0x860] sm:$0xff] }
 0x13a   : > { %9889 = vmatprep.subr.bf16.mxu1 %v9888_v55  ;;  %v638_v55 = vld [vmem:[%s12289_s28 + $0x960] sm:$0xff] }
 0x13c   : > { %9827 = vmatpush2.bf16.msra.mxu0 %v9826_v0  ;;  %v9918_v0 = vunpack.c.h.s8.bf16 %v606_v54 }
 0x13d   : > { %9891 = vmatpush2.bf16.msra.mxu1 %v9890_v1  ;;  %9829 = vmatprep.subr.bf16.mxu0 %v9828_v4  ;;  %v9982_v1 = vunpack.c.h.s8.bf16 %v638_v55  ;;  %v9920_v4 = vunpack.c.l.s8.bf16 %v607_v39 }
 0x13e   : > { %9893 = vmatprep.subr.bf16.mxu1 %v9892_v5  ;;  %v9984_v5 = vunpack.c.l.s8.bf16 %v639_v40  ;;  %v594_v40 = vld [vmem:[%s12289_s28 + $0x800] sm:$0xff] }
 0x140   : > { %9831 = vmatpush2.bf16.msra.mxu0 %v9830_v8  ;;  %v12533_v8 = vcombine.high %v12524_v62, %v12524_v62 }
 0x141   : > { %9895 = vmatpush2.bf16.msra.mxu1 %v9894_v9  ;;  %9833 = vmatprep.subr.bf16.mxu0 %v9832_v10  ;;  %v12537_v9 = vcombine.high %v12527_v63, %v12527_v63  ;;  %v9922_v10 = vunpack.c.l.s8.bf16 %v606_v54  ;;  %v623_v54 = vld [vmem:[%s12289_s28 + $0x8e8] sm:$0xff] }
 0x142   : > { %9897 = vmatprep.subr.bf16.mxu1 %v9896_v11  ;;  %v9986_v11 = vunpack.c.l.s8.bf16 %v638_v55  ;;  %v655_v55 = vld [vmem:[%s12289_s28 + $0x9e8] sm:$0xff] }
 0x144   : > { %9835 = vmatpush2.bf16.msra.mxu0 %v9834_v14  ;;  %v602_v14 = vld [vmem:[%s12289_s28 + $0x840] sm:$0xff] }
 0x145   : > { %9899 = vmatpush2.bf16.msra.mxu1 %v9898_v15  ;;  %9837 = vmatprep.subr.bf16.mxu0 %v9836_v16  ;;  %v634_v15 = vld [vmem:[%s12289_s28 + $0x940] sm:$0xff]  ;;  %v9926_v16 = vunpack.c.h.s8.bf16 %v602_v14 }
 0x146   : > { %9901 = vmatprep.subr.bf16.mxu1 %v9900_v17  ;;  %v9990_v17 = vunpack.c.h.s8.bf16 %v634_v15 }
 0x148   : > { %9839 = vmatpush2.bf16.msra.mxu0 %v9838_v20  ;;  %v599_v20 = vld [vmem:[%s12289_s28 + $0x828] sm:$0xff] }
 0x149   : > { %9903 = vmatpush2.bf16.msra.mxu1 %v9902_v21  ;;  %9841 = vmatprep.subr.bf16.mxu0 %v9840_v22  ;;  %v631_v21 = vld [vmem:[%s12289_s28 + $0x928] sm:$0xff]  ;;  %v9930_v22 = vunpack.c.l.s8.bf16 %v602_v14  ;;  %v9932_v24 = vunpack.c.h.s8.bf16 %v599_v20  ;;  %v9936_v31 = vunpack.c.l.s8.bf16 %v599_v20  ;;  %v618_v20 = vld [vmem:[%s12289_s28 + $0x8c0] sm:$0xff] }
 0x14a   : > { %9905 = vmatprep.subr.bf16.mxu1 %v9904_v23  ;;  %v9994_v23 = vunpack.c.l.s8.bf16 %v634_v15  ;;  %v9996_v25 = vunpack.c.h.s8.bf16 %v631_v21  ;;  %v10000_v32 = vunpack.c.l.s8.bf16 %v631_v21  ;;  %v619_v14 = vld [vmem:[%s12289_s28 + $0x8c8] sm:$0xff]  ;;  %v650_v21 = vld [vmem:[%s12289_s28 + $0x9c0] sm:$0xff] }
 0x14b   : > { %v651_v15 = vld [vmem:[%s12289_s28 + $0x9c8] sm:$0xff] }
 0x14c   : > { %9843 = vmatpush2.bf16.msra.mxu0 %v9842_v27  ;;  %v598_v27 = vld [vmem:[%s12289_s28 + $0x820] sm:$0xff] }
 0x14d   : > { %9907 = vmatpush2.bf16.msra.mxu1 %v9906_v28  ;;  %9845 = vmatprep.subr.bf16.mxu0 %v9844_v29  ;;  %v630_v28 = vld [vmem:[%s12289_s28 + $0x920] sm:$0xff]  ;;  %v9934_v29 = vunpack.c.h.s8.bf16 %v598_v27 }
 0x14e   : > { %9909 = vmatprep.subr.bf16.mxu1 %v9908_v30  ;;  %v9998_v30 = vunpack.c.h.s8.bf16 %v630_v28 }
 0x150   : > { %9847 = vmatpush2.bf16.msra.mxu0 %v9846_v34  ;;  %v627_v34 = vld [vmem:[%s12289_s28 + $0x908] sm:$0xff] }
 0x151   : > { %9911 = vmatpush2.bf16.msra.mxu1 %v9910_v36  ;;  %9849 = vmatprep.subr.bf16.mxu0 %v9848_v37  ;;  %v9938_v36 = vunpack.c.l.s8.bf16 %v598_v27  ;;  %v10002_v37 = vunpack.c.l.s8.bf16 %v630_v28  ;;  %v10004_v39 = vunpack.c.h.s8.bf16 %v627_v34  ;;  %v615_v27 = vld [vmem:[%s12289_s28 + $0x8a8] sm:$0xff] }
 0x152   : > { %9913 = vmatprep.subr.bf16.mxu1 %v9912_v38  ;;  %v9940_v38 = vunpack.c.h.s8.bf16 %v595_v33  ;;  %v647_v28 = vld [vmem:[%s12289_s28 + $0x9a8] sm:$0xff] }
 0x154   : > { %9851 = vmatpush2.bf16.msra.mxu0 %v9850_v49  ;;  %v9942_v49 = vunpack.c.h.s8.bf16 %v594_v40 }
 0x155   : > { %9915 = vmatpush2.bf16.msra.mxu1 %v9914_v50  ;;  %9917 = vmatprep.subr.bf16.mxu0 %v9916_v51  ;;  %v10006_v50 = vunpack.c.h.s8.bf16 %v626_v42  ;;  %v9944_v51 = vunpack.c.l.s8.bf16 %v595_v33  ;;  %v614_v33 = vld [vmem:[%s12289_s28 + $0x8a0] sm:$0xff] }
 0x156   : > { %9981 = vmatprep.subr.bf16.mxu1 %v9980_v52  ;;  %v10008_v52 = vunpack.c.l.s8.bf16 %v627_v34  ;;  %v646_v34 = vld [vmem:[%s12289_s28 + $0x9a0] sm:$0xff] }
 0x157   : > { %6220 = vmatmul.mubr.f32.vlgmr.msra.gmra.mxu0 %v12471_v43 }
 0x158   : > { %6291 = vmatmul.mubr.f32.vlgmr.msra.gmra.mxu1 %v12474_v44  ;;  %9919 = vmatpush1.bf16.msra.mxu0 %v9918_v0  ;;  %v9946_v0 = vunpack.c.l.s8.bf16 %v594_v40  ;;  %v611_v40 = vld [vmem:[%s12289_s28 + $0x888] sm:$0xff] }
 0x159   : > { %9983 = vmatpush1.bf16.msra.mxu1 %v9982_v1  ;;  %9921 = vmatprep.subr.bf16.mxu0 %v9920_v4  ;;  %v10010_v1 = vunpack.c.l.s8.bf16 %v626_v42  ;;  %v9948_v4 = vunpack.c.h.s8.bf16 %v623_v54  ;;  %v643_v42 = vld [vmem:[%s12289_s28 + $0x988] sm:$0xff] }
 0x15a   : > { %9985 = vmatprep.subr.bf16.mxu1 %v9984_v5  ;;  %6361 = vmatprep.mubr.f32.mxu0 %v12533_v8  ;;  %v10012_v5 = vunpack.c.h.s8.bf16 %v655_v55 }
 0x15b   : > { %6432 = vmatprep.mubr.f32.mxu1 %v12537_v9 }
 0x15c   : > { %9923 = vmatpush1.bf16.msra.mxu0 %v9922_v10  ;;  %v9950_v10 = vunpack.c.h.s8.bf16 %v622_v6 }
 0x15d   : > { %9987 = vmatpush1.bf16.msra.mxu1 %v9986_v11  ;;  %9925 = vmatprep.subr.bf16.mxu0 %v9924_v12  ;;  %v10014_v11 = vunpack.c.h.s8.bf16 %v654_v7  ;;  %v9952_v12 = vunpack.c.l.s8.bf16 %v623_v54  ;;  %v610_v54 = vld [vmem:[%s12289_s28 + $0x880] sm:$0xff] }
 0x15e   : > { %9989 = vmatprep.subr.bf16.mxu1 %v9988_v13  ;;  %v10016_v13 = vunpack.c.l.s8.bf16 %v655_v55  ;;  %v642_v55 = vld [vmem:[%s12289_s28 + $0x980] sm:$0xff] }
 0x160   : > { %9927 = vmatpush1.bf16.msra.mxu0 %v9926_v16  ;;  %v9954_v16 = vunpack.c.l.s8.bf16 %v622_v6  ;;  %v10040_v6 = vunpack.c.l.s8.bf16 %v643_v42 }
 0x161   : > { %9991 = vmatpush1.bf16.msra.mxu1 %v9990_v17  ;;  %9929 = vmatprep.subr.bf16.mxu0 %v9928_v18  ;;  %v10018_v17 = vunpack.c.l.s8.bf16 %v654_v7  ;;  %v9956_v18 = vunpack.c.h.s8.bf16 %v619_v14  ;;  %v671_v7 = vld [vmem:[%s12289_s28 + $0xa68] sm:$0xff] }
 0x162   : > { %9993 = vmatprep.subr.bf16.mxu1 %v9992_v19  ;;  %v10020_v19 = vunpack.c.h.s8.bf16 %v651_v15 }
 0x164   : > { %9931 = vmatpush1.bf16.msra.mxu0 %v9930_v22  ;;  %v9958_v22 = vunpack.c.h.s8.bf16 %v618_v20 }
 0x165   : > { %9995 = vmatpush1.bf16.msra.mxu1 %v9994_v23  ;;  %9933 = vmatprep.subr.bf16.mxu0 %v9932_v24  ;;  %v10022_v23 = vunpack.c.h.s8.bf16 %v650_v21  ;;  %v9960_v24 = vunpack.c.l.s8.bf16 %v619_v14  ;;  %v10044_v14 = vunpack.c.h.s8.bf16 %v671_v7 }
 0x166   : > { %9997 = vmatprep.subr.bf16.mxu1 %v9996_v25  ;;  %v10024_v25 = vunpack.c.l.s8.bf16 %v651_v15 }
 0x168   : > { %9935 = vmatpush1.bf16.msra.mxu0 %v9934_v29  ;;  %v9962_v29 = vunpack.c.l.s8.bf16 %v618_v20 }
 0x169   : > { %9999 = vmatpush1.bf16.msra.mxu1 %v9998_v30  ;;  %9937 = vmatprep.subr.bf16.mxu0 %v9936_v31  ;;  %v10026_v30 = vunpack.c.l.s8.bf16 %v650_v21  ;;  %v9964_v31 = vunpack.c.h.s8.bf16 %v615_v27 }
 0x16a   : > { %10001 = vmatprep.subr.bf16.mxu1 %v10000_v32  ;;  %v10028_v32 = vunpack.c.h.s8.bf16 %v647_v28 }
 0x16c   : > { %9939 = vmatpush1.bf16.msra.mxu0 %v9938_v36  ;;  %v9966_v36 = vunpack.c.h.s8.bf16 %v614_v33 }
 0x16d   : > { %10003 = vmatpush1.bf16.msra.mxu1 %v10002_v37  ;;  %9941 = vmatprep.subr.bf16.mxu0 %v9940_v38  ;;  %v10030_v37 = vunpack.c.h.s8.bf16 %v646_v34  ;;  %v9968_v38 = vunpack.c.l.s8.bf16 %v615_v27 }
 0x16e   : > { %10005 = vmatprep.subr.bf16.mxu1 %v10004_v39  ;;  %v10032_v39 = vunpack.c.l.s8.bf16 %v647_v28 }
 0x170   : > { %9943 = vmatpush1.bf16.msra.mxu0 %v9942_v49  ;;  %v9970_v49 = vunpack.c.l.s8.bf16 %v614_v33  ;;  %v666_v33 = vld [vmem:[%s12289_s28 + $0xa40] sm:$0xff] }
 0x171   : > { %10007 = vmatpush1.bf16.msra.mxu1 %v10006_v50  ;;  %9945 = vmatprep.subr.bf16.mxu0 %v9944_v51  ;;  %v10034_v50 = vunpack.c.l.s8.bf16 %v646_v34  ;;  %v9972_v51 = vunpack.c.h.s8.bf16 %v611_v40  ;;  %v698_v34 = vld [vmem:[%s12289_s28 + $0xb40] sm:$0xff] }
 0x172   : > { %10009 = vmatprep.subr.bf16.mxu1 %v10008_v52  ;;  %v10036_v52 = vunpack.c.h.s8.bf16 %v643_v42  ;;  %v695_v42 = vld [vmem:[%s12289_s28 + $0xb28] sm:$0xff] }
 0x174   : > { %9947 = vmatpush1.bf16.msra.mxu0 %v9946_v0  ;;  %v5527_v0 = vld [vmem:[%s13343_s0 + $0x28] sm:$0xff] }
 0x175   : > { %10011 = vmatpush1.bf16.msra.mxu1 %v10010_v1  ;;  %9949 = vmatprep.subr.bf16.mxu0 %v9948_v4  ;;  %v9974_v1 = vunpack.c.h.s8.bf16 %v610_v54  ;;  %v10038_v4 = vunpack.c.h.s8.bf16 %v642_v55 }
 0x176   : > { %10013 = vmatprep.subr.bf16.mxu1 %v10012_v5  ;;  %v9976_v5 = vunpack.c.l.s8.bf16 %v611_v40  ;;  %v663_v40 = vld [vmem:[%s12289_s28 + $0xa28] sm:$0xff] }
 0x178   : > { %9951 = vmatpush2.bf16.msra.mxu0 %v9950_v10  ;;  %v703_v10 = vld [vmem:[%s12289_s28 + $0xb68] sm:$0xff] }
 0x179   : > { %10015 = vmatpush2.bf16.msra.mxu1 %v10014_v11  ;;  %9953 = vmatprep.subr.bf16.mxu0 %v9952_v12  ;;  %v5625_v11 = vcombine.high %v5527_v0, %v5527_v0  ;;  %v9978_v12 = vunpack.c.l.s8.bf16 %v610_v54  ;;  %v10108_v15 = vunpack.c.h.s8.bf16 %v703_v10  ;;  %v662_v54 = vld [vmem:[%s12289_s28 + $0xa20] sm:$0xff] }
 0x17a   : > { %10017 = vmatprep.subr.bf16.mxu1 %v10016_v13  ;;  %v10042_v13 = vunpack.c.l.s8.bf16 %v642_v55  ;;  %v694_v55 = vld [vmem:[%s12289_s28 + $0xb20] sm:$0xff] }
 0x17c   : > { %9955 = vmatpush2.bf16.msra.mxu0 %v9954_v16  ;;  %v670_v16 = vld [vmem:[%s12289_s28 + $0xa60] sm:$0xff] }
 0x17d   : > { %10019 = vmatpush2.bf16.msra.mxu1 %v10018_v17  ;;  %9957 = vmatprep.subr.bf16.mxu0 %v9956_v18  ;;  %v702_v17 = vld [vmem:[%s12289_s28 + $0xb60] sm:$0xff]  ;;  %v12577_v18 = vrot.slane %v5527_v0, %v12316_v35  ;;  %v10046_v20 = vunpack.c.h.s8.bf16 %v670_v16  ;;  %v10062_v0 = vunpack.c.h.s8.bf16 %v662_v54 }
 0x17e   : > { %10021 = vmatprep.subr.bf16.mxu1 %v10020_v19  ;;  %v12580_v19 = vrot.slane %v5625_v11, %v12316_v35  ;;  %v10110_v21 = vunpack.c.h.s8.bf16 %v702_v17  ;;  %v10130_v11 = vunpack.c.l.s8.bf16 %v694_v55 }
 0x17f   : > { %v12586_v27 = vcombine.high %v12577_v18, %v12577_v18 }
 0x180   : > { %9959 = vmatpush2.bf16.msra.mxu0 %v9958_v22  ;;  %v10048_v22 = vunpack.c.l.s8.bf16 %v671_v7  ;;  %v12590_v28 = vcombine.high %v12580_v19, %v12580_v19  ;;  %v691_v7 = vld [vmem:[%s12289_s28 + $0xb08] sm:$0xff] }
 0x181   : > { %10023 = vmatpush2.bf16.msra.mxu1 %v10022_v23  ;;  %9961 = vmatprep.subr.bf16.mxu0 %v9960_v24  ;;  %v10112_v23 = vunpack.c.l.s8.bf16 %v703_v10  ;;  %v667_v24 = vld [vmem:[%s12289_s28 + $0xa48] sm:$0xff]  ;;  %v10066_v10 = vunpack.c.l.s8.bf16 %v662_v54 }
 0x182   : > { %10025 = vmatprep.subr.bf16.mxu1 %v10024_v25  ;;  %v699_v25 = vld [vmem:[%s12289_s28 + $0xb48] sm:$0xff] }
 0x184   : > { %9963 = vmatpush2.bf16.msra.mxu0 %v9962_v29  ;;  %v10050_v29 = vunpack.c.l.s8.bf16 %v670_v16 }
 0x185   : > { %10027 = vmatpush2.bf16.msra.mxu1 %v10026_v30  ;;  %9965 = vmatprep.subr.bf16.mxu0 %v9964_v31  ;;  %v10114_v30 = vunpack.c.l.s8.bf16 %v702_v17  ;;  %v10052_v31 = vunpack.c.h.s8.bf16 %v667_v24 }
 0x186   : > { %10029 = vmatprep.subr.bf16.mxu1 %v10028_v32  ;;  %v10116_v32 = vunpack.c.h.s8.bf16 %v699_v25 }
 0x188   : > { %9967 = vmatpush2.bf16.msra.mxu0 %v9966_v36  ;;  %v10054_v36 = vunpack.c.h.s8.bf16 %v666_v33 }
 0x189   : > { %10031 = vmatpush2.bf16.msra.mxu1 %v10030_v37  ;;  %9969 = vmatprep.subr.bf16.mxu0 %v9968_v38  ;;  %v10118_v37 = vunpack.c.h.s8.bf16 %v698_v34  ;;  %v10056_v38 = vunpack.c.l.s8.bf16 %v667_v24 }
 0x18a   : > { %10033 = vmatprep.subr.bf16.mxu1 %v10032_v39  ;;  %v10120_v39 = vunpack.c.l.s8.bf16 %v699_v25 }
 0x18c   : > { %9971 = vmatpush2.bf16.msra.mxu0 %v9970_v49  ;;  %v10058_v49 = vunpack.c.l.s8.bf16 %v666_v33 }
 0x18d   : > { %10035 = vmatpush2.bf16.msra.mxu1 %v10034_v50  ;;  %9973 = vmatprep.subr.bf16.mxu0 %v9972_v51  ;;  %v10122_v50 = vunpack.c.l.s8.bf16 %v698_v34  ;;  %v10060_v51 = vunpack.c.h.s8.bf16 %v663_v40 }
 0x18e   : > { %10037 = vmatprep.subr.bf16.mxu1 %v10036_v52  ;;  %v10124_v52 = vunpack.c.h.s8.bf16 %v695_v42 }
 0x190   : > { %9975 = vmatpush2.bf16.msra.mxu0 %v9974_v1  ;;  %v10126_v1 = vunpack.c.h.s8.bf16 %v694_v55 }
 0x191   : > { %10039 = vmatpush2.bf16.msra.mxu1 %v10038_v4  ;;  %9977 = vmatprep.subr.bf16.mxu0 %v9976_v5  ;;  %v10064_v4 = vunpack.c.l.s8.bf16 %v663_v40  ;;  %v10128_v5 = vunpack.c.l.s8.bf16 %v695_v42 }
 0x192   : > { %10041 = vmatprep.subr.bf16.mxu1 %v10040_v6  ;;  %v659_v6 = vld [vmem:[%s12289_s28 + $0xa08] sm:$0xff] }
 0x194   : > { %9979 = vmatpush2.bf16.msra.mxu0 %v9978_v12  ;;  %v10068_v12 = vunpack.c.h.s8.bf16 %v659_v6 }
 0x195   : > { %10043 = vmatpush2.bf16.msra.mxu1 %v10042_v13  ;;  %10045 = vmatprep.subr.bf16.mxu0 %v10044_v14  ;;  %v10132_v13 = vunpack.c.h.s8.bf16 %v691_v7  ;;  %v658_v14 = vld [vmem:[%s12289_s28 + $0xa00] sm:$0xff] }
 0x196   : > { %10109 = vmatprep.subr.bf16.mxu1 %v10108_v15  ;;  %v690_v15 = vld [vmem:[%s12289_s28 + $0xb00] sm:$0xff]  ;;  %v10070_v16 = vunpack.c.h.s8.bf16 %v658_v14  ;;  %v10074_v24 = vunpack.c.l.s8.bf16 %v658_v14 }
 0x197   : > { %6362 = vmatmul.mubr.f32.vlgmr.msra.gmra.mxu0 %v12524_v62  ;;  %v10134_v17 = vunpack.c.h.s8.bf16 %v690_v15  ;;  %v10138_v25 = vunpack.c.l.s8.bf16 %v690_v15 }
 0x198   : > { %6433 = vmatmul.mubr.f32.vlgmr.msra.gmra.mxu1 %v12527_v63  ;;  %10047 = vmatpush1.bf16.msra.mxu0 %v10046_v20  ;;  %v10072_v20 = vunpack.c.l.s8.bf16 %v659_v6 }
 0x199   : > { %10111 = vmatpush1.bf16.msra.mxu1 %v10110_v21  ;;  %10049 = vmatprep.subr.bf16.mxu0 %v10048_v22  ;;  %v10136_v21 = vunpack.c.l.s8.bf16 %v691_v7  ;;  %v687_v22 = vld [vmem:[%s12289_s28 + $0xae8] sm:$0xff] }
 0x19a   : > { %10113 = vmatprep.subr.bf16.mxu1 %v10112_v23  ;;  %6503 = vmatprep.mubr.f32.mxu0 %v12586_v27  ;;  %v719_v23 = vld [vmem:[%s12289_s28 + $0xbe8] sm:$0xff] }
 0x19b   : > { %6574 = vmatprep.mubr.f32.mxu1 %v12590_v28 }
 0x19c   : > { %10051 = vmatpush1.bf16.msra.mxu0 %v10050_v29  ;;  %v10076_v29 = vunpack.c.h.s8.bf16 %v687_v22 }
 0x19d   : > { %10115 = vmatpush1.bf16.msra.mxu1 %v10114_v30  ;;  %10053 = vmatprep.subr.bf16.mxu0 %v10052_v31  ;;  %v10140_v30 = vunpack.c.h.s8.bf16 %v719_v23  ;;  %v686_v31 = vld [vmem:[%s12289_s28 + $0xae0] sm:$0xff] }
 0x19e   : > { %10117 = vmatprep.subr.bf16.mxu1 %v10116_v32  ;;  %v718_v32 = vld [vmem:[%s12289_s28 + $0xbe0] sm:$0xff]  ;;  %v10078_v33 = vunpack.c.h.s8.bf16 %v686_v31  ;;  %v10082_v40 = vunpack.c.l.s8.bf16 %v686_v31  ;;  %v5528_v31 = vld [vmem:[%s13343_s0 + $0x30] sm:$0xff] }
 0x19f   : > { %v10142_v34 = vunpack.c.h.s8.bf16 %v718_v32  ;;  %v10146_v42 = vunpack.c.l.s8.bf16 %v718_v32 }
 0x1a0   : > { %10055 = vmatpush1.bf16.msra.mxu0 %v10054_v36  ;;  %v10080_v36 = vunpack.c.l.s8.bf16 %v687_v22 }
 0x1a1   : > { %10119 = vmatpush1.bf16.msra.mxu1 %v10118_v37  ;;  %10057 = vmatprep.subr.bf16.mxu0 %v10056_v38  ;;  %v10144_v37 = vunpack.c.l.s8.bf16 %v719_v23  ;;  %v683_v38 = vld [vmem:[%s12289_s28 + $0xac8] sm:$0xff] }
 0x1a2   : > { %10121 = vmatprep.subr.bf16.mxu1 %v10120_v39  ;;  %v715_v39 = vld [vmem:[%s12289_s28 + $0xbc8] sm:$0xff] }
 0x1a4   : > { %10059 = vmatpush1.bf16.msra.mxu0 %v10058_v49  ;;  %v10084_v49 = vunpack.c.h.s8.bf16 %v683_v38 }
 0x1a5   : > { %10123 = vmatpush1.bf16.msra.mxu1 %v10122_v50  ;;  %10061 = vmatprep.subr.bf16.mxu0 %v10060_v51  ;;  %v10148_v50 = vunpack.c.h.s8.bf16 %v715_v39  ;;  %v682_v51 = vld [vmem:[%s12289_s28 + $0xac0] sm:$0xff] }
 0x1a6   : > { %10125 = vmatprep.subr.bf16.mxu1 %v10124_v52  ;;  %v714_v52 = vld [vmem:[%s12289_s28 + $0xbc0] sm:$0xff]  ;;  %v10086_v54 = vunpack.c.h.s8.bf16 %v682_v51  ;;  %v10090_v6 = vunpack.c.l.s8.bf16 %v682_v51 }
 0x1a7   : > { %v10150_v55 = vunpack.c.h.s8.bf16 %v714_v52  ;;  %v10154_v7 = vunpack.c.l.s8.bf16 %v714_v52  ;;  %v734_v51 = vld [vmem:[%s12289_s28 + $0xc60] sm:$0xff] }
 0x1a8   : > { %10063 = vmatpush1.bf16.msra.mxu0 %v10062_v0  ;;  %v10088_v0 = vunpack.c.l.s8.bf16 %v683_v38  ;;  %v767_v38 = vld [vmem:[%s12289_s28 + $0xd68] sm:$0xff]  ;;  %v766_v52 = vld [vmem:[%s12289_s28 + $0xd60] sm:$0xff] }
 0x1a9   : > { %10127 = vmatpush1.bf16.msra.mxu1 %v10126_v1  ;;  %10065 = vmatprep.subr.bf16.mxu0 %v10064_v4  ;;  %v10152_v1 = vunpack.c.l.s8.bf16 %v715_v39  ;;  %v679_v4 = vld [vmem:[%s12289_s28 + $0xaa8] sm:$0xff]  ;;  %v5642_v39 = vcombine.high %v5528_v31, %v5528_v31 }
 0x1aa   : > { %10129 = vmatprep.subr.bf16.mxu1 %v10128_v5  ;;  %v711_v5 = vld [vmem:[%s12289_s28 + $0xba8] sm:$0xff] }
 0x1ac   : > { %10067 = vmatpush1.bf16.msra.mxu0 %v10066_v10  ;;  %v10092_v10 = vunpack.c.h.s8.bf16 %v679_v4 }
 0x1ad   : > { %10131 = vmatpush1.bf16.msra.mxu1 %v10130_v11  ;;  %10069 = vmatprep.subr.bf16.mxu0 %v10068_v12  ;;  %v10156_v11 = vunpack.c.h.s8.bf16 %v711_v5  ;;  %v678_v12 = vld [vmem:[%s12289_s28 + $0xaa0] sm:$0xff] }
 0x1ae   : > { %10133 = vmatprep.subr.bf16.mxu1 %v10132_v13  ;;  %v710_v13 = vld [vmem:[%s12289_s28 + $0xba0] sm:$0xff]  ;;  %v10094_v14 = vunpack.c.h.s8.bf16 %v678_v12  ;;  %v10098_v22 = vunpack.c.l.s8.bf16 %v678_v12  ;;  %v10178_v12 = vunpack.c.l.s8.bf16 %v734_v51 }
 0x1af   : > { %v10158_v15 = vunpack.c.h.s8.bf16 %v710_v13  ;;  %v10162_v23 = vunpack.c.l.s8.bf16 %v710_v13  ;;  %v10242_v13 = vunpack.c.l.s8.bf16 %v766_v52 }
 0x1b0   : > { %10071 = vmatpush1.bf16.msra.mxu0 %v10070_v16  ;;  %v10096_v16 = vunpack.c.l.s8.bf16 %v679_v4 }
 0x1b1   : > { %10135 = vmatpush1.bf16.msra.mxu1 %v10134_v17  ;;  %10073 = vmatprep.subr.bf16.mxu0 %v10072_v20  ;;  %v10160_v17 = vunpack.c.l.s8.bf16 %v711_v5  ;;  %v675_v20 = vld [vmem:[%s12289_s28 + $0xa88] sm:$0xff]  ;;  %v10240_v5 = vunpack.c.l.s8.bf16 %v767_v38 }
 0x1b2   : > { %10137 = vmatprep.subr.bf16.mxu1 %v10136_v21  ;;  %v707_v21 = vld [vmem:[%s12289_s28 + $0xb88] sm:$0xff] }
 0x1b4   : > { %10075 = vmatpush1.bf16.msra.mxu0 %v10074_v24  ;;  %v10100_v24 = vunpack.c.h.s8.bf16 %v675_v20 }
 0x1b5   : > { %10139 = vmatpush1.bf16.msra.mxu1 %v10138_v25  ;;  %10077 = vmatprep.subr.bf16.mxu0 %v10076_v29  ;;  %v10164_v25 = vunpack.c.h.s8.bf16 %v707_v21  ;;  %v674_v29 = vld [vmem:[%s12289_s28 + $0xa80] sm:$0xff] }
 0x1b6   : > { %10141 = vmatprep.subr.bf16.mxu1 %v10140_v30  ;;  %v706_v30 = vld [vmem:[%s12289_s28 + $0xb80] sm:$0xff]  ;;  %v10102_v32 = vunpack.c.h.s8.bf16 %v674_v29 }
 0x1b8   : > { %10079 = vmatpush2.bf16.msra.mxu0 %v10078_v33  ;;  %v10166_v33 = vunpack.c.h.s8.bf16 %v706_v30 }
 0x1b9   : > { %10143 = vmatpush2.bf16.msra.mxu1 %v10142_v34  ;;  %10081 = vmatprep.subr.bf16.mxu0 %v10080_v36  ;;  %v10104_v34 = vunpack.c.l.s8.bf16 %v675_v20  ;;  %v10168_v36 = vunpack.c.l.s8.bf16 %v707_v21 }
 0x1ba   : > { %10145 = vmatprep.subr.bf16.mxu1 %v10144_v37  ;;  %v735_v37 = vld [vmem:[%s12289_s28 + $0xc68] sm:$0xff] }
 0x1bb   : > { %v10176_v4 = vunpack.c.l.s8.bf16 %v735_v37 }
 0x1bc   : > { %10083 = vmatpush2.bf16.msra.mxu0 %v10082_v40  ;;  %v10106_v40 = vunpack.c.l.s8.bf16 %v674_v29 }
 0x1bd   : > { %10147 = vmatpush2.bf16.msra.mxu1 %v10146_v42  ;;  %10085 = vmatprep.subr.bf16.mxu0 %v10084_v49  ;;  %v10170_v42 = vunpack.c.l.s8.bf16 %v706_v30  ;;  %v10172_v49 = vunpack.c.h.s8.bf16 %v735_v37 }
 0x1be   : > { %10149 = vmatprep.subr.bf16.mxu1 %v10148_v50  ;;  %v10236_v50 = vunpack.c.h.s8.bf16 %v767_v38 }
 0x1c0   : > { %10087 = vmatpush2.bf16.msra.mxu0 %v10086_v54  ;;  %v12630_v54 = vrot.slane %v5528_v31, %v12316_v35 }
 0x1c1   : > { %10151 = vmatpush2.bf16.msra.mxu1 %v10150_v55  ;;  %10089 = vmatprep.subr.bf16.mxu0 %v10088_v0  ;;  %v12633_v55 = vrot.slane %v5642_v39, %v12316_v35  ;;  %v10174_v0 = vunpack.c.h.s8.bf16 %v734_v51 }
 0x1c2   : > { %10153 = vmatprep.subr.bf16.mxu1 %v10152_v1  ;;  %v10238_v1 = vunpack.c.h.s8.bf16 %v766_v52 }
 0x1c4   : > { %10091 = vmatpush2.bf16.msra.mxu0 %v10090_v6  ;;  %v731_v6 = vld [vmem:[%s12289_s28 + $0xc48] sm:$0xff] }
 0x1c5   : > { %10155 = vmatpush2.bf16.msra.mxu1 %v10154_v7  ;;  %10093 = vmatprep.subr.bf16.mxu0 %v10092_v10  ;;  %v763_v7 = vld [vmem:[%s12289_s28 + $0xd48] sm:$0xff]  ;;  %v12639_v10 = vcombine.high %v12630_v54, %v12630_v54 }
 0x1c6   : > { %10157 = vmatprep.subr.bf16.mxu1 %v10156_v11  ;;  %v12643_v11 = vcombine.high %v12633_v55, %v12633_v55 }
 0x1c8   : > { %10095 = vmatpush2.bf16.msra.mxu0 %v10094_v14  ;;  %v10180_v14 = vunpack.c.h.s8.bf16 %v731_v6 }
 0x1c9   : > { %10159 = vmatpush2.bf16.msra.mxu1 %v10158_v15  ;;  %10097 = vmatprep.subr.bf16.mxu0 %v10096_v16  ;;  %v10244_v15 = vunpack.c.h.s8.bf16 %v763_v7  ;;  %v730_v16 = vld [vmem:[%s12289_s28 + $0xc40] sm:$0xff] }
 0x1ca   : > { %10161 = vmatprep.subr.bf16.mxu1 %v10160_v17  ;;  %v762_v17 = vld [vmem:[%s12289_s28 + $0xd40] sm:$0xff]  ;;  %v10182_v20 = vunpack.c.h.s8.bf16 %v730_v16  ;;  %v10186_v29 = vunpack.c.l.s8.bf16 %v730_v16 }
 0x1cb   : > { %v10246_v21 = vunpack.c.h.s8.bf16 %v762_v17  ;;  %v10250_v30 = vunpack.c.l.s8.bf16 %v762_v17 }
 0x1cc   : > { %10099 = vmatpush2.bf16.msra.mxu0 %v10098_v22  ;;  %v10184_v22 = vunpack.c.l.s8.bf16 %v731_v6 }
 0x1cd   : > { %10163 = vmatpush2.bf16.msra.mxu1 %v10162_v23  ;;  %10101 = vmatprep.subr.bf16.mxu0 %v10100_v24  ;;  %v10248_v23 = vunpack.c.l.s8.bf16 %v763_v7  ;;  %v727_v24 = vld [vmem:[%s12289_s28 + $0xc28] sm:$0xff] }
 0x1ce   : > { %10165 = vmatprep.subr.bf16.mxu1 %v10164_v25  ;;  %v759_v25 = vld [vmem:[%s12289_s28 + $0xd28] sm:$0xff]  ;;  %v10188_v31 = vunpack.c.h.s8.bf16 %v727_v24  ;;  %v10192_v38 = vunpack.c.l.s8.bf16 %v727_v24 }
 0x1cf   : > { %v10256_v39 = vunpack.c.l.s8.bf16 %v759_v25 }
 0x1d0   : > { %10103 = vmatpush2.bf16.msra.mxu0 %v10102_v32  ;;  %v10252_v32 = vunpack.c.h.s8.bf16 %v759_v25 }
 0x1d1   : > { %10167 = vmatpush2.bf16.msra.mxu1 %v10166_v33  ;;  %10105 = vmatprep.subr.bf16.mxu0 %v10104_v34  ;;  %v726_v33 = vld [vmem:[%s12289_s28 + $0xc20] sm:$0xff] }
 0x1d2   : > { %10169 = vmatprep.subr.bf16.mxu1 %v10168_v36  ;;  %v758_v34 = vld [vmem:[%s12289_s28 + $0xd20] sm:$0xff]  ;;  %v10190_v36 = vunpack.c.h.s8.bf16 %v726_v33 }
 0x1d3   : > { %v10254_v37 = vunpack.c.h.s8.bf16 %v758_v34 }
 0x1d4   : > { %10107 = vmatpush2.bf16.msra.mxu0 %v10106_v40  ;;  %v723_v40 = vld [vmem:[%s12289_s28 + $0xc08] sm:$0xff] }
 0x1d5   : > { %10171 = vmatpush2.bf16.msra.mxu1 %v10170_v42  ;;  %10173 = vmatprep.subr.bf16.mxu0 %v10172_v49  ;;  %v755_v42 = vld [vmem:[%s12289_s28 + $0xd08] sm:$0xff]  ;;  %v10194_v49 = vunpack.c.l.s8.bf16 %v726_v33  ;;  %v10196_v51 = vunpack.c.h.s8.bf16 %v723_v40  ;;  %v10200_v6 = vunpack.c.l.s8.bf16 %v723_v40 }
 0x1d6   : > { %10237 = vmatprep.subr.bf16.mxu1 %v10236_v50  ;;  %v10258_v50 = vunpack.c.l.s8.bf16 %v758_v34  ;;  %v10260_v52 = vunpack.c.h.s8.bf16 %v755_v42  ;;  %v10264_v7 = vunpack.c.l.s8.bf16 %v755_v42 }
 0x1d7   : > { %6504 = vmatmul.mubr.f32.vlgmr.msra.gmra.mxu0 %v12577_v18 }
 0x1d8   : > { %6575 = vmatmul.mubr.f32.vlgmr.msra.gmra.mxu1 %v12580_v19  ;;  %10175 = vmatpush1.bf16.msra.mxu0 %v10174_v0  ;;  %v722_v0 = vld [vmem:[%s12289_s28 + $0xc00] sm:$0xff] }
 0x1d9   : > { %10239 = vmatpush1.bf16.msra.mxu1 %v10238_v1  ;;  %10177 = vmatprep.subr.bf16.mxu0 %v10176_v4  ;;  %v754_v1 = vld [vmem:[%s12289_s28 + $0xd00] sm:$0xff]  ;;  %v10198_v4 = vunpack.c.h.s8.bf16 %v722_v0 }
 0x1da   : > { %10241 = vmatprep.subr.bf16.mxu1 %v10240_v5  ;;  %6645 = vmatprep.mubr.f32.mxu0 %v12639_v10  ;;  %v10262_v5 = vunpack.c.h.s8.bf16 %v754_v1 }
 0x1db   : > { %6716 = vmatprep.mubr.f32.mxu1 %v12643_v11 }
 0x1dc   : > { %10179 = vmatpush1.bf16.msra.mxu0 %v10178_v12  ;;  %v751_v12 = vld [vmem:[%s12289_s28 + $0xce8] sm:$0xff] }
 0x1dd   : > { %10243 = vmatpush1.bf16.msra.mxu1 %v10242_v13  ;;  %10181 = vmatprep.subr.bf16.mxu0 %v10180_v14  ;;  %v783_v13 = vld [vmem:[%s12289_s28 + $0xde8] sm:$0xff]  ;;  %v10202_v14 = vunpack.c.l.s8.bf16 %v722_v0  ;;  %v10204_v16 = vunpack.c.h.s8.bf16 %v751_v12  ;;  %v10208_v24 = vunpack.c.l.s8.bf16 %v751_v12 }
 0x1de   : > { %10245 = vmatprep.subr.bf16.mxu1 %v10244_v15  ;;  %v10266_v15 = vunpack.c.l.s8.bf16 %v754_v1  ;;  %v10268_v17 = vunpack.c.h.s8.bf16 %v783_v13  ;;  %v10272_v25 = vunpack.c.l.s8.bf16 %v783_v13 }
 0x1e0   : > { %10183 = vmatpush1.bf16.msra.mxu0 %v10182_v20  ;;  %v750_v20 = vld [vmem:[%s12289_s28 + $0xce0] sm:$0xff] }
 0x1e1   : > { %10247 = vmatpush1.bf16.msra.mxu1 %v10246_v21  ;;  %10185 = vmatprep.subr.bf16.mxu0 %v10184_v22  ;;  %v782_v21 = vld [vmem:[%s12289_s28 + $0xde0] sm:$0xff]  ;;  %v10206_v22 = vunpack.c.h.s8.bf16 %v750_v20 }
 0x1e2   : > { %10249 = vmatprep.subr.bf16.mxu1 %v10248_v23  ;;  %v10270_v23 = vunpack.c.h.s8.bf16 %v782_v21 }
 0x1e4   : > { %10187 = vmatpush1.bf16.msra.mxu0 %v10186_v29  ;;  %v747_v29 = vld [vmem:[%s12289_s28 + $0xcc8] sm:$0xff] }
 0x1e5   : > { %10251 = vmatpush1.bf16.msra.mxu1 %v10250_v30  ;;  %10189 = vmatprep.subr.bf16.mxu0 %v10188_v31  ;;  %v779_v30 = vld [vmem:[%s12289_s28 + $0xdc8] sm:$0xff]  ;;  %v10210_v31 = vunpack.c.l.s8.bf16 %v750_v20  ;;  %v10212_v33 = vunpack.c.h.s8.bf16 %v747_v29  ;;  %v10216_v40 = vunpack.c.l.s8.bf16 %v747_v29 }
 0x1e6   : > { %10253 = vmatprep.subr.bf16.mxu1 %v10252_v32  ;;  %v10274_v32 = vunpack.c.l.s8.bf16 %v782_v21  ;;  %v10276_v34 = vunpack.c.h.s8.bf16 %v779_v30  ;;  %v10280_v42 = vunpack.c.l.s8.bf16 %v779_v30 }
 0x1e8   : > { %10191 = vmatpush1.bf16.msra.mxu0 %v10190_v36  ;;  %v746_v36 = vld [vmem:[%s12289_s28 + $0xcc0] sm:$0xff] }
 0x1e9   : > { %10255 = vmatpush1.bf16.msra.mxu1 %v10254_v37  ;;  %10193 = vmatprep.subr.bf16.mxu0 %v10192_v38  ;;  %v778_v37 = vld [vmem:[%s12289_s28 + $0xdc0] sm:$0xff]  ;;  %v10214_v38 = vunpack.c.h.s8.bf16 %v746_v36 }
 0x1ea   : > { %10257 = vmatprep.subr.bf16.mxu1 %v10256_v39  ;;  %v10278_v39 = vunpack.c.h.s8.bf16 %v778_v37 }
 0x1ec   : > { %10195 = vmatpush1.bf16.msra.mxu0 %v10194_v49  ;;  %v743_v49 = vld [vmem:[%s12289_s28 + $0xca8] sm:$0xff] }
 0x1ed   : > { %10259 = vmatpush1.bf16.msra.mxu1 %v10258_v50  ;;  %10197 = vmatprep.subr.bf16.mxu0 %v10196_v51  ;;  %v775_v50 = vld [vmem:[%s12289_s28 + $0xda8] sm:$0xff]  ;;  %v10218_v51 = vunpack.c.l.s8.bf16 %v746_v36  ;;  %v10220_v0 = vunpack.c.h.s8.bf16 %v743_v49  ;;  %v10224_v12 = vunpack.c.l.s8.bf16 %v743_v49 }
 0x1ee   : > { %10261 = vmatprep.subr.bf16.mxu1 %v10260_v52  ;;  %v10282_v52 = vunpack.c.l.s8.bf16 %v778_v37  ;;  %v10284_v1 = vunpack.c.h.s8.bf16 %v775_v50  ;;  %v10288_v13 = vunpack.c.l.s8.bf16 %v775_v50 }
 0x1f0   : > { %10199 = vmatpush1.bf16.msra.mxu0 %v10198_v4  ;;  %v742_v4 = vld [vmem:[%s12289_s28 + $0xca0] sm:$0xff] }
 0x1f1   : > { %10263 = vmatpush1.bf16.msra.mxu1 %v10262_v5  ;;  %10201 = vmatprep.subr.bf16.mxu0 %v10200_v6  ;;  %v774_v5 = vld [vmem:[%s12289_s28 + $0xda0] sm:$0xff]  ;;  %v10222_v6 = vunpack.c.h.s8.bf16 %v742_v4 }
 0x1f2   : > { %10265 = vmatprep.subr.bf16.mxu1 %v10264_v7  ;;  %v10286_v7 = vunpack.c.h.s8.bf16 %v774_v5 }
 0x1f4   : > { %10203 = vmatpush1.bf16.msra.mxu0 %v10202_v14  ;;  %v739_v14 = vld [vmem:[%s12289_s28 + $0xc88] sm:$0xff] }
 0x1f5   : > { %10267 = vmatpush1.bf16.msra.mxu1 %v10266_v15  ;;  %10205 = vmatprep.subr.bf16.mxu0 %v10204_v16  ;;  %v771_v15 = vld [vmem:[%s12289_s28 + $0xd88] sm:$0xff]  ;;  %v10226_v16 = vunpack.c.l.s8.bf16 %v742_v4  ;;  %v10228_v20 = vunpack.c.h.s8.bf16 %v739_v14  ;;  %v10232_v30 = vunpack.c.l.s8.bf16 %v739_v14 }
 0x1f6   : > { %10269 = vmatprep.subr.bf16.mxu1 %v10268_v17  ;;  %v10290_v17 = vunpack.c.l.s8.bf16 %v774_v5  ;;  %v10292_v21 = vunpack.c.h.s8.bf16 %v771_v15  ;;  %v795_v4 = vld [vmem:[%s12289_s28 + $0xe48] sm:$0xff] }
 0x1f7   : > { %v827_v5 = vld [vmem:[%s12289_s28 + $0xf48] sm:$0xff]  ;;  %v10308_v14 = vunpack.c.h.s8.bf16 %v795_v4 }
 0x1f8   : > { %10207 = vmatpush2.bf16.msra.mxu0 %v10206_v22  ;;  %v738_v22 = vld [vmem:[%s12289_s28 + $0xc80] sm:$0xff] }
 0x1f9   : > { %10271 = vmatpush2.bf16.msra.mxu1 %v10270_v23  ;;  %10209 = vmatprep.subr.bf16.mxu0 %v10208_v24  ;;  %v770_v23 = vld [vmem:[%s12289_s28 + $0xd80] sm:$0xff]  ;;  %v5529_v24 = vld [vmem:[%s13343_s0 + $0x38] sm:$0xff]  ;;  %v10234_v36 = vunpack.c.l.s8.bf16 %v738_v22 }
 0x1fa   : > { %10273 = vmatprep.subr.bf16.mxu1 %v10272_v25  ;;  %v10230_v25 = vunpack.c.h.s8.bf16 %v738_v22  ;;  %v10294_v29 = vunpack.c.h.s8.bf16 %v770_v23  ;;  %v10298_v37 = vunpack.c.l.s8.bf16 %v770_v23  ;;  %v12683_v49 = vrot.slane %v5529_v24, %v12316_v35 }
 0x1fb   : > { %v10312_v22 = vunpack.c.l.s8.bf16 %v795_v4  ;;  %v10376_v23 = vunpack.c.l.s8.bf16 %v827_v5  ;;  %v786_v4 = vld [vmem:[%s12289_s28 + $0xe00] sm:$0xff] }
 0x1fc   : > { %10211 = vmatpush2.bf16.msra.mxu0 %v10210_v31  ;;  %v10296_v31 = vunpack.c.l.s8.bf16 %v771_v15  ;;  %v10372_v15 = vunpack.c.h.s8.bf16 %v827_v5  ;;  %v818_v5 = vld [vmem:[%s12289_s28 + $0xf00] sm:$0xff] }
 0x1fd   : > { %10275 = vmatpush2.bf16.msra.mxu1 %v10274_v32  ;;  %10213 = vmatprep.subr.bf16.mxu0 %v10212_v33  ;;  %v799_v32 = vld [vmem:[%s12289_s28 + $0xe68] sm:$0xff] }
 0x1fe   : > { %10277 = vmatprep.subr.bf16.mxu1 %v10276_v34  ;;  %v831_v33 = vld [vmem:[%s12289_s28 + $0xf68] sm:$0xff]  ;;  %v5659_v34 = vcombine.high %v5529_v24, %v5529_v24 }
 0x1ff   : > { %v791_v24 = vld [vmem:[%s12289_s28 + $0xe28] sm:$0xff] }
 0x200   : > { %10215 = vmatpush2.bf16.msra.mxu0 %v10214_v38  ;;  %v10300_v38 = vunpack.c.h.s8.bf16 %v799_v32  ;;  %v12686_v50 = vrot.slane %v5659_v34, %v12316_v35  ;;  %v822_v34 = vld [vmem:[%s12289_s28 + $0xf20] sm:$0xff] }
 0x201   : > { %10279 = vmatpush2.bf16.msra.mxu1 %v10278_v39  ;;  %10217 = vmatprep.subr.bf16.mxu0 %v10216_v40  ;;  %v10364_v39 = vunpack.c.h.s8.bf16 %v831_v33  ;;  %v798_v40 = vld [vmem:[%s12289_s28 + $0xe60] sm:$0xff] }
 0x202   : > { %10281 = vmatprep.subr.bf16.mxu1 %v10280_v42  ;;  %v830_v42 = vld [vmem:[%s12289_s28 + $0xf60] sm:$0xff] }
 0x204   : > { %10219 = vmatpush2.bf16.msra.mxu0 %v10218_v51  ;;  %v10302_v51 = vunpack.c.h.s8.bf16 %v798_v40 }
 0x205   : > { %10283 = vmatpush2.bf16.msra.mxu1 %v10282_v52  ;;  %10221 = vmatprep.subr.bf16.mxu0 %v10220_v0  ;;  %v10366_v52 = vunpack.c.h.s8.bf16 %v830_v42  ;;  %v10304_v0 = vunpack.c.l.s8.bf16 %v799_v32 }
 0x206   : > { %10285 = vmatprep.subr.bf16.mxu1 %v10284_v1  ;;  %v10368_v1 = vunpack.c.l.s8.bf16 %v831_v33  ;;  %v790_v33 = vld [vmem:[%s12289_s28 + $0xe20] sm:$0xff] }
 0x208   : > { %10223 = vmatpush2.bf16.msra.mxu0 %v10222_v6  ;;  %v12692_v6 = vcombine.high %v12683_v49, %v12683_v49 }
 0x209   : > { %10287 = vmatpush2.bf16.msra.mxu1 %v10286_v7  ;;  %10225 = vmatprep.subr.bf16.mxu0 %v10224_v12  ;;  %v12696_v7 = vcombine.high %v12686_v50, %v12686_v50  ;;  %v10306_v12 = vunpack.c.l.s8.bf16 %v798_v40  ;;  %v787_v40 = vld [vmem:[%s12289_s28 + $0xe08] sm:$0xff] }
 0x20a   : > { %10289 = vmatprep.subr.bf16.mxu1 %v10288_v13  ;;  %v10370_v13 = vunpack.c.l.s8.bf16 %v830_v42  ;;  %v819_v42 = vld [vmem:[%s12289_s28 + $0xf08] sm:$0xff] }
 0x20c   : > { %10227 = vmatpush2.bf16.msra.mxu0 %v10226_v16  ;;  %v794_v16 = vld [vmem:[%s12289_s28 + $0xe40] sm:$0xff] }
 0x20d   : > { %10291 = vmatpush2.bf16.msra.mxu1 %v10290_v17  ;;  %10229 = vmatprep.subr.bf16.mxu0 %v10228_v20  ;;  %v826_v17 = vld [vmem:[%s12289_s28 + $0xf40] sm:$0xff]  ;;  %v10310_v20 = vunpack.c.h.s8.bf16 %v794_v16 }
 0x20e   : > { %10293 = vmatprep.subr.bf16.mxu1 %v10292_v21  ;;  %v10374_v21 = vunpack.c.h.s8.bf16 %v826_v17 }
 0x210   : > { %10231 = vmatpush2.bf16.msra.mxu0 %v10230_v25  ;;  %v823_v25 = vld [vmem:[%s12289_s28 + $0xf28] sm:$0xff] }
 0x211   : > { %10295 = vmatpush2.bf16.msra.mxu1 %v10294_v29  ;;  %10233 = vmatprep.subr.bf16.mxu0 %v10232_v30  ;;  %v10314_v29 = vunpack.c.l.s8.bf16 %v794_v16  ;;  %v10378_v30 = vunpack.c.l.s8.bf16 %v826_v17  ;;  %v10380_v32 = vunpack.c.h.s8.bf16 %v823_v25  ;;  %v815_v16 = vld [vmem:[%s12289_s28 + $0xee8] sm:$0xff] }
 0x212   : > { %10297 = vmatprep.subr.bf16.mxu1 %v10296_v31  ;;  %v10316_v31 = vunpack.c.h.s8.bf16 %v791_v24  ;;  %v847_v17 = vld [vmem:[%s12289_s28 + $0xfe8] sm:$0xff] }
 0x214   : > { %10235 = vmatpush2.bf16.msra.mxu0 %v10234_v36  ;;  %v10318_v36 = vunpack.c.h.s8.bf16 %v790_v33 }
 0x215   : > { %10299 = vmatpush2.bf16.msra.mxu1 %v10298_v37  ;;  %10301 = vmatprep.subr.bf16.mxu0 %v10300_v38  ;;  %v10382_v37 = vunpack.c.h.s8.bf16 %v822_v34  ;;  %v10320_v38 = vunpack.c.l.s8.bf16 %v791_v24  ;;  %v814_v24 = vld [vmem:[%s12289_s28 + $0xee0] sm:$0xff] }
 0x216   : > { %10365 = vmatprep.subr.bf16.mxu1 %v10364_v39  ;;  %v10384_v39 = vunpack.c.l.s8.bf16 %v823_v25  ;;  %v846_v25 = vld [vmem:[%s12289_s28 + $0xfe0] sm:$0xff] }
 0x217   : > { %6646 = vmatmul.mubr.f32.vlgmr.msra.gmra.mxu0 %v12630_v54 }
 0x218   : > { %6717 = vmatmul.mubr.f32.vlgmr.msra.gmra.mxu1 %v12633_v55  ;;  %10303 = vmatpush1.bf16.msra.mxu0 %v10302_v51  ;;  %v10322_v51 = vunpack.c.l.s8.bf16 %v790_v33  ;;  %v811_v33 = vld [vmem:[%s12289_s28 + $0xec8] sm:$0xff] }
 0x219   : > { %10367 = vmatpush1.bf16.msra.mxu1 %v10366_v52  ;;  %10305 = vmatprep.subr.bf16.mxu0 %v10304_v0  ;;  %v10386_v52 = vunpack.c.l.s8.bf16 %v822_v34  ;;  %v10324_v0 = vunpack.c.h.s8.bf16 %v787_v40  ;;  %v843_v34 = vld [vmem:[%s12289_s28 + $0xfc8] sm:$0xff] }
 0x21a   : > { %10369 = vmatprep.subr.bf16.mxu1 %v10368_v1  ;;  %6787 = vmatprep.mubr.f32.mxu0 %v12692_v6  ;;  %v10388_v1 = vunpack.c.h.s8.bf16 %v819_v42 }
 0x21b   : > { %6858 = vmatprep.mubr.f32.mxu1 %v12696_v7 }
 0x21c   : > { %10307 = vmatpush1.bf16.msra.mxu0 %v10306_v12  ;;  %v10326_v12 = vunpack.c.h.s8.bf16 %v786_v4 }
 0x21d   : > { %10371 = vmatpush1.bf16.msra.mxu1 %v10370_v13  ;;  %10309 = vmatprep.subr.bf16.mxu0 %v10308_v14  ;;  %v10390_v13 = vunpack.c.h.s8.bf16 %v818_v5  ;;  %v10328_v14 = vunpack.c.l.s8.bf16 %v787_v40  ;;  %v810_v40 = vld [vmem:[%s12289_s28 + $0xec0] sm:$0xff] }
 0x21e   : > { %10373 = vmatprep.subr.bf16.mxu1 %v10372_v15  ;;  %v10392_v15 = vunpack.c.l.s8.bf16 %v819_v42  ;;  %v842_v42 = vld [vmem:[%s12289_s28 + $0xfc0] sm:$0xff] }
 0x220   : > { %10311 = vmatpush1.bf16.msra.mxu0 %v10310_v20  ;;  %v10330_v20 = vunpack.c.l.s8.bf16 %v786_v4  ;;  %v807_v4 = vld [vmem:[%s12289_s28 + $0xea8] sm:$0xff] }
 0x221   : > { %10375 = vmatpush1.bf16.msra.mxu1 %v10374_v21  ;;  %10313 = vmatprep.subr.bf16.mxu0 %v10312_v22  ;;  %v10394_v21 = vunpack.c.l.s8.bf16 %v818_v5  ;;  %v10332_v22 = vunpack.c.h.s8.bf16 %v815_v16  ;;  %v839_v5 = vld [vmem:[%s12289_s28 + $0xfa8] sm:$0xff] }
 0x222   : > { %10377 = vmatprep.subr.bf16.mxu1 %v10376_v23  ;;  %v10396_v23 = vunpack.c.h.s8.bf16 %v847_v17 }
 0x224   : > { %10315 = vmatpush1.bf16.msra.mxu0 %v10314_v29  ;;  %v10334_v29 = vunpack.c.h.s8.bf16 %v814_v24 }
 0x225   : > { %10379 = vmatpush1.bf16.msra.mxu1 %v10378_v30  ;;  %10317 = vmatprep.subr.bf16.mxu0 %v10316_v31  ;;  %v10398_v30 = vunpack.c.h.s8.bf16 %v846_v25  ;;  %v10336_v31 = vunpack.c.l.s8.bf16 %v815_v16  ;;  %v806_v16 = vld [vmem:[%s12289_s28 + $0xea0] sm:$0xff] }
 0x226   : > { %10381 = vmatprep.subr.bf16.mxu1 %v10380_v32  ;;  %v10400_v32 = vunpack.c.l.s8.bf16 %v847_v17  ;;  %v838_v17 = vld [vmem:[%s12289_s28 + $0xfa0] sm:$0xff] }
 0x228   : > { %10319 = vmatpush1.bf16.msra.mxu0 %v10318_v36  ;;  %v10338_v36 = vunpack.c.l.s8.bf16 %v814_v24  ;;  %v803_v24 = vld [vmem:[%s12289_s28 + $0xe88] sm:$0xff] }
 0x229   : > { %10383 = vmatpush1.bf16.msra.mxu1 %v10382_v37  ;;  %10321 = vmatprep.subr.bf16.mxu0 %v10320_v38  ;;  %v10402_v37 = vunpack.c.l.s8.bf16 %v846_v25  ;;  %v10340_v38 = vunpack.c.h.s8.bf16 %v811_v33  ;;  %v835_v25 = vld [vmem:[%s12289_s28 + $0xf88] sm:$0xff] }
 0x22a   : > { %10385 = vmatprep.subr.bf16.mxu1 %v10384_v39  ;;  %v10404_v39 = vunpack.c.h.s8.bf16 %v843_v34 }
 0x22c   : > { %10323 = vmatpush1.bf16.msra.mxu0 %v10322_v51  ;;  %v10342_v51 = vunpack.c.h.s8.bf16 %v810_v40 }
 0x22d   : > { %10387 = vmatpush1.bf16.msra.mxu1 %v10386_v52  ;;  %10325 = vmatprep.subr.bf16.mxu0 %v10324_v0  ;;  %v10406_v52 = vunpack.c.h.s8.bf16 %v842_v42  ;;  %v10344_v0 = vunpack.c.l.s8.bf16 %v811_v33  ;;  %v802_v33 = vld [vmem:[%s12289_s28 + $0xe80] sm:$0xff] }
 0x22e   : > { %10389 = vmatprep.subr.bf16.mxu1 %v10388_v1  ;;  %v10408_v1 = vunpack.c.l.s8.bf16 %v843_v34  ;;  %v834_v34 = vld [vmem:[%s12289_s28 + $0xf80] sm:$0xff] }
 0x230   : > { %10327 = vmatpush1.bf16.msra.mxu0 %v10326_v12  ;;  %v10346_v12 = vunpack.c.l.s8.bf16 %v810_v40  ;;  %v10424_v40 = vunpack.c.l.s8.bf16 %v835_v25 }
 0x231   : > { %10391 = vmatpush1.bf16.msra.mxu1 %v10390_v13  ;;  %10329 = vmatprep.subr.bf16.mxu0 %v10328_v14  ;;  %v10410_v13 = vunpack.c.l.s8.bf16 %v842_v42  ;;  %v10348_v14 = vunpack.c.h.s8.bf16 %v807_v4  ;;  %v863_v42 = vld [vmem:[%s12289_s28 + $0x1068] sm:$0xff] }
 0x232   : > { %10393 = vmatprep.subr.bf16.mxu1 %v10392_v15  ;;  %v10412_v15 = vunpack.c.h.s8.bf16 %v839_v5 }
 0x234   : > { %10331 = vmatpush1.bf16.msra.mxu0 %v10330_v20  ;;  %v10350_v20 = vunpack.c.h.s8.bf16 %v806_v16 }
 0x235   : > { %10395 = vmatpush1.bf16.msra.mxu1 %v10394_v21  ;;  %10333 = vmatprep.subr.bf16.mxu0 %v10332_v22  ;;  %v10414_v21 = vunpack.c.h.s8.bf16 %v838_v17  ;;  %v10352_v22 = vunpack.c.l.s8.bf16 %v807_v4  ;;  %v10428_v4 = vunpack.c.h.s8.bf16 %v863_v42 }
 0x236   : > { %10397 = vmatprep.subr.bf16.mxu1 %v10396_v23  ;;  %v10416_v23 = vunpack.c.l.s8.bf16 %v839_v5 }
 0x238   : > { %10335 = vmatpush2.bf16.msra.mxu0 %v10334_v29  ;;  %v10354_v29 = vunpack.c.l.s8.bf16 %v806_v16 }
 0x239   : > { %10399 = vmatpush2.bf16.msra.mxu1 %v10398_v30  ;;  %10337 = vmatprep.subr.bf16.mxu0 %v10336_v31  ;;  %v10418_v30 = vunpack.c.l.s8.bf16 %v838_v17  ;;  %v10356_v31 = vunpack.c.h.s8.bf16 %v803_v24 }
 0x23a   : > { %10401 = vmatprep.subr.bf16.mxu1 %v10400_v32  ;;  %v10420_v32 = vunpack.c.h.s8.bf16 %v835_v25 }
 0x23c   : > { %10339 = vmatpush2.bf16.msra.mxu0 %v10338_v36  ;;  %v5530_v36 = vld [vmem:[%s13343_s0 + $0x40] sm:$0xff] }
 0x23d   : > { %10403 = vmatpush2.bf16.msra.mxu1 %v10402_v37  ;;  %10341 = vmatprep.subr.bf16.mxu0 %v10340_v38  ;;  %v10358_v37 = vunpack.c.h.s8.bf16 %v802_v33  ;;  %v10422_v38 = vunpack.c.h.s8.bf16 %v834_v34 }
 0x23e   : > { %10405 = vmatprep.subr.bf16.mxu1 %v10404_v39  ;;  %v10360_v39 = vunpack.c.l.s8.bf16 %v803_v24 }
 0x240   : > { %10343 = vmatpush2.bf16.msra.mxu0 %v10342_v51  ;;  %v895_v51 = vld [vmem:[%s12289_s28 + $0x1168] sm:$0xff] }
 0x241   : > { %10407 = vmatpush2.bf16.msra.mxu1 %v10406_v52  ;;  %10345 = vmatprep.subr.bf16.mxu0 %v10344_v0  ;;  %v5676_v52 = vcombine.high %v5530_v36, %v5530_v36  ;;  %v10362_v0 = vunpack.c.l.s8.bf16 %v802_v33  ;;  %v10492_v5 = vunpack.c.h.s8.bf16 %v895_v51  ;;  %v858_v33 = vld [vmem:[%s12289_s28 + $0x1040] sm:$0xff] }
 0x242   : > { %10409 = vmatprep.subr.bf16.mxu1 %v10408_v1  ;;  %v10426_v1 = vunpack.c.l.s8.bf16 %v834_v34  ;;  %v890_v34 = vld [vmem:[%s12289_s28 + $0x1140] sm:$0xff] }
 0x244   : > { %10347 = vmatpush2.bf16.msra.mxu0 %v10346_v12  ;;  %v862_v12 = vld [vmem:[%s12289_s28 + $0x1060] sm:$0xff] }
 0x245   : > { %10411 = vmatpush2.bf16.msra.mxu1 %v10410_v13  ;;  %10349 = vmatprep.subr.bf16.mxu0 %v10348_v14  ;;  %v894_v13 = vld [vmem:[%s12289_s28 + $0x1160] sm:$0xff]  ;;  %v12736_v14 = vrot.slane %v5530_v36, %v12316_v35  ;;  %v10430_v16 = vunpack.c.h.s8.bf16 %v862_v12  ;;  %v10438_v36 = vunpack.c.h.s8.bf16 %v858_v33 }
 0x246   : > { %10413 = vmatprep.subr.bf16.mxu1 %v10412_v15  ;;  %v12739_v15 = vrot.slane %v5676_v52, %v12316_v35  ;;  %v10494_v17 = vunpack.c.h.s8.bf16 %v894_v13  ;;  %v10506_v52 = vunpack.c.l.s8.bf16 %v890_v34 }
 0x247   : > { %v12745_v24 = vcombine.high %v12736_v14, %v12736_v14 }
 0x248   : > { %10351 = vmatpush2.bf16.msra.mxu0 %v10350_v20  ;;  %v10432_v20 = vunpack.c.l.s8.bf16 %v863_v42  ;;  %v12749_v25 = vcombine.high %v12739_v15, %v12739_v15  ;;  %v887_v42 = vld [vmem:[%s12289_s28 + $0x1128] sm:$0xff] }
 0x249   : > { %10415 = vmatpush2.bf16.msra.mxu1 %v10414_v21  ;;  %10353 = vmatprep.subr.bf16.mxu0 %v10352_v22  ;;  %v10496_v21 = vunpack.c.l.s8.bf16 %v895_v51  ;;  %v859_v22 = vld [vmem:[%s12289_s28 + $0x1048] sm:$0xff]  ;;  %v10442_v51 = vunpack.c.l.s8.bf16 %v858_v33 }
 0x24a   : > { %10417 = vmatprep.subr.bf16.mxu1 %v10416_v23  ;;  %v891_v23 = vld [vmem:[%s12289_s28 + $0x1148] sm:$0xff] }
 0x24c   : > { %10355 = vmatpush2.bf16.msra.mxu0 %v10354_v29  ;;  %v10434_v29 = vunpack.c.l.s8.bf16 %v862_v12 }
 0x24d   : > { %10419 = vmatpush2.bf16.msra.mxu1 %v10418_v30  ;;  %10357 = vmatprep.subr.bf16.mxu0 %v10356_v31  ;;  %v10498_v30 = vunpack.c.l.s8.bf16 %v894_v13  ;;  %v10436_v31 = vunpack.c.h.s8.bf16 %v859_v22 }
 0x24e   : > { %10421 = vmatprep.subr.bf16.mxu1 %v10420_v32  ;;  %v10500_v32 = vunpack.c.h.s8.bf16 %v891_v23 }
 0x250   : > { %10359 = vmatpush2.bf16.msra.mxu0 %v10358_v37  ;;  %v10502_v37 = vunpack.c.h.s8.bf16 %v890_v34 }
 0x251   : > { %10423 = vmatpush2.bf16.msra.mxu1 %v10422_v38  ;;  %10361 = vmatprep.subr.bf16.mxu0 %v10360_v39  ;;  %v10440_v38 = vunpack.c.l.s8.bf16 %v859_v22  ;;  %v10504_v39 = vunpack.c.l.s8.bf16 %v891_v23 }
 0x252   : > { %10425 = vmatprep.subr.bf16.mxu1 %v10424_v40  ;;  %v855_v40 = vld [vmem:[%s12289_s28 + $0x1028] sm:$0xff] }
 0x254   : > { %10363 = vmatpush2.bf16.msra.mxu0 %v10362_v0  ;;  %v10444_v0 = vunpack.c.h.s8.bf16 %v855_v40 }
 0x255   : > { %10427 = vmatpush2.bf16.msra.mxu1 %v10426_v1  ;;  %10429 = vmatprep.subr.bf16.mxu0 %v10428_v4  ;;  %v10508_v1 = vunpack.c.h.s8.bf16 %v887_v42  ;;  %v854_v4 = vld [vmem:[%s12289_s28 + $0x1020] sm:$0xff] }
 0x256   : > { %10493 = vmatprep.subr.bf16.mxu1 %v10492_v5  ;;  %v886_v5 = vld [vmem:[%s12289_s28 + $0x1120] sm:$0xff]  ;;  %v10446_v12 = vunpack.c.h.s8.bf16 %v854_v4  ;;  %v10450_v22 = vunpack.c.l.s8.bf16 %v854_v4 }
 0x257   : > { %6788 = vmatmul.mubr.f32.vlgmr.msra.gmra.mxu0 %v12683_v49  ;;  %v10510_v13 = vunpack.c.h.s8.bf16 %v886_v5  ;;  %v10514_v23 = vunpack.c.l.s8.bf16 %v886_v5 }
 0x258   : > { %6859 = vmatmul.mubr.f32.vlgmr.msra.gmra.mxu1 %v12686_v50  ;;  %10431 = vmatpush1.bf16.msra.mxu0 %v10430_v16  ;;  %v10448_v16 = vunpack.c.l.s8.bf16 %v855_v40 }
 0x259   : > { %10495 = vmatpush1.bf16.msra.mxu1 %v10494_v17  ;;  %10433 = vmatprep.subr.bf16.mxu0 %v10432_v20  ;;  %v10512_v17 = vunpack.c.l.s8.bf16 %v887_v42  ;;  %v851_v20 = vld [vmem:[%s12289_s28 + $0x1008] sm:$0xff] }
 0x25a   : > { %10497 = vmatprep.subr.bf16.mxu1 %v10496_v21  ;;  %6929 = vmatprep.mubr.f32.mxu0 %v12745_v24  ;;  %v883_v21 = vld [vmem:[%s12289_s28 + $0x1108] sm:$0xff] }
 0x25b   : > { %7000 = vmatprep.mubr.f32.mxu1 %v12749_v25 }
 0x25c   : > { %10435 = vmatpush1.bf16.msra.mxu0 %v10434_v29  ;;  %v10452_v29 = vunpack.c.h.s8.bf16 %v851_v20 }
 0x25d   : > { %10499 = vmatpush1.bf16.msra.mxu1 %v10498_v30  ;;  %10437 = vmatprep.subr.bf16.mxu0 %v10436_v31  ;;  %v10516_v30 = vunpack.c.h.s8.bf16 %v883_v21  ;;  %v850_v31 = vld [vmem:[%s12289_s28 + $0x1000] sm:$0xff] }
 0x25e   : > { %10501 = vmatprep.subr.bf16.mxu1 %v10500_v32  ;;  %v882_v32 = vld [vmem:[%s12289_s28 + $0x1100] sm:$0xff]  ;;  %v10454_v33 = vunpack.c.h.s8.bf16 %v850_v31  ;;  %v10458_v40 = vunpack.c.l.s8.bf16 %v850_v31 }
 0x25f   : > { %v10518_v34 = vunpack.c.h.s8.bf16 %v882_v32  ;;  %v10522_v42 = vunpack.c.l.s8.bf16 %v882_v32 }
 0x260   : > { %10439 = vmatpush1.bf16.msra.mxu0 %v10438_v36  ;;  %v10456_v36 = vunpack.c.l.s8.bf16 %v851_v20 }
 0x261   : > { %10503 = vmatpush1.bf16.msra.mxu1 %v10502_v37  ;;  %10441 = vmatprep.subr.bf16.mxu0 %v10440_v38  ;;  %v10520_v37 = vunpack.c.l.s8.bf16 %v883_v21  ;;  %v879_v38 = vld [vmem:[%s12289_s28 + $0x10e8] sm:$0xff] }
 0x262   : > { %10505 = vmatprep.subr.bf16.mxu1 %v10504_v39  ;;  %v911_v39 = vld [vmem:[%s12289_s28 + $0x11e8] sm:$0xff] }
 0x264   : > { %10443 = vmatpush1.bf16.msra.mxu0 %v10442_v51  ;;  %v10460_v51 = vunpack.c.h.s8.bf16 %v879_v38 }
 0x265   : > { %10507 = vmatpush1.bf16.msra.mxu1 %v10506_v52  ;;  %10445 = vmatprep.subr.bf16.mxu0 %v10444_v0  ;;  %v10524_v52 = vunpack.c.h.s8.bf16 %v911_v39  ;;  %v878_v0 = vld [vmem:[%s12289_s28 + $0x10e0] sm:$0xff] }
 0x266   : > { %10509 = vmatprep.subr.bf16.mxu1 %v10508_v1  ;;  %v910_v1 = vld [vmem:[%s12289_s28 + $0x11e0] sm:$0xff]  ;;  %v10462_v4 = vunpack.c.h.s8.bf16 %v878_v0  ;;  %v10466_v20 = vunpack.c.l.s8.bf16 %v878_v0 }
 0x267   : > { %v10526_v5 = vunpack.c.h.s8.bf16 %v910_v1  ;;  %v10530_v21 = vunpack.c.l.s8.bf16 %v910_v1 }
 0x268   : > { %10447 = vmatpush1.bf16.msra.mxu0 %v10446_v12  ;;  %v10464_v12 = vunpack.c.l.s8.bf16 %v879_v38 }
 0x269   : > { %10511 = vmatpush1.bf16.msra.mxu1 %v10510_v13  ;;  %10449 = vmatprep.subr.bf16.mxu0 %v10448_v16  ;;  %v10528_v13 = vunpack.c.l.s8.bf16 %v911_v39  ;;  %v875_v16 = vld [vmem:[%s12289_s28 + $0x10c8] sm:$0xff] }
 0x26a   : > { %10513 = vmatprep.subr.bf16.mxu1 %v10512_v17  ;;  %v907_v17 = vld [vmem:[%s12289_s28 + $0x11c8] sm:$0xff] }
 0x26c   : > { %10451 = vmatpush1.bf16.msra.mxu0 %v10450_v22  ;;  %v10468_v22 = vunpack.c.h.s8.bf16 %v875_v16 }
 0x26d   : > { %10515 = vmatpush1.bf16.msra.mxu1 %v10514_v23  ;;  %10453 = vmatprep.subr.bf16.mxu0 %v10452_v29  ;;  %v10532_v23 = vunpack.c.h.s8.bf16 %v907_v17  ;;  %v874_v29 = vld [vmem:[%s12289_s28 + $0x10c0] sm:$0xff] }
 0x26e   : > { %10517 = vmatprep.subr.bf16.mxu1 %v10516_v30  ;;  %v906_v30 = vld [vmem:[%s12289_s28 + $0x11c0] sm:$0xff]  ;;  %v10470_v31 = vunpack.c.h.s8.bf16 %v874_v29  ;;  %v10474_v38 = vunpack.c.l.s8.bf16 %v874_v29 }
 0x26f   : > { %v10534_v32 = vunpack.c.h.s8.bf16 %v906_v30  ;;  %v10538_v39 = vunpack.c.l.s8.bf16 %v906_v30 }
 0x270   : > { %10455 = vmatpush1.bf16.msra.mxu0 %v10454_v33  ;;  %v10472_v33 = vunpack.c.l.s8.bf16 %v875_v16 }
 0x271   : > { %10519 = vmatpush1.bf16.msra.mxu1 %v10518_v34  ;;  %10457 = vmatprep.subr.bf16.mxu0 %v10456_v36  ;;  %v10536_v34 = vunpack.c.l.s8.bf16 %v907_v17  ;;  %v871_v36 = vld [vmem:[%s12289_s28 + $0x10a8] sm:$0xff] }
 0x272   : > { %10521 = vmatprep.subr.bf16.mxu1 %v10520_v37  ;;  %v903_v37 = vld [vmem:[%s12289_s28 + $0x11a8] sm:$0xff] }
 0x274   : > { %10459 = vmatpush1.bf16.msra.mxu0 %v10458_v40  ;;  %v10476_v40 = vunpack.c.h.s8.bf16 %v871_v36 }
 0x275   : > { %10523 = vmatpush1.bf16.msra.mxu1 %v10522_v42  ;;  %10461 = vmatprep.subr.bf16.mxu0 %v10460_v51  ;;  %v10540_v42 = vunpack.c.h.s8.bf16 %v903_v37  ;;  %v870_v51 = vld [vmem:[%s12289_s28 + $0x10a0] sm:$0xff] }
 0x276   : > { %10525 = vmatprep.subr.bf16.mxu1 %v10524_v52  ;;  %v902_v52 = vld [vmem:[%s12289_s28 + $0x11a0] sm:$0xff]  ;;  %v10478_v0 = vunpack.c.h.s8.bf16 %v870_v51  ;;  %v10482_v16 = vunpack.c.l.s8.bf16 %v870_v51 }
 0x277   : > { %v10542_v1 = vunpack.c.h.s8.bf16 %v902_v52  ;;  %v10546_v17 = vunpack.c.l.s8.bf16 %v902_v52 }
 0x278   : > { %10463 = vmatpush2.bf16.msra.mxu0 %v10462_v4  ;;  %v10480_v4 = vunpack.c.l.s8.bf16 %v871_v36 }
 0x279   : > { %10527 = vmatpush2.bf16.msra.mxu1 %v10526_v5  ;;  %10465 = vmatprep.subr.bf16.mxu0 %v10464_v12  ;;  %v10544_v5 = vunpack.c.l.s8.bf16 %v903_v37  ;;  %v867_v12 = vld [vmem:[%s12289_s28 + $0x1088] sm:$0xff] }
 0x27a   : > { %10529 = vmatprep.subr.bf16.mxu1 %v10528_v13  ;;  %v899_v13 = vld [vmem:[%s12289_s28 + $0x1188] sm:$0xff] }
 0x27c   : > { %10467 = vmatpush2.bf16.msra.mxu0 %v10466_v20  ;;  %v10484_v20 = vunpack.c.h.s8.bf16 %v867_v12 }
 0x27d   : > { %10531 = vmatpush2.bf16.msra.mxu1 %v10530_v21  ;;  %10469 = vmatprep.subr.bf16.mxu0 %v10468_v22  ;;  %v10548_v21 = vunpack.c.h.s8.bf16 %v899_v13  ;;  %v866_v22 = vld [vmem:[%s12289_s28 + $0x1080] sm:$0xff] }
 0x27e   : > { %10533 = vmatprep.subr.bf16.mxu1 %v10532_v23  ;;  %v898_v23 = vld [vmem:[%s12289_s28 + $0x1180] sm:$0xff]  ;;  %v10486_v29 = vunpack.c.h.s8.bf16 %v866_v22  ;;  %v10490_v36 = vunpack.c.l.s8.bf16 %v866_v22 }
 0x27f   : > { %v10550_v30 = vunpack.c.h.s8.bf16 %v898_v23  ;;  %v10554_v37 = vunpack.c.l.s8.bf16 %v898_v23 }
 0x280   : > { %10471 = vmatpush2.bf16.msra.mxu0 %v10470_v31  ;;  %v10488_v31 = vunpack.c.l.s8.bf16 %v867_v12 }
 0x281   : > { %10535 = vmatpush2.bf16.msra.mxu1 %v10534_v32  ;;  %10473 = vmatprep.subr.bf16.mxu0 %v10472_v33  ;;  %v10552_v32 = vunpack.c.l.s8.bf16 %v899_v13  ;;  %v353_v33 = vld [vmem:[%s12289_s28 + $0x78] sm:$0xff] }
 0x282   : > { %10537 = vmatprep.subr.bf16.mxu1 %v10536_v34  ;;  %v385_v34 = vld [vmem:[%s12289_s28 + $0x178] sm:$0xff] }
 0x284   : > { %10475 = vmatpush2.bf16.msra.mxu0 %v10474_v38  ;;  %v10556_v38 = vunpack.c.h.s8.bf16 %v353_v33 }
 0x285   : > { %10539 = vmatpush2.bf16.msra.mxu1 %v10538_v39  ;;  %10477 = vmatprep.subr.bf16.mxu0 %v10476_v40  ;;  %v10620_v39 = vunpack.c.h.s8.bf16 %v385_v34  ;;  %v352_v40 = vld [vmem:[%s12289_s28 + $0x70] sm:$0xff] }
 0x286   : > { %10541 = vmatprep.subr.bf16.mxu1 %v10540_v42  ;;  %v384_v42 = vld [vmem:[%s12289_s28 + $0x170] sm:$0xff]  ;;  %v10558_v51 = vunpack.c.h.s8.bf16 %v352_v40  ;;  %v10562_v12 = vunpack.c.l.s8.bf16 %v352_v40 }
 0x287   : > { %v10622_v52 = vunpack.c.h.s8.bf16 %v384_v42  ;;  %v10626_v13 = vunpack.c.l.s8.bf16 %v384_v42 }
 0x288   : > { %10479 = vmatpush2.bf16.msra.mxu0 %v10478_v0  ;;  %v10560_v0 = vunpack.c.l.s8.bf16 %v353_v33 }
 0x289   : > { %10543 = vmatpush2.bf16.msra.mxu1 %v10542_v1  ;;  %10481 = vmatprep.subr.bf16.mxu0 %v10480_v4  ;;  %v10624_v1 = vunpack.c.l.s8.bf16 %v385_v34  ;;  %v349_v4 = vld [vmem:[%s12289_s28 + $0x58] sm:$0xff] }
 0x28a   : > { %10545 = vmatprep.subr.bf16.mxu1 %v10544_v5  ;;  %v381_v5 = vld [vmem:[%s12289_s28 + $0x158] sm:$0xff] }
 0x28c   : > { %10483 = vmatpush2.bf16.msra.mxu0 %v10482_v16  ;;  %v10564_v16 = vunpack.c.h.s8.bf16 %v349_v4 }
 0x28d   : > { %10547 = vmatpush2.bf16.msra.mxu1 %v10546_v17  ;;  %10485 = vmatprep.subr.bf16.mxu0 %v10484_v20  ;;  %v10628_v17 = vunpack.c.h.s8.bf16 %v381_v5  ;;  %v348_v20 = vld [vmem:[%s12289_s28 + $0x50] sm:$0xff] }
 0x28e   : > { %10549 = vmatprep.subr.bf16.mxu1 %v10548_v21  ;;  %v380_v21 = vld [vmem:[%s12289_s28 + $0x150] sm:$0xff]  ;;  %v10566_v22 = vunpack.c.h.s8.bf16 %v348_v20  ;;  %v10570_v33 = vunpack.c.l.s8.bf16 %v348_v20 }
 0x28f   : > { %v10630_v23 = vunpack.c.h.s8.bf16 %v380_v21  ;;  %v10634_v34 = vunpack.c.l.s8.bf16 %v380_v21 }
 0x290   : > { %10487 = vmatpush2.bf16.msra.mxu0 %v10486_v29  ;;  %v10568_v29 = vunpack.c.l.s8.bf16 %v349_v4 }
 0x291   : > { %10551 = vmatpush2.bf16.msra.mxu1 %v10550_v30  ;;  %10489 = vmatprep.subr.bf16.mxu0 %v10488_v31  ;;  %v10632_v30 = vunpack.c.l.s8.bf16 %v381_v5  ;;  %v345_v31 = vld [vmem:[%s12289_s28 + $0x38] sm:$0xff] }
 0x292   : > { %10553 = vmatprep.subr.bf16.mxu1 %v10552_v32  ;;  %v377_v32 = vld [vmem:[%s12289_s28 + $0x138] sm:$0xff]  ;;  %v10576_v40 = vunpack.c.l.s8.bf16 %v345_v31 }
 0x293   : > { %v10640_v42 = vunpack.c.l.s8.bf16 %v377_v32 }
 0x294   : > { %10491 = vmatpush2.bf16.msra.mxu0 %v10490_v36  ;;  %v344_v36 = vld [vmem:[%s12289_s28 + $0x30] sm:$0xff] }
 0x295   : > { %10555 = vmatpush2.bf16.msra.mxu1 %v10554_v37  ;;  %10557 = vmatprep.subr.bf16.mxu0 %v10556_v38  ;;  %v376_v37 = vld [vmem:[%s12289_s28 + $0x130] sm:$0xff]  ;;  %v10574_v38 = vunpack.c.h.s8.bf16 %v344_v36 }
 0x296   : > { %10621 = vmatprep.subr.bf16.mxu1 %v10620_v39  ;;  %v10638_v39 = vunpack.c.h.s8.bf16 %v376_v37 }
 0x297   : > { %6930 = vmatmul.mubr.f32.vlgmr.msra.gmra.mxu0 %v12736_v14 }
 0x298   : > { %7001 = vmatmul.mubr.f32.vlgmr.msra.gmra.mxu1 %v12739_v15  ;;  %10559 = vmatpush1.bf16.msra.mxu0 %v10558_v51  ;;  %v341_v51 = vld [vmem:[%s12289_s28 + $0x18] sm:$0xff] }
 0x299   : > { %10623 = vmatpush1.bf16.msra.mxu1 %v10622_v52  ;;  %10561 = vmatprep.subr.bf16.mxu0 %v10560_v0  ;;  %v373_v52 = vld [vmem:[%s12289_s28 + $0x118] sm:$0xff]  ;;  %v10578_v0 = vunpack.c.l.s8.bf16 %v344_v36  ;;  %v10580_v4 = vunpack.c.h.s8.bf16 %v341_v51  ;;  %v10584_v20 = vunpack.c.l.s8.bf16 %v341_v51 }
 0x29a   : > { %10625 = vmatprep.subr.bf16.mxu1 %v10624_v1  ;;  %7071 = vmatprep.mubr.f32.mxu0 %v12328_v45  ;;  %v10572_v45 = vunpack.c.h.s8.bf16 %v345_v31  ;;  %v10642_v1 = vunpack.c.l.s8.bf16 %v376_v37  ;;  %v10644_v5 = vunpack.c.h.s8.bf16 %v373_v52  ;;  %v10648_v21 = vunpack.c.l.s8.bf16 %v373_v52 }
 0x29b   : > { %7142 = vmatprep.mubr.f32.mxu1 %v12337_v53  ;;  %v10636_v53 = vunpack.c.h.s8.bf16 %v377_v32 }
 0x29c   : > { %10563 = vmatpush1.bf16.msra.mxu0 %v10562_v12  ;;  %v340_v12 = vld [vmem:[%s12289_s28 + $0x10] sm:$0xff] }
 0x29d   : > { %10627 = vmatpush1.bf16.msra.mxu1 %v10626_v13  ;;  %10565 = vmatprep.subr.bf16.mxu0 %v10564_v16  ;;  %v372_v13 = vld [vmem:[%s12289_s28 + $0x110] sm:$0xff]  ;;  %v10582_v16 = vunpack.c.h.s8.bf16 %v340_v12 }
 0x29e   : > { %10629 = vmatprep.subr.bf16.mxu1 %v10628_v17  ;;  %v10646_v17 = vunpack.c.h.s8.bf16 %v372_v13 }
 0x2a0   : > { %10567 = vmatpush1.bf16.msra.mxu0 %v10566_v22  ;;  %v369_v22 = vld [vmem:[%s12289_s28 + $0xf8] sm:$0xff] }
 0x2a1   : > { %10631 = vmatpush1.bf16.msra.mxu1 %v10630_v23  ;;  %10569 = vmatprep.subr.bf16.mxu0 %v10568_v29  ;;  %v401_v23 = vld [vmem:[%s12289_s28 + $0x1f8] sm:$0xff]  ;;  %v10586_v29 = vunpack.c.l.s8.bf16 %v340_v12  ;;  %v10588_v31 = vunpack.c.h.s8.bf16 %v369_v22  ;;  %v10592_v36 = vunpack.c.l.s8.bf16 %v369_v22 }
 0x2a2   : > { %10633 = vmatprep.subr.bf16.mxu1 %v10632_v30  ;;  %v10650_v30 = vunpack.c.l.s8.bf16 %v372_v13  ;;  %v10652_v32 = vunpack.c.h.s8.bf16 %v401_v23  ;;  %v10656_v37 = vunpack.c.l.s8.bf16 %v401_v23 }
 0x2a4   : > { %10571 = vmatpush1.bf16.msra.mxu0 %v10570_v33  ;;  %v368_v33 = vld [vmem:[%s12289_s28 + $0xf0] sm:$0xff] }
 0x2a5   : > { %10635 = vmatpush1.bf16.msra.mxu1 %v10634_v34  ;;  %10573 = vmatprep.subr.bf16.mxu0 %v10572_v45  ;;  %v400_v34 = vld [vmem:[%s12289_s28 + $0x1f0] sm:$0xff]  ;;  %v10590_v45 = vunpack.c.h.s8.bf16 %v368_v33 }
 0x2a6   : > { %10637 = vmatprep.subr.bf16.mxu1 %v10636_v53  ;;  %v10654_v53 = vunpack.c.h.s8.bf16 %v400_v34 }
 0x2a8   : > { %10575 = vmatpush1.bf16.msra.mxu0 %v10574_v38  ;;  %v365_v38 = vld [vmem:[%s12289_s28 + $0xd8] sm:$0xff] }
 0x2a9   : > { %10639 = vmatpush1.bf16.msra.mxu1 %v10638_v39  ;;  %10577 = vmatprep.subr.bf16.mxu0 %v10576_v40  ;;  %v397_v39 = vld [vmem:[%s12289_s28 + $0x1d8] sm:$0xff]  ;;  %v10594_v40 = vunpack.c.l.s8.bf16 %v368_v33  ;;  %v10596_v51 = vunpack.c.h.s8.bf16 %v365_v38  ;;  %v10600_v12 = vunpack.c.l.s8.bf16 %v365_v38 }
 0x2aa   : > { %10641 = vmatprep.subr.bf16.mxu1 %v10640_v42  ;;  %v10658_v42 = vunpack.c.l.s8.bf16 %v400_v34  ;;  %v10660_v52 = vunpack.c.h.s8.bf16 %v397_v39  ;;  %v10664_v13 = vunpack.c.l.s8.bf16 %v397_v39 }
 0x2ac   : > { %10579 = vmatpush1.bf16.msra.mxu0 %v10578_v0  ;;  %v364_v0 = vld [vmem:[%s12289_s28 + $0xd0] sm:$0xff] }
 0x2ad   : > { %10643 = vmatpush1.bf16.msra.mxu1 %v10642_v1  ;;  %10581 = vmatprep.subr.bf16.mxu0 %v10580_v4  ;;  %v396_v1 = vld [vmem:[%s12289_s28 + $0x1d0] sm:$0xff]  ;;  %v10598_v4 = vunpack.c.h.s8.bf16 %v364_v0 }
 0x2ae   : > { %10645 = vmatprep.subr.bf16.mxu1 %v10644_v5  ;;  %v10662_v5 = vunpack.c.h.s8.bf16 %v396_v1 }
 0x2b0   : > { %10583 = vmatpush1.bf16.msra.mxu0 %v10582_v16  ;;  %v361_v16 = vld [vmem:[%s12289_s28 + $0xb8] sm:$0xff] }
 0x2b1   : > { %10647 = vmatpush1.bf16.msra.mxu1 %v10646_v17  ;;  %10585 = vmatprep.subr.bf16.mxu0 %v10584_v20  ;;  %v393_v17 = vld [vmem:[%s12289_s28 + $0x1b8] sm:$0xff]  ;;  %v10602_v20 = vunpack.c.l.s8.bf16 %v364_v0  ;;  %v10604_v22 = vunpack.c.h.s8.bf16 %v361_v16  ;;  %v10608_v33 = vunpack.c.l.s8.bf16 %v361_v16 }
 0x2b2   : > { %10649 = vmatprep.subr.bf16.mxu1 %v10648_v21  ;;  %v10666_v21 = vunpack.c.l.s8.bf16 %v396_v1  ;;  %v10668_v23 = vunpack.c.h.s8.bf16 %v393_v17  ;;  %v10672_v34 = vunpack.c.l.s8.bf16 %v393_v17 }
 0x2b4   : > { %10587 = vmatpush1.bf16.msra.mxu0 %v10586_v29  ;;  %v360_v29 = vld [vmem:[%s12289_s28 + $0xb0] sm:$0xff] }
 0x2b5   : > { %10651 = vmatpush1.bf16.msra.mxu1 %v10650_v30  ;;  %10589 = vmatprep.subr.bf16.mxu0 %v10588_v31  ;;  %v392_v30 = vld [vmem:[%s12289_s28 + $0x1b0] sm:$0xff]  ;;  %v10606_v31 = vunpack.c.h.s8.bf16 %v360_v29 }
 0x2b6   : > { %10653 = vmatprep.subr.bf16.mxu1 %v10652_v32  ;;  %v10670_v32 = vunpack.c.h.s8.bf16 %v392_v30 }
 0x2b8   : > { %10591 = vmatpush2.bf16.msra.mxu0 %v10590_v45  ;;  %v357_v45 = vld [vmem:[%s12289_s28 + $0x98] sm:$0xff] }
 0x2b9   : > { %10655 = vmatpush2.bf16.msra.mxu1 %v10654_v53  ;;  %10593 = vmatprep.subr.bf16.mxu0 %v10592_v36  ;;  %v389_v53 = vld [vmem:[%s12289_s28 + $0x198] sm:$0xff]  ;;  %v10610_v36 = vunpack.c.l.s8.bf16 %v360_v29  ;;  %v10612_v38 = vunpack.c.h.s8.bf16 %v357_v45  ;;  %v10616_v0 = vunpack.c.l.s8.bf16 %v357_v45 }
 0x2ba   : > { %10657 = vmatprep.subr.bf16.mxu1 %v10656_v37  ;;  %v10674_v37 = vunpack.c.l.s8.bf16 %v392_v30  ;;  %v10676_v39 = vunpack.c.h.s8.bf16 %v389_v53  ;;  %v10680_v1 = vunpack.c.l.s8.bf16 %v389_v53 }
 0x2bc   : > { %10595 = vmatpush2.bf16.msra.mxu0 %v10594_v40  ;;  %v356_v40 = vld [vmem:[%s12289_s28 + $0x90] sm:$0xff] }
 0x2bd   : > { %10659 = vmatpush2.bf16.msra.mxu1 %v10658_v42  ;;  %10597 = vmatprep.subr.bf16.mxu0 %v10596_v51  ;;  %v388_v42 = vld [vmem:[%s12289_s28 + $0x190] sm:$0xff]  ;;  %v10614_v51 = vunpack.c.h.s8.bf16 %v356_v40 }
 0x2be   : > { %10661 = vmatprep.subr.bf16.mxu1 %v10660_v52  ;;  %v10678_v52 = vunpack.c.h.s8.bf16 %v388_v42 }
 0x2c0   : > { %10599 = vmatpush2.bf16.msra.mxu0 %v10598_v4  ;;  %v417_v4 = vld [vmem:[%s12289_s28 + $0x278] sm:$0xff] }
 0x2c1   : > { %10663 = vmatpush2.bf16.msra.mxu1 %v10662_v5  ;;  %10601 = vmatprep.subr.bf16.mxu0 %v10600_v12  ;;  %v449_v5 = vld [vmem:[%s12289_s28 + $0x378] sm:$0xff]  ;;  %v10618_v12 = vunpack.c.l.s8.bf16 %v356_v40  ;;  %v10684_v16 = vunpack.c.h.s8.bf16 %v417_v4  ;;  %v10688_v29 = vunpack.c.l.s8.bf16 %v417_v4 }
 0x2c2   : > { %10665 = vmatprep.subr.bf16.mxu1 %v10664_v13  ;;  %v10682_v13 = vunpack.c.l.s8.bf16 %v388_v42  ;;  %v10748_v17 = vunpack.c.h.s8.bf16 %v449_v5  ;;  %v10752_v30 = vunpack.c.l.s8.bf16 %v449_v5  ;;  %v409_v40 = vld [vmem:[%s12289_s28 + $0x238] sm:$0xff] }
 0x2c3   : > { %v441_v42 = vld [vmem:[%s12289_s28 + $0x338] sm:$0xff] }
 0x2c4   : > { %10603 = vmatpush2.bf16.msra.mxu0 %v10602_v20  ;;  %v416_v20 = vld [vmem:[%s12289_s28 + $0x270] sm:$0xff] }
 0x2c5   : > { %10667 = vmatpush2.bf16.msra.mxu1 %v10666_v21  ;;  %10605 = vmatprep.subr.bf16.mxu0 %v10604_v22  ;;  %v448_v21 = vld [vmem:[%s12289_s28 + $0x370] sm:$0xff]  ;;  %v10686_v22 = vunpack.c.h.s8.bf16 %v416_v20 }
 0x2c6   : > { %10669 = vmatprep.subr.bf16.mxu1 %v10668_v23  ;;  %v10750_v23 = vunpack.c.h.s8.bf16 %v448_v21 }
 0x2c8   : > { %10607 = vmatpush2.bf16.msra.mxu0 %v10606_v31  ;;  %v413_v31 = vld [vmem:[%s12289_s28 + $0x258] sm:$0xff] }
 0x2c9   : > { %10671 = vmatpush2.bf16.msra.mxu1 %v10670_v32  ;;  %10609 = vmatprep.subr.bf16.mxu0 %v10608_v33  ;;  %v445_v32 = vld [vmem:[%s12289_s28 + $0x358] sm:$0xff]  ;;  %v10690_v33 = vunpack.c.l.s8.bf16 %v416_v20  ;;  %v10692_v45 = vunpack.c.h.s8.bf16 %v413_v31 }
 0x2ca   : > { %10673 = vmatprep.subr.bf16.mxu1 %v10672_v34  ;;  %v10754_v34 = vunpack.c.l.s8.bf16 %v448_v21  ;;  %v10756_v53 = vunpack.c.h.s8.bf16 %v445_v32 }
 0x2cc   : > { %10611 = vmatpush2.bf16.msra.mxu0 %v10610_v36  ;;  %v412_v36 = vld [vmem:[%s12289_s28 + $0x250] sm:$0xff] }
 0x2cd   : > { %10675 = vmatpush2.bf16.msra.mxu1 %v10674_v37  ;;  %10613 = vmatprep.subr.bf16.mxu0 %v10612_v38  ;;  %v444_v37 = vld [vmem:[%s12289_s28 + $0x350] sm:$0xff]  ;;  %v10696_v38 = vunpack.c.l.s8.bf16 %v413_v31 }
 0x2ce   : > { %10677 = vmatprep.subr.bf16.mxu1 %v10676_v39  ;;  %v10760_v39 = vunpack.c.l.s8.bf16 %v445_v32 }
 0x2d0   : > { %10615 = vmatpush2.bf16.msra.mxu0 %v10614_v51  ;;  %v10698_v51 = vunpack.c.l.s8.bf16 %v412_v36 }
 0x2d1   : > { %10679 = vmatpush2.bf16.msra.mxu1 %v10678_v52  ;;  %10617 = vmatprep.subr.bf16.mxu0 %v10616_v0  ;;  %v10762_v52 = vunpack.c.l.s8.bf16 %v444_v37  ;;  %v408_v0 = vld [vmem:[%s12289_s28 + $0x230] sm:$0xff] }
 0x2d2   : > { %10681 = vmatprep.subr.bf16.mxu1 %v10680_v1  ;;  %v440_v1 = vld [vmem:[%s12289_s28 + $0x330] sm:$0xff]  ;;  %v10702_v4 = vunpack.c.h.s8.bf16 %v408_v0  ;;  %v10706_v20 = vunpack.c.l.s8.bf16 %v408_v0 }
 0x2d3   : > { %v10766_v5 = vunpack.c.h.s8.bf16 %v440_v1  ;;  %v10770_v21 = vunpack.c.l.s8.bf16 %v440_v1 }
 0x2d4   : > { %10619 = vmatpush2.bf16.msra.mxu0 %v10618_v12  ;;  %v10704_v12 = vunpack.c.l.s8.bf16 %v409_v40 }
 0x2d5   : > { %10683 = vmatpush2.bf16.msra.mxu1 %v10682_v13  ;;  %10685 = vmatprep.subr.bf16.mxu0 %v10684_v16  ;;  %v10768_v13 = vunpack.c.l.s8.bf16 %v441_v42  ;;  %v405_v16 = vld [vmem:[%s12289_s28 + $0x218] sm:$0xff] }
 0x2d6   : > { %10749 = vmatprep.subr.bf16.mxu1 %v10748_v17  ;;  %v437_v17 = vld [vmem:[%s12289_s28 + $0x318] sm:$0xff] }
 0x2d7   : > { %7072 = vmatmul.mubr.f32.vlgmr.msra.gmra.mxu0 %v12322_v41  ;;  %v10694_v41 = vunpack.c.h.s8.bf16 %v412_v36 }
 0x2d8   : > { %7143 = vmatmul.mubr.f32.vlgmr.msra.gmra.mxu1 %v12331_v46  ;;  %10687 = vmatpush1.bf16.msra.mxu0 %v10686_v22  ;;  %v10758_v46 = vunpack.c.h.s8.bf16 %v444_v37  ;;  %v10708_v22 = vunpack.c.h.s8.bf16 %v405_v16 }
 0x2d9   : > { %10751 = vmatpush1.bf16.msra.mxu1 %v10750_v23  ;;  %10689 = vmatprep.subr.bf16.mxu0 %v10688_v29  ;;  %v10772_v23 = vunpack.c.h.s8.bf16 %v437_v17  ;;  %v404_v29 = vld [vmem:[%s12289_s28 + $0x210] sm:$0xff] }
 0x2da   : > { %10753 = vmatprep.subr.bf16.mxu1 %v10752_v30  ;;  %7213 = vmatprep.mubr.f32.mxu0 %v12374_v2  ;;  %v10700_v2 = vunpack.c.h.s8.bf16 %v409_v40  ;;  %v436_v30 = vld [vmem:[%s12289_s28 + $0x310] sm:$0xff]  ;;  %v10710_v31 = vunpack.c.h.s8.bf16 %v404_v29  ;;  %v10714_v36 = vunpack.c.l.s8.bf16 %v404_v29 }
 0x2db   : > { %7284 = vmatprep.mubr.f32.mxu1 %v12378_v3  ;;  %v10764_v3 = vunpack.c.h.s8.bf16 %v441_v42  ;;  %v10774_v32 = vunpack.c.h.s8.bf16 %v436_v30  ;;  %v10778_v37 = vunpack.c.l.s8.bf16 %v436_v30 }
 0x2dc   : > { %10691 = vmatpush1.bf16.msra.mxu0 %v10690_v33  ;;  %v10712_v33 = vunpack.c.l.s8.bf16 %v405_v16 }
 0x2dd   : > { %10755 = vmatpush1.bf16.msra.mxu1 %v10754_v34  ;;  %10693 = vmatprep.subr.bf16.mxu0 %v10692_v45  ;;  %v10776_v34 = vunpack.c.l.s8.bf16 %v437_v17  ;;  %v433_v45 = vld [vmem:[%s12289_s28 + $0x2f8] sm:$0xff] }
 0x2de   : > { %10757 = vmatprep.subr.bf16.mxu1 %v10756_v53  ;;  %v465_v53 = vld [vmem:[%s12289_s28 + $0x3f8] sm:$0xff] }
 0x2e0   : > { %10695 = vmatpush1.bf16.msra.mxu0 %v10694_v41  ;;  %v10716_v41 = vunpack.c.h.s8.bf16 %v433_v45 }
 0x2e1   : > { %10759 = vmatpush1.bf16.msra.mxu1 %v10758_v46  ;;  %10697 = vmatprep.subr.bf16.mxu0 %v10696_v38  ;;  %v10780_v46 = vunpack.c.h.s8.bf16 %v465_v53  ;;  %v432_v38 = vld [vmem:[%s12289_s28 + $0x2f0] sm:$0xff] }
 0x2e2   : > { %10761 = vmatprep.subr.bf16.mxu1 %v10760_v39  ;;  %v464_v39 = vld [vmem:[%s12289_s28 + $0x3f0] sm:$0xff]  ;;  %v10718_v40 = vunpack.c.h.s8.bf16 %v432_v38  ;;  %v10722_v0 = vunpack.c.l.s8.bf16 %v432_v38 }
 0x2e3   : > { %v10782_v42 = vunpack.c.h.s8.bf16 %v464_v39  ;;  %v10786_v1 = vunpack.c.l.s8.bf16 %v464_v39 }
 0x2e4   : > { %10699 = vmatpush1.bf16.msra.mxu0 %v10698_v51  ;;  %v10720_v51 = vunpack.c.l.s8.bf16 %v433_v45 }
 0x2e5   : > { %10763 = vmatpush1.bf16.msra.mxu1 %v10762_v52  ;;  %10701 = vmatprep.subr.bf16.mxu0 %v10700_v2  ;;  %v10784_v52 = vunpack.c.l.s8.bf16 %v465_v53  ;;  %v429_v2 = vld [vmem:[%s12289_s28 + $0x2d8] sm:$0xff] }
 0x2e6   : > { %10765 = vmatprep.subr.bf16.mxu1 %v10764_v3  ;;  %v461_v3 = vld [vmem:[%s12289_s28 + $0x3d8] sm:$0xff] }
 0x2e8   : > { %10703 = vmatpush1.bf16.msra.mxu0 %v10702_v4  ;;  %v10724_v4 = vunpack.c.h.s8.bf16 %v429_v2 }
 0x2e9   : > { %10767 = vmatpush1.bf16.msra.mxu1 %v10766_v5  ;;  %10705 = vmatprep.subr.bf16.mxu0 %v10704_v12  ;;  %v10788_v5 = vunpack.c.h.s8.bf16 %v461_v3  ;;  %v428_v12 = vld [vmem:[%s12289_s28 + $0x2d0] sm:$0xff] }
 0x2ea   : > { %10769 = vmatprep.subr.bf16.mxu1 %v10768_v13  ;;  %v460_v13 = vld [vmem:[%s12289_s28 + $0x3d0] sm:$0xff]  ;;  %v10726_v16 = vunpack.c.h.s8.bf16 %v428_v12  ;;  %v10730_v29 = vunpack.c.l.s8.bf16 %v428_v12 }
 0x2eb   : > { %v10790_v17 = vunpack.c.h.s8.bf16 %v460_v13  ;;  %v10794_v30 = vunpack.c.l.s8.bf16 %v460_v13 }
 0x2ec   : > { %10707 = vmatpush1.bf16.msra.mxu0 %v10706_v20  ;;  %v10728_v20 = vunpack.c.l.s8.bf16 %v429_v2 }
 0x2ed   : > { %10771 = vmatpush1.bf16.msra.mxu1 %v10770_v21  ;;  %10709 = vmatprep.subr.bf16.mxu0 %v10708_v22  ;;  %v10792_v21 = vunpack.c.l.s8.bf16 %v461_v3  ;;  %v425_v22 = vld [vmem:[%s12289_s28 + $0x2b8] sm:$0xff] }
 0x2ee   : > { %10773 = vmatprep.subr.bf16.mxu1 %v10772_v23  ;;  %v457_v23 = vld [vmem:[%s12289_s28 + $0x3b8] sm:$0xff] }
 0x2f0   : > { %10711 = vmatpush1.bf16.msra.mxu0 %v10710_v31  ;;  %v10732_v31 = vunpack.c.h.s8.bf16 %v425_v22 }
 0x2f1   : > { %10775 = vmatpush1.bf16.msra.mxu1 %v10774_v32  ;;  %10713 = vmatprep.subr.bf16.mxu0 %v10712_v33  ;;  %v10796_v32 = vunpack.c.h.s8.bf16 %v457_v23  ;;  %v424_v33 = vld [vmem:[%s12289_s28 + $0x2b0] sm:$0xff] }
 0x2f2   : > { %10777 = vmatprep.subr.bf16.mxu1 %v10776_v34  ;;  %v456_v34 = vld [vmem:[%s12289_s28 + $0x3b0] sm:$0xff]  ;;  %v10734_v45 = vunpack.c.h.s8.bf16 %v424_v33  ;;  %v10738_v38 = vunpack.c.l.s8.bf16 %v424_v33 }
 0x2f3   : > { %v10798_v53 = vunpack.c.h.s8.bf16 %v456_v34  ;;  %v10802_v39 = vunpack.c.l.s8.bf16 %v456_v34 }
 0x2f4   : > { %10715 = vmatpush1.bf16.msra.mxu0 %v10714_v36  ;;  %v10736_v36 = vunpack.c.l.s8.bf16 %v425_v22 }
 0x2f5   : > { %10779 = vmatpush1.bf16.msra.mxu1 %v10778_v37  ;;  %10717 = vmatprep.subr.bf16.mxu0 %v10716_v41  ;;  %v10800_v37 = vunpack.c.l.s8.bf16 %v457_v23  ;;  %v421_v41 = vld [vmem:[%s12289_s28 + $0x298] sm:$0xff] }
 0x2f6   : > { %10781 = vmatprep.subr.bf16.mxu1 %v10780_v46  ;;  %v453_v46 = vld [vmem:[%s12289_s28 + $0x398] sm:$0xff] }
 0x2f8   : > { %10719 = vmatpush2.bf16.msra.mxu0 %v10718_v40  ;;  %v10740_v40 = vunpack.c.h.s8.bf16 %v421_v41 }
 0x2f9   : > { %10783 = vmatpush2.bf16.msra.mxu1 %v10782_v42  ;;  %10721 = vmatprep.subr.bf16.mxu0 %v10720_v51  ;;  %v10804_v42 = vunpack.c.h.s8.bf16 %v453_v46  ;;  %v420_v51 = vld [vmem:[%s12289_s28 + $0x290] sm:$0xff] }
 0x2fa   : > { %10785 = vmatprep.subr.bf16.mxu1 %v10784_v52  ;;  %v452_v52 = vld [vmem:[%s12289_s28 + $0x390] sm:$0xff]  ;;  %v10742_v2 = vunpack.c.h.s8.bf16 %v420_v51  ;;  %v10746_v12 = vunpack.c.l.s8.bf16 %v420_v51 }
 0x2fb   : > { %v10806_v3 = vunpack.c.h.s8.bf16 %v452_v52  ;;  %v10810_v13 = vunpack.c.l.s8.bf16 %v452_v52  ;;  %v472_v51 = vld [vmem:[%s12289_s28 + $0x430] sm:$0xff] }
 0x2fc   : > { %10723 = vmatpush2.bf16.msra.mxu0 %v10722_v0  ;;  %v10744_v0 = vunpack.c.l.s8.bf16 %v421_v41  ;;  %v504_v52 = vld [vmem:[%s12289_s28 + $0x530] sm:$0xff] }
 0x2fd   : > { %10787 = vmatpush2.bf16.msra.mxu1 %v10786_v1  ;;  %10725 = vmatprep.subr.bf16.mxu0 %v10724_v4  ;;  %v10808_v1 = vunpack.c.l.s8.bf16 %v453_v46  ;;  %v481_v4 = vld [vmem:[%s12289_s28 + $0x478] sm:$0xff] }
 0x2fe   : > { %10789 = vmatprep.subr.bf16.mxu1 %v10788_v5  ;;  %v513_v5 = vld [vmem:[%s12289_s28 + $0x578] sm:$0xff] }
 0x300   : > { %10727 = vmatpush2.bf16.msra.mxu0 %v10726_v16  ;;  %v10812_v16 = vunpack.c.h.s8.bf16 %v481_v4 }
 0x301   : > { %10791 = vmatpush2.bf16.msra.mxu1 %v10790_v17  ;;  %10729 = vmatprep.subr.bf16.mxu0 %v10728_v20  ;;  %v10876_v17 = vunpack.c.h.s8.bf16 %v513_v5  ;;  %v480_v20 = vld [vmem:[%s12289_s28 + $0x470] sm:$0xff] }
 0x302   : > { %10793 = vmatprep.subr.bf16.mxu1 %v10792_v21  ;;  %v512_v21 = vld [vmem:[%s12289_s28 + $0x570] sm:$0xff]  ;;  %v10814_v22 = vunpack.c.h.s8.bf16 %v480_v20  ;;  %v10818_v33 = vunpack.c.l.s8.bf16 %v480_v20 }
 0x303   : > { %v10878_v23 = vunpack.c.h.s8.bf16 %v512_v21  ;;  %v10882_v34 = vunpack.c.l.s8.bf16 %v512_v21  ;;  %v468_v20 = vld [vmem:[%s12289_s28 + $0x410] sm:$0xff] }
 0x304   : > { %10731 = vmatpush2.bf16.msra.mxu0 %v10730_v29  ;;  %v10816_v29 = vunpack.c.l.s8.bf16 %v481_v4  ;;  %v469_v4 = vld [vmem:[%s12289_s28 + $0x418] sm:$0xff]  ;;  %v500_v21 = vld [vmem:[%s12289_s28 + $0x510] sm:$0xff] }
 0x305   : > { %10795 = vmatpush2.bf16.msra.mxu1 %v10794_v30  ;;  %10733 = vmatprep.subr.bf16.mxu0 %v10732_v31  ;;  %v10880_v30 = vunpack.c.l.s8.bf16 %v513_v5  ;;  %v477_v31 = vld [vmem:[%s12289_s28 + $0x458] sm:$0xff] }
 0x306   : > { %10797 = vmatprep.subr.bf16.mxu1 %v10796_v32  ;;  %v509_v32 = vld [vmem:[%s12289_s28 + $0x558] sm:$0xff]  ;;  %v10824_v41 = vunpack.c.l.s8.bf16 %v477_v31 }
 0x307   : > { %v10888_v46 = vunpack.c.l.s8.bf16 %v509_v32  ;;  %v501_v5 = vld [vmem:[%s12289_s28 + $0x518] sm:$0xff] }
 0x308   : > { %10735 = vmatpush2.bf16.msra.mxu0 %v10734_v45  ;;  %v10820_v45 = vunpack.c.h.s8.bf16 %v477_v31  ;;  %v497_v31 = vld [vmem:[%s12289_s28 + $0x4f8] sm:$0xff] }
 0x309   : > { %10799 = vmatpush2.bf16.msra.mxu1 %v10798_v53  ;;  %10737 = vmatprep.subr.bf16.mxu0 %v10736_v36  ;;  %v10884_v53 = vunpack.c.h.s8.bf16 %v509_v32  ;;  %v476_v36 = vld [vmem:[%s12289_s28 + $0x450] sm:$0xff]  ;;  %v529_v32 = vld [vmem:[%s12289_s28 + $0x5f8] sm:$0xff] }
 0x30a   : > { %10801 = vmatprep.subr.bf16.mxu1 %v10800_v37  ;;  %v508_v37 = vld [vmem:[%s12289_s28 + $0x550] sm:$0xff] }
 0x30c   : > { %10739 = vmatpush2.bf16.msra.mxu0 %v10738_v38  ;;  %v473_v38 = vld [vmem:[%s12289_s28 + $0x438] sm:$0xff] }
 0x30d   : > { %10803 = vmatpush2.bf16.msra.mxu1 %v10802_v39  ;;  %10741 = vmatprep.subr.bf16.mxu0 %v10740_v40  ;;  %v505_v39 = vld [vmem:[%s12289_s28 + $0x538] sm:$0xff]  ;;  %v10826_v40 = vunpack.c.l.s8.bf16 %v476_v36 }
 0x30e   : > { %10805 = vmatprep.subr.bf16.mxu1 %v10804_v42  ;;  %v10890_v42 = vunpack.c.l.s8.bf16 %v508_v37 }
 0x310   : > { %10743 = vmatpush2.bf16.msra.mxu0 %v10742_v2  ;;  %v10830_v2 = vunpack.c.h.s8.bf16 %v472_v51 }
 0x311   : > { %10807 = vmatpush2.bf16.msra.mxu1 %v10806_v3  ;;  %10745 = vmatprep.subr.bf16.mxu0 %v10744_v0  ;;  %v10894_v3 = vunpack.c.h.s8.bf16 %v504_v52  ;;  %v10832_v0 = vunpack.c.l.s8.bf16 %v473_v38 }
 0x312   : > { %10809 = vmatprep.subr.bf16.mxu1 %v10808_v1  ;;  %v10896_v1 = vunpack.c.l.s8.bf16 %v505_v39 }
 0x314   : > { %10747 = vmatpush2.bf16.msra.mxu0 %v10746_v12  ;;  %v10834_v12 = vunpack.c.l.s8.bf16 %v472_v51  ;;  %v492_v51 = vld [vmem:[%s12289_s28 + $0x4d0] sm:$0xff] }
 0x315   : > { %10811 = vmatpush2.bf16.msra.mxu1 %v10810_v13  ;;  %10813 = vmatprep.subr.bf16.mxu0 %v10812_v16  ;;  %v10898_v13 = vunpack.c.l.s8.bf16 %v504_v52  ;;  %v10836_v16 = vunpack.c.h.s8.bf16 %v469_v4  ;;  %v524_v52 = vld [vmem:[%s12289_s28 + $0x5d0] sm:$0xff] }
 0x316   : > { %10877 = vmatprep.subr.bf16.mxu1 %v10876_v17  ;;  %v10900_v17 = vunpack.c.h.s8.bf16 %v501_v5 }
 0x317   : > { %7214 = vmatmul.mubr.f32.vlgmr.msra.gmra.mxu0 %v12365_v58  ;;  %v10822_v58 = vunpack.c.h.s8.bf16 %v476_v36  ;;  %v496_v36 = vld [vmem:[%s12289_s28 + $0x4f0] sm:$0xff] }
 0x318   : > { %7285 = vmatmul.mubr.f32.vlgmr.msra.gmra.mxu1 %v12368_v59  ;;  %10815 = vmatpush1.bf16.msra.mxu0 %v10814_v22  ;;  %v10886_v59 = vunpack.c.h.s8.bf16 %v508_v37  ;;  %v10838_v22 = vunpack.c.h.s8.bf16 %v468_v20  ;;  %v528_v37 = vld [vmem:[%s12289_s28 + $0x5f0] sm:$0xff] }
 0x319   : > { %10879 = vmatpush1.bf16.msra.mxu1 %v10878_v23  ;;  %10817 = vmatprep.subr.bf16.mxu0 %v10816_v29  ;;  %v10902_v23 = vunpack.c.h.s8.bf16 %v500_v21  ;;  %v10840_v29 = vunpack.c.l.s8.bf16 %v469_v4  ;;  %v489_v4 = vld [vmem:[%s12289_s28 + $0x4b8] sm:$0xff] }
 0x31a   : > { %10881 = vmatprep.subr.bf16.mxu1 %v10880_v30  ;;  %7355 = vmatprep.mubr.f32.mxu0 %v12427_v56  ;;  %v10828_v56 = vunpack.c.h.s8.bf16 %v473_v38  ;;  %v10904_v30 = vunpack.c.l.s8.bf16 %v501_v5  ;;  %v493_v38 = vld [vmem:[%s12289_s28 + $0x4d8] sm:$0xff] }
 0x31b   : > { %7426 = vmatprep.mubr.f32.mxu1 %v12431_v57  ;;  %v10892_v57 = vunpack.c.h.s8.bf16 %v505_v39  ;;  %v525_v39 = vld [vmem:[%s12289_s28 + $0x5d8] sm:$0xff] }
 0x31c   : > { %10819 = vmatpush1.bf16.msra.mxu0 %v10818_v33  ;;  %v10842_v33 = vunpack.c.l.s8.bf16 %v468_v20  ;;  %v521_v5 = vld [vmem:[%s12289_s28 + $0x5b8] sm:$0xff]  ;;  %v488_v20 = vld [vmem:[%s12289_s28 + $0x4b0] sm:$0xff] }
 0x31d   : > { %10883 = vmatpush1.bf16.msra.mxu1 %v10882_v34  ;;  %10821 = vmatprep.subr.bf16.mxu0 %v10820_v45  ;;  %v10906_v34 = vunpack.c.l.s8.bf16 %v500_v21  ;;  %v10844_v45 = vunpack.c.h.s8.bf16 %v497_v31  ;;  %v520_v21 = vld [vmem:[%s12289_s28 + $0x5b0] sm:$0xff] }
 0x31e   : > { %10885 = vmatprep.subr.bf16.mxu1 %v10884_v53  ;;  %v10908_v53 = vunpack.c.h.s8.bf16 %v529_v32 }
 0x320   : > { %10823 = vmatpush1.bf16.msra.mxu0 %v10822_v58  ;;  %v10846_v58 = vunpack.c.h.s8.bf16 %v496_v36 }
 0x321   : > { %10887 = vmatpush1.bf16.msra.mxu1 %v10886_v59  ;;  %10825 = vmatprep.subr.bf16.mxu0 %v10824_v41  ;;  %v10910_v59 = vunpack.c.h.s8.bf16 %v528_v37  ;;  %v10848_v41 = vunpack.c.l.s8.bf16 %v497_v31  ;;  %v485_v31 = vld [vmem:[%s12289_s28 + $0x498] sm:$0xff] }
 0x322   : > { %10889 = vmatprep.subr.bf16.mxu1 %v10888_v46  ;;  %v10912_v46 = vunpack.c.l.s8.bf16 %v529_v32  ;;  %v517_v32 = vld [vmem:[%s12289_s28 + $0x598] sm:$0xff] }
 0x324   : > { %10827 = vmatpush1.bf16.msra.mxu0 %v10826_v40  ;;  %v10850_v40 = vunpack.c.l.s8.bf16 %v496_v36  ;;  %v484_v36 = vld [vmem:[%s12289_s28 + $0x490] sm:$0xff] }
 0x325   : > { %10891 = vmatpush1.bf16.msra.mxu1 %v10890_v42  ;;  %10829 = vmatprep.subr.bf16.mxu0 %v10828_v56  ;;  %v10914_v42 = vunpack.c.l.s8.bf16 %v528_v37  ;;  %v10852_v56 = vunpack.c.h.s8.bf16 %v493_v38  ;;  %v516_v37 = vld [vmem:[%s12289_s28 + $0x590] sm:$0xff] }
 0x326   : > { %10893 = vmatprep.subr.bf16.mxu1 %v10892_v57  ;;  %v10916_v57 = vunpack.c.h.s8.bf16 %v525_v39 }
 0x328   : > { %10831 = vmatpush1.bf16.msra.mxu0 %v10830_v2  ;;  %v10854_v2 = vunpack.c.h.s8.bf16 %v492_v51 }
 0x329   : > { %10895 = vmatpush1.bf16.msra.mxu1 %v10894_v3  ;;  %10833 = vmatprep.subr.bf16.mxu0 %v10832_v0  ;;  %v10918_v3 = vunpack.c.h.s8.bf16 %v524_v52  ;;  %v10856_v0 = vunpack.c.l.s8.bf16 %v493_v38  ;;  %v545_v38 = vld [vmem:[%s12289_s28 + $0x678] sm:$0xff] }
 0x32a   : > { %10897 = vmatprep.subr.bf16.mxu1 %v10896_v1  ;;  %v10920_v1 = vunpack.c.l.s8.bf16 %v525_v39  ;;  %v577_v39 = vld [vmem:[%s12289_s28 + $0x778] sm:$0xff] }
 0x32c   : > { %10835 = vmatpush1.bf16.msra.mxu0 %v10834_v12  ;;  %v10858_v12 = vunpack.c.l.s8.bf16 %v492_v51  ;;  %v544_v51 = vld [vmem:[%s12289_s28 + $0x670] sm:$0xff] }
 0x32d   : > { %10899 = vmatpush1.bf16.msra.mxu1 %v10898_v13  ;;  %10837 = vmatprep.subr.bf16.mxu0 %v10836_v16  ;;  %v10922_v13 = vunpack.c.l.s8.bf16 %v524_v52  ;;  %v10860_v16 = vunpack.c.h.s8.bf16 %v489_v4  ;;  %v576_v52 = vld [vmem:[%s12289_s28 + $0x770] sm:$0xff] }
 0x32e   : > { %10901 = vmatprep.subr.bf16.mxu1 %v10900_v17  ;;  %v10924_v17 = vunpack.c.h.s8.bf16 %v521_v5 }
 0x330   : > { %10839 = vmatpush1.bf16.msra.mxu0 %v10838_v22  ;;  %v10862_v22 = vunpack.c.h.s8.bf16 %v488_v20 }
 0x331   : > { %10903 = vmatpush1.bf16.msra.mxu1 %v10902_v23  ;;  %10841 = vmatprep.subr.bf16.mxu0 %v10840_v29  ;;  %v10926_v23 = vunpack.c.h.s8.bf16 %v520_v21  ;;  %v10864_v29 = vunpack.c.l.s8.bf16 %v489_v4  ;;  %v541_v4 = vld [vmem:[%s12289_s28 + $0x658] sm:$0xff] }
 0x332   : > { %10905 = vmatprep.subr.bf16.mxu1 %v10904_v30  ;;  %v10928_v30 = vunpack.c.l.s8.bf16 %v521_v5  ;;  %v573_v5 = vld [vmem:[%s12289_s28 + $0x758] sm:$0xff] }
 0x334   : > { %10843 = vmatpush1.bf16.msra.mxu0 %v10842_v33  ;;  %v10866_v33 = vunpack.c.l.s8.bf16 %v488_v20  ;;  %v540_v20 = vld [vmem:[%s12289_s28 + $0x650] sm:$0xff] }
 0x335   : > { %10907 = vmatpush1.bf16.msra.mxu1 %v10906_v34  ;;  %10845 = vmatprep.subr.bf16.mxu0 %v10844_v45  ;;  %v10930_v34 = vunpack.c.l.s8.bf16 %v520_v21  ;;  %v10868_v45 = vunpack.c.h.s8.bf16 %v485_v31  ;;  %v572_v21 = vld [vmem:[%s12289_s28 + $0x750] sm:$0xff] }
 0x336   : > { %10909 = vmatprep.subr.bf16.mxu1 %v10908_v53  ;;  %v10932_v53 = vunpack.c.h.s8.bf16 %v517_v32 }
 0x338   : > { %10847 = vmatpush2.bf16.msra.mxu0 %v10846_v58  ;;  %v10870_v58 = vunpack.c.h.s8.bf16 %v484_v36 }
 0x339   : > { %10911 = vmatpush2.bf16.msra.mxu1 %v10910_v59  ;;  %10849 = vmatprep.subr.bf16.mxu0 %v10848_v41  ;;  %v10934_v59 = vunpack.c.h.s8.bf16 %v516_v37  ;;  %v10872_v41 = vunpack.c.l.s8.bf16 %v485_v31  ;;  %v10954_v31 = vunpack.c.l.s8.bf16 %v540_v20 }
 0x33a   : > { %10913 = vmatprep.subr.bf16.mxu1 %v10912_v46  ;;  %v10936_v46 = vunpack.c.l.s8.bf16 %v517_v32  ;;  %v11018_v32 = vunpack.c.l.s8.bf16 %v572_v21 }
 0x33c   : > { %10851 = vmatpush2.bf16.msra.mxu0 %v10850_v40  ;;  %v10874_v40 = vunpack.c.l.s8.bf16 %v484_v36 }
 0x33d   : > { %10915 = vmatpush2.bf16.msra.mxu1 %v10914_v42  ;;  %10853 = vmatprep.subr.bf16.mxu0 %v10852_v56  ;;  %v10938_v42 = vunpack.c.l.s8.bf16 %v516_v37  ;;  %v10940_v56 = vunpack.c.h.s8.bf16 %v545_v38 }
 0x33e   : > { %10917 = vmatprep.subr.bf16.mxu1 %v10916_v57  ;;  %v11004_v57 = vunpack.c.h.s8.bf16 %v577_v39 }
 0x340   : > { %10855 = vmatpush2.bf16.msra.mxu0 %v10854_v2  ;;  %v10942_v2 = vunpack.c.h.s8.bf16 %v544_v51 }
 0x341   : > { %10919 = vmatpush2.bf16.msra.mxu1 %v10918_v3  ;;  %10857 = vmatprep.subr.bf16.mxu0 %v10856_v0  ;;  %v11006_v3 = vunpack.c.h.s8.bf16 %v576_v52  ;;  %v10944_v0 = vunpack.c.l.s8.bf16 %v545_v38 }
 0x342   : > { %10921 = vmatprep.subr.bf16.mxu1 %v10920_v1  ;;  %v11008_v1 = vunpack.c.l.s8.bf16 %v577_v39 }
 0x344   : > { %10859 = vmatpush2.bf16.msra.mxu0 %v10858_v12  ;;  %v10946_v12 = vunpack.c.l.s8.bf16 %v544_v51 }
 0x345   : > { %10923 = vmatpush2.bf16.msra.mxu1 %v10922_v13  ;;  %10861 = vmatprep.subr.bf16.mxu0 %v10860_v16  ;;  %v11010_v13 = vunpack.c.l.s8.bf16 %v576_v52  ;;  %v10948_v16 = vunpack.c.h.s8.bf16 %v541_v4 }
 0x346   : > { %10925 = vmatprep.subr.bf16.mxu1 %v10924_v17  ;;  %v11012_v17 = vunpack.c.h.s8.bf16 %v573_v5 }
 0x348   : > { %10863 = vmatpush2.bf16.msra.mxu0 %v10862_v22  ;;  %v10952_v22 = vunpack.c.l.s8.bf16 %v541_v4 }
 0x349   : > { %10927 = vmatpush2.bf16.msra.mxu1 %v10926_v23  ;;  %10865 = vmatprep.subr.bf16.mxu0 %v10864_v29  ;;  %v11016_v23 = vunpack.c.l.s8.bf16 %v573_v5  ;;  %v537_v29 = vld [vmem:[%s12289_s28 + $0x638] sm:$0xff] }
 0x34a   : > { %10929 = vmatprep.subr.bf16.mxu1 %v10928_v30  ;;  %v569_v30 = vld [vmem:[%s12289_s28 + $0x738] sm:$0xff]  ;;  %v10960_v36 = vunpack.c.l.s8.bf16 %v537_v29 }
 0x34b   : > { %v11024_v37 = vunpack.c.l.s8.bf16 %v569_v30 }
 0x34c   : > { %10867 = vmatpush2.bf16.msra.mxu0 %v10866_v33  ;;  %v536_v33 = vld [vmem:[%s12289_s28 + $0x630] sm:$0xff] }
 0x34d   : > { %10931 = vmatpush2.bf16.msra.mxu1 %v10930_v34  ;;  %10869 = vmatprep.subr.bf16.mxu0 %v10868_v45  ;;  %v568_v34 = vld [vmem:[%s12289_s28 + $0x730] sm:$0xff]  ;;  %v10958_v45 = vunpack.c.h.s8.bf16 %v536_v33 }
 0x34e   : > { %10933 = vmatprep.subr.bf16.mxu1 %v10932_v53  ;;  %v11022_v53 = vunpack.c.h.s8.bf16 %v568_v34 }
 0x350   : > { %10871 = vmatpush2.bf16.msra.mxu0 %v10870_v58  ;;  %v533_v58 = vld [vmem:[%s12289_s28 + $0x618] sm:$0xff] }
 0x351   : > { %10935 = vmatpush2.bf16.msra.mxu1 %v10934_v59  ;;  %10873 = vmatprep.subr.bf16.mxu0 %v10872_v41  ;;  %v565_v59 = vld [vmem:[%s12289_s28 + $0x718] sm:$0xff]  ;;  %v10962_v41 = vunpack.c.l.s8.bf16 %v536_v33  ;;  %v10964_v38 = vunpack.c.h.s8.bf16 %v533_v58  ;;  %v10968_v51 = vunpack.c.l.s8.bf16 %v533_v58 }
 0x352   : > { %10937 = vmatprep.subr.bf16.mxu1 %v10936_v46  ;;  %v11026_v46 = vunpack.c.l.s8.bf16 %v568_v34  ;;  %v11028_v39 = vunpack.c.h.s8.bf16 %v565_v59  ;;  %v11032_v52 = vunpack.c.l.s8.bf16 %v565_v59 }
 0x354   : > { %10875 = vmatpush2.bf16.msra.mxu0 %v10874_v40  ;;  %v532_v40 = vld [vmem:[%s12289_s28 + $0x610] sm:$0xff] }
 0x355   : > { %10939 = vmatpush2.bf16.msra.mxu1 %v10938_v42  ;;  %10941 = vmatprep.subr.bf16.mxu0 %v10940_v56  ;;  %v564_v42 = vld [vmem:[%s12289_s28 + $0x710] sm:$0xff]  ;;  %v10966_v56 = vunpack.c.h.s8.bf16 %v532_v40 }
 0x356   : > { %11005 = vmatprep.subr.bf16.mxu1 %v11004_v57  ;;  %v11030_v57 = vunpack.c.h.s8.bf16 %v564_v42 }
 0x357   : > { %7356 = vmatmul.mubr.f32.vlgmr.msra.gmra.mxu0 %v12418_v47  ;;  %v10950_v47 = vunpack.c.h.s8.bf16 %v540_v20 }
 0x358   : > { %7427 = vmatmul.mubr.f32.vlgmr.msra.gmra.mxu1 %v12421_v48  ;;  %10943 = vmatpush1.bf16.msra.mxu0 %v10942_v2  ;;  %v11014_v48 = vunpack.c.h.s8.bf16 %v572_v21  ;;  %v561_v2 = vld [vmem:[%s12289_s28 + $0x6f8] sm:$0xff] }
 0x359   : > { %11007 = vmatpush1.bf16.msra.mxu1 %v11006_v3  ;;  %10945 = vmatprep.subr.bf16.mxu0 %v10944_v0  ;;  %v593_v3 = vld [vmem:[%s12289_s28 + $0x7f8] sm:$0xff]  ;;  %v10970_v0 = vunpack.c.l.s8.bf16 %v532_v40  ;;  %v10972_v4 = vunpack.c.h.s8.bf16 %v561_v2  ;;  %v10976_v20 = vunpack.c.l.s8.bf16 %v561_v2 }
 0x35a   : > { %11009 = vmatprep.subr.bf16.mxu1 %v11008_v1  ;;  %7497 = vmatprep.mubr.f32.mxu0 %v12480_v60  ;;  %v10956_v60 = vunpack.c.h.s8.bf16 %v537_v29  ;;  %v11034_v1 = vunpack.c.l.s8.bf16 %v564_v42  ;;  %v11036_v5 = vunpack.c.h.s8.bf16 %v593_v3  ;;  %v11040_v21 = vunpack.c.l.s8.bf16 %v593_v3 }
 0x35b   : > { %7568 = vmatprep.mubr.f32.mxu1 %v12484_v61  ;;  %v11020_v61 = vunpack.c.h.s8.bf16 %v569_v30 }
 0x35c   : > { %10947 = vmatpush1.bf16.msra.mxu0 %v10946_v12  ;;  %v560_v12 = vld [vmem:[%s12289_s28 + $0x6f0] sm:$0xff] }
 0x35d   : > { %11011 = vmatpush1.bf16.msra.mxu1 %v11010_v13  ;;  %10949 = vmatprep.subr.bf16.mxu0 %v10948_v16  ;;  %v592_v13 = vld [vmem:[%s12289_s28 + $0x7f0] sm:$0xff]  ;;  %v10974_v16 = vunpack.c.h.s8.bf16 %v560_v12 }
 0x35e   : > { %11013 = vmatprep.subr.bf16.mxu1 %v11012_v17  ;;  %v11038_v17 = vunpack.c.h.s8.bf16 %v592_v13 }
 0x360   : > { %10951 = vmatpush1.bf16.msra.mxu0 %v10950_v47  ;;  %v557_v47 = vld [vmem:[%s12289_s28 + $0x6d8] sm:$0xff] }
 0x361   : > { %11015 = vmatpush1.bf16.msra.mxu1 %v11014_v48  ;;  %10953 = vmatprep.subr.bf16.mxu0 %v10952_v22  ;;  %v589_v48 = vld [vmem:[%s12289_s28 + $0x7d8] sm:$0xff]  ;;  %v10978_v22 = vunpack.c.l.s8.bf16 %v560_v12  ;;  %v10980_v29 = vunpack.c.h.s8.bf16 %v557_v47  ;;  %v10984_v33 = vunpack.c.l.s8.bf16 %v557_v47 }
 0x362   : > { %11017 = vmatprep.subr.bf16.mxu1 %v11016_v23  ;;  %v11042_v23 = vunpack.c.l.s8.bf16 %v592_v13  ;;  %v11044_v30 = vunpack.c.h.s8.bf16 %v589_v48  ;;  %v11048_v34 = vunpack.c.l.s8.bf16 %v589_v48 }
 0x364   : > { %10955 = vmatpush1.bf16.msra.mxu0 %v10954_v31  ;;  %v556_v31 = vld [vmem:[%s12289_s28 + $0x6d0] sm:$0xff] }
 0x365   : > { %11019 = vmatpush1.bf16.msra.mxu1 %v11018_v32  ;;  %10957 = vmatprep.subr.bf16.mxu0 %v10956_v60  ;;  %v588_v32 = vld [vmem:[%s12289_s28 + $0x7d0] sm:$0xff]  ;;  %v10982_v60 = vunpack.c.h.s8.bf16 %v556_v31 }
 0x366   : > { %11021 = vmatprep.subr.bf16.mxu1 %v11020_v61  ;;  %v11046_v61 = vunpack.c.h.s8.bf16 %v588_v32 }
 0x368   : > { %10959 = vmatpush1.bf16.msra.mxu0 %v10958_v45  ;;  %v553_v45 = vld [vmem:[%s12289_s28 + $0x6b8] sm:$0xff] }
 0x369   : > { %11023 = vmatpush1.bf16.msra.mxu1 %v11022_v53  ;;  %10961 = vmatprep.subr.bf16.mxu0 %v10960_v36  ;;  %v585_v53 = vld [vmem:[%s12289_s28 + $0x7b8] sm:$0xff]  ;;  %v10986_v36 = vunpack.c.l.s8.bf16 %v556_v31  ;;  %v10988_v58 = vunpack.c.h.s8.bf16 %v553_v45  ;;  %v10992_v40 = vunpack.c.l.s8.bf16 %v553_v45 }
 0x36a   : > { %11025 = vmatprep.subr.bf16.mxu1 %v11024_v37  ;;  %v11050_v37 = vunpack.c.l.s8.bf16 %v588_v32  ;;  %v11052_v59 = vunpack.c.h.s8.bf16 %v585_v53  ;;  %v11056_v42 = vunpack.c.l.s8.bf16 %v585_v53 }
 0x36c   : > { %10963 = vmatpush1.bf16.msra.mxu0 %v10962_v41  ;;  %v552_v41 = vld [vmem:[%s12289_s28 + $0x6b0] sm:$0xff] }
 0x36d   : > { %11027 = vmatpush1.bf16.msra.mxu1 %v11026_v46  ;;  %10965 = vmatprep.subr.bf16.mxu0 %v10964_v38  ;;  %v584_v46 = vld [vmem:[%s12289_s28 + $0x7b0] sm:$0xff]  ;;  %v10990_v38 = vunpack.c.h.s8.bf16 %v552_v41 }
 0x36e   : > { %11029 = vmatprep.subr.bf16.mxu1 %v11028_v39  ;;  %v11054_v39 = vunpack.c.h.s8.bf16 %v584_v46 }
 0x370   : > { %10967 = vmatpush1.bf16.msra.mxu0 %v10966_v56  ;;  %v549_v56 = vld [vmem:[%s12289_s28 + $0x698] sm:$0xff] }
 0x371   : > { %11031 = vmatpush1.bf16.msra.mxu1 %v11030_v57  ;;  %10969 = vmatprep.subr.bf16.mxu0 %v10968_v51  ;;  %v581_v57 = vld [vmem:[%s12289_s28 + $0x798] sm:$0xff]  ;;  %v10994_v51 = vunpack.c.l.s8.bf16 %v552_v41  ;;  %v10996_v2 = vunpack.c.h.s8.bf16 %v549_v56  ;;  %v11000_v12 = vunpack.c.l.s8.bf16 %v549_v56 }
 0x372   : > { %11033 = vmatprep.subr.bf16.mxu1 %v11032_v52  ;;  %v11058_v52 = vunpack.c.l.s8.bf16 %v584_v46  ;;  %v11060_v3 = vunpack.c.h.s8.bf16 %v581_v57  ;;  %v11064_v13 = vunpack.c.l.s8.bf16 %v581_v57  ;;  %v601_v41 = vld [vmem:[%s12289_s28 + $0x838] sm:$0xff] }
 0x373   : > { %v633_v46 = vld [vmem:[%s12289_s28 + $0x938] sm:$0xff] }
 0x374   : > { %10971 = vmatpush1.bf16.msra.mxu0 %v10970_v0  ;;  %v548_v0 = vld [vmem:[%s12289_s28 + $0x690] sm:$0xff] }
 0x375   : > { %11035 = vmatpush1.bf16.msra.mxu1 %v11034_v1  ;;  %10973 = vmatprep.subr.bf16.mxu0 %v10972_v4  ;;  %v580_v1 = vld [vmem:[%s12289_s28 + $0x790] sm:$0xff]  ;;  %v10998_v4 = vunpack.c.h.s8.bf16 %v548_v0 }
 0x376   : > { %11037 = vmatprep.subr.bf16.mxu1 %v11036_v5  ;;  %v11062_v5 = vunpack.c.h.s8.bf16 %v580_v1 }
 0x378   : > { %10975 = vmatpush2.bf16.msra.mxu0 %v10974_v16  ;;  %v609_v16 = vld [vmem:[%s12289_s28 + $0x878] sm:$0xff] }
 0x379   : > { %11039 = vmatpush2.bf16.msra.mxu1 %v11038_v17  ;;  %10977 = vmatprep.subr.bf16.mxu0 %v10976_v20  ;;  %v641_v17 = vld [vmem:[%s12289_s28 + $0x978] sm:$0xff]  ;;  %v11002_v20 = vunpack.c.l.s8.bf16 %v548_v0  ;;  %v11068_v47 = vunpack.c.h.s8.bf16 %v609_v16  ;;  %v11072_v31 = vunpack.c.l.s8.bf16 %v609_v16 }
 0x37a   : > { %11041 = vmatprep.subr.bf16.mxu1 %v11040_v21  ;;  %v11066_v21 = vunpack.c.l.s8.bf16 %v580_v1  ;;  %v11132_v48 = vunpack.c.h.s8.bf16 %v641_v17  ;;  %v11136_v32 = vunpack.c.l.s8.bf16 %v641_v17 }
 0x37c   : > { %10979 = vmatpush2.bf16.msra.mxu0 %v10978_v22  ;;  %v608_v22 = vld [vmem:[%s12289_s28 + $0x870] sm:$0xff] }
 0x37d   : > { %11043 = vmatpush2.bf16.msra.mxu1 %v11042_v23  ;;  %10981 = vmatprep.subr.bf16.mxu0 %v10980_v29  ;;  %v640_v23 = vld [vmem:[%s12289_s28 + $0x970] sm:$0xff]  ;;  %v11070_v29 = vunpack.c.h.s8.bf16 %v608_v22 }
 0x37e   : > { %11045 = vmatprep.subr.bf16.mxu1 %v11044_v30  ;;  %v11134_v30 = vunpack.c.h.s8.bf16 %v640_v23 }
 0x380   : > { %10983 = vmatpush2.bf16.msra.mxu0 %v10982_v60  ;;  %v605_v60 = vld [vmem:[%s12289_s28 + $0x858] sm:$0xff] }
 0x381   : > { %11047 = vmatpush2.bf16.msra.mxu1 %v11046_v61  ;;  %10985 = vmatprep.subr.bf16.mxu0 %v10984_v33  ;;  %v637_v61 = vld [vmem:[%s12289_s28 + $0x958] sm:$0xff]  ;;  %v11074_v33 = vunpack.c.l.s8.bf16 %v608_v22  ;;  %v11076_v45 = vunpack.c.h.s8.bf16 %v605_v60 }
 0x382   : > { %11049 = vmatprep.subr.bf16.mxu1 %v11048_v34  ;;  %v11138_v34 = vunpack.c.l.s8.bf16 %v640_v23  ;;  %v11140_v53 = vunpack.c.h.s8.bf16 %v637_v61 }
 0x384   : > { %10987 = vmatpush2.bf16.msra.mxu0 %v10986_v36  ;;  %v604_v36 = vld [vmem:[%s12289_s28 + $0x850] sm:$0xff] }
 0x385   : > { %11051 = vmatpush2.bf16.msra.mxu1 %v11050_v37  ;;  %10989 = vmatprep.subr.bf16.mxu0 %v10988_v58  ;;  %v636_v37 = vld [vmem:[%s12289_s28 + $0x950] sm:$0xff]  ;;  %v11080_v58 = vunpack.c.l.s8.bf16 %v605_v60 }
 0x386   : > { %11053 = vmatprep.subr.bf16.mxu1 %v11052_v59  ;;  %v11144_v59 = vunpack.c.l.s8.bf16 %v637_v61 }
 0x388   : > { %10991 = vmatpush2.bf16.msra.mxu0 %v10990_v38  ;;  %v11082_v38 = vunpack.c.l.s8.bf16 %v604_v36 }
 0x389   : > { %11055 = vmatpush2.bf16.msra.mxu1 %v11054_v39  ;;  %10993 = vmatprep.subr.bf16.mxu0 %v10992_v40  ;;  %v11146_v39 = vunpack.c.l.s8.bf16 %v636_v37  ;;  %v600_v40 = vld [vmem:[%s12289_s28 + $0x830] sm:$0xff] }
 0x38a   : > { %11057 = vmatprep.subr.bf16.mxu1 %v11056_v42  ;;  %v632_v42 = vld [vmem:[%s12289_s28 + $0x930] sm:$0xff]  ;;  %v11086_v56 = vunpack.c.h.s8.bf16 %v600_v40  ;;  %v11090_v0 = vunpack.c.l.s8.bf16 %v600_v40 }
 0x38b   : > { %v11150_v57 = vunpack.c.h.s8.bf16 %v632_v42  ;;  %v11154_v1 = vunpack.c.l.s8.bf16 %v632_v42 }
 0x38c   : > { %10995 = vmatpush2.bf16.msra.mxu0 %v10994_v51  ;;  %v11088_v51 = vunpack.c.l.s8.bf16 %v601_v41 }
 0x38d   : > { %11059 = vmatpush2.bf16.msra.mxu1 %v11058_v52  ;;  %10997 = vmatprep.subr.bf16.mxu0 %v10996_v2  ;;  %v11152_v52 = vunpack.c.l.s8.bf16 %v633_v46  ;;  %v597_v2 = vld [vmem:[%s12289_s28 + $0x818] sm:$0xff] }
 0x38e   : > { %11061 = vmatprep.subr.bf16.mxu1 %v11060_v3  ;;  %v629_v3 = vld [vmem:[%s12289_s28 + $0x918] sm:$0xff] }
 0x390   : > { %10999 = vmatpush2.bf16.msra.mxu0 %v10998_v4  ;;  %v11092_v4 = vunpack.c.h.s8.bf16 %v597_v2 }
 0x391   : > { %11063 = vmatpush2.bf16.msra.mxu1 %v11062_v5  ;;  %11001 = vmatprep.subr.bf16.mxu0 %v11000_v12  ;;  %v11156_v5 = vunpack.c.h.s8.bf16 %v629_v3  ;;  %v596_v12 = vld [vmem:[%s12289_s28 + $0x810] sm:$0xff] }
 0x392   : > { %11065 = vmatprep.subr.bf16.mxu1 %v11064_v13  ;;  %v628_v13 = vld [vmem:[%s12289_s28 + $0x910] sm:$0xff]  ;;  %v11094_v16 = vunpack.c.h.s8.bf16 %v596_v12  ;;  %v11098_v22 = vunpack.c.l.s8.bf16 %v596_v12 }
 0x393   : > { %v11158_v17 = vunpack.c.h.s8.bf16 %v628_v13  ;;  %v11162_v23 = vunpack.c.l.s8.bf16 %v628_v13 }
 0x394   : > { %11003 = vmatpush2.bf16.msra.mxu0 %v11002_v20  ;;  %v11096_v20 = vunpack.c.l.s8.bf16 %v597_v2 }
 0x395   : > { %11067 = vmatpush2.bf16.msra.mxu1 %v11066_v21  ;;  %11069 = vmatprep.subr.bf16.mxu0 %v11068_v47  ;;  %v11160_v21 = vunpack.c.l.s8.bf16 %v629_v3  ;;  %v625_v47 = vld [vmem:[%s12289_s28 + $0x8f8] sm:$0xff] }
 0x396   : > { %11133 = vmatprep.subr.bf16.mxu1 %v11132_v48  ;;  %v657_v48 = vld [vmem:[%s12289_s28 + $0x9f8] sm:$0xff] }
 0x397   : > { %7498 = vmatmul.mubr.f32.vlgmr.msra.gmra.mxu0 %v12471_v43  ;;  %v11078_v43 = vunpack.c.h.s8.bf16 %v604_v36 }
 0x398   : > { %7569 = vmatmul.mubr.f32.vlgmr.msra.gmra.mxu1 %v12474_v44  ;;  %11071 = vmatpush1.bf16.msra.mxu0 %v11070_v29  ;;  %v11142_v44 = vunpack.c.h.s8.bf16 %v636_v37  ;;  %v11100_v29 = vunpack.c.h.s8.bf16 %v625_v47 }
 0x399   : > { %11135 = vmatpush1.bf16.msra.mxu1 %v11134_v30  ;;  %11073 = vmatprep.subr.bf16.mxu0 %v11072_v31  ;;  %v11164_v30 = vunpack.c.h.s8.bf16 %v657_v48  ;;  %v624_v31 = vld [vmem:[%s12289_s28 + $0x8f0] sm:$0xff] }
 0x39a   : > { %11137 = vmatprep.subr.bf16.mxu1 %v11136_v32  ;;  %7639 = vmatprep.mubr.f32.mxu0 %v12533_v8  ;;  %v11084_v8 = vunpack.c.h.s8.bf16 %v601_v41  ;;  %v656_v32 = vld [vmem:[%s12289_s28 + $0x9f0] sm:$0xff]  ;;  %v11102_v60 = vunpack.c.h.s8.bf16 %v624_v31  ;;  %v11106_v36 = vunpack.c.l.s8.bf16 %v624_v31 }
 0x39b   : > { %7710 = vmatprep.mubr.f32.mxu1 %v12537_v9  ;;  %v11148_v9 = vunpack.c.h.s8.bf16 %v633_v46  ;;  %v11166_v61 = vunpack.c.h.s8.bf16 %v656_v32  ;;  %v11170_v37 = vunpack.c.l.s8.bf16 %v656_v32 }
 0x39c   : > { %11075 = vmatpush1.bf16.msra.mxu0 %v11074_v33  ;;  %v11104_v33 = vunpack.c.l.s8.bf16 %v625_v47 }
 0x39d   : > { %11139 = vmatpush1.bf16.msra.mxu1 %v11138_v34  ;;  %11077 = vmatprep.subr.bf16.mxu0 %v11076_v45  ;;  %v11168_v34 = vunpack.c.l.s8.bf16 %v657_v48  ;;  %v621_v45 = vld [vmem:[%s12289_s28 + $0x8d8] sm:$0xff] }
 0x39e   : > { %11141 = vmatprep.subr.bf16.mxu1 %v11140_v53  ;;  %v653_v53 = vld [vmem:[%s12289_s28 + $0x9d8] sm:$0xff] }
 0x3a0   : > { %11079 = vmatpush1.bf16.msra.mxu0 %v11078_v43  ;;  %v11108_v43 = vunpack.c.h.s8.bf16 %v621_v45 }
 0x3a1   : > { %11143 = vmatpush1.bf16.msra.mxu1 %v11142_v44  ;;  %11081 = vmatprep.subr.bf16.mxu0 %v11080_v58  ;;  %v11172_v44 = vunpack.c.h.s8.bf16 %v653_v53  ;;  %v620_v58 = vld [vmem:[%s12289_s28 + $0x8d0] sm:$0xff] }
 0x3a2   : > { %11145 = vmatprep.subr.bf16.mxu1 %v11144_v59  ;;  %v652_v59 = vld [vmem:[%s12289_s28 + $0x9d0] sm:$0xff]  ;;  %v11110_v41 = vunpack.c.h.s8.bf16 %v620_v58  ;;  %v11114_v40 = vunpack.c.l.s8.bf16 %v620_v58 }
 0x3a3   : > { %v11174_v46 = vunpack.c.h.s8.bf16 %v652_v59  ;;  %v11178_v42 = vunpack.c.l.s8.bf16 %v652_v59 }
 0x3a4   : > { %11083 = vmatpush1.bf16.msra.mxu0 %v11082_v38  ;;  %v11112_v38 = vunpack.c.l.s8.bf16 %v621_v45 }
 0x3a5   : > { %11147 = vmatpush1.bf16.msra.mxu1 %v11146_v39  ;;  %11085 = vmatprep.subr.bf16.mxu0 %v11084_v8  ;;  %v11176_v39 = vunpack.c.l.s8.bf16 %v653_v53  ;;  %v617_v8 = vld [vmem:[%s12289_s28 + $0x8b8] sm:$0xff] }
 0x3a6   : > { %11149 = vmatprep.subr.bf16.mxu1 %v11148_v9  ;;  %v649_v9 = vld [vmem:[%s12289_s28 + $0x9b8] sm:$0xff] }
 0x3a8   : > { %11087 = vmatpush1.bf16.msra.mxu0 %v11086_v56  ;;  %v11116_v56 = vunpack.c.h.s8.bf16 %v617_v8 }
 0x3a9   : > { %11151 = vmatpush1.bf16.msra.mxu1 %v11150_v57  ;;  %11089 = vmatprep.subr.bf16.mxu0 %v11088_v51  ;;  %v11180_v57 = vunpack.c.h.s8.bf16 %v649_v9  ;;  %v616_v51 = vld [vmem:[%s12289_s28 + $0x8b0] sm:$0xff] }
 0x3aa   : > { %11153 = vmatprep.subr.bf16.mxu1 %v11152_v52  ;;  %v648_v52 = vld [vmem:[%s12289_s28 + $0x9b0] sm:$0xff]  ;;  %v11118_v2 = vunpack.c.h.s8.bf16 %v616_v51  ;;  %v11122_v12 = vunpack.c.l.s8.bf16 %v616_v51 }
 0x3ab   : > { %v11182_v3 = vunpack.c.h.s8.bf16 %v648_v52  ;;  %v11186_v13 = vunpack.c.l.s8.bf16 %v648_v52  ;;  %v664_v51 = vld [vmem:[%s12289_s28 + $0xa30] sm:$0xff] }
 0x3ac   : > { %11091 = vmatpush1.bf16.msra.mxu0 %v11090_v0  ;;  %v11120_v0 = vunpack.c.l.s8.bf16 %v617_v8  ;;  %v696_v52 = vld [vmem:[%s12289_s28 + $0xb30] sm:$0xff] }
 0x3ad   : > { %11155 = vmatpush1.bf16.msra.mxu1 %v11154_v1  ;;  %11093 = vmatprep.subr.bf16.mxu0 %v11092_v4  ;;  %v11184_v1 = vunpack.c.l.s8.bf16 %v649_v9  ;;  %v613_v4 = vld [vmem:[%s12289_s28 + $0x898] sm:$0xff] }
 0x3ae   : > { %11157 = vmatprep.subr.bf16.mxu1 %v11156_v5  ;;  %v645_v5 = vld [vmem:[%s12289_s28 + $0x998] sm:$0xff] }
 0x3b0   : > { %11095 = vmatpush1.bf16.msra.mxu0 %v11094_v16  ;;  %v11124_v16 = vunpack.c.h.s8.bf16 %v613_v4 }
 0x3b1   : > { %11159 = vmatpush1.bf16.msra.mxu1 %v11158_v17  ;;  %11097 = vmatprep.subr.bf16.mxu0 %v11096_v20  ;;  %v11188_v17 = vunpack.c.h.s8.bf16 %v645_v5  ;;  %v612_v20 = vld [vmem:[%s12289_s28 + $0x890] sm:$0xff] }
 0x3b2   : > { %11161 = vmatprep.subr.bf16.mxu1 %v11160_v21  ;;  %v644_v21 = vld [vmem:[%s12289_s28 + $0x990] sm:$0xff]  ;;  %v11126_v47 = vunpack.c.h.s8.bf16 %v612_v20  ;;  %v11130_v31 = vunpack.c.l.s8.bf16 %v612_v20 }
 0x3b3   : > { %v11190_v48 = vunpack.c.h.s8.bf16 %v644_v21  ;;  %v11194_v32 = vunpack.c.l.s8.bf16 %v644_v21  ;;  %v660_v20 = vld [vmem:[%s12289_s28 + $0xa10] sm:$0xff] }
 0x3b4   : > { %11099 = vmatpush1.bf16.msra.mxu0 %v11098_v22  ;;  %v11128_v22 = vunpack.c.l.s8.bf16 %v613_v4  ;;  %v661_v4 = vld [vmem:[%s12289_s28 + $0xa18] sm:$0xff]  ;;  %v692_v21 = vld [vmem:[%s12289_s28 + $0xb10] sm:$0xff] }
 0x3b5   : > { %11163 = vmatpush1.bf16.msra.mxu1 %v11162_v23  ;;  %11101 = vmatprep.subr.bf16.mxu0 %v11100_v29  ;;  %v11192_v23 = vunpack.c.l.s8.bf16 %v645_v5  ;;  %v673_v29 = vld [vmem:[%s12289_s28 + $0xa78] sm:$0xff] }
 0x3b6   : > { %11165 = vmatprep.subr.bf16.mxu1 %v11164_v30  ;;  %v705_v30 = vld [vmem:[%s12289_s28 + $0xb78] sm:$0xff] }
 0x3b7   : > { %v693_v5 = vld [vmem:[%s12289_s28 + $0xb18] sm:$0xff] }
 0x3b8   : > { %11103 = vmatpush2.bf16.msra.mxu0 %v11102_v60  ;;  %v11196_v60 = vunpack.c.h.s8.bf16 %v673_v29 }
 0x3b9   : > { %11167 = vmatpush2.bf16.msra.mxu1 %v11166_v61  ;;  %11105 = vmatprep.subr.bf16.mxu0 %v11104_v33  ;;  %v11260_v61 = vunpack.c.h.s8.bf16 %v705_v30  ;;  %v672_v33 = vld [vmem:[%s12289_s28 + $0xa70] sm:$0xff] }
 0x3ba   : > { %11169 = vmatprep.subr.bf16.mxu1 %v11168_v34  ;;  %v704_v34 = vld [vmem:[%s12289_s28 + $0xb70] sm:$0xff]  ;;  %v11198_v45 = vunpack.c.h.s8.bf16 %v672_v33  ;;  %v11202_v58 = vunpack.c.l.s8.bf16 %v672_v33 }
 0x3bb   : > { %v11262_v53 = vunpack.c.h.s8.bf16 %v704_v34  ;;  %v11266_v59 = vunpack.c.l.s8.bf16 %v704_v34  ;;  %v688_v33 = vld [vmem:[%s12289_s28 + $0xaf0] sm:$0xff] }
 0x3bc   : > { %11107 = vmatpush2.bf16.msra.mxu0 %v11106_v36  ;;  %v11200_v36 = vunpack.c.l.s8.bf16 %v673_v29  ;;  %v689_v29 = vld [vmem:[%s12289_s28 + $0xaf8] sm:$0xff]  ;;  %v720_v34 = vld [vmem:[%s12289_s28 + $0xbf0] sm:$0xff] }
 0x3bd   : > { %11171 = vmatpush2.bf16.msra.mxu1 %v11170_v37  ;;  %11109 = vmatprep.subr.bf16.mxu0 %v11108_v43  ;;  %v11264_v37 = vunpack.c.l.s8.bf16 %v705_v30  ;;  %v669_v43 = vld [vmem:[%s12289_s28 + $0xa58] sm:$0xff] }
 0x3be   : > { %11173 = vmatprep.subr.bf16.mxu1 %v11172_v44  ;;  %v701_v44 = vld [vmem:[%s12289_s28 + $0xb58] sm:$0xff]  ;;  %v11208_v8 = vunpack.c.l.s8.bf16 %v669_v43 }
 0x3bf   : > { %v11272_v9 = vunpack.c.l.s8.bf16 %v701_v44  ;;  %v721_v30 = vld [vmem:[%s12289_s28 + $0xbf8] sm:$0xff] }
 0x3c0   : > { %11111 = vmatpush2.bf16.msra.mxu0 %v11110_v41  ;;  %v11204_v41 = vunpack.c.h.s8.bf16 %v669_v43  ;;  %v685_v43 = vld [vmem:[%s12289_s28 + $0xad8] sm:$0xff] }
 0x3c1   : > { %11175 = vmatpush2.bf16.msra.mxu1 %v11174_v46  ;;  %11113 = vmatprep.subr.bf16.mxu0 %v11112_v38  ;;  %v11268_v46 = vunpack.c.h.s8.bf16 %v701_v44  ;;  %v668_v38 = vld [vmem:[%s12289_s28 + $0xa50] sm:$0xff]  ;;  %v717_v44 = vld [vmem:[%s12289_s28 + $0xbd8] sm:$0xff] }
 0x3c2   : > { %11177 = vmatprep.subr.bf16.mxu1 %v11176_v39  ;;  %v700_v39 = vld [vmem:[%s12289_s28 + $0xb50] sm:$0xff] }
 0x3c4   : > { %11115 = vmatpush2.bf16.msra.mxu0 %v11114_v40  ;;  %v665_v40 = vld [vmem:[%s12289_s28 + $0xa38] sm:$0xff] }
 0x3c5   : > { %11179 = vmatpush2.bf16.msra.mxu1 %v11178_v42  ;;  %11117 = vmatprep.subr.bf16.mxu0 %v11116_v56  ;;  %v697_v42 = vld [vmem:[%s12289_s28 + $0xb38] sm:$0xff]  ;;  %v11210_v56 = vunpack.c.l.s8.bf16 %v668_v38 }
 0x3c6   : > { %11181 = vmatprep.subr.bf16.mxu1 %v11180_v57  ;;  %v11274_v57 = vunpack.c.l.s8.bf16 %v700_v39 }
 0x3c8   : > { %11119 = vmatpush2.bf16.msra.mxu0 %v11118_v2  ;;  %v11214_v2 = vunpack.c.h.s8.bf16 %v664_v51 }
 0x3c9   : > { %11183 = vmatpush2.bf16.msra.mxu1 %v11182_v3  ;;  %11121 = vmatprep.subr.bf16.mxu0 %v11120_v0  ;;  %v11278_v3 = vunpack.c.h.s8.bf16 %v696_v52  ;;  %v11216_v0 = vunpack.c.l.s8.bf16 %v665_v40 }
 0x3ca   : > { %11185 = vmatprep.subr.bf16.mxu1 %v11184_v1  ;;  %v11280_v1 = vunpack.c.l.s8.bf16 %v697_v42 }
 0x3cc   : > { %11123 = vmatpush2.bf16.msra.mxu0 %v11122_v12  ;;  %v11218_v12 = vunpack.c.l.s8.bf16 %v664_v51  ;;  %v680_v51 = vld [vmem:[%s12289_s28 + $0xab0] sm:$0xff] }
 0x3cd   : > { %11187 = vmatpush2.bf16.msra.mxu1 %v11186_v13  ;;  %11125 = vmatprep.subr.bf16.mxu0 %v11124_v16  ;;  %v11282_v13 = vunpack.c.l.s8.bf16 %v696_v52  ;;  %v11220_v16 = vunpack.c.h.s8.bf16 %v661_v4  ;;  %v712_v52 = vld [vmem:[%s12289_s28 + $0xbb0] sm:$0xff] }
 0x3ce   : > { %11189 = vmatprep.subr.bf16.mxu1 %v11188_v17  ;;  %v11284_v17 = vunpack.c.h.s8.bf16 %v693_v5 }
 0x3d0   : > { %11127 = vmatpush2.bf16.msra.mxu0 %v11126_v47  ;;  %v11222_v47 = vunpack.c.h.s8.bf16 %v660_v20 }
 0x3d1   : > { %11191 = vmatpush2.bf16.msra.mxu1 %v11190_v48  ;;  %11129 = vmatprep.subr.bf16.mxu0 %v11128_v22  ;;  %v11286_v48 = vunpack.c.h.s8.bf16 %v692_v21  ;;  %v11224_v22 = vunpack.c.l.s8.bf16 %v661_v4  ;;  %v677_v4 = vld [vmem:[%s12289_s28 + $0xa98] sm:$0xff] }
 0x3d2   : > { %11193 = vmatprep.subr.bf16.mxu1 %v11192_v23  ;;  %v11288_v23 = vunpack.c.l.s8.bf16 %v693_v5  ;;  %v709_v5 = vld [vmem:[%s12289_s28 + $0xb98] sm:$0xff] }
 0x3d4   : > { %11131 = vmatpush2.bf16.msra.mxu0 %v11130_v31  ;;  %v11226_v31 = vunpack.c.l.s8.bf16 %v660_v20  ;;  %v676_v20 = vld [vmem:[%s12289_s28 + $0xa90] sm:$0xff] }
 0x3d5   : > { %11195 = vmatpush2.bf16.msra.mxu1 %v11194_v32  ;;  %11197 = vmatprep.subr.bf16.mxu0 %v11196_v60  ;;  %v11290_v32 = vunpack.c.l.s8.bf16 %v692_v21  ;;  %v11228_v60 = vunpack.c.h.s8.bf16 %v689_v29  ;;  %v708_v21 = vld [vmem:[%s12289_s28 + $0xb90] sm:$0xff] }
 0x3d6   : > { %11261 = vmatprep.subr.bf16.mxu1 %v11260_v61  ;;  %v11292_v61 = vunpack.c.h.s8.bf16 %v721_v30 }
 0x3d7   : > { %7640 = vmatmul.mubr.f32.vlgmr.msra.gmra.mxu0 %v12524_v62  ;;  %v11206_v62 = vunpack.c.h.s8.bf16 %v668_v38  ;;  %v684_v38 = vld [vmem:[%s12289_s28 + $0xad0] sm:$0xff] }
 0x3d8   : > { %7711 = vmatmul.mubr.f32.vlgmr.msra.gmra.mxu1 %v12527_v63  ;;  %11199 = vmatpush1.bf16.msra.mxu0 %v11198_v45  ;;  %v11270_v63 = vunpack.c.h.s8.bf16 %v700_v39  ;;  %v11230_v45 = vunpack.c.h.s8.bf16 %v688_v33  ;;  %v716_v39 = vld [vmem:[%s12289_s28 + $0xbd0] sm:$0xff] }
 0x3d9   : > { %11263 = vmatpush1.bf16.msra.mxu1 %v11262_v53  ;;  %11201 = vmatprep.subr.bf16.mxu0 %v11200_v36  ;;  %v11294_v53 = vunpack.c.h.s8.bf16 %v720_v34  ;;  %v11232_v36 = vunpack.c.l.s8.bf16 %v689_v29  ;;  %v737_v29 = vld [vmem:[%s12289_s28 + $0xc78] sm:$0xff] }
 0x3da   : > { %11265 = vmatprep.subr.bf16.mxu1 %v11264_v37  ;;  %7781 = vmatprep.mubr.f32.mxu0 %v12586_v27  ;;  %v11212_v27 = vunpack.c.h.s8.bf16 %v665_v40  ;;  %v11296_v37 = vunpack.c.l.s8.bf16 %v721_v30  ;;  %v681_v40 = vld [vmem:[%s12289_s28 + $0xab8] sm:$0xff] }
 0x3db   : > { %7852 = vmatprep.mubr.f32.mxu1 %v12590_v28  ;;  %v11276_v28 = vunpack.c.h.s8.bf16 %v697_v42  ;;  %v713_v42 = vld [vmem:[%s12289_s28 + $0xbb8] sm:$0xff] }
 0x3dc   : > { %11203 = vmatpush1.bf16.msra.mxu0 %v11202_v58  ;;  %v11234_v58 = vunpack.c.l.s8.bf16 %v688_v33  ;;  %v769_v30 = vld [vmem:[%s12289_s28 + $0xd78] sm:$0xff]  ;;  %v736_v33 = vld [vmem:[%s12289_s28 + $0xc70] sm:$0xff] }
 0x3dd   : > { %11267 = vmatpush1.bf16.msra.mxu1 %v11266_v59  ;;  %11205 = vmatprep.subr.bf16.mxu0 %v11204_v41  ;;  %v11298_v59 = vunpack.c.l.s8.bf16 %v720_v34  ;;  %v11236_v41 = vunpack.c.h.s8.bf16 %v685_v43  ;;  %v768_v34 = vld [vmem:[%s12289_s28 + $0xd70] sm:$0xff] }
 0x3de   : > { %11269 = vmatprep.subr.bf16.mxu1 %v11268_v46  ;;  %v11300_v46 = vunpack.c.h.s8.bf16 %v717_v44 }
 0x3e0   : > { %11207 = vmatpush1.bf16.msra.mxu0 %v11206_v62  ;;  %v11238_v62 = vunpack.c.h.s8.bf16 %v684_v38 }
 0x3e1   : > { %11271 = vmatpush1.bf16.msra.mxu1 %v11270_v63  ;;  %11209 = vmatprep.subr.bf16.mxu0 %v11208_v8  ;;  %v11302_v63 = vunpack.c.h.s8.bf16 %v716_v39  ;;  %v11240_v8 = vunpack.c.l.s8.bf16 %v685_v43  ;;  %v733_v43 = vld [vmem:[%s12289_s28 + $0xc58] sm:$0xff] }
 0x3e2   : > { %11273 = vmatprep.subr.bf16.mxu1 %v11272_v9  ;;  %v11304_v9 = vunpack.c.l.s8.bf16 %v717_v44  ;;  %v765_v44 = vld [vmem:[%s12289_s28 + $0xd58] sm:$0xff] }
 0x3e4   : > { %11211 = vmatpush1.bf16.msra.mxu0 %v11210_v56  ;;  %v11242_v56 = vunpack.c.l.s8.bf16 %v684_v38  ;;  %v732_v38 = vld [vmem:[%s12289_s28 + $0xc50] sm:$0xff] }
 0x3e5   : > { %11275 = vmatpush1.bf16.msra.mxu1 %v11274_v57  ;;  %11213 = vmatprep.subr.bf16.mxu0 %v11212_v27  ;;  %v11306_v57 = vunpack.c.l.s8.bf16 %v716_v39  ;;  %v11244_v27 = vunpack.c.h.s8.bf16 %v681_v40  ;;  %v764_v39 = vld [vmem:[%s12289_s28 + $0xd50] sm:$0xff] }
 0x3e6   : > { %11277 = vmatprep.subr.bf16.mxu1 %v11276_v28  ;;  %v11308_v28 = vunpack.c.h.s8.bf16 %v713_v42 }
 0x3e8   : > { %11215 = vmatpush1.bf16.msra.mxu0 %v11214_v2  ;;  %v11246_v2 = vunpack.c.h.s8.bf16 %v680_v51 }
 0x3e9   : > { %11279 = vmatpush1.bf16.msra.mxu1 %v11278_v3  ;;  %11217 = vmatprep.subr.bf16.mxu0 %v11216_v0  ;;  %v11310_v3 = vunpack.c.h.s8.bf16 %v712_v52  ;;  %v11248_v0 = vunpack.c.l.s8.bf16 %v681_v40  ;;  %v11338_v40 = vunpack.c.l.s8.bf16 %v732_v38 }
 0x3ea   : > { %11281 = vmatprep.subr.bf16.mxu1 %v11280_v1  ;;  %v11312_v1 = vunpack.c.l.s8.bf16 %v713_v42  ;;  %v11402_v42 = vunpack.c.l.s8.bf16 %v764_v39 }
 0x3ec   : > { %11219 = vmatpush1.bf16.msra.mxu0 %v11218_v12  ;;  %v11250_v12 = vunpack.c.l.s8.bf16 %v680_v51 }
 0x3ed   : > { %11283 = vmatpush1.bf16.msra.mxu1 %v11282_v13  ;;  %11221 = vmatprep.subr.bf16.mxu0 %v11220_v16  ;;  %v11314_v13 = vunpack.c.l.s8.bf16 %v712_v52  ;;  %v11252_v16 = vunpack.c.h.s8.bf16 %v677_v4 }
 0x3ee   : > { %11285 = vmatprep.subr.bf16.mxu1 %v11284_v17  ;;  %v11316_v17 = vunpack.c.h.s8.bf16 %v709_v5 }
 0x3f0   : > { %11223 = vmatpush1.bf16.msra.mxu0 %v11222_v47  ;;  %v11254_v47 = vunpack.c.h.s8.bf16 %v676_v20 }
 0x3f1   : > { %11287 = vmatpush1.bf16.msra.mxu1 %v11286_v48  ;;  %11225 = vmatprep.subr.bf16.mxu0 %v11224_v22  ;;  %v11318_v48 = vunpack.c.h.s8.bf16 %v708_v21  ;;  %v11256_v22 = vunpack.c.l.s8.bf16 %v677_v4 }
 0x3f2   : > { %11289 = vmatprep.subr.bf16.mxu1 %v11288_v23  ;;  %v11320_v23 = vunpack.c.l.s8.bf16 %v709_v5 }
 0x3f4   : > { %11227 = vmatpush1.bf16.msra.mxu0 %v11226_v31  ;;  %v11258_v31 = vunpack.c.l.s8.bf16 %v676_v20 }
 0x3f5   : > { %11291 = vmatpush1.bf16.msra.mxu1 %v11290_v32  ;;  %11229 = vmatprep.subr.bf16.mxu0 %v11228_v60  ;;  %v11322_v32 = vunpack.c.l.s8.bf16 %v708_v21  ;;  %v11324_v60 = vunpack.c.h.s8.bf16 %v737_v29 }
 0x3f6   : > { %11293 = vmatprep.subr.bf16.mxu1 %v11292_v61  ;;  %v11388_v61 = vunpack.c.h.s8.bf16 %v769_v30 }
 0x3f8   : > { %11231 = vmatpush2.bf16.msra.mxu0 %v11230_v45  ;;  %v11326_v45 = vunpack.c.h.s8.bf16 %v736_v33 }
 0x3f9   : > { %11295 = vmatpush2.bf16.msra.mxu1 %v11294_v53  ;;  %11233 = vmatprep.subr.bf16.mxu0 %v11232_v36  ;;  %v11390_v53 = vunpack.c.h.s8.bf16 %v768_v34  ;;  %v11328_v36 = vunpack.c.l.s8.bf16 %v737_v29 }
 0x3fa   : > { %11297 = vmatprep.subr.bf16.mxu1 %v11296_v37  ;;  %v11392_v37 = vunpack.c.l.s8.bf16 %v769_v30 }
 0x3fc   : > { %11235 = vmatpush2.bf16.msra.mxu0 %v11234_v58  ;;  %v11330_v58 = vunpack.c.l.s8.bf16 %v736_v33 }
 0x3fd   : > { %11299 = vmatpush2.bf16.msra.mxu1 %v11298_v59  ;;  %11237 = vmatprep.subr.bf16.mxu0 %v11236_v41  ;;  %v11394_v59 = vunpack.c.l.s8.bf16 %v768_v34  ;;  %v11332_v41 = vunpack.c.h.s8.bf16 %v733_v43 }
 0x3fe   : > { %11301 = vmatprep.subr.bf16.mxu1 %v11300_v46  ;;  %v11396_v46 = vunpack.c.h.s8.bf16 %v765_v44 }
 0x400   : > { %11239 = vmatpush2.bf16.msra.mxu0 %v11238_v62  ;;  %v11336_v62 = vunpack.c.l.s8.bf16 %v733_v43 }
 0x401   : > { %11303 = vmatpush2.bf16.msra.mxu1 %v11302_v63  ;;  %11241 = vmatprep.subr.bf16.mxu0 %v11240_v8  ;;  %v11400_v63 = vunpack.c.l.s8.bf16 %v765_v44  ;;  %v729_v8 = vld [vmem:[%s12289_s28 + $0xc38] sm:$0xff] }
 0x402   : > { %11305 = vmatprep.subr.bf16.mxu1 %v11304_v9  ;;  %v761_v9 = vld [vmem:[%s12289_s28 + $0xd38] sm:$0xff]  ;;  %v11344_v51 = vunpack.c.l.s8.bf16 %v729_v8 }
 0x403   : > { %v11408_v52 = vunpack.c.l.s8.bf16 %v761_v9 }
 0x404   : > { %11243 = vmatpush2.bf16.msra.mxu0 %v11242_v56  ;;  %v728_v56 = vld [vmem:[%s12289_s28 + $0xc30] sm:$0xff] }
 0x405   : > { %11307 = vmatpush2.bf16.msra.mxu1 %v11306_v57  ;;  %11245 = vmatprep.subr.bf16.mxu0 %v11244_v27  ;;  %v760_v57 = vld [vmem:[%s12289_s28 + $0xd30] sm:$0xff]  ;;  %v11342_v27 = vunpack.c.h.s8.bf16 %v728_v56 }
 0x406   : > { %11309 = vmatprep.subr.bf16.mxu1 %v11308_v28  ;;  %v11406_v28 = vunpack.c.h.s8.bf16 %v760_v57 }
 0x408   : > { %11247 = vmatpush2.bf16.msra.mxu0 %v11246_v2  ;;  %v725_v2 = vld [vmem:[%s12289_s28 + $0xc18] sm:$0xff] }
 0x409   : > { %11311 = vmatpush2.bf16.msra.mxu1 %v11310_v3  ;;  %11249 = vmatprep.subr.bf16.mxu0 %v11248_v0  ;;  %v757_v3 = vld [vmem:[%s12289_s28 + $0xd18] sm:$0xff]  ;;  %v11346_v0 = vunpack.c.l.s8.bf16 %v728_v56  ;;  %v11348_v4 = vunpack.c.h.s8.bf16 %v725_v2  ;;  %v11352_v20 = vunpack.c.l.s8.bf16 %v725_v2 }
 0x40a   : > { %11313 = vmatprep.subr.bf16.mxu1 %v11312_v1  ;;  %v11410_v1 = vunpack.c.l.s8.bf16 %v760_v57  ;;  %v11412_v5 = vunpack.c.h.s8.bf16 %v757_v3  ;;  %v11416_v21 = vunpack.c.l.s8.bf16 %v757_v3 }
 0x40c   : > { %11251 = vmatpush2.bf16.msra.mxu0 %v11250_v12  ;;  %v724_v12 = vld [vmem:[%s12289_s28 + $0xc10] sm:$0xff] }
 0x40d   : > { %11315 = vmatpush2.bf16.msra.mxu1 %v11314_v13  ;;  %11253 = vmatprep.subr.bf16.mxu0 %v11252_v16  ;;  %v756_v13 = vld [vmem:[%s12289_s28 + $0xd10] sm:$0xff]  ;;  %v11350_v16 = vunpack.c.h.s8.bf16 %v724_v12 }
 0x40e   : > { %11317 = vmatprep.subr.bf16.mxu1 %v11316_v17  ;;  %v11414_v17 = vunpack.c.h.s8.bf16 %v756_v13 }
 0x410   : > { %11255 = vmatpush2.bf16.msra.mxu0 %v11254_v47  ;;  %v753_v47 = vld [vmem:[%s12289_s28 + $0xcf8] sm:$0xff] }
 0x411   : > { %11319 = vmatpush2.bf16.msra.mxu1 %v11318_v48  ;;  %11257 = vmatprep.subr.bf16.mxu0 %v11256_v22  ;;  %v785_v48 = vld [vmem:[%s12289_s28 + $0xdf8] sm:$0xff]  ;;  %v11354_v22 = vunpack.c.l.s8.bf16 %v724_v12  ;;  %v11356_v29 = vunpack.c.h.s8.bf16 %v753_v47  ;;  %v11360_v33 = vunpack.c.l.s8.bf16 %v753_v47 }
 0x412   : > { %11321 = vmatprep.subr.bf16.mxu1 %v11320_v23  ;;  %v11418_v23 = vunpack.c.l.s8.bf16 %v756_v13  ;;  %v11420_v30 = vunpack.c.h.s8.bf16 %v785_v48  ;;  %v11424_v34 = vunpack.c.l.s8.bf16 %v785_v48 }
 0x414   : > { %11259 = vmatpush2.bf16.msra.mxu0 %v11258_v31  ;;  %v752_v31 = vld [vmem:[%s12289_s28 + $0xcf0] sm:$0xff] }
 0x415   : > { %11323 = vmatpush2.bf16.msra.mxu1 %v11322_v32  ;;  %11325 = vmatprep.subr.bf16.mxu0 %v11324_v60  ;;  %v784_v32 = vld [vmem:[%s12289_s28 + $0xdf0] sm:$0xff]  ;;  %v11358_v60 = vunpack.c.h.s8.bf16 %v752_v31 }
 0x416   : > { %11389 = vmatprep.subr.bf16.mxu1 %v11388_v61  ;;  %v11422_v61 = vunpack.c.h.s8.bf16 %v784_v32 }
 0x417   : > { %7782 = vmatmul.mubr.f32.vlgmr.msra.gmra.mxu0 %v12577_v18  ;;  %v11334_v18 = vunpack.c.h.s8.bf16 %v732_v38 }
 0x418   : > { %7853 = vmatmul.mubr.f32.vlgmr.msra.gmra.mxu1 %v12580_v19  ;;  %11327 = vmatpush1.bf16.msra.mxu0 %v11326_v45  ;;  %v11398_v19 = vunpack.c.h.s8.bf16 %v764_v39  ;;  %v749_v45 = vld [vmem:[%s12289_s28 + $0xcd8] sm:$0xff] }
 0x419   : > { %11391 = vmatpush1.bf16.msra.mxu1 %v11390_v53  ;;  %11329 = vmatprep.subr.bf16.mxu0 %v11328_v36  ;;  %v781_v53 = vld [vmem:[%s12289_s28 + $0xdd8] sm:$0xff]  ;;  %v11362_v36 = vunpack.c.l.s8.bf16 %v752_v31  ;;  %v11364_v43 = vunpack.c.h.s8.bf16 %v749_v45  ;;  %v11368_v38 = vunpack.c.l.s8.bf16 %v749_v45 }
 0x41a   : > { %11393 = vmatprep.subr.bf16.mxu1 %v11392_v37  ;;  %7923 = vmatprep.mubr.f32.mxu0 %v12639_v10  ;;  %v11340_v10 = vunpack.c.h.s8.bf16 %v729_v8  ;;  %v11426_v37 = vunpack.c.l.s8.bf16 %v784_v32  ;;  %v11428_v44 = vunpack.c.h.s8.bf16 %v781_v53  ;;  %v11432_v39 = vunpack.c.l.s8.bf16 %v781_v53 }
 0x41b   : > { %7994 = vmatprep.mubr.f32.mxu1 %v12643_v11  ;;  %v11404_v11 = vunpack.c.h.s8.bf16 %v761_v9 }
 0x41c   : > { %11331 = vmatpush1.bf16.msra.mxu0 %v11330_v58  ;;  %v748_v58 = vld [vmem:[%s12289_s28 + $0xcd0] sm:$0xff] }
 0x41d   : > { %11395 = vmatpush1.bf16.msra.mxu1 %v11394_v59  ;;  %11333 = vmatprep.subr.bf16.mxu0 %v11332_v41  ;;  %v780_v59 = vld [vmem:[%s12289_s28 + $0xdd0] sm:$0xff]  ;;  %v11366_v41 = vunpack.c.h.s8.bf16 %v748_v58 }
 0x41e   : > { %11397 = vmatprep.subr.bf16.mxu1 %v11396_v46  ;;  %v11430_v46 = vunpack.c.h.s8.bf16 %v780_v59 }
 0x420   : > { %11335 = vmatpush1.bf16.msra.mxu0 %v11334_v18  ;;  %v745_v18 = vld [vmem:[%s12289_s28 + $0xcb8] sm:$0xff] }
 0x421   : > { %11399 = vmatpush1.bf16.msra.mxu1 %v11398_v19  ;;  %11337 = vmatprep.subr.bf16.mxu0 %v11336_v62  ;;  %v777_v19 = vld [vmem:[%s12289_s28 + $0xdb8] sm:$0xff]  ;;  %v11370_v62 = vunpack.c.l.s8.bf16 %v748_v58  ;;  %v11372_v8 = vunpack.c.h.s8.bf16 %v745_v18  ;;  %v11376_v56 = vunpack.c.l.s8.bf16 %v745_v18 }
 0x422   : > { %11401 = vmatprep.subr.bf16.mxu1 %v11400_v63  ;;  %v11434_v63 = vunpack.c.l.s8.bf16 %v780_v59  ;;  %v11436_v9 = vunpack.c.h.s8.bf16 %v777_v19  ;;  %v11440_v57 = vunpack.c.l.s8.bf16 %v777_v19  ;;  %v793_v58 = vld [vmem:[%s12289_s28 + $0xe38] sm:$0xff] }
 0x423   : > { %v825_v59 = vld [vmem:[%s12289_s28 + $0xf38] sm:$0xff] }
 0x424   : > { %11339 = vmatpush1.bf16.msra.mxu0 %v11338_v40  ;;  %v744_v40 = vld [vmem:[%s12289_s28 + $0xcb0] sm:$0xff] }
 0x425   : > { %11403 = vmatpush1.bf16.msra.mxu1 %v11402_v42  ;;  %11341 = vmatprep.subr.bf16.mxu0 %v11340_v10  ;;  %v776_v42 = vld [vmem:[%s12289_s28 + $0xdb0] sm:$0xff]  ;;  %v11374_v10 = vunpack.c.h.s8.bf16 %v744_v40 }
 0x426   : > { %11405 = vmatprep.subr.bf16.mxu1 %v11404_v11  ;;  %v11438_v11 = vunpack.c.h.s8.bf16 %v776_v42 }
 0x428   : > { %11343 = vmatpush1.bf16.msra.mxu0 %v11342_v27  ;;  %v741_v27 = vld [vmem:[%s12289_s28 + $0xc98] sm:$0xff] }
 0x429   : > { %11407 = vmatpush1.bf16.msra.mxu1 %v11406_v28  ;;  %11345 = vmatprep.subr.bf16.mxu0 %v11344_v51  ;;  %v773_v28 = vld [vmem:[%s12289_s28 + $0xd98] sm:$0xff]  ;;  %v11378_v51 = vunpack.c.l.s8.bf16 %v744_v40  ;;  %v11380_v2 = vunpack.c.h.s8.bf16 %v741_v27  ;;  %v11384_v12 = vunpack.c.l.s8.bf16 %v741_v27 }
 0x42a   : > { %11409 = vmatprep.subr.bf16.mxu1 %v11408_v52  ;;  %v11442_v52 = vunpack.c.l.s8.bf16 %v776_v42  ;;  %v11444_v3 = vunpack.c.h.s8.bf16 %v773_v28  ;;  %v11448_v13 = vunpack.c.l.s8.bf16 %v773_v28 }
 0x42c   : > { %11347 = vmatpush1.bf16.msra.mxu0 %v11346_v0  ;;  %v740_v0 = vld [vmem:[%s12289_s28 + $0xc90] sm:$0xff] }
 0x42d   : > { %11411 = vmatpush1.bf16.msra.mxu1 %v11410_v1  ;;  %11349 = vmatprep.subr.bf16.mxu0 %v11348_v4  ;;  %v772_v1 = vld [vmem:[%s12289_s28 + $0xd90] sm:$0xff]  ;;  %v11382_v4 = vunpack.c.h.s8.bf16 %v740_v0 }
 0x42e   : > { %11413 = vmatprep.subr.bf16.mxu1 %v11412_v5  ;;  %v11446_v5 = vunpack.c.h.s8.bf16 %v772_v1 }
 0x430   : > { %11351 = vmatpush1.bf16.msra.mxu0 %v11350_v16  ;;  %v801_v16 = vld [vmem:[%s12289_s28 + $0xe78] sm:$0xff] }
 0x431   : > { %11415 = vmatpush1.bf16.msra.mxu1 %v11414_v17  ;;  %11353 = vmatprep.subr.bf16.mxu0 %v11352_v20  ;;  %v833_v17 = vld [vmem:[%s12289_s28 + $0xf78] sm:$0xff]  ;;  %v11386_v20 = vunpack.c.l.s8.bf16 %v740_v0  ;;  %v11452_v47 = vunpack.c.h.s8.bf16 %v801_v16  ;;  %v11456_v31 = vunpack.c.l.s8.bf16 %v801_v16 }
 0x432   : > { %11417 = vmatprep.subr.bf16.mxu1 %v11416_v21  ;;  %v11450_v21 = vunpack.c.l.s8.bf16 %v772_v1  ;;  %v11516_v48 = vunpack.c.h.s8.bf16 %v833_v17  ;;  %v11520_v32 = vunpack.c.l.s8.bf16 %v833_v17 }
 0x434   : > { %11355 = vmatpush1.bf16.msra.mxu0 %v11354_v22  ;;  %v800_v22 = vld [vmem:[%s12289_s28 + $0xe70] sm:$0xff] }
 0x435   : > { %11419 = vmatpush1.bf16.msra.mxu1 %v11418_v23  ;;  %11357 = vmatprep.subr.bf16.mxu0 %v11356_v29  ;;  %v832_v23 = vld [vmem:[%s12289_s28 + $0xf70] sm:$0xff]  ;;  %v11454_v29 = vunpack.c.h.s8.bf16 %v800_v22 }
 0x436   : > { %11421 = vmatprep.subr.bf16.mxu1 %v11420_v30  ;;  %v11518_v30 = vunpack.c.h.s8.bf16 %v832_v23 }
 0x438   : > { %11359 = vmatpush2.bf16.msra.mxu0 %v11358_v60  ;;  %v797_v60 = vld [vmem:[%s12289_s28 + $0xe58] sm:$0xff] }
 0x439   : > { %11423 = vmatpush2.bf16.msra.mxu1 %v11422_v61  ;;  %11361 = vmatprep.subr.bf16.mxu0 %v11360_v33  ;;  %v829_v61 = vld [vmem:[%s12289_s28 + $0xf58] sm:$0xff]  ;;  %v11458_v33 = vunpack.c.l.s8.bf16 %v800_v22  ;;  %v11460_v45 = vunpack.c.h.s8.bf16 %v797_v60 }
 0x43a   : > { %11425 = vmatprep.subr.bf16.mxu1 %v11424_v34  ;;  %v11522_v34 = vunpack.c.l.s8.bf16 %v832_v23  ;;  %v11524_v53 = vunpack.c.h.s8.bf16 %v829_v61 }
 0x43c   : > { %11363 = vmatpush2.bf16.msra.mxu0 %v11362_v36  ;;  %v796_v36 = vld [vmem:[%s12289_s28 + $0xe50] sm:$0xff] }
 0x43d   : > { %11427 = vmatpush2.bf16.msra.mxu1 %v11426_v37  ;;  %11365 = vmatprep.subr.bf16.mxu0 %v11364_v43  ;;  %v828_v37 = vld [vmem:[%s12289_s28 + $0xf50] sm:$0xff]  ;;  %v11464_v43 = vunpack.c.l.s8.bf16 %v797_v60 }
 0x43e   : > { %11429 = vmatprep.subr.bf16.mxu1 %v11428_v44  ;;  %v11528_v44 = vunpack.c.l.s8.bf16 %v829_v61 }
 0x440   : > { %11367 = vmatpush2.bf16.msra.mxu0 %v11366_v41  ;;  %v11466_v41 = vunpack.c.l.s8.bf16 %v796_v36 }
 0x441   : > { %11431 = vmatpush2.bf16.msra.mxu1 %v11430_v46  ;;  %11369 = vmatprep.subr.bf16.mxu0 %v11368_v38  ;;  %v11530_v46 = vunpack.c.l.s8.bf16 %v828_v37  ;;  %v792_v38 = vld [vmem:[%s12289_s28 + $0xe30] sm:$0xff] }
 0x442   : > { %11433 = vmatprep.subr.bf16.mxu1 %v11432_v39  ;;  %v824_v39 = vld [vmem:[%s12289_s28 + $0xf30] sm:$0xff]  ;;  %v11470_v18 = vunpack.c.h.s8.bf16 %v792_v38  ;;  %v11474_v40 = vunpack.c.l.s8.bf16 %v792_v38 }
 0x443   : > { %v11534_v19 = vunpack.c.h.s8.bf16 %v824_v39  ;;  %v11538_v42 = vunpack.c.l.s8.bf16 %v824_v39 }
 0x444   : > { %11371 = vmatpush2.bf16.msra.mxu0 %v11370_v62  ;;  %v11472_v62 = vunpack.c.l.s8.bf16 %v793_v58 }
 0x445   : > { %11435 = vmatpush2.bf16.msra.mxu1 %v11434_v63  ;;  %11373 = vmatprep.subr.bf16.mxu0 %v11372_v8  ;;  %v11536_v63 = vunpack.c.l.s8.bf16 %v825_v59  ;;  %v789_v8 = vld [vmem:[%s12289_s28 + $0xe18] sm:$0xff] }
 0x446   : > { %11437 = vmatprep.subr.bf16.mxu1 %v11436_v9  ;;  %v821_v9 = vld [vmem:[%s12289_s28 + $0xf18] sm:$0xff] }
 0x448   : > { %11375 = vmatpush2.bf16.msra.mxu0 %v11374_v10  ;;  %v11476_v10 = vunpack.c.h.s8.bf16 %v789_v8 }
 0x449   : > { %11439 = vmatpush2.bf16.msra.mxu1 %v11438_v11  ;;  %11377 = vmatprep.subr.bf16.mxu0 %v11376_v56  ;;  %v11540_v11 = vunpack.c.h.s8.bf16 %v821_v9  ;;  %v788_v56 = vld [vmem:[%s12289_s28 + $0xe10] sm:$0xff] }
 0x44a   : > { %11441 = vmatprep.subr.bf16.mxu1 %v11440_v57  ;;  %v820_v57 = vld [vmem:[%s12289_s28 + $0xf10] sm:$0xff]  ;;  %v11478_v27 = vunpack.c.h.s8.bf16 %v788_v56  ;;  %v11482_v0 = vunpack.c.l.s8.bf16 %v788_v56 }
 0x44b   : > { %v11542_v28 = vunpack.c.h.s8.bf16 %v820_v57  ;;  %v11546_v1 = vunpack.c.l.s8.bf16 %v820_v57 }
 0x44c   : > { %11379 = vmatpush2.bf16.msra.mxu0 %v11378_v51  ;;  %v11480_v51 = vunpack.c.l.s8.bf16 %v789_v8 }
 0x44d   : > { %11443 = vmatpush2.bf16.msra.mxu1 %v11442_v52  ;;  %11381 = vmatprep.subr.bf16.mxu0 %v11380_v2  ;;  %v11544_v52 = vunpack.c.l.s8.bf16 %v821_v9  ;;  %v817_v2 = vld [vmem:[%s12289_s28 + $0xef8] sm:$0xff] }
 0x44e   : > { %11445 = vmatprep.subr.bf16.mxu1 %v11444_v3  ;;  %v849_v3 = vld [vmem:[%s12289_s28 + $0xff8] sm:$0xff] }
 0x450   : > { %11383 = vmatpush2.bf16.msra.mxu0 %v11382_v4  ;;  %v11484_v4 = vunpack.c.h.s8.bf16 %v817_v2 }
 0x451   : > { %11447 = vmatpush2.bf16.msra.mxu1 %v11446_v5  ;;  %11385 = vmatprep.subr.bf16.mxu0 %v11384_v12  ;;  %v11548_v5 = vunpack.c.h.s8.bf16 %v849_v3  ;;  %v816_v12 = vld [vmem:[%s12289_s28 + $0xef0] sm:$0xff] }
 0x452   : > { %11449 = vmatprep.subr.bf16.mxu1 %v11448_v13  ;;  %v848_v13 = vld [vmem:[%s12289_s28 + $0xff0] sm:$0xff]  ;;  %v11486_v16 = vunpack.c.h.s8.bf16 %v816_v12  ;;  %v11490_v22 = vunpack.c.l.s8.bf16 %v816_v12 }
 0x453   : > { %v11550_v17 = vunpack.c.h.s8.bf16 %v848_v13  ;;  %v11554_v23 = vunpack.c.l.s8.bf16 %v848_v13 }
 0x454   : > { %11387 = vmatpush2.bf16.msra.mxu0 %v11386_v20  ;;  %v11488_v20 = vunpack.c.l.s8.bf16 %v817_v2 }
 0x455   : > { %11451 = vmatpush2.bf16.msra.mxu1 %v11450_v21  ;;  %11453 = vmatprep.subr.bf16.mxu0 %v11452_v47  ;;  %v11552_v21 = vunpack.c.l.s8.bf16 %v849_v3  ;;  %v813_v47 = vld [vmem:[%s12289_s28 + $0xed8] sm:$0xff] }
 0x456   : > { %11517 = vmatprep.subr.bf16.mxu1 %v11516_v48  ;;  %v845_v48 = vld [vmem:[%s12289_s28 + $0xfd8] sm:$0xff] }
 0x457   : > { %7924 = vmatmul.mubr.f32.vlgmr.msra.gmra.mxu0 %v12630_v54  ;;  %v11462_v54 = vunpack.c.h.s8.bf16 %v796_v36 }
 0x458   : > { %7995 = vmatmul.mubr.f32.vlgmr.msra.gmra.mxu1 %v12633_v55  ;;  %11455 = vmatpush1.bf16.msra.mxu0 %v11454_v29  ;;  %v11526_v55 = vunpack.c.h.s8.bf16 %v828_v37  ;;  %v11492_v29 = vunpack.c.h.s8.bf16 %v813_v47 }
 0x459   : > { %11519 = vmatpush1.bf16.msra.mxu1 %v11518_v30  ;;  %11457 = vmatprep.subr.bf16.mxu0 %v11456_v31  ;;  %v11556_v30 = vunpack.c.h.s8.bf16 %v845_v48  ;;  %v812_v31 = vld [vmem:[%s12289_s28 + $0xed0] sm:$0xff] }
 0x45a   : > { %11521 = vmatprep.subr.bf16.mxu1 %v11520_v32  ;;  %8065 = vmatprep.mubr.f32.mxu0 %v12692_v6  ;;  %v11468_v6 = vunpack.c.h.s8.bf16 %v793_v58  ;;  %v844_v32 = vld [vmem:[%s12289_s28 + $0xfd0] sm:$0xff]  ;;  %v11494_v60 = vunpack.c.h.s8.bf16 %v812_v31  ;;  %v11498_v36 = vunpack.c.l.s8.bf16 %v812_v31 }
 0x45b   : > { %8136 = vmatprep.mubr.f32.mxu1 %v12696_v7  ;;  %v11532_v7 = vunpack.c.h.s8.bf16 %v825_v59  ;;  %v11558_v61 = vunpack.c.h.s8.bf16 %v844_v32  ;;  %v11562_v37 = vunpack.c.l.s8.bf16 %v844_v32  ;;  %v856_v31 = vld [vmem:[%s12289_s28 + $0x1030] sm:$0xff] }
 0x45c   : > { %11459 = vmatpush1.bf16.msra.mxu0 %v11458_v33  ;;  %v11496_v33 = vunpack.c.l.s8.bf16 %v813_v47  ;;  %v888_v32 = vld [vmem:[%s12289_s28 + $0x1130] sm:$0xff] }
 0x45d   : > { %11523 = vmatpush1.bf16.msra.mxu1 %v11522_v34  ;;  %11461 = vmatprep.subr.bf16.mxu0 %v11460_v45  ;;  %v11560_v34 = vunpack.c.l.s8.bf16 %v845_v48  ;;  %v809_v45 = vld [vmem:[%s12289_s28 + $0xeb8] sm:$0xff] }
 0x45e   : > { %11525 = vmatprep.subr.bf16.mxu1 %v11524_v53  ;;  %v841_v53 = vld [vmem:[%s12289_s28 + $0xfb8] sm:$0xff] }
 0x460   : > { %11463 = vmatpush1.bf16.msra.mxu0 %v11462_v54  ;;  %v11500_v54 = vunpack.c.h.s8.bf16 %v809_v45 }
 0x461   : > { %11527 = vmatpush1.bf16.msra.mxu1 %v11526_v55  ;;  %11465 = vmatprep.subr.bf16.mxu0 %v11464_v43  ;;  %v11564_v55 = vunpack.c.h.s8.bf16 %v841_v53  ;;  %v808_v43 = vld [vmem:[%s12289_s28 + $0xeb0] sm:$0xff] }
 0x462   : > { %11529 = vmatprep.subr.bf16.mxu1 %v11528_v44  ;;  %v840_v44 = vld [vmem:[%s12289_s28 + $0xfb0] sm:$0xff]  ;;  %v11502_v58 = vunpack.c.h.s8.bf16 %v808_v43  ;;  %v11506_v38 = vunpack.c.l.s8.bf16 %v808_v43 }
 0x463   : > { %v11566_v59 = vunpack.c.h.s8.bf16 %v840_v44  ;;  %v11570_v39 = vunpack.c.l.s8.bf16 %v840_v44  ;;  %v852_v43 = vld [vmem:[%s12289_s28 + $0x1010] sm:$0xff] }
 0x464   : > { %11467 = vmatpush1.bf16.msra.mxu0 %v11466_v41  ;;  %v11504_v41 = vunpack.c.l.s8.bf16 %v809_v45  ;;  %v853_v45 = vld [vmem:[%s12289_s28 + $0x1018] sm:$0xff]  ;;  %v884_v44 = vld [vmem:[%s12289_s28 + $0x1110] sm:$0xff] }
 0x465   : > { %11531 = vmatpush1.bf16.msra.mxu1 %v11530_v46  ;;  %11469 = vmatprep.subr.bf16.mxu0 %v11468_v6  ;;  %v11568_v46 = vunpack.c.l.s8.bf16 %v841_v53  ;;  %v805_v6 = vld [vmem:[%s12289_s28 + $0xe98] sm:$0xff] }
 0x466   : > { %11533 = vmatprep.subr.bf16.mxu1 %v11532_v7  ;;  %v837_v7 = vld [vmem:[%s12289_s28 + $0xf98] sm:$0xff] }
 0x467   : > { %v885_v53 = vld [vmem:[%s12289_s28 + $0x1118] sm:$0xff] }
 0x468   : > { %11471 = vmatpush1.bf16.msra.mxu0 %v11470_v18  ;;  %v11508_v18 = vunpack.c.h.s8.bf16 %v805_v6 }
 0x469   : > { %11535 = vmatpush1.bf16.msra.mxu1 %v11534_v19  ;;  %11473 = vmatprep.subr.bf16.mxu0 %v11472_v62  ;;  %v11572_v19 = vunpack.c.h.s8.bf16 %v837_v7  ;;  %v804_v62 = vld [vmem:[%s12289_s28 + $0xe90] sm:$0xff] }
 0x46a   : > { %11537 = vmatprep.subr.bf16.mxu1 %v11536_v63  ;;  %v836_v63 = vld [vmem:[%s12289_s28 + $0xf90] sm:$0xff]  ;;  %v11510_v8 = vunpack.c.h.s8.bf16 %v804_v62  ;;  %v11514_v56 = vunpack.c.l.s8.bf16 %v804_v62 }
 0x46b   : > { %v11574_v9 = vunpack.c.h.s8.bf16 %v836_v63  ;;  %v11578_v57 = vunpack.c.l.s8.bf16 %v836_v63  ;;  %v880_v62 = vld [vmem:[%s12289_s28 + $0x10f0] sm:$0xff] }
 0x46c   : > { %11475 = vmatpush1.bf16.msra.mxu0 %v11474_v40  ;;  %v11512_v40 = vunpack.c.l.s8.bf16 %v805_v6  ;;  %v881_v6 = vld [vmem:[%s12289_s28 + $0x10f8] sm:$0xff]  ;;  %v912_v63 = vld [vmem:[%s12289_s28 + $0x11f0] sm:$0xff] }
 0x46d   : > { %11539 = vmatpush1.bf16.msra.mxu1 %v11538_v42  ;;  %11477 = vmatprep.subr.bf16.mxu0 %v11476_v10  ;;  %v11576_v42 = vunpack.c.l.s8.bf16 %v837_v7  ;;  %v865_v10 = vld [vmem:[%s12289_s28 + $0x1078] sm:$0xff] }
 0x46e   : > { %11541 = vmatprep.subr.bf16.mxu1 %v11540_v11  ;;  %v897_v11 = vld [vmem:[%s12289_s28 + $0x1178] sm:$0xff] }
 0x46f   : > { %v913_v7 = vld [vmem:[%s12289_s28 + $0x11f8] sm:$0xff] }
 0x470   : > { %11479 = vmatpush1.bf16.msra.mxu0 %v11478_v27  ;;  %v11580_v27 = vunpack.c.h.s8.bf16 %v865_v10 }
 0x471   : > { %11543 = vmatpush1.bf16.msra.mxu1 %v11542_v28  ;;  %11481 = vmatprep.subr.bf16.mxu0 %v11480_v51  ;;  %v11644_v28 = vunpack.c.h.s8.bf16 %v897_v11  ;;  %v864_v51 = vld [vmem:[%s12289_s28 + $0x1070] sm:$0xff] }
 0x472   : > { %11545 = vmatprep.subr.bf16.mxu1 %v11544_v52  ;;  %v896_v52 = vld [vmem:[%s12289_s28 + $0x1170] sm:$0xff]  ;;  %v11582_v2 = vunpack.c.h.s8.bf16 %v864_v51  ;;  %v11586_v12 = vunpack.c.l.s8.bf16 %v864_v51 }
 0x473   : > { %v11646_v3 = vunpack.c.h.s8.bf16 %v896_v52  ;;  %v11650_v13 = vunpack.c.l.s8.bf16 %v896_v52  ;;  %v876_v51 = vld [vmem:[%s12289_s28 + $0x10d0] sm:$0xff] }
 0x474   : > { %11483 = vmatpush1.bf16.msra.mxu0 %v11482_v0  ;;  %v11584_v0 = vunpack.c.l.s8.bf16 %v865_v10  ;;  %v877_v10 = vld [vmem:[%s12289_s28 + $0x10d8] sm:$0xff]  ;;  %v908_v52 = vld [vmem:[%s12289_s28 + $0x11d0] sm:$0xff] }
 0x475   : > { %11547 = vmatpush1.bf16.msra.mxu1 %v11546_v1  ;;  %11485 = vmatprep.subr.bf16.mxu0 %v11484_v4  ;;  %v11648_v1 = vunpack.c.l.s8.bf16 %v897_v11  ;;  %v861_v4 = vld [vmem:[%s12289_s28 + $0x1058] sm:$0xff] }
 0x476   : > { %11549 = vmatprep.subr.bf16.mxu1 %v11548_v5  ;;  %v893_v5 = vld [vmem:[%s12289_s28 + $0x1158] sm:$0xff]  ;;  %v11592_v47 = vunpack.c.l.s8.bf16 %v861_v4 }
 0x477   : > { %v11656_v48 = vunpack.c.l.s8.bf16 %v893_v5  ;;  %v909_v11 = vld [vmem:[%s12289_s28 + $0x11d8] sm:$0xff] }
 0x478   : > { %11487 = vmatpush2.bf16.msra.mxu0 %v11486_v16  ;;  %v11588_v16 = vunpack.c.h.s8.bf16 %v861_v4  ;;  %v873_v4 = vld [vmem:[%s12289_s28 + $0x10b8] sm:$0xff] }
 0x479   : > { %11551 = vmatpush2.bf16.msra.mxu1 %v11550_v17  ;;  %11489 = vmatprep.subr.bf16.mxu0 %v11488_v20  ;;  %v11652_v17 = vunpack.c.h.s8.bf16 %v893_v5  ;;  %v860_v20 = vld [vmem:[%s12289_s28 + $0x1050] sm:$0xff]  ;;  %v905_v5 = vld [vmem:[%s12289_s28 + $0x11b8] sm:$0xff] }
 0x47a   : > { %11553 = vmatprep.subr.bf16.mxu1 %v11552_v21  ;;  %v892_v21 = vld [vmem:[%s12289_s28 + $0x1150] sm:$0xff] }
 0x47c   : > { %11491 = vmatpush2.bf16.msra.mxu0 %v11490_v22  ;;  %v857_v22 = vld [vmem:[%s12289_s28 + $0x1038] sm:$0xff] }
 0x47d   : > { %11555 = vmatpush2.bf16.msra.mxu1 %v11554_v23  ;;  %11493 = vmatprep.subr.bf16.mxu0 %v11492_v29  ;;  %v889_v23 = vld [vmem:[%s12289_s28 + $0x1138] sm:$0xff]  ;;  %v11594_v29 = vunpack.c.l.s8.bf16 %v860_v20 }
 0x47e   : > { %11557 = vmatprep.subr.bf16.mxu1 %v11556_v30  ;;  %v11658_v30 = vunpack.c.l.s8.bf16 %v892_v21 }
 0x480   : > { %11495 = vmatpush2.bf16.msra.mxu0 %v11494_v60  ;;  %v11598_v60 = vunpack.c.h.s8.bf16 %v856_v31 }
 0x481   : > { %11559 = vmatpush2.bf16.msra.mxu1 %v11558_v61  ;;  %11497 = vmatprep.subr.bf16.mxu0 %v11496_v33  ;;  %v11662_v61 = vunpack.c.h.s8.bf16 %v888_v32  ;;  %v11600_v33 = vunpack.c.l.s8.bf16 %v857_v22 }
 0x482   : > { %11561 = vmatprep.subr.bf16.mxu1 %v11560_v34  ;;  %v11664_v34 = vunpack.c.l.s8.bf16 %v889_v23 }
 0x484   : > { %11499 = vmatpush2.bf16.msra.mxu0 %v11498_v36  ;;  %v11602_v36 = vunpack.c.l.s8.bf16 %v856_v31  ;;  %v868_v31 = vld [vmem:[%s12289_s28 + $0x1090] sm:$0xff] }
 0x485   : > { %11563 = vmatpush2.bf16.msra.mxu1 %v11562_v37  ;;  %11501 = vmatprep.subr.bf16.mxu0 %v11500_v54  ;;  %v11666_v37 = vunpack.c.l.s8.bf16 %v888_v32  ;;  %v11604_v54 = vunpack.c.h.s8.bf16 %v853_v45  ;;  %v900_v32 = vld [vmem:[%s12289_s28 + $0x1190] sm:$0xff] }
 0x486   : > { %11565 = vmatprep.subr.bf16.mxu1 %v11564_v55  ;;  %v11668_v55 = vunpack.c.h.s8.bf16 %v885_v53 }
 0x488   : > { %11503 = vmatpush2.bf16.msra.mxu0 %v11502_v58  ;;  %v11606_v58 = vunpack.c.h.s8.bf16 %v852_v43 }
 0x489   : > { %11567 = vmatpush2.bf16.msra.mxu1 %v11566_v59  ;;  %11505 = vmatprep.subr.bf16.mxu0 %v11504_v41  ;;  %v11670_v59 = vunpack.c.h.s8.bf16 %v884_v44  ;;  %v11608_v41 = vunpack.c.l.s8.bf16 %v853_v45 }
 0x48a   : > { %11569 = vmatprep.subr.bf16.mxu1 %v11568_v46  ;;  %v11672_v46 = vunpack.c.l.s8.bf16 %v885_v53  ;;  %v8324_v53 = vld [vmem:[%s12289_s28 + $0x1268] sm:$0xff] }
 0x48c   : > { %11507 = vmatpush2.bf16.msra.mxu0 %v11506_v38  ;;  %v11610_v38 = vunpack.c.l.s8.bf16 %v852_v43  ;;  %v11708_v43 = vunpack.c.h.s8.bf16 %v8324_v53 }
 0x48d   : > { %11571 = vmatpush2.bf16.msra.mxu1 %v11570_v39  ;;  %11509 = vmatprep.subr.bf16.mxu0 %v11508_v18  ;;  %v11674_v39 = vunpack.c.l.s8.bf16 %v884_v44  ;;  %v11612_v18 = vunpack.c.h.s8.bf16 %v881_v6 }
 0x48e   : > { %11573 = vmatprep.subr.bf16.mxu1 %v11572_v19  ;;  %v11676_v19 = vunpack.c.h.s8.bf16 %v913_v7 }
 0x490   : > { %11511 = vmatpush2.bf16.msra.mxu0 %v11510_v8  ;;  %v11614_v8 = vunpack.c.h.s8.bf16 %v880_v62 }
 0x491   : > { %11575 = vmatpush2.bf16.msra.mxu1 %v11574_v9  ;;  %11513 = vmatprep.subr.bf16.mxu0 %v11512_v40  ;;  %v11678_v9 = vunpack.c.h.s8.bf16 %v912_v63  ;;  %v11616_v40 = vunpack.c.l.s8.bf16 %v881_v6 }
 0x492   : > { %11577 = vmatprep.subr.bf16.mxu1 %v11576_v42  ;;  %v11680_v42 = vunpack.c.l.s8.bf16 %v913_v7 }
 0x494   : > { %11515 = vmatpush2.bf16.msra.mxu0 %v11514_v56  ;;  %v11618_v56 = vunpack.c.l.s8.bf16 %v880_v62 }
 0x495   : > { %11579 = vmatpush2.bf16.msra.mxu1 %v11578_v57  ;;  %11581 = vmatprep.subr.bf16.mxu0 %v11580_v27  ;;  %v11682_v57 = vunpack.c.l.s8.bf16 %v912_v63  ;;  %v11620_v27 = vunpack.c.h.s8.bf16 %v877_v10 }
 0x496   : > { %11645 = vmatprep.subr.bf16.mxu1 %v11644_v28  ;;  %v11684_v28 = vunpack.c.h.s8.bf16 %v909_v11 }
 0x497   : > { %8066 = vmatmul.mubr.f32.vlgmr.msra.gmra.mxu0 %v12683_v49  ;;  %v11590_v49 = vunpack.c.h.s8.bf16 %v860_v20  ;;  %v872_v20 = vld [vmem:[%s12289_s28 + $0x10b0] sm:$0xff] }
 0x498   : > { %8137 = vmatmul.mubr.f32.vlgmr.msra.gmra.mxu1 %v12686_v50  ;;  %11583 = vmatpush1.bf16.msra.mxu0 %v11582_v2  ;;  %v11654_v50 = vunpack.c.h.s8.bf16 %v892_v21  ;;  %v11622_v2 = vunpack.c.h.s8.bf16 %v876_v51  ;;  %v904_v21 = vld [vmem:[%s12289_s28 + $0x11b0] sm:$0xff] }
 0x499   : > { %11647 = vmatpush1.bf16.msra.mxu1 %v11646_v3  ;;  %11585 = vmatprep.subr.bf16.mxu0 %v11584_v0  ;;  %v11686_v3 = vunpack.c.h.s8.bf16 %v908_v52  ;;  %v11624_v0 = vunpack.c.l.s8.bf16 %v877_v10  ;;  %v8351_v10 = vld [vmem:[%s12289_s28 + $0x1340] sm:$0xff] }
 0x49a   : > { %11649 = vmatprep.subr.bf16.mxu1 %v11648_v1  ;;  %8207 = vmatprep.mubr.f32.mxu0 %v12745_v24  ;;  %v11596_v24 = vunpack.c.h.s8.bf16 %v857_v22  ;;  %v11688_v1 = vunpack.c.l.s8.bf16 %v909_v11  ;;  %v869_v22 = vld [vmem:[%s12289_s28 + $0x1098] sm:$0xff] }
 0x49b   : > { %8278 = vmatprep.mubr.f32.mxu1 %v12749_v25  ;;  %v11660_v25 = vunpack.c.h.s8.bf16 %v889_v23  ;;  %v901_v23 = vld [vmem:[%s12289_s28 + $0x1198] sm:$0xff] }
 0x49c   : > { %11587 = vmatpush1.bf16.msra.mxu0 %v11586_v12  ;;  %v11626_v12 = vunpack.c.l.s8.bf16 %v876_v51  ;;  %v11704_v45 = vunpack.c.l.s8.bf16 %v901_v23  ;;  %v11786_v51 = vunpack.c.l.s8.bf16 %v8351_v10 }
 0x49d   : > { %11651 = vmatpush1.bf16.msra.mxu1 %v11650_v13  ;;  %11589 = vmatprep.subr.bf16.mxu0 %v11588_v16  ;;  %v11690_v13 = vunpack.c.l.s8.bf16 %v908_v52  ;;  %v11628_v16 = vunpack.c.h.s8.bf16 %v873_v4 }
 0x49e   : > { %11653 = vmatprep.subr.bf16.mxu1 %v11652_v17  ;;  %v11692_v17 = vunpack.c.h.s8.bf16 %v905_v5 }
 0x4a0   : > { %11591 = vmatpush1.bf16.msra.mxu0 %v11590_v49  ;;  %v11630_v49 = vunpack.c.h.s8.bf16 %v872_v20 }
 0x4a1   : > { %11655 = vmatpush1.bf16.msra.mxu1 %v11654_v50  ;;  %11593 = vmatprep.subr.bf16.mxu0 %v11592_v47  ;;  %v11694_v50 = vunpack.c.h.s8.bf16 %v904_v21  ;;  %v11632_v47 = vunpack.c.l.s8.bf16 %v873_v4 }
 0x4a2   : > { %11657 = vmatprep.subr.bf16.mxu1 %v11656_v48  ;;  %v11696_v48 = vunpack.c.l.s8.bf16 %v905_v5 }
 0x4a4   : > { %11595 = vmatpush1.bf16.msra.mxu0 %v11594_v29  ;;  %v11634_v29 = vunpack.c.l.s8.bf16 %v872_v20 }
 0x4a5   : > { %11659 = vmatpush1.bf16.msra.mxu1 %v11658_v30  ;;  %11597 = vmatprep.subr.bf16.mxu0 %v11596_v24  ;;  %v11698_v30 = vunpack.c.l.s8.bf16 %v904_v21  ;;  %v11636_v24 = vunpack.c.h.s8.bf16 %v869_v22 }
 0x4a6   : > { %11661 = vmatprep.subr.bf16.mxu1 %v11660_v25  ;;  %v11700_v25 = vunpack.c.h.s8.bf16 %v901_v23 }
 0x4a8   : > { %11599 = vmatpush1.bf16.msra.mxu0 %v11598_v60  ;;  %v8887_v60 = vld [vmem:[%s13344_s1] sm:$0xff] }
 0x4a9   : > { %11663 = vmatpush1.bf16.msra.mxu1 %v11662_v61  ;;  %11601 = vmatprep.subr.bf16.mxu0 %v11600_v33  ;;  %v11638_v61 = vunpack.c.h.s8.bf16 %v868_v31  ;;  %v11702_v33 = vunpack.c.h.s8.bf16 %v900_v32 }
 0x4aa   : > { %11665 = vmatprep.subr.bf16.mxu1 %v11664_v34  ;;  %v11640_v34 = vunpack.c.l.s8.bf16 %v869_v22 }
 0x4ac   : > { %11603 = vmatpush1.bf16.msra.mxu0 %v11602_v36  ;;  %v8356_v36 = vld [vmem:[%s12289_s28 + $0x1368] sm:$0xff] }
 0x4ad   : > { %11667 = vmatpush1.bf16.msra.mxu1 %v11666_v37  ;;  %11605 = vmatprep.subr.bf16.mxu0 %v11604_v54  ;;  %v8889_v37 = vcombine.high %v8887_v60, %v8887_v60  ;;  %v11642_v54 = vunpack.c.l.s8.bf16 %v868_v31  ;;  %v11772_v44 = vunpack.c.h.s8.bf16 %v8356_v36 }
 0x4ae   : > { %11669 = vmatprep.subr.bf16.mxu1 %v11668_v55  ;;  %v11706_v55 = vunpack.c.l.s8.bf16 %v900_v32 }
 0x4b0   : > { %11607 = vmatpush1.bf16.msra.mxu0 %v11606_v58  ;;  %v8323_v58 = vld [vmem:[%s12289_s28 + $0x1260] sm:$0xff] }
 0x4b1   : > { %11671 = vmatpush1.bf16.msra.mxu1 %v11670_v59  ;;  %11609 = vmatprep.subr.bf16.mxu0 %v11608_v41  ;;  %v8355_v59 = vld [vmem:[%s12289_s28 + $0x1360] sm:$0xff]  ;;  %v13113_v41 = vrot.slane %v8887_v60, %v12316_v35  ;;  %v11710_v6 = vunpack.c.h.s8.bf16 %v8323_v58  ;;  %v11714_v63 = vunpack.c.l.s8.bf16 %v8323_v58 }
 0x4b2   : > { %11673 = vmatprep.subr.bf16.mxu1 %v11672_v46  ;;  %v13116_v46 = vrot.slane %v8889_v37, %v12316_v35  ;;  %v11774_v7 = vunpack.c.h.s8.bf16 %v8355_v59  ;;  %v8336_v37 = vld [vmem:[%s12289_s28 + $0x12c8] sm:$0xff] }
 0x4b3   : > { %v13122_v62 = vcombine.high %v13113_v41, %v13113_v41 }
 0x4b4   : > { %11611 = vmatpush1.bf16.msra.mxu0 %v11610_v38  ;;  %v11712_v38 = vunpack.c.l.s8.bf16 %v8324_v53  ;;  %v13126_v35 = vcombine.high %v13116_v46, %v13116_v46 }
 0x4b5   : > { %11675 = vmatpush1.bf16.msra.mxu1 %v11674_v39  ;;  %11613 = vmatprep.subr.bf16.mxu0 %v11612_v18  ;;  %v11776_v39 = vunpack.c.l.s8.bf16 %v8356_v36  ;;  %v8320_v18 = vld [vmem:[%s12289_s28 + $0x1248] sm:$0xff] }
 0x4b6   : > { %11677 = vmatprep.subr.bf16.mxu1 %v11676_v19  ;;  %v8352_v19 = vld [vmem:[%s12289_s28 + $0x1348] sm:$0xff]  ;;  %v11720_v11 = vunpack.c.l.s8.bf16 %v8320_v18 }
 0x4b8   : > { %11615 = vmatpush2.bf16.msra.mxu0 %v11614_v8  ;;  %v11778_v8 = vunpack.c.l.s8.bf16 %v8355_v59  ;;  %v8335_v59 = vld [vmem:[%s12289_s28 + $0x12c0] sm:$0xff] }
 0x4b9   : > { %11679 = vmatpush2.bf16.msra.mxu1 %v11678_v9  ;;  %11617 = vmatprep.subr.bf16.mxu0 %v11616_v40  ;;  %v11716_v9 = vunpack.c.h.s8.bf16 %v8320_v18  ;;  %v11780_v40 = vunpack.c.h.s8.bf16 %v8352_v19 }
 0x4ba   : > { %11681 = vmatprep.subr.bf16.mxu1 %v11680_v42  ;;  %v8319_v42 = vld [vmem:[%s12289_s28 + $0x1240] sm:$0xff] }
 0x4bc   : > { %11619 = vmatpush2.bf16.msra.mxu0 %v11618_v56  ;;  %v11784_v56 = vunpack.c.l.s8.bf16 %v8352_v19  ;;  %v8332_v19 = vld [vmem:[%s12289_s28 + $0x12a8] sm:$0xff] }
 0x4bd   : > { %11683 = vmatpush2.bf16.msra.mxu1 %v11682_v57  ;;  %11621 = vmatprep.subr.bf16.mxu0 %v11620_v27  ;;  %v8316_v57 = vld [vmem:[%s12289_s28 + $0x1228] sm:$0xff] }
 0x4be   : > { %11685 = vmatprep.subr.bf16.mxu1 %v11684_v28  ;;  %v8348_v27 = vld [vmem:[%s12289_s28 + $0x1328] sm:$0xff]  ;;  %v11722_v28 = vunpack.c.l.s8.bf16 %v8319_v42  ;;  %v11724_v52 = vunpack.c.h.s8.bf16 %v8316_v57  ;;  %v11728_v5 = vunpack.c.l.s8.bf16 %v8316_v57 }
 0x4c0   : > { %11623 = vmatpush2.bf16.msra.mxu0 %v11622_v2  ;;  %v11788_v2 = vunpack.c.h.s8.bf16 %v8348_v27 }
 0x4c1   : > { %11687 = vmatpush2.bf16.msra.mxu1 %v11686_v3  ;;  %11625 = vmatprep.subr.bf16.mxu0 %v11624_v0  ;;  %v8315_v3 = vld [vmem:[%s12289_s28 + $0x1220] sm:$0xff] }
 0x4c2   : > { %11689 = vmatprep.subr.bf16.mxu1 %v11688_v1  ;;  %v8347_v0 = vld [vmem:[%s12289_s28 + $0x1320] sm:$0xff]  ;;  %v11726_v1 = vunpack.c.h.s8.bf16 %v8315_v3 }
 0x4c3   : > { %v11790_v4 = vunpack.c.h.s8.bf16 %v8347_v0  ;;  %v11794_v20 = vunpack.c.l.s8.bf16 %v8347_v0  ;;  %v8327_v0 = vld [vmem:[%s12289_s28 + $0x1280] sm:$0xff] }
 0x4c4   : > { %11627 = vmatpush2.bf16.msra.mxu0 %v11626_v12  ;;  %v11792_v12 = vunpack.c.l.s8.bf16 %v8348_v27  ;;  %v8328_v27 = vld [vmem:[%s12289_s28 + $0x1288] sm:$0xff] }
 0x4c5   : > { %11691 = vmatpush2.bf16.msra.mxu1 %v11690_v13  ;;  %11629 = vmatprep.subr.bf16.mxu0 %v11628_v16  ;;  %v8312_v13 = vld [vmem:[%s12289_s28 + $0x1208] sm:$0xff] }
 0x4c6   : > { %11693 = vmatprep.subr.bf16.mxu1 %v11692_v17  ;;  %v8344_v16 = vld [vmem:[%s12289_s28 + $0x1308] sm:$0xff]  ;;  %v11730_v17 = vunpack.c.l.s8.bf16 %v8315_v3  ;;  %v11732_v21 = vunpack.c.h.s8.bf16 %v8312_v13  ;;  %v11736_v23 = vunpack.c.l.s8.bf16 %v8312_v13 }
 0x4c8   : > { %11631 = vmatpush2.bf16.msra.mxu0 %v11630_v49  ;;  %v11796_v49 = vunpack.c.h.s8.bf16 %v8344_v16 }
 0x4c9   : > { %11695 = vmatpush2.bf16.msra.mxu1 %v11694_v50  ;;  %11633 = vmatprep.subr.bf16.mxu0 %v11632_v47  ;;  %v8311_v50 = vld [vmem:[%s12289_s28 + $0x1200] sm:$0xff] }
 0x4ca   : > { %11697 = vmatprep.subr.bf16.mxu1 %v11696_v48  ;;  %v8343_v47 = vld [vmem:[%s12289_s28 + $0x1300] sm:$0xff]  ;;  %v11734_v48 = vunpack.c.h.s8.bf16 %v8311_v50 }
 0x4cb   : > { %v11798_v22 = vunpack.c.h.s8.bf16 %v8343_v47  ;;  %v11802_v31 = vunpack.c.l.s8.bf16 %v8343_v47  ;;  %v8325_v47 = vld [vmem:[%s12289_s28 + $0x1270] sm:$0xff] }
 0x4cc   : > { %11635 = vmatpush2.bf16.msra.mxu0 %v11634_v29  ;;  %v11800_v29 = vunpack.c.l.s8.bf16 %v8344_v16  ;;  %v8326_v16 = vld [vmem:[%s12289_s28 + $0x1278] sm:$0xff] }
 0x4cd   : > { %11699 = vmatpush2.bf16.msra.mxu1 %v11698_v30  ;;  %11637 = vmatprep.subr.bf16.mxu0 %v11636_v24  ;;  %v8340_v30 = vld [vmem:[%s12289_s28 + $0x12e8] sm:$0xff] }
 0x4ce   : > { %11701 = vmatprep.subr.bf16.mxu1 %v11700_v25  ;;  %v8372_v24 = vld [vmem:[%s12289_s28 + $0x13e8] sm:$0xff]  ;;  %v11738_v25 = vunpack.c.l.s8.bf16 %v8311_v50  ;;  %v11740_v32 = vunpack.c.h.s8.bf16 %v8340_v30  ;;  %v11744_v53 = vunpack.c.l.s8.bf16 %v8340_v30 }
 0x4cf   : > { %v11804_v60 = vunpack.c.h.s8.bf16 %v8372_v24  ;;  %v11808_v36 = vunpack.c.l.s8.bf16 %v8372_v24  ;;  %v8322_v24 = vld [vmem:[%s12289_s28 + $0x1258] sm:$0xff] }
 0x4d0   : > { %11639 = vmatpush2.bf16.msra.mxu0 %v11638_v61  ;;  %v8339_v61 = vld [vmem:[%s12289_s28 + $0x12e0] sm:$0xff] }
 0x4d1   : > { %11703 = vmatpush2.bf16.msra.mxu1 %v11702_v33  ;;  %11641 = vmatprep.subr.bf16.mxu0 %v11640_v34  ;;  %v8371_v33 = vld [vmem:[%s12289_s28 + $0x13e0] sm:$0xff]  ;;  %v11742_v34 = vunpack.c.h.s8.bf16 %v8339_v61 }
 0x4d2   : > { %11705 = vmatprep.subr.bf16.mxu1 %v11704_v45  ;;  %v11806_v45 = vunpack.c.h.s8.bf16 %v8371_v33 }
 0x4d4   : > { %11643 = vmatpush2.bf16.msra.mxu0 %v11642_v54  ;;  %v8368_v54 = vld [vmem:[%s12289_s28 + $0x13c8] sm:$0xff] }
 0x4d5   : > { %11707 = vmatpush2.bf16.msra.mxu1 %v11706_v55  ;;  %11709 = vmatprep.subr.bf16.mxu0 %v11708_v43  ;;  %v11746_v55 = vunpack.c.l.s8.bf16 %v8339_v61  ;;  %v11810_v43 = vunpack.c.l.s8.bf16 %v8371_v33  ;;  %v11812_v58 = vunpack.c.h.s8.bf16 %v8368_v54  ;;  %v11816_v18 = vunpack.c.l.s8.bf16 %v8368_v54  ;;  %v8321_v33 = vld [vmem:[%s12289_s28 + $0x1250] sm:$0xff]  ;;  %v8318_v54 = vld [vmem:[%s12289_s28 + $0x1238] sm:$0xff] }
 0x4d6   : > { %11773 = vmatprep.subr.bf16.mxu1 %v11772_v44  ;;  %v11748_v44 = vunpack.c.h.s8.bf16 %v8336_v37 }
 0x4d7   : > { %8208 = vmatmul.mubr.f32.vlgmr.msra.gmra.mxu0 %v12736_v14  ;;  %v11718_v14 = vunpack.c.h.s8.bf16 %v8319_v42 }
 0x4d8   : > { %8279 = vmatmul.mubr.f32.vlgmr.msra.gmra.mxu1 %v12739_v15  ;;  %11711 = vmatpush1.bf16.msra.mxu0 %v11710_v6  ;;  %v11782_v15 = vunpack.c.h.s8.bf16 %v8351_v10  ;;  %v8367_v6 = vld [vmem:[%s12289_s28 + $0x13c0] sm:$0xff] }
 0x4d9   : > { %11775 = vmatpush1.bf16.msra.mxu1 %v11774_v7  ;;  %11713 = vmatprep.subr.bf16.mxu0 %v11712_v38  ;;  %v11750_v7 = vunpack.c.h.s8.bf16 %v8335_v59  ;;  %v11814_v38 = vunpack.c.h.s8.bf16 %v8367_v6  ;;  %v8331_v10 = vld [vmem:[%s12289_s28 + $0x12a0] sm:$0xff] }
 0x4da   : > { %11777 = vmatprep.subr.bf16.mxu1 %v11776_v39  ;;  %8974 = vmatprep.mubr.f32.mxu0 %v13122_v62  ;;  %v11752_v39 = vunpack.c.l.s8.bf16 %v8336_v37 }
 0x4db   : > { %9045 = vmatprep.mubr.f32.mxu1 %v13126_v35 }
 0x4dc   : > { %11715 = vmatpush1.bf16.msra.mxu0 %v11714_v63  ;;  %v8364_v63 = vld [vmem:[%s12289_s28 + $0x13a8] sm:$0xff] }
 0x4dd   : > { %11779 = vmatpush1.bf16.msra.mxu1 %v11778_v8  ;;  %11717 = vmatprep.subr.bf16.mxu0 %v11716_v9  ;;  %v11754_v8 = vunpack.c.l.s8.bf16 %v8335_v59  ;;  %v11818_v9 = vunpack.c.l.s8.bf16 %v8367_v6  ;;  %v11820_v42 = vunpack.c.h.s8.bf16 %v8364_v63  ;;  %v11824_v57 = vunpack.c.l.s8.bf16 %v8364_v63  ;;  %v8349_v59 = vld [vmem:[%s12289_s28 + $0x1330] sm:$0xff] }
 0x4de   : > { %11781 = vmatprep.subr.bf16.mxu1 %v11780_v40  ;;  %v11756_v40 = vunpack.c.h.s8.bf16 %v8332_v19 }
 0x4e0   : > { %11719 = vmatpush1.bf16.msra.mxu0 %v11718_v14  ;;  %v8363_v14 = vld [vmem:[%s12289_s28 + $0x13a0] sm:$0xff] }
 0x4e1   : > { %11783 = vmatpush1.bf16.msra.mxu1 %v11782_v15  ;;  %11721 = vmatprep.subr.bf16.mxu0 %v11720_v11  ;;  %v11758_v15 = vunpack.c.h.s8.bf16 %v8331_v10  ;;  %v11822_v11 = vunpack.c.h.s8.bf16 %v8363_v14 }
 0x4e2   : > { %11785 = vmatprep.subr.bf16.mxu1 %v11784_v56  ;;  %v11760_v56 = vunpack.c.l.s8.bf16 %v8332_v19  ;;  %v8346_v19 = vld [vmem:[%s12289_s28 + $0x1318] sm:$0xff] }
 0x4e4   : > { %11723 = vmatpush1.bf16.msra.mxu0 %v11722_v28  ;;  %v8360_v28 = vld [vmem:[%s12289_s28 + $0x1388] sm:$0xff] }
 0x4e5   : > { %11787 = vmatpush1.bf16.msra.mxu1 %v11786_v51  ;;  %11725 = vmatprep.subr.bf16.mxu0 %v11724_v52  ;;  %v11762_v51 = vunpack.c.l.s8.bf16 %v8331_v10  ;;  %v11826_v52 = vunpack.c.l.s8.bf16 %v8363_v14  ;;  %v11828_v3 = vunpack.c.h.s8.bf16 %v8360_v28  ;;  %v11832_v13 = vunpack.c.l.s8.bf16 %v8360_v28  ;;  %v8345_v10 = vld [vmem:[%s12289_s28 + $0x1310] sm:$0xff] }
 0x4e6   : > { %11789 = vmatprep.subr.bf16.mxu1 %v11788_v2  ;;  %v11764_v2 = vunpack.c.h.s8.bf16 %v8328_v27 }
 0x4e8   : > { %11727 = vmatpush1.bf16.msra.mxu0 %v11726_v1  ;;  %v8359_v1 = vld [vmem:[%s12289_s28 + $0x1380] sm:$0xff] }
 0x4e9   : > { %11791 = vmatpush1.bf16.msra.mxu1 %v11790_v4  ;;  %11729 = vmatprep.subr.bf16.mxu0 %v11728_v5  ;;  %v11766_v4 = vunpack.c.h.s8.bf16 %v8327_v0  ;;  %v11830_v5 = vunpack.c.h.s8.bf16 %v8359_v1 }
 0x4ea   : > { %11793 = vmatprep.subr.bf16.mxu1 %v11792_v12  ;;  %v11768_v12 = vunpack.c.l.s8.bf16 %v8328_v27  ;;  %v8374_v27 = vld [vmem:[%s12289_s28 + $0x13f8] sm:$0xff] }
 0x4ec   : > { %11731 = vmatpush1.bf16.msra.mxu0 %v11730_v17  ;;  %v8358_v17 = vld [vmem:[%s12289_s28 + $0x1378] sm:$0xff] }
 0x4ed   : > { %11795 = vmatpush1.bf16.msra.mxu1 %v11794_v20  ;;  %11733 = vmatprep.subr.bf16.mxu0 %v11732_v21  ;;  %v11770_v20 = vunpack.c.l.s8.bf16 %v8327_v0  ;;  %v11834_v21 = vunpack.c.l.s8.bf16 %v8359_v1  ;;  %v11900_v50 = vunpack.c.h.s8.bf16 %v8358_v17  ;;  %v11904_v30 = vunpack.c.l.s8.bf16 %v8358_v17  ;;  %v8373_v0 = vld [vmem:[%s12289_s28 + $0x13f0] sm:$0xff] }
 0x4ee   : > { %11797 = vmatprep.subr.bf16.mxu1 %v11796_v49  ;;  %v11836_v49 = vunpack.c.h.s8.bf16 %v8326_v16 }
 0x4f0   : > { %11735 = vmatpush1.bf16.msra.mxu0 %v11734_v48  ;;  %v8357_v48 = vld [vmem:[%s12289_s28 + $0x1370] sm:$0xff] }
 0x4f1   : > { %11799 = vmatpush1.bf16.msra.mxu1 %v11798_v22  ;;  %11737 = vmatprep.subr.bf16.mxu0 %v11736_v23  ;;  %v11838_v22 = vunpack.c.h.s8.bf16 %v8325_v47  ;;  %v11902_v23 = vunpack.c.h.s8.bf16 %v8357_v48 }
 0x4f2   : > { %11801 = vmatprep.subr.bf16.mxu1 %v11800_v29  ;;  %v11840_v29 = vunpack.c.l.s8.bf16 %v8326_v16  ;;  %v8370_v16 = vld [vmem:[%s12289_s28 + $0x13d8] sm:$0xff] }
 0x4f4   : > { %11739 = vmatpush1.bf16.msra.mxu0 %v11738_v25  ;;  %v8354_v25 = vld [vmem:[%s12289_s28 + $0x1358] sm:$0xff] }
 0x4f5   : > { %11803 = vmatpush1.bf16.msra.mxu1 %v11802_v31  ;;  %11741 = vmatprep.subr.bf16.mxu0 %v11740_v32  ;;  %v11842_v31 = vunpack.c.l.s8.bf16 %v8325_v47  ;;  %v11906_v32 = vunpack.c.l.s8.bf16 %v8357_v48  ;;  %v11908_v61 = vunpack.c.h.s8.bf16 %v8354_v25  ;;  %v11912_v37 = vunpack.c.l.s8.bf16 %v8354_v25  ;;  %v8369_v47 = vld [vmem:[%s12289_s28 + $0x13d0] sm:$0xff] }
 0x4f6   : > { %11805 = vmatprep.subr.bf16.mxu1 %v11804_v60  ;;  %v11844_v60 = vunpack.c.h.s8.bf16 %v8322_v24 }
 0x4f8   : > { %11743 = vmatpush2.bf16.msra.mxu0 %v11742_v34  ;;  %v8353_v34 = vld [vmem:[%s12289_s28 + $0x1350] sm:$0xff] }
 0x4f9   : > { %11807 = vmatpush2.bf16.msra.mxu1 %v11806_v45  ;;  %11745 = vmatprep.subr.bf16.mxu0 %v11744_v53  ;;  %v11846_v45 = vunpack.c.h.s8.bf16 %v8321_v33  ;;  %v11910_v53 = vunpack.c.h.s8.bf16 %v8353_v34 }
 0x4fa   : > { %11809 = vmatprep.subr.bf16.mxu1 %v11808_v36  ;;  %v11848_v36 = vunpack.c.l.s8.bf16 %v8322_v24  ;;  %v8366_v24 = vld [vmem:[%s12289_s28 + $0x13b8] sm:$0xff] }
 0x4fc   : > { %11747 = vmatpush2.bf16.msra.mxu0 %v11746_v55  ;;  %v8350_v55 = vld [vmem:[%s12289_s28 + $0x1338] sm:$0xff] }
 0x4fd   : > { %11811 = vmatpush2.bf16.msra.mxu1 %v11810_v43  ;;  %11749 = vmatprep.subr.bf16.mxu0 %v11748_v44  ;;  %v11850_v43 = vunpack.c.l.s8.bf16 %v8321_v33  ;;  %v11914_v44 = vunpack.c.l.s8.bf16 %v8353_v34  ;;  %v8365_v33 = vld [vmem:[%s12289_s28 + $0x13b0] sm:$0xff] }
 0x4fe   : > { %11813 = vmatprep.subr.bf16.mxu1 %v11812_v58  ;;  %v8317_v58 = vld [vmem:[%s12289_s28 + $0x1230] sm:$0xff] }
 0x4ff   : > { %v11854_v6 = vunpack.c.h.s8.bf16 %v8317_v58  ;;  %v11858_v63 = vunpack.c.l.s8.bf16 %v8317_v58  ;;  %v8361_v58 = vld [vmem:[%s12289_s28 + $0x1390] sm:$0xff] }
 0x500   : > { %11751 = vmatpush2.bf16.msra.mxu0 %v11750_v7  ;;  %v11918_v7 = vunpack.c.h.s8.bf16 %v8349_v59 }
 0x501   : > { %11815 = vmatpush2.bf16.msra.mxu1 %v11814_v38  ;;  %11753 = vmatprep.subr.bf16.mxu0 %v11752_v39  ;;  %v11856_v38 = vunpack.c.l.s8.bf16 %v8318_v54  ;;  %v11920_v39 = vunpack.c.l.s8.bf16 %v8350_v55 }
 0x502   : > { %11817 = vmatprep.subr.bf16.mxu1 %v11816_v18  ;;  %v8314_v18 = vld [vmem:[%s12289_s28 + $0x1218] sm:$0xff] }
 0x504   : > { %11755 = vmatpush2.bf16.msra.mxu0 %v11754_v8  ;;  %v11922_v8 = vunpack.c.l.s8.bf16 %v8349_v59 }
 0x505   : > { %11819 = vmatpush2.bf16.msra.mxu1 %v11818_v9  ;;  %11757 = vmatprep.subr.bf16.mxu0 %v11756_v40  ;;  %v11860_v9 = vunpack.c.h.s8.bf16 %v8314_v18  ;;  %v11924_v40 = vunpack.c.h.s8.bf16 %v8346_v19 }
 0x506   : > { %11821 = vmatprep.subr.bf16.mxu1 %v11820_v42  ;;  %v8313_v42 = vld [vmem:[%s12289_s28 + $0x1210] sm:$0xff] }
 0x507   : > { %v11862_v14 = vunpack.c.h.s8.bf16 %v8313_v42  ;;  %v11866_v28 = vunpack.c.l.s8.bf16 %v8313_v42 }
 0x508   : > { %11759 = vmatpush2.bf16.msra.mxu0 %v11758_v15  ;;  %v11926_v15 = vunpack.c.h.s8.bf16 %v8345_v10 }
 0x509   : > { %11823 = vmatpush2.bf16.msra.mxu1 %v11822_v11  ;;  %11761 = vmatprep.subr.bf16.mxu0 %v11760_v56  ;;  %v11864_v11 = vunpack.c.l.s8.bf16 %v8314_v18  ;;  %v11928_v56 = vunpack.c.l.s8.bf16 %v8346_v19  ;;  %v11962_v18 = vunpack.c.l.s8.bf16 %v8361_v58  ;;  %v5795_v19 = vpop.f32.mrf.mxu0 }
 0x50a   : > { %11825 = vmatprep.subr.bf16.mxu1 %v11824_v57  ;;  %v8342_v57 = vld [vmem:[%s12289_s28 + $0x12f8] sm:$0xff] }
 0x50c   : > { %11763 = vmatpush2.bf16.msra.mxu0 %v11762_v51  ;;  %v11930_v51 = vunpack.c.l.s8.bf16 %v8345_v10 }
 0x50d   : > { %11827 = vmatpush2.bf16.msra.mxu1 %v11826_v52  ;;  %11765 = vmatprep.subr.bf16.mxu0 %v11764_v2  ;;  %v11868_v52 = vunpack.c.h.s8.bf16 %v8342_v57  ;;  %v11932_v2 = vunpack.c.h.s8.bf16 %v8374_v27 }
 0x50e   : > { %11829 = vmatprep.subr.bf16.mxu1 %v11828_v3  ;;  %v8341_v3 = vld [vmem:[%s12289_s28 + $0x12f0] sm:$0xff] }
 0x50f   : > { %v11870_v1 = vunpack.c.h.s8.bf16 %v8341_v3  ;;  %v11874_v17 = vunpack.c.l.s8.bf16 %v8341_v3 }
 0x510   : > { %11767 = vmatpush2.bf16.msra.mxu0 %v11766_v4  ;;  %v11934_v4 = vunpack.c.h.s8.bf16 %v8373_v0 }
 0x511   : > { %11831 = vmatpush2.bf16.msra.mxu1 %v11830_v5  ;;  %11769 = vmatprep.subr.bf16.mxu0 %v11768_v12  ;;  %v11872_v5 = vunpack.c.l.s8.bf16 %v8342_v57  ;;  %v11936_v12 = vunpack.c.l.s8.bf16 %v8374_v27 }
 0x512   : > { %11833 = vmatprep.subr.bf16.mxu1 %v11832_v13  ;;  %v8338_v13 = vld [vmem:[%s12289_s28 + $0x12d8] sm:$0xff] }
 0x514   : > { %11771 = vmatpush2.bf16.msra.mxu0 %v11770_v20  ;;  %v11938_v20 = vunpack.c.l.s8.bf16 %v8373_v0 }
 0x515   : > { %11835 = vmatpush2.bf16.msra.mxu1 %v11834_v21  ;;  %11837 = vmatprep.subr.bf16.mxu0 %v11836_v49  ;;  %v11876_v21 = vunpack.c.h.s8.bf16 %v8338_v13  ;;  %v11940_v49 = vunpack.c.h.s8.bf16 %v8370_v16 }
 0x516   : > { %11901 = vmatprep.subr.bf16.mxu1 %v11900_v50  ;;  %v8337_v50 = vld [vmem:[%s12289_s28 + $0x12d0] sm:$0xff] }
 0x517   : > { %8975 = vmatmul.mubr.f32.vlgmr.msra.gmra.mxu0 %v13113_v41  ;;  %v11878_v48 = vunpack.c.h.s8.bf16 %v8337_v50  ;;  %v11882_v25 = vunpack.c.l.s8.bf16 %v8337_v50 }
 0x518   : > { %9046 = vmatmul.mubr.f32.vlgmr.msra.gmra.mxu1 %v13116_v46  ;;  %11839 = vmatpush1.bf16.msra.mxu0 %v11838_v22  ;;  %v11942_v22 = vunpack.c.h.s8.bf16 %v8369_v47 }
 0x519   : > { %11903 = vmatpush1.bf16.msra.mxu1 %v11902_v23  ;;  %11841 = vmatprep.subr.bf16.mxu0 %v11840_v29  ;;  %v11880_v23 = vunpack.c.l.s8.bf16 %v8338_v13  ;;  %v11944_v29 = vunpack.c.l.s8.bf16 %v8370_v16 }
 0x51a   : > { %11905 = vmatprep.subr.bf16.mxu1 %v11904_v30  ;;  %9116 = vmatprep.mubr.f32.mxu0 %v13122_v62  ;;  %v11852_v62 = vunpack.c.h.s8.bf16 %v8318_v54  ;;  %v8334_v30 = vld [vmem:[%s12289_s28 + $0x12b8] sm:$0xff] }
 0x51b   : > { %9187 = vmatprep.mubr.f32.mxu1 %v13126_v35  ;;  %v11916_v35 = vunpack.c.h.s8.bf16 %v8350_v55  ;;  %v8362_v54 = vld [vmem:[%s12289_s28 + $0x1398] sm:$0xff] }
 0x51c   : > { %11843 = vmatpush1.bf16.msra.mxu0 %v11842_v31  ;;  %v11946_v31 = vunpack.c.l.s8.bf16 %v8369_v47 }
 0x51d   : > { %11907 = vmatpush1.bf16.msra.mxu1 %v11906_v32  ;;  %11845 = vmatprep.subr.bf16.mxu0 %v11844_v60  ;;  %v11884_v32 = vunpack.c.h.s8.bf16 %v8334_v30  ;;  %v11948_v60 = vunpack.c.h.s8.bf16 %v8366_v24 }
 0x51e   : > { %11909 = vmatprep.subr.bf16.mxu1 %v11908_v61  ;;  %v8333_v61 = vld [vmem:[%s12289_s28 + $0x12b0] sm:$0xff] }
 0x51f   : > { %v11886_v34 = vunpack.c.h.s8.bf16 %v8333_v61  ;;  %v11890_v55 = vunpack.c.l.s8.bf16 %v8333_v61 }
 0x520   : > { %11847 = vmatpush1.bf16.msra.mxu0 %v11846_v45  ;;  %v11950_v45 = vunpack.c.h.s8.bf16 %v8365_v33 }
 0x521   : > { %11911 = vmatpush1.bf16.msra.mxu1 %v11910_v53  ;;  %11849 = vmatprep.subr.bf16.mxu0 %v11848_v36  ;;  %v11888_v53 = vunpack.c.l.s8.bf16 %v8334_v30  ;;  %v11952_v36 = vunpack.c.l.s8.bf16 %v8366_v24 }
 0x522   : > { %11913 = vmatprep.subr.bf16.mxu1 %v11912_v37  ;;  %v8330_v37 = vld [vmem:[%s12289_s28 + $0x1298] sm:$0xff] }
 0x524   : > { %11851 = vmatpush1.bf16.msra.mxu0 %v11850_v43  ;;  %v11954_v43 = vunpack.c.l.s8.bf16 %v8365_v33 }
 0x525   : > { %11915 = vmatpush1.bf16.msra.mxu1 %v11914_v44  ;;  %11853 = vmatprep.subr.bf16.mxu0 %v11852_v62  ;;  %v11892_v44 = vunpack.c.h.s8.bf16 %v8330_v37  ;;  %v11956_v62 = vunpack.c.h.s8.bf16 %v8362_v54 }
 0x526   : > { %11917 = vmatprep.subr.bf16.mxu1 %v11916_v35  ;;  %v8329_v35 = vld [vmem:[%s12289_s28 + $0x1290] sm:$0xff]  ;;  %s9393_s28 = sshll.u32 %s13363_s25, 1 }
 0x527   : > { %v11894_v59 = vunpack.c.h.s8.bf16 %v8329_v35  ;;  %s329_s9 = scalar_lea.vmem %s13347_s4, %s9393_s28  ;;  %s337_s16 = scalar_lea.vmem %s13349_s6, %s9393_s28 }
 0x528   : > { %11855 = vmatpush1.bf16.msra.mxu0 %v11854_v6  ;;  %v11958_v6 = vunpack.c.h.s8.bf16 %v8361_v58  ;;  %s333_s24 = scalar_lea.vmem %s13348_s5, %s9393_s28 }
 0x529   : > { %11919 = vmatpush1.bf16.msra.mxu1 %v11918_v7  ;;  %11857 = vmatprep.subr.bf16.mxu0 %v11856_v38  ;;  %v11896_v7 = vunpack.c.l.s8.bf16 %v8330_v37  ;;  %v11960_v38 = vunpack.c.l.s8.bf16 %v8362_v54 }
 0x52a   : > { %11921 = vmatprep.subr.bf16.mxu1 %v11920_v39  ;;  %v11898_v39 = vunpack.c.l.s8.bf16 %v8329_v35 }
 0x52c   : > { %11859 = vmatpush1.bf16.msra.mxu0 %v11858_v63  ;;  %v5866_v63 = vpop.f32.mrf.mxu1 }
 0x52d   : > { %11923 = vmatpush1.bf16.msra.mxu1 %v11922_v8  ;;  %11861 = vmatprep.subr.bf16.mxu0 %v11860_v9  ;;  %v5797_v8 = vpop.f32.mrf.mxu0 }
 0x52e   : > { %11925 = vmatprep.subr.bf16.mxu1 %v11924_v40  ;;  %v5868_v9 = vpop.f32.mrf.mxu1 }
 0x52f   : > { %v5937_v40 = vpop.f32.mrf.mxu0 }
 0x530   : > { %11863 = vmatpush1.bf16.msra.mxu0 %v11862_v14  ;;  %v6008_v42 = vpop.f32.mrf.mxu1 }
 0x531   : > { %11927 = vmatpush1.bf16.msra.mxu1 %v11926_v15  ;;  %11865 = vmatprep.subr.bf16.mxu0 %v11864_v11  ;;  %v5939_v10 = vpop.f32.mrf.mxu0 }
 0x532   : > { %11929 = vmatprep.subr.bf16.mxu1 %v11928_v56  ;;  %v6010_v14 = vpop.f32.mrf.mxu1 }
 0x533   : > { %v6079_v15 = vpop.f32.mrf.mxu0 }
 0x534   : > { %11867 = vmatpush1.bf16.msra.mxu0 %v11866_v28  ;;  %v6150_v11 = vpop.f32.mrf.mxu1 }
 0x535   : > { %11931 = vmatpush1.bf16.msra.mxu1 %v11930_v51  ;;  %11869 = vmatprep.subr.bf16.mxu0 %v11868_v52  ;;  %v6081_v56 = vpop.f32.mrf.mxu0 }
 0x536   : > { %11933 = vmatprep.subr.bf16.mxu1 %v11932_v2  ;;  %v6152_v57 = vpop.f32.mrf.mxu1 }
 0x537   : > { %v6221_v27 = vpop.f32.mrf.mxu0 }
 0x538   : > { %11871 = vmatpush2.bf16.msra.mxu0 %v11870_v1  ;;  %v6292_v28 = vpop.f32.mrf.mxu1 }
 0x539   : > { %11935 = vmatpush2.bf16.msra.mxu1 %v11934_v4  ;;  %11873 = vmatprep.subr.bf16.mxu0 %v11872_v5  ;;  %v6223_v51 = vpop.f32.mrf.mxu0 }
 0x53a   : > { %11937 = vmatprep.subr.bf16.mxu1 %v11936_v12  ;;  %v6294_v52 = vpop.f32.mrf.mxu1 }
 0x53b   : > { %v6363_v2 = vpop.f32.mrf.mxu0 }
 0x53c   : > { %11875 = vmatpush2.bf16.msra.mxu0 %v11874_v17 }
 0x53d   : > { %11939 = vmatpush2.bf16.msra.mxu1 %v11938_v20  ;;  %11877 = vmatprep.subr.bf16.mxu0 %v11876_v21  ;;  %v6365_v3 = vpop.f32.mrf.mxu0 }
 0x53e   : > { %11941 = vmatprep.subr.bf16.mxu1 %v11940_v49 }
 0x53f   : > { %v13196_v0 = vpop.f32.mrf.mxu0 }
 0x540   : > { %11879 = vmatpush2.bf16.msra.mxu0 %v11878_v48 }
 0x541   : > { %11943 = vmatpush2.bf16.msra.mxu1 %v11942_v22  ;;  %11881 = vmatprep.subr.bf16.mxu0 %v11880_v23  ;;  %v6507_v4 = vpop.f32.mrf.mxu0 }
 0x542   : > { %11945 = vmatprep.subr.bf16.mxu1 %v11944_v29 }
 0x543   : > { %v13202_v12 = vpop.f32.mrf.mxu0 }
 0x544   : > { %11883 = vmatpush2.bf16.msra.mxu0 %v11882_v25 }
 0x545   : > { %11947 = vmatpush2.bf16.msra.mxu1 %v11946_v31  ;;  %11885 = vmatprep.subr.bf16.mxu0 %v11884_v32  ;;  %v13206_v16 = vpop.f32.mrf.mxu0 }
 0x546   : > { %11949 = vmatprep.subr.bf16.mxu1 %v11948_v60 }
 0x547   : > { %v13210_v20 = vpop.f32.mrf.mxu0 }
 0x548   : > { %11887 = vmatpush2.bf16.msra.mxu0 %v11886_v34 }
 0x549   : > { %11951 = vmatpush2.bf16.msra.mxu1 %v11950_v45  ;;  %11889 = vmatprep.subr.bf16.mxu0 %v11888_v53  ;;  %v13214_v49 = vpop.f32.mrf.mxu0  ;;  %v5869_v45 = vadd.f32 %v5868_v9, %v5797_v8  ;;  %v5867_v53 = vadd.f32 %v5866_v63, %v5795_v19 }
 0x54a   : > { %11953 = vmatprep.subr.bf16.mxu1 %v11952_v36 }
 0x54b   : > { %v13218_v47 = vpop.f32.mrf.mxu0  ;;  %v5940_v54 = vadd.f32 %v5939_v10, %v5869_v45 }
 0x54c   : > { %11891 = vmatpush2.bf16.msra.mxu0 %v11890_v55  ;;  %v5938_v55 = vadd.f32 %v5937_v40, %v5867_v53 }
 0x54d   : > { %11955 = vmatpush2.bf16.msra.mxu1 %v11954_v43  ;;  %11893 = vmatprep.subr.bf16.mxu0 %v11892_v44  ;;  %v13222_v22 = vpop.f32.mrf.mxu0 }
 0x54e   : > { %11957 = vmatprep.subr.bf16.mxu1 %v11956_v62  ;;  %v6011_v62 = vadd.f32 %v6010_v14, %v5940_v54  ;;  %v6009_v35 = vadd.f32 %v6008_v42, %v5938_v55 }
 0x54f   : > { %v7073_v29 = vpop.f32.mrf.mxu0 }
 0x550   : > { %11895 = vmatpush2.bf16.msra.mxu0 %v11894_v59 }
 0x551   : > { %11959 = vmatpush2.bf16.msra.mxu1 %v11958_v6  ;;  %11897 = vmatprep.subr.bf16.mxu0 %v11896_v7  ;;  %v7075_v24 = vpop.f32.mrf.mxu0  ;;  %v6082_v6 = vadd.f32 %v6081_v56, %v6011_v62  ;;  %v6080_v7 = vadd.f32 %v6079_v15, %v6009_v35 }
 0x552   : > { %11961 = vmatprep.subr.bf16.mxu1 %v11960_v38 }
 0x553   : > { %v7215_v31 = vpop.f32.mrf.mxu0  ;;  %v6151_v19 = vadd.f32 %v6150_v11, %v6080_v7 }
 0x554   : > { %11899 = vmatpush2.bf16.msra.mxu0 %v11898_v39 }
 0x555   : > { %11963 = vmatpush2.bf16.msra.mxu1 %v11962_v18  ;;  %v7217_v60 = vpop.f32.mrf.mxu0  ;;  %v6153_v18 = vadd.f32 %v6152_v57, %v6082_v6  ;;  %v6222_v40 = vadd.f32 %v6221_v27, %v6151_v19 }
 0x557   : > { %9117 = vmatmul.mubr.f32.vlgmr.msra.gmra.mxu0 %v13113_v41  ;;  %v6434_v41 = vpop.f32.mrf.mxu1  ;;  %v7357_v33 = vpop.f32.mrf.mxu0  ;;  %v6224_v9 = vadd.f32 %v6223_v51, %v6153_v18  ;;  %v6293_v45 = vadd.f32 %v6292_v28, %v6222_v40 }
 0x558   : > { %9188 = vmatmul.mubr.f32.vlgmr.msra.gmra.mxu1 %v13116_v46 }
 0x559   : > { %v6436_v46 = vpop.f32.mrf.mxu1  ;;  %v7359_v36 = vpop.f32.mrf.mxu0  ;;  %v6295_v14 = vadd.f32 %v6294_v52, %v6224_v9  ;;  %v6364_v54 = vadd.f32 %v6363_v2, %v6293_v45 }
 0x55b   : > { %v13198_v1 = vpop.f32.mrf.mxu1  ;;  %v7499_v43 = vpop.f32.mrf.mxu0  ;;  %v6366_v53 = vadd.f32 %v6365_v3, %v6295_v14  ;;  %v6435_v62 = vadd.f32 %v6434_v41, %v6364_v54 }
 0x55d   : > { %v13200_v5 = vpop.f32.mrf.mxu1  ;;  %v13232_v58 = vpop.f32.mrf.mxu0  ;;  %v6437_v55 = vadd.f32 %v6436_v46, %v6366_v53  ;;  %v6506_v52 = vadd.f32 %v13196_v0, %v6435_v62 }
 0x55f   : > { %v13204_v13 = vpop.f32.mrf.mxu1  ;;  %v13236_v38 = vpop.f32.mrf.mxu0  ;;  %v6508_v35 = vadd.f32 %v6507_v4, %v6437_v55  ;;  %v6577_v19 = vadd.f32 %v13198_v1, %v6506_v52  ;;  %v8285_v52 = vld [vmem:[%s12295_s10] ss:$2 sm:$0xf] }
 0x561   : > { %v13208_v17 = vpop.f32.mrf.mxu1  ;;  %v13240_v63 = vpop.f32.mrf.mxu0  ;;  %v6579_v2 = vadd.f32 %v13200_v5, %v6508_v35  ;;  %v6648_v0 = vadd.f32 %v13202_v12, %v6577_v19 }
 0x563   : > { %v13212_v21 = vpop.f32.mrf.mxu1  ;;  %v13244_v10 = vpop.f32.mrf.mxu0  ;;  %v6650_v9 = vadd.f32 %v13206_v16, %v6579_v2  ;;  %v6719_v1 = vadd.f32 %v13204_v13, %v6648_v0 }
 0x565   : > { %v13216_v50 = vpop.f32.mrf.mxu1  ;;  %v13248_v56 = vpop.f32.mrf.mxu0  ;;  %v6721_v5 = vadd.f32 %v13208_v17, %v6650_v9  ;;  %v6790_v12 = vadd.f32 %v13210_v20, %v6719_v1 }
 0x567   : > { %v13220_v48 = vpop.f32.mrf.mxu1  ;;  %v13252_v57 = vpop.f32.mrf.mxu0  ;;  %v6792_v16 = vadd.f32 %v13214_v49, %v6721_v5  ;;  %v6861_v13 = vadd.f32 %v13212_v21, %v6790_v12  ;;  %v8293_v49 = vsub.s32 1, %v12309_v26 }
 0x569   : > { %v13224_v23 = vpop.f32.mrf.mxu1  ;;  %v13256_v51 = vpop.f32.mrf.mxu0  ;;  %v6863_v17 = vadd.f32 %v13216_v50, %v6792_v16  ;;  %v6932_v35 = vadd.f32 %v13218_v47, %v6861_v13 }
 0x56b   : > { %v7144_v30 = vpop.f32.mrf.mxu1  ;;  %v13261_v28 = vpop.f32.mrf.mxu0  ;;  %v6934_v62 = vadd.f32 %v13222_v22, %v6863_v17 }
 0x56c   : > { %v7145_v7 = vadd.f32 %v7144_v30, %v7073_v29 }
 0x56d   : > { %v7146_v25 = vpop.f32.mrf.mxu1  ;;  %v13267_v46 = vpop.f32.mrf.mxu0  ;;  %v7005_v2 = vadd.f32 %v13224_v23, %v6934_v62 }
 0x56e   : > { %v7147_v3 = vadd.f32 %v7146_v25, %v7075_v24  ;;  %v7216_v18 = vadd.f32 %v7215_v31, %v7145_v7 }
 0x56f   : > { %v7286_v32 = vpop.f32.mrf.mxu1 }
 0x570   : > { %v7218_v4 = vadd.f32 %v7217_v60, %v7147_v3  ;;  %v7287_v29 = vadd.f32 %v7286_v32, %v7216_v18  ;;  %v8294_v3 = vrot.slane %v8285_v52, %v8293_v49 }
 0x571   : > { %v7288_v61 = vpop.f32.mrf.mxu1 }
 0x572   : > { %v7289_v30 = vadd.f32 %v7288_v61, %v7218_v4  ;;  %v7358_v24 = vadd.f32 %v7357_v33, %v7287_v29  ;;  %v8308_v0 = vmul.f32 %v8294_v3, %v7005_v2 }
 0x573   : > { %v13226_v34 = vpop.f32.mrf.mxu1 }
 0x574   : > { %v7360_v60 = vadd.f32 %v7359_v36, %v7289_v30  ;;  %v7429_v32 = vadd.f32 %v13226_v34, %v7358_v24  ;;  %v9396_v36 = vld [vmem:[%s12295_s10 + $0x1] ss:$2 sm:$0xf]  ;;  %v8289_v34 = vsub.s32 0, %v12309_v26 }
 0x575   : > { %v13228_v37 = vpop.f32.mrf.mxu1 }
 0x576   : > { %v7431_v61 = vadd.f32 %v13228_v37, %v7360_v60  ;;  %v7500_v33 = vadd.f32 %v7499_v43, %v7429_v32  ;;  %v9204_v43 = vrot.slane %v9396_v36, %v8293_v49  ;;  %v9200_v21 = vrot.slane %v9396_v36, %v8289_v34 }
 0x577   : > { %v13230_v44 = vpop.f32.mrf.mxu1  ;;  %v8290_v19 = vrot.slane %v8285_v52, %v8289_v34  ;;  %v9244_v34 = vld [vmem:[%s329_s9] sm:$0x3] }
 0x578   : > { %v7502_v20 = vadd.f32 %v13232_v58, %v7431_v61  ;;  %v7571_v50 = vadd.f32 %v13230_v44, %v7500_v33  ;;  %v7003_v58 = vadd.f32 %v13220_v48, %v6932_v35 }
 0x579   : > { %v13234_v59 = vpop.f32.mrf.mxu1 }
 0x57a   : > { %v7573_v22 = vadd.f32 %v13234_v59, %v7502_v20  ;;  %v7642_v18 = vadd.f32 %v13236_v38, %v7571_v50  ;;  %v8307_v29 = vmul.f32 %v8290_v19, %v7003_v58 }
 0x57b   : > { %v13238_v39 = vpop.f32.mrf.mxu1 }
 0x57c   : > { %v7644_v47 = vadd.f32 %v13240_v63, %v7573_v22  ;;  %v7713_v44 = vadd.f32 %v13238_v39, %v7642_v18 }
 0x57d   : > { %v13242_v8 = vpop.f32.mrf.mxu1 }
 0x57e   : > { %v7715_v5 = vadd.f32 %v13242_v8, %v7644_v47  ;;  %v7784_v23 = vadd.f32 %v13244_v10, %v7713_v44 }
 0x57f   : > { %v13246_v42 = vpop.f32.mrf.mxu1 }
 0x580   : > { %v7786_v59 = vadd.f32 %v13248_v56, %v7715_v5  ;;  %v7855_v38 = vadd.f32 %v13246_v42, %v7784_v23 }
 0x581   : > { %v13250_v15 = vpop.f32.mrf.mxu1 }
 0x582   : > { %v7857_v63 = vadd.f32 %v13250_v15, %v7786_v59  ;;  %v7926_v16 = vadd.f32 %v13252_v57, %v7855_v38  ;;  %v8297_v57 = vsub.s32 2, %v12309_v26 }
 0x583   : > { %v13254_v11 = vpop.f32.mrf.mxu1 }
 0x584   : > { %v7928_v60 = vadd.f32 %v13256_v51, %v7857_v63  ;;  %v7997_v39 = vadd.f32 %v13254_v11, %v7926_v16  ;;  %v8301_v51 = vsub.s32 3, %v12309_v26 }
 0x585   : > { %v13258_v27 = vpop.f32.mrf.mxu1 }
 0x586   : > { %v7999_v8 = vadd.f32 %v13258_v27, %v7928_v60  ;;  %v8068_v10 = vadd.f32 %v13261_v28, %v7997_v39  ;;  %v8298_v27 = vrot.slane %v8285_v52, %v8297_v57  ;;  %v9208_v28 = vrot.slane %v9396_v36, %v8297_v57 }
 0x587   : > { %v13263_v6 = vpop.f32.mrf.mxu1  ;;  %v8302_v17 = vrot.slane %v8285_v52, %v8301_v51 }
 0x588   : > { %v8070_v56 = vadd.f32 %v13267_v46, %v7999_v8  ;;  %v8139_v42 = vadd.f32 %v13263_v6, %v8068_v10 }
 0x589   : > { %v13269_v41 = vpop.f32.mrf.mxu1 }
 0x58a   : > { %v8141_v12 = vadd.f32 %v13269_v41, %v8070_v56 }
 0x597   : > { %v13273_v40 = vpop.f32.mrf.mxu0 }
 0x598   : > { %v13275_v14 = vpop.f32.mrf.mxu1  ;;  %v8210_v15 = vadd.f32 %v13273_v40, %v8139_v42  ;;  %v9212_v40 = vrot.slane %v9396_v36, %v8301_v51 }
 0x599   : > { %v8211_v25 = vpop.f32.mrf.mxu0 }
 0x59a   : > { %v13279_v31 = vpop.f32.mrf.mxu1  ;;  %v8281_v11 = vadd.f32 %v13275_v14, %v8210_v15 }
 0x5d7   : > { %v8976_v45 = vpop.f32.mrf.mxu0 }
 0x5d8   : > { %v9047_v53 = vpop.f32.mrf.mxu1 }
 0x5d9   : > { %v8978_v54 = vpop.f32.mrf.mxu0  ;;  %v9048_v7 = vadd.f32 %v9047_v53, %v8976_v45  ;;  %v8212_v45 = vadd.f32 %v8211_v25, %v8141_v12  ;;  %v8309_v25 = vmul.f32 %v8298_v27, %v8281_v11 }
 0x5da   : > { %v9049_v55 = vpop.f32.mrf.mxu1 }
 0x5db   : > { %v9050_v37 = vadd.f32 %v9049_v55, %v8978_v54  ;;  %v9217_v4 = vmul.f32 %v9200_v21, %v9048_v7  ;;  %v8283_v6 = vadd.f32 %v13279_v31, %v8212_v45 }
 0x5dd   : > { %v9218_v9 = vmul.f32 %v9204_v43, %v9050_v37  ;;  %v9221_v24 = vadd.f32 %v9217_v4, %v8307_v29  ;;  %v8310_v14 = vmul.f32 %v8302_v17, %v8283_v6 }
 0x5df   : > { %v9222_v30 = vadd.f32 %v9218_v9, %v8308_v0  ;;  %v9397_v1 = vmul.f32 -1.442695, %v9221_v24 }
 0x5e1   : > { %v9398_v48 = vmul.f32 -1.442695, %v9222_v30 }
 0x5e3   : > { %12024 = vpow2.f32 %v9398_v48 }
 0x5e4   : > { %12026 = vpow2.f32 %v9397_v1 }
 0x5f0   : > { %v12025_v53 = vpop.eup %12024 }
 0x5f1   : > { %v12027_v32 = vpop.eup %12026  ;;  %v9234_v41 = vadd.f32 1.0, %v12025_v53 }
 0x5f2   : > { %v9228_v13 = vadd.f32 1.0, %v12027_v32 }
 0x5f3   : > { %12028 = vrcp.f32 %v9234_v41 }
 0x5f4   : > { %12030 = vrcp.f32 %v9228_v13 }
 0x600   : > { %v12029_v36 = vpop.eup %12028 }
 0x601   : > { %v12031_v52 = vpop.eup %12030  ;;  %v9245_v37 = vmul.f32 %v12029_v36, %v9244_v34 }
 0x617   : > { %v9118_v46 = vpop.f32.mrf.mxu0 }
 0x618   : > { %v9189_v61 = vpop.f32.mrf.mxu1 }
 0x619   : > { %v9190_v33 = vadd.f32 %v9189_v61, %v9118_v46  ;;  %v9120_v54 = vpop.f32.mrf.mxu0 }
 0x61a   : > { %v9191_v26 = vpop.f32.mrf.mxu1 }
 0x61b   : > { %v9219_v55 = vmul.f32 %v9208_v28, %v9190_v33  ;;  %v9192_v62 = vadd.f32 %v9191_v26, %v9120_v54 }
 0x61d   : > { %v9223_v49 = vadd.f32 %v9219_v55, %v8309_v25  ;;  %v9220_v20 = vmul.f32 %v9212_v40, %v9192_v62 }
 0x61f   : > { %12032 = vtanh.f32 %v9223_v49  ;;  %v9224_v35 = vadd.f32 %v9220_v20, %v8310_v14 }
 0x621   : > { %v9399_v31 = vmul.f32 -1.442695, %v9224_v35 }
 0x623   : > { %12034 = vpow2.f32 %v9399_v31 }
 0x62c   : > { %v12033_v50 = vpop.eup %12032 }
 0x62d   : > { %v9246_v43 = vmul.f32 %v12033_v50, %v12031_v52 }
 0x62f   : > { %v9247_v7 = vadd.f32 %v9246_v43, %v9245_v37 }
 0x630   : > { %v12035_v21 = vpop.eup %12034 }
 0x631   : > { %9251 = vst [vmem:[%s337_s16] sm:$0x3] %v9247_v7  ;;  %v9241_v2 = vadd.f32 1.0, %v12035_v21  ;;  %12036 = vtanh.f32 %v9247_v7 }
 0x633   : > { %12038 = vrcp.f32 %v9241_v2 }
 0x63e   : > { %v12037_v3 = vpop.eup %12036 }
 0x640   : > { %v12039_v22 = vpop.eup %12038 }
 0x641   : > { %v9249_v18 = vmul.f32 %v12039_v22, %v12037_v3 }
 0x643   : > { %9250 = vst [vmem:[%s333_s24] sm:$0x3] %v9249_v18 }
 0x644 PF: > { %p20_p8 = scmp.ge.s32.totalorder %s12199_s26, 6   ;;  %s13358_s21 = smov %s12126_s22 }
 0x645   : > { %s13359_s22 = smov %s12130_s23  ;;  %s13360_s23 = smov %s12209_s29 }
 0x646   : > { %s13361_s24 = smov %s12199_s26  ;;  %22 = sbr.rel (!%p20_p8) target bundleno = 7 (0x7), region = 109 }
 0x64b   :  { %9285 = vsyncpa [#allocation3], 1 }
 0x64c   :  { %9287 = vsyncpa [#allocation3 + $0x1], 1 }
 0x64d   :  { %9288 = vsyncpa [#allocation5], 1 }
 0x64e   :  { %9290 = vsyncpa [#allocation5 + $0x1], 1 }

</bundles_post_ra>
